<compile_context>
chip_gen: v7x
topology: tpu7x:2x2x1
jax: 0.10.0
libtpu: 0.0.40
codegen_flags: <defaults>
</compile_context>

<pallas_src>
import functools

import numpy as np
import jax
import jax.numpy as jnp
from jax import lax
from jax.experimental import pallas as pl
from jax.experimental.pallas import tpu as pltpu

_PREC = lax.Precision.HIGHEST       # used only by the pure-JAX reference


# ----------------------------------------------------------------------------
# Host-side weight packing
# ----------------------------------------------------------------------------
def _toeplitz(w_hwio, width, cin_stride, kmax, nmax):
    """(3,3,Cin,Cout) conv weights -> (3, kmax, nmax) banded row-Toeplitz matrices.

    Acting on an image row stored as (width*cin_stride,) lanes, T[dy] applies all
    three horizontal taps with the left/right zero padding folded in.  Unused
    rows/cols are zero so the kernel can always contract over a uniform K = kmax."""
    _, _, cin, cout = w_hwio.shape
    w_np = np.asarray(w_hwio, np.float32)
    t = np.zeros((3, kmax, nmax), np.float32)
    for dy in range(3):
        for dx in range(3):
            for j in range(width):
                jj = j + dx - 1
                if 0 <= jj < width:
                    t[dy, jj * cin_stride:jj * cin_stride + cin,
                      j * cout:(j + 1) * cout] = w_np[dy, dx]
    return t


def _pool_cols(width, c, mg):
    """Fused horizontal MaxPool(3, s=2, p=1) selection matrix (width*c, 3*mg).

    Column group d in {0,1,2} picks the {left, centre, right} neighbour of every even
    column (out-of-range neighbours duplicate the centre, neutral for max).  Groups
    are padded to a 128-multiple stride mg so the in-kernel max uses aligned lane
    slices."""
    wh = width // 2
    s = np.zeros((width * c, 3 * mg), np.float32)
    for oj in range(wh):
        jl = max(2 * oj - 1, 0)
        for ch in range(c):
            s[jl * c + ch,            0 * mg + oj * c + ch] = 1.0
            s[2 * oj * c + ch,        1 * mg + oj * c + ch] = 1.0
            s[(2 * oj + 1) * c + ch,  2 * mg + oj * c + ch] = 1.0
    return s


def _pool_rows(h_in, batch_blk, ru, cu):
    """Vertical MaxPool row-selection matrices (3, ru, cu) in the batched padded
    layout (per-image blocks of h+2 rows).  All-zero rows land on the output halo
    rows, so the pooled slab comes out with exact zero halos for free."""
    h_out = h_in // 2
    p_in, p_out = h_in + 2, h_out + 2
    r = np.zeros((3, ru, cu), np.float32)
    for b in range(batch_blk):
        for oi in range(h_out):
            sel = (max(2 * oi - 1, 0), 2 * oi, 2 * oi + 1)
            for d in range(3):
                r[d, b * p_out + 1 + oi, b * p_in + 1 + sel[d]] = 1.0
    return r


def pack_params(params, H, W, B, input_channels, channels):
    """Pack the whole network into 4 resident kernel buffers + static metadata."""
    num_stacks = len(channels)
    cin_pad = ((input_channels + 7) // 8) * 8      # lane-friendly input channel stride

    # conv metadata in kernel execution order: per stack [lead, r1.c1, r1.c2, r2.c1, r2.c2]
    conv_list = []                                  # (w, b, width, cin_stride)
    prev_c = input_channels
    for s, cout in enumerate(channels):
        ws = W >> s
        st = params[s]
        conv_list.append((st["conv"]["w"], st["conv"]["b"], ws,
                          cin_pad if s == 0 else prev_c))
        for res in ("res1", "res2"):
            for cn in ("conv1", "conv2"):
                conv_list.append((st[res][cn]["w"], st[res][cn]["b"], ws // 2, cout))
        prev_c = cout

    kmax = max(width * stride for (_, _, width, stride) in conv_list)
    nmax = max(width * int(np.asarray(wt).shape[-1]) for (wt, _, width, _) in conv_list)
    mgs = tuple((((W >> s) // 2) * channels[s] + 127) // 128 * 128
                for s in range(num_stacks))
    cmax = max([kmax, nmax] + list(mgs))

    nc = len(conv_list)
    t_all = np.zeros((nc, 3, kmax, nmax), np.float32)
    b_all = np.zeros((nc, 1, nmax), np.float32)
    for i, (wt, bs, width, stride) in enumerate(conv_list):
        cout_i = int(np.asarray(wt).shape[-1])
        t_all[i] = _toeplitz(np.asarray(wt, np.float32), width, stride, kmax, nmax)
        b_all[i, 0, :width * cout_i] = np.tile(np.asarray(bs, np.float32), width)
    t_all = t_all.reshape(nc * 3, kmax, nmax)

    sr = max((W >> s) * channels[s] for s in range(num_stacks))
    sc = max(3 * mgs[s] for s in range(num_stacks))
    s_all = np.zeros((num_stacks, sr, sc), np.float32)
    for s in range(num_stacks):
        mat = _pool_cols(W >> s, channels[s], mgs[s])
        s_all[s, :mat.shape[0], :mat.shape[1]] = mat

    ru = max(B * ((H >> s) // 2 + 2) for s in range(num_stacks))
    cu = max(B * ((H >> s) + 2) for s in range(num_stacks))
    r_all = np.zeros((num_stacks, 3, ru, cu), np.float32)
    for s in range(num_stacks):
        r_all[s] = _pool_rows(H >> s, B, ru, cu)
    r_all = r_all.reshape(num_stacks * 3, ru, cu)

    arrays = (jnp.asarray(t_all, jnp.bfloat16),     # bf16 MXU weights: single pass
              jnp.asarray(b_all, jnp.float32),
              jnp.asarray(s_all, jnp.bfloat16),
              jnp.asarray(r_all, jnp.bfloat16))
    meta = dict(B=B, H=H, W=W, input_channels=input_channels, cin_pad=cin_pad,
                channels=tuple(int(c) for c in channels),
                kmax=kmax, nmax=nmax, cmax=cmax, mgs=mgs)
    return arrays, meta


# ----------------------------------------------------------------------------
# Fused Pallas kernel: whole ImpalaCNN forward for B images per grid step
# ----------------------------------------------------------------------------
def _impala_kernel(x_ref, t_ref, b_ref, s_ref, r_ref, o_ref, sa, sb, *,
                   B, H, W, cin_pad, channels, kmax, mgs):
    f32, bf16 = jnp.float32, jnp.bfloat16
    zrow = jnp.zeros((1, kmax), f32)

    # Zero both activation slabs once per block: guarantees finite contents everywhere
    # and exact zero halos for the first stack.
    sa[...] = jnp.zeros_like(sa)
    sb[...] = jnp.zeros_like(sb)

    # Stage the B-image block into slab A in padded per-image layout (rows 1..H).
    p0 = H + 2
    for b in range(B):
        sa[b * p0 + 1:b * p0 + 1 + H, 0:W * cin_pad] = x_ref[b]

    def conv(src, dst, res, L, P, h, n, ci, relu, zero_halo):
        """3x3 SAME conv as 3 shifted row-Toeplitz matmuls (uniform K, bf16 MXU)."""
        w0 = src[0:L - 2, 0:kmax].astype(bf16)
        w1 = src[1:L - 1, 0:kmax].astype(bf16)
        w2 = src[2:L,     0:kmax].astype(bf16)
        acc = jnp.dot(w0, t_ref[3 * ci + 0][:, 0:n], preferred_element_type=f32)
        acc = acc + jnp.dot(w1, t_ref[3 * ci + 1][:, 0:n], preferred_element_type=f32)
        acc = acc + jnp.dot(w2, t_ref[3 * ci + 2][:, 0:n], preferred_element_type=f32)
        acc = acc + b_ref[ci][:, 0:n]
        if res is not None:
            acc = acc + res[1:L - 1, 0:n]
        if relu:
            acc = jnp.maximum(acc, 0.0)
        dst[1:L - 1, 0:n] = acc
        if zero_halo:                   # restore exact zero per-image halo rows
            for b in range(B):
                dst[b * P:b * P + 1, 0:kmax] = zrow
                dst[b * P + h + 1:b * P + h + 2, 0:kmax] = zrow

    ci = 0
    h, w = H, W
    for s, cout in enumerate(channels):
        P, L = h + 2, B * (h + 2)
        n_lead = w * cout
        # ---- stack lead conv (linear): A -> B.  Only the pool reads it, and the pool
        #      row-selectors never touch halo rows, so no halo re-zeroing is needed.
        conv(sa, sb, None, L, P, h, n_lead, ci, relu=False, zero_halo=False)
        ci += 1
        # ---- MaxPool2d(3, stride 2, pad 1): B -> A, as 1 fused column-selection
        #      matmul (max over 3 aligned lane groups) + 3 row-selection matmuls.
        h2, w2 = h // 2, w // 2
        P2, L2 = h2 + 2, B * (h2 + 2)
        mg = mgs[s]
        a = sb[0:L, 0:n_lead].astype(bf16)
        hm3 = jnp.dot(a, s_ref[s][0:n_lead, 0:3 * mg], preferred_element_type=f32)
        hm = jnp.maximum(hm3[:, 0:mg],
                         jnp.maximum(hm3[:, mg:2 * mg], hm3[:, 2 * mg:3 * mg]))
        hmb = hm.astype(bf16)
        pooled = None
        for d in range(3):
            rd = jnp.dot(r_ref[3 * s + d][0:L2, 0:L], hmb, preferred_element_type=f32)
            pooled = rd if pooled is None else jnp.maximum(pooled, rd)
        sa[0:L2, 0:mg] = pooled          # new-layout halo rows come out exactly zero
        h, w, P, L = h2, w2, P2, L2
        n = w * cout
        # ---- two residual blocks (x lives in slab A throughout)
        for _ in range(2):
            conv(sa, sb, None, L, P, h, n, ci, relu=True, zero_halo=True)  # relu(conv1(x))
            ci += 1
            conv(sb, sa, sa, L, P, h, n, ci, relu=True, zero_halo=True)    # relu(conv2(.)+x)
            ci += 1

    # ---- emit the (B, Hf, Wf*Cf) output block
    pf, nf = h + 2, w * channels[-1]
    for b in range(B):
        o_ref[b] = sa[b * pf + 1:b * pf + 1 + h, 0:nf].astype(o_ref.dtype)


# ----------------------------------------------------------------------------
# Wrapper
# ----------------------------------------------------------------------------
def impala_cnn_forward(packed, meta, x_nchw):
    t_all, b_all, s_all, r_all = packed
    B, H, W = meta["B"], meta["H"], meta["W"]
    cin, cin_pad = meta["input_channels"], meta["cin_pad"]
    channels = meta["channels"]
    ns = len(channels)
    N = x_nchw.shape[0]
    assert N % B == 0, (N, B)
    Hf, Wf, Cf = H >> ns, W >> ns, channels[-1]

    x = jnp.transpose(x_nchw, (0, 2, 3, 1))                          # NHWC
    if cin_pad != cin:
        x = jnp.pad(x, ((0, 0), (0, 0), (0, 0), (0, cin_pad - cin)))
    x = x.reshape(N, H, W * cin_pad)                                 # lane-dense rows

    kernel = functools.partial(
        _impala_kernel, B=B, H=H, W=W, cin_pad=cin_pad,
        channels=channels, kmax=meta["kmax"], mgs=meta["mgs"])

    out = pl.pallas_call(
        kernel,
        out_shape=jax.ShapeDtypeStruct((N, Hf, Wf * Cf), jnp.float32),
        grid=(N // B,),
        in_specs=[
            pl.BlockSpec((B, H, W * cin_pad), lambda i: (i, 0, 0)),
            pl.BlockSpec(t_all.shape, lambda i: (0, 0, 0)),
            pl.BlockSpec(b_all.shape, lambda i: (0, 0, 0)),
            pl.BlockSpec(s_all.shape, lambda i: (0, 0, 0)),
            pl.BlockSpec(r_all.shape, lambda i: (0, 0, 0)),
        ],
        out_specs=pl.BlockSpec((B, Hf, Wf * Cf), lambda i: (i, 0, 0)),
        scratch_shapes=[
            pltpu.VMEM((B * (H + 2), meta["cmax"]), jnp.float32),    # ping-pong slabs
            pltpu.VMEM((B * (H + 2), meta["cmax"]), jnp.float32),
        ],
        compiler_params=pltpu.CompilerParams(
            dimension_semantics=("parallel",),
            vmem_limit_bytes=32 * 1024 * 1024),
    )(x, t_all, b_all, s_all, r_all)

    # torch.flatten(x, start_dim=1) on NCHW
    out = out.reshape(N, Hf, Wf, Cf)
    return jnp.transpose(out, (0, 3, 1, 2)).reshape(N, -1)


# ----------------------------------------------------------------------------
# Parameter init + pure-JAX reference (verification only)
# ----------------------------------------------------------------------------
def init_params(key, input_channels=3, channels=(16, 32, 32)):
    def conv_init(key, cin, cout):
        kw, kb = jax.random.split(key)
        scale = (2.0 / (9.0 * cin)) ** 0.5
        w = scale * jax.random.normal(kw, (3, 3, cin, cout), jnp.float32)   # HWIO
        b = 0.01 * jax.random.normal(kb, (cout,), jnp.float32)
        return {"w": w, "b": b}

    params = []
    cin = input_channels
    for cout in channels:
        key, k0, k1, k2, k3, k4 = jax.random.split(key, 6)
        params.append({
            "conv": conv_init(k0, cin, cout),
            "res1": {"conv1": conv_init(k1, cout, cout), "conv2": conv_init(k2, cout, cout)},
            "res2": {"conv1": conv_init(k3, cout, cout), "conv2": conv_init(k4, cout, cout)},
        })
        cin = cout
    return params


def _conv_ref(x, w, b, relu=False, residual=None):
    y = lax.conv_general_dilated(x, w, (1, 1), "SAME",
                                 dimension_numbers=("NHWC", "HWIO", "NHWC"),
                                 precision=_PREC)
    y = y + b
    if residual is not None:
        y = y + residual
    return jnp.maximum(y, 0.0) if relu else y


def _pool_ref(x):
    return lax.reduce_window(x, -jnp.inf, lax.max, (1, 3, 3, 1), (1, 2, 2, 1),
                             padding=((0, 0), (1, 1), (1, 1), (0, 0)))


def impala_cnn_reference(params, x_nchw):
    x = jnp.transpose(x_nchw, (0, 2, 3, 1))
    for stack in params:
        x = _conv_ref(x, stack["conv"]["w"], stack["conv"]["b"])
        x = _pool_ref(x)
        for res in (stack["res1"], stack["res2"]):
            h = _conv_ref(x, res["conv1"]["w"], res["conv1"]["b"], relu=True)
            x = _conv_ref(h, res["conv2"]["w"], res["conv2"]["b"], relu=True, residual=x)
    x = jnp.transpose(x, (0, 3, 1, 2))
    return x.reshape(x.shape[0], -1)


# ----------------------------------------------------------------------------
if __name__ == "__main__":
    key = jax.random.PRNGKey(0)
    kx, kp = jax.random.split(key)

    N, C_IN, S, B = 8, 3, 16, 4          # grid = N // B = 2 steps (keeps both v7x TCs busy)
    channels = (16, 32, 32)
    x = jax.random.normal(kx, (N, C_IN, S, S), jnp.float32)     # NCHW, like PyTorch
    params = init_params(kp, input_channels=C_IN, channels=channels)
    packed, meta = pack_params(params, S, S, B, C_IN, channels)

    fwd = jax.jit(functools.partial(impala_cnn_forward, packed, meta))
    out = jax.block_until_ready(fwd(x))

    # spatial 16 -> 8 -> 4 -> 2, final channels 32  ==> flatten dim 32*2*2 = 128
    assert out.shape == (N, channels[-1] * (S >> len(channels)) ** 2), out.shape

    ref = jax.block_until_ready(impala_cnn_reference(params, x))
    max_err = float(jnp.max(jnp.abs(out - ref)))
    scale = float(jnp.max(jnp.abs(ref)))
    # bf16 MXU operands (per the perf review) => compare at bf16-level accuracy
    assert max_err <= 5e-2 * scale + 5e-2, (max_err, scale)
    print("KERNEL_OK")
</pallas_src>

<mosaic_0001>
module attributes {stable_mosaic.version = 11 : i64} {
  func.func @_impala_kernel(%arg0: i32, %arg1: memref<4x16x128xf32, #tpu.memory_space<vmem>>, %arg2: memref<45x128x256xbf16, #tpu.memory_space<vmem>>, %arg3: memref<15x1x256xf32, #tpu.memory_space<vmem>>, %arg4: memref<3x256x384xbf16, #tpu.memory_space<vmem>>, %arg5: memref<9x40x72xbf16, #tpu.memory_space<vmem>>, %arg6: memref<4x2x64xf32, #tpu.memory_space<vmem>>, %arg7: memref<72x256xf32, #tpu.memory_space<vmem>>, %arg8: memref<72x256xf32, #tpu.memory_space<vmem>>) attributes {dimension_semantics = [#tpu.dimension_semantics<parallel>], iteration_bounds = array<i64: 2>, scalar_prefetch = 0 : i64, scratch_operands = 2 : i64, tpu.core_type = #tpu.core_type<tc>, window_params = [{transform_indices = @transform_0, window_bounds = array<i64: 4, 16, 128>}, {pipeline_mode = #tpu.pipeline_mode<synchronous>, transform_indices = @transform_1, window_bounds = array<i64: 45, 128, 256>}, {pipeline_mode = #tpu.pipeline_mode<synchronous>, transform_indices = @transform_2, window_bounds = array<i64: 15, 1, 256>}, {pipeline_mode = #tpu.pipeline_mode<synchronous>, transform_indices = @transform_3, window_bounds = array<i64: 3, 256, 384>}, {pipeline_mode = #tpu.pipeline_mode<synchronous>, transform_indices = @transform_4, window_bounds = array<i64: 9, 40, 72>}, {transform_indices = @transform_5, window_bounds = array<i64: 4, 2, 64>}]} {
    %cst = arith.constant 0.000000e+00 : f32
    %0 = vector.broadcast %cst : f32 to vector<1x128xf32>
    %cst_0 = arith.constant 0.000000e+00 : f32
    %1 = vector.broadcast %cst_0 : f32 to vector<72x256xf32>
    %c0 = arith.constant 0 : index
    %c0_1 = arith.constant 0 : index
    %2 = vector.load %arg7[%c0, %c0_1] : memref<72x256xf32, #tpu.memory_space<vmem>>, vector<72x256xf32>
    tpu.vector_store %arg7[%c0, %c0_1], %1 {strides = array<i32>} : memref<72x256xf32, #tpu.memory_space<vmem>>, vector<72x256xf32>,
    %cst_2 = arith.constant 0.000000e+00 : f32
    %3 = vector.broadcast %cst_2 : f32 to vector<72x256xf32>
    %c0_3 = arith.constant 0 : index
    %c0_4 = arith.constant 0 : index
    %4 = vector.load %arg8[%c0_3, %c0_4] : memref<72x256xf32, #tpu.memory_space<vmem>>, vector<72x256xf32>
    tpu.vector_store %arg8[%c0_3, %c0_4], %3 {strides = array<i32>} : memref<72x256xf32, #tpu.memory_space<vmem>>, vector<72x256xf32>,
    %c0_5 = arith.constant 0 : index
    %c0_6 = arith.constant 0 : index
    %c0_7 = arith.constant 0 : index
    %5 = vector.load %arg1[%c0_5, %c0_6, %c0_7] : memref<4x16x128xf32, #tpu.memory_space<vmem>>, vector<1x16x128xf32>
    %6 = vector.shape_cast %5 : vector<1x16x128xf32> to vector<16x128xf32>
    %c1 = arith.constant 1 : index
    %c0_8 = arith.constant 0 : index
    %7 = vector.load %arg7[%c1, %c0_8] : memref<72x256xf32, #tpu.memory_space<vmem>>, vector<16x128xf32>
    tpu.vector_store %arg7[%c1, %c0_8], %6 {strides = array<i32>} : memref<72x256xf32, #tpu.memory_space<vmem>>, vector<16x128xf32>,
    %c1_9 = arith.constant 1 : index
    %c0_10 = arith.constant 0 : index
    %c0_11 = arith.constant 0 : index
    %8 = vector.load %arg1[%c1_9, %c0_10, %c0_11] : memref<4x16x128xf32, #tpu.memory_space<vmem>>, vector<1x16x128xf32>
    %9 = vector.shape_cast %8 : vector<1x16x128xf32> to vector<16x128xf32>
    %c19 = arith.constant 19 : index
    %c0_12 = arith.constant 0 : index
    %10 = vector.load %arg7[%c19, %c0_12] : memref<72x256xf32, #tpu.memory_space<vmem>>, vector<16x128xf32>
    tpu.vector_store %arg7[%c19, %c0_12], %9 {strides = array<i32>} : memref<72x256xf32, #tpu.memory_space<vmem>>, vector<16x128xf32>,
    %c2 = arith.constant 2 : index
    %c0_13 = arith.constant 0 : index
    %c0_14 = arith.constant 0 : index
    %11 = vector.load %arg1[%c2, %c0_13, %c0_14] : memref<4x16x128xf32, #tpu.memory_space<vmem>>, vector<1x16x128xf32>
    %12 = vector.shape_cast %11 : vector<1x16x128xf32> to vector<16x128xf32>
    %c37 = arith.constant 37 : index
    %c0_15 = arith.constant 0 : index
    %13 = vector.load %arg7[%c37, %c0_15] : memref<72x256xf32, #tpu.memory_space<vmem>>, vector<16x128xf32>
    tpu.vector_store %arg7[%c37, %c0_15], %12 {strides = array<i32>} : memref<72x256xf32, #tpu.memory_space<vmem>>, vector<16x128xf32>,
    %c3 = arith.constant 3 : index
    %c0_16 = arith.constant 0 : index
    %c0_17 = arith.constant 0 : index
    %14 = vector.load %arg1[%c3, %c0_16, %c0_17] : memref<4x16x128xf32, #tpu.memory_space<vmem>>, vector<1x16x128xf32>
    %15 = vector.shape_cast %14 : vector<1x16x128xf32> to vector<16x128xf32>
    %c55 = arith.constant 55 : index
    %c0_18 = arith.constant 0 : index
    %16 = vector.load %arg7[%c55, %c0_18] : memref<72x256xf32, #tpu.memory_space<vmem>>, vector<16x128xf32>
    tpu.vector_store %arg7[%c55, %c0_18], %15 {strides = array<i32>} : memref<72x256xf32, #tpu.memory_space<vmem>>, vector<16x128xf32>,
    %c0_19 = arith.constant 0 : index
    %c0_20 = arith.constant 0 : index
    %17 = vector.load %arg7[%c0_19, %c0_20] : memref<72x256xf32, #tpu.memory_space<vmem>>, vector<70x128xf32>
    %18 = arith.truncf %17 : vector<70x128xf32> to vector<70x128xbf16>
    %c1_21 = arith.constant 1 : index
    %c0_22 = arith.constant 0 : index
    %19 = vector.load %arg7[%c1_21, %c0_22] : memref<72x256xf32, #tpu.memory_space<vmem>>, vector<70x128xf32>
    %20 = arith.truncf %19 : vector<70x128xf32> to vector<70x128xbf16>
    %c2_23 = arith.constant 2 : index
    %c0_24 = arith.constant 0 : index
    %21 = vector.load %arg7[%c2_23, %c0_24] : memref<72x256xf32, #tpu.memory_space<vmem>>, vector<70x128xf32>
    %22 = arith.truncf %21 : vector<70x128xf32> to vector<70x128xbf16>
    %c0_25 = arith.constant 0 : index
    %c0_26 = arith.constant 0 : index
    %c0_27 = arith.constant 0 : index
    %23 = vector.load %arg2[%c0_25, %c0_26, %c0_27] : memref<45x128x256xbf16, #tpu.memory_space<vmem>>, vector<1x128x256xbf16>
    %24 = vector.shape_cast %23 : vector<1x128x256xbf16> to vector<128x256xbf16>
    %cst_28 = arith.constant dense<0.000000e+00> : vector<70x256xf32>
    %25 = tpu.matmul %18, %24, %cst_28 {dimension_numbers = #tpu.dot_dimension_numbers<[1], [0], [0], [1], [0, 0, 1, 1], [], []>} : vector<70x128xbf16>, vector<128x256xbf16>, vector<70x256xf32> -> vector<70x256xf32>
    %c1_29 = arith.constant 1 : index
    %c0_30 = arith.constant 0 : index
    %c0_31 = arith.constant 0 : index
    %26 = vector.load %arg2[%c1_29, %c0_30, %c0_31] : memref<45x128x256xbf16, #tpu.memory_space<vmem>>, vector<1x128x256xbf16>
    %27 = vector.shape_cast %26 : vector<1x128x256xbf16> to vector<128x256xbf16>
    %cst_32 = arith.constant dense<0.000000e+00> : vector<70x256xf32>
    %28 = tpu.matmul %20, %27, %cst_32 {dimension_numbers = #tpu.dot_dimension_numbers<[1], [0], [0], [1], [0, 0, 1, 1], [], []>} : vector<70x128xbf16>, vector<128x256xbf16>, vector<70x256xf32> -> vector<70x256xf32>
    %29 = arith.addf %25, %28 : vector<70x256xf32>
    %c2_33 = arith.constant 2 : index
    %c0_34 = arith.constant 0 : index
    %c0_35 = arith.constant 0 : index
    %30 = vector.load %arg2[%c2_33, %c0_34, %c0_35] : memref<45x128x256xbf16, #tpu.memory_space<vmem>>, vector<1x128x256xbf16>
    %31 = vector.shape_cast %30 : vector<1x128x256xbf16> to vector<128x256xbf16>
    %cst_36 = arith.constant dense<0.000000e+00> : vector<70x256xf32>
    %32 = tpu.matmul %22, %31, %cst_36 {dimension_numbers = #tpu.dot_dimension_numbers<[1], [0], [0], [1], [0, 0, 1, 1], [], []>} : vector<70x128xbf16>, vector<128x256xbf16>, vector<70x256xf32> -> vector<70x256xf32>
    %33 = arith.addf %29, %32 : vector<70x256xf32>
    %c0_37 = arith.constant 0 : index
    %c0_38 = arith.constant 0 : index
    %c0_39 = arith.constant 0 : index
    %34 = vector.load %arg3[%c0_37, %c0_38, %c0_39] : memref<15x1x256xf32, #tpu.memory_space<vmem>>, vector<1x1x256xf32>
    %35 = vector.shape_cast %34 : vector<1x1x256xf32> to vector<1x256xf32>
    %36 = vector.broadcast %35 : vector<1x256xf32> to vector<70x256xf32>
    %37 = arith.addf %33, %36 : vector<70x256xf32>
    %c1_40 = arith.constant 1 : index
    %c0_41 = arith.constant 0 : index
    %38 = vector.load %arg8[%c1_40, %c0_41] : memref<72x256xf32, #tpu.memory_space<vmem>>, vector<70x256xf32>
    tpu.vector_store %arg8[%c1_40, %c0_41], %37 {strides = array<i32>} : memref<72x256xf32, #tpu.memory_space<vmem>>, vector<70x256xf32>,
    %c0_42 = arith.constant 0 : index
    %c0_43 = arith.constant 0 : index
    %39 = vector.load %arg8[%c0_42, %c0_43] : memref<72x256xf32, #tpu.memory_space<vmem>>, vector<72x256xf32>
    %40 = arith.truncf %39 : vector<72x256xf32> to vector<72x256xbf16>
    %c0_44 = arith.constant 0 : index
    %c0_45 = arith.constant 0 : index
    %c0_46 = arith.constant 0 : index
    %41 = vector.load %arg4[%c0_44, %c0_45, %c0_46] : memref<3x256x384xbf16, #tpu.memory_space<vmem>>, vector<1x256x384xbf16>
    %42 = vector.shape_cast %41 : vector<1x256x384xbf16> to vector<256x384xbf16>
    %cst_47 = arith.constant dense<0.000000e+00> : vector<72x384xf32>
    %43 = tpu.matmul %40, %42, %cst_47 {dimension_numbers = #tpu.dot_dimension_numbers<[1], [0], [0], [1], [0, 0, 1, 1], [], []>} : vector<72x256xbf16>, vector<256x384xbf16>, vector<72x384xf32> -> vector<72x384xf32>
    %44 = vector.extract_strided_slice %43 {offsets = [0, 0], sizes = [72, 128], strides = [1, 1]} : vector<72x384xf32> to vector<72x128xf32>
    %45 = vector.extract_strided_slice %43 {offsets = [0, 128], sizes = [72, 128], strides = [1, 1]} : vector<72x384xf32> to vector<72x128xf32>
    %46 = vector.extract_strided_slice %43 {offsets = [0, 256], sizes = [72, 128], strides = [1, 1]} : vector<72x384xf32> to vector<72x128xf32>
    %47 = arith.maximumf %45, %46 : vector<72x128xf32>
    %48 = arith.maximumf %44, %47 : vector<72x128xf32>
    %49 = arith.truncf %48 : vector<72x128xf32> to vector<72x128xbf16>
    %c0_48 = arith.constant 0 : index
    %c0_49 = arith.constant 0 : index
    %c0_50 = arith.constant 0 : index
    %50 = vector.load %arg5[%c0_48, %c0_49, %c0_50] : memref<9x40x72xbf16, #tpu.memory_space<vmem>>, vector<1x40x72xbf16>
    %51 = vector.shape_cast %50 : vector<1x40x72xbf16> to vector<40x72xbf16>
    %cst_51 = arith.constant dense<0.000000e+00> : vector<40x128xf32>
    %52 = tpu.matmul %51, %49, %cst_51 {dimension_numbers = #tpu.dot_dimension_numbers<[1], [0], [0], [1], [0, 0, 1, 1], [], []>} : vector<40x72xbf16>, vector<72x128xbf16>, vector<40x128xf32> -> vector<40x128xf32>
    %c1_52 = arith.constant 1 : index
    %c0_53 = arith.constant 0 : index
    %c0_54 = arith.constant 0 : index
    %53 = vector.load %arg5[%c1_52, %c0_53, %c0_54] : memref<9x40x72xbf16, #tpu.memory_space<vmem>>, vector<1x40x72xbf16>
    %54 = vector.shape_cast %53 : vector<1x40x72xbf16> to vector<40x72xbf16>
    %cst_55 = arith.constant dense<0.000000e+00> : vector<40x128xf32>
    %55 = tpu.matmul %54, %49, %cst_55 {dimension_numbers = #tpu.dot_dimension_numbers<[1], [0], [0], [1], [0, 0, 1, 1], [], []>} : vector<40x72xbf16>, vector<72x128xbf16>, vector<40x128xf32> -> vector<40x128xf32>
    %56 = arith.maximumf %52, %55 : vector<40x128xf32>
    %c2_56 = arith.constant 2 : index
    %c0_57 = arith.constant 0 : index
    %c0_58 = arith.constant 0 : index
    %57 = vector.load %arg5[%c2_56, %c0_57, %c0_58] : memref<9x40x72xbf16, #tpu.memory_space<vmem>>, vector<1x40x72xbf16>
    %58 = vector.shape_cast %57 : vector<1x40x72xbf16> to vector<40x72xbf16>
    %cst_59 = arith.constant dense<0.000000e+00> : vector<40x128xf32>
    %59 = tpu.matmul %58, %49, %cst_59 {dimension_numbers = #tpu.dot_dimension_numbers<[1], [0], [0], [1], [0, 0, 1, 1], [], []>} : vector<40x72xbf16>, vector<72x128xbf16>, vector<40x128xf32> -> vector<40x128xf32>
    %60 = arith.maximumf %56, %59 : vector<40x128xf32>
    %c0_60 = arith.constant 0 : index
    %c0_61 = arith.constant 0 : index
    %61 = vector.load %arg7[%c0_60, %c0_61] : memref<72x256xf32, #tpu.memory_space<vmem>>, vector<40x128xf32>
    tpu.vector_store %arg7[%c0_60, %c0_61], %60 {strides = array<i32>} : memref<72x256xf32, #tpu.memory_space<vmem>>, vector<40x128xf32>,
    %c0_62 = arith.constant 0 : index
    %c0_63 = arith.constant 0 : index
    %62 = vector.load %arg7[%c0_62, %c0_63] : memref<72x256xf32, #tpu.memory_space<vmem>>, vector<38x128xf32>
    %63 = arith.truncf %62 : vector<38x128xf32> to vector<38x128xbf16>
    %c1_64 = arith.constant 1 : index
    %c0_65 = arith.constant 0 : index
    %64 = vector.load %arg7[%c1_64, %c0_65] : memref<72x256xf32, #tpu.memory_space<vmem>>, vector<38x128xf32>
    %65 = arith.truncf %64 : vector<38x128xf32> to vector<38x128xbf16>
    %c2_66 = arith.constant 2 : index
    %c0_67 = arith.constant 0 : index
    %66 = vector.load %arg7[%c2_66, %c0_67] : memref<72x256xf32, #tpu.memory_space<vmem>>, vector<38x128xf32>
    %67 = arith.truncf %66 : vector<38x128xf32> to vector<38x128xbf16>
    %c3_68 = arith.constant 3 : index
    %c0_69 = arith.constant 0 : index
    %c0_70 = arith.constant 0 : index
    %68 = vector.load %arg2[%c3_68, %c0_69, %c0_70] : memref<45x128x256xbf16, #tpu.memory_space<vmem>>, vector<1x128x256xbf16>
    %69 = vector.shape_cast %68 : vector<1x128x256xbf16> to vector<128x256xbf16>
    %70 = vector.extract_strided_slice %69 {offsets = [0, 0], sizes = [128, 128], strides = [1, 1]} : vector<128x256xbf16> to vector<128x128xbf16>
    %cst_71 = arith.constant dense<0.000000e+00> : vector<38x128xf32>
    %71 = tpu.matmul %63, %70, %cst_71 {dimension_numbers = #tpu.dot_dimension_numbers<[1], [0], [0], [1], [0, 0, 1, 1], [], []>} : vector<38x128xbf16>, vector<128x128xbf16>, vector<38x128xf32> -> vector<38x128xf32>
    %c4 = arith.constant 4 : index
    %c0_72 = arith.constant 0 : index
    %c0_73 = arith.constant 0 : index
    %72 = vector.load %arg2[%c4, %c0_72, %c0_73] : memref<45x128x256xbf16, #tpu.memory_space<vmem>>, vector<1x128x256xbf16>
    %73 = vector.shape_cast %72 : vector<1x128x256xbf16> to vector<128x256xbf16>
    %74 = vector.extract_strided_slice %73 {offsets = [0, 0], sizes = [128, 128], strides = [1, 1]} : vector<128x256xbf16> to vector<128x128xbf16>
    %cst_74 = arith.constant dense<0.000000e+00> : vector<38x128xf32>
    %75 = tpu.matmul %65, %74, %cst_74 {dimension_numbers = #tpu.dot_dimension_numbers<[1], [0], [0], [1], [0, 0, 1, 1], [], []>} : vector<38x128xbf16>, vector<128x128xbf16>, vector<38x128xf32> -> vector<38x128xf32>
    %76 = arith.addf %71, %75 : vector<38x128xf32>
    %c5 = arith.constant 5 : index
    %c0_75 = arith.constant 0 : index
    %c0_76 = arith.constant 0 : index
    %77 = vector.load %arg2[%c5, %c0_75, %c0_76] : memref<45x128x256xbf16, #tpu.memory_space<vmem>>, vector<1x128x256xbf16>
    %78 = vector.shape_cast %77 : vector<1x128x256xbf16> to vector<128x256xbf16>
    %79 = vector.extract_strided_slice %78 {offsets = [0, 0], sizes = [128, 128], strides = [1, 1]} : vector<128x256xbf16> to vector<128x128xbf16>
    %cst_77 = arith.constant dense<0.000000e+00> : vector<38x128xf32>
    %80 = tpu.matmul %67, %79, %cst_77 {dimension_numbers = #tpu.dot_dimension_numbers<[1], [0], [0], [1], [0, 0, 1, 1], [], []>} : vector<38x128xbf16>, vector<128x128xbf16>, vector<38x128xf32> -> vector<38x128xf32>
    %81 = arith.addf %76, %80 : vector<38x128xf32>
    %c1_78 = arith.constant 1 : index
    %c0_79 = arith.constant 0 : index
    %c0_80 = arith.constant 0 : index
    %82 = vector.load %arg3[%c1_78, %c0_79, %c0_80] : memref<15x1x256xf32, #tpu.memory_space<vmem>>, vector<1x1x256xf32>
    %83 = vector.shape_cast %82 : vector<1x1x256xf32> to vector<1x256xf32>
    %84 = vector.extract_strided_slice %83 {offsets = [0, 0], sizes = [1, 128], strides = [1, 1]} : vector<1x256xf32> to vector<1x128xf32>
    %85 = vector.broadcast %84 : vector<1x128xf32> to vector<38x128xf32>
    %86 = arith.addf %81, %85 : vector<38x128xf32>
    %cst_81 = arith.constant 0.000000e+00 : f32
    %87 = vector.broadcast %cst_81 : f32 to vector<38x128xf32>
    %88 = arith.maximumf %86, %87 : vector<38x128xf32>
    %c1_82 = arith.constant 1 : index
    %c0_83 = arith.constant 0 : index
    %89 = vector.load %arg8[%c1_82, %c0_83] : memref<72x256xf32, #tpu.memory_space<vmem>>, vector<38x128xf32>
    tpu.vector_store %arg8[%c1_82, %c0_83], %88 {strides = array<i32>} : memref<72x256xf32, #tpu.memory_space<vmem>>, vector<38x128xf32>,
    %c0_84 = arith.constant 0 : index
    %c0_85 = arith.constant 0 : index
    %90 = vector.load %arg8[%c0_84, %c0_85] : memref<72x256xf32, #tpu.memory_space<vmem>>, vector<1x128xf32>
    tpu.vector_store %arg8[%c0_84, %c0_85], %0 {strides = array<i32>} : memref<72x256xf32, #tpu.memory_space<vmem>>, vector<1x128xf32>,
    %c9 = arith.constant 9 : index
    %c0_86 = arith.constant 0 : index
    %91 = vector.load %arg8[%c9, %c0_86] : memref<72x256xf32, #tpu.memory_space<vmem>>, vector<1x128xf32>
    tpu.vector_store %arg8[%c9, %c0_86], %0 {strides = array<i32>} : memref<72x256xf32, #tpu.memory_space<vmem>>, vector<1x128xf32>,
    %c10 = arith.constant 10 : index
    %c0_87 = arith.constant 0 : index
    %92 = vector.load %arg8[%c10, %c0_87] : memref<72x256xf32, #tpu.memory_space<vmem>>, vector<1x128xf32>
    tpu.vector_store %arg8[%c10, %c0_87], %0 {strides = array<i32>} : memref<72x256xf32, #tpu.memory_space<vmem>>, vector<1x128xf32>,
    %c19_88 = arith.constant 19 : index
    %c0_89 = arith.constant 0 : index
    %93 = vector.load %arg8[%c19_88, %c0_89] : memref<72x256xf32, #tpu.memory_space<vmem>>, vector<1x128xf32>
    tpu.vector_store %arg8[%c19_88, %c0_89], %0 {strides = array<i32>} : memref<72x256xf32, #tpu.memory_space<vmem>>, vector<1x128xf32>,
    %c20 = arith.constant 20 : index
    %c0_90 = arith.constant 0 : index
    %94 = vector.load %arg8[%c20, %c0_90] : memref<72x256xf32, #tpu.memory_space<vmem>>, vector<1x128xf32>
    tpu.vector_store %arg8[%c20, %c0_90], %0 {strides = array<i32>} : memref<72x256xf32, #tpu.memory_space<vmem>>, vector<1x128xf32>,
    %c29 = arith.constant 29 : index
    %c0_91 = arith.constant 0 : index
    %95 = vector.load %arg8[%c29, %c0_91] : memref<72x256xf32, #tpu.memory_space<vmem>>, vector<1x128xf32>
    tpu.vector_store %arg8[%c29, %c0_91], %0 {strides = array<i32>} : memref<72x256xf32, #tpu.memory_space<vmem>>, vector<1x128xf32>,
    %c30 = arith.constant 30 : index
    %c0_92 = arith.constant 0 : index
    %96 = vector.load %arg8[%c30, %c0_92] : memref<72x256xf32, #tpu.memory_space<vmem>>, vector<1x128xf32>
    tpu.vector_store %arg8[%c30, %c0_92], %0 {strides = array<i32>} : memref<72x256xf32, #tpu.memory_space<vmem>>, vector<1x128xf32>,
    %c39 = arith.constant 39 : index
    %c0_93 = arith.constant 0 : index
    %97 = vector.load %arg8[%c39, %c0_93] : memref<72x256xf32, #tpu.memory_space<vmem>>, vector<1x128xf32>
    tpu.vector_store %arg8[%c39, %c0_93], %0 {strides = array<i32>} : memref<72x256xf32, #tpu.memory_space<vmem>>, vector<1x128xf32>,
    %c0_94 = arith.constant 0 : index
    %c0_95 = arith.constant 0 : index
    %98 = vector.load %arg8[%c0_94, %c0_95] : memref<72x256xf32, #tpu.memory_space<vmem>>, vector<38x128xf32>
    %99 = arith.truncf %98 : vector<38x128xf32> to vector<38x128xbf16>
    %c1_96 = arith.constant 1 : index
    %c0_97 = arith.constant 0 : index
    %100 = vector.load %arg8[%c1_96, %c0_97] : memref<72x256xf32, #tpu.memory_space<vmem>>, vector<38x128xf32>
    %101 = arith.truncf %100 : vector<38x128xf32> to vector<38x128xbf16>
    %c2_98 = arith.constant 2 : index
    %c0_99 = arith.constant 0 : index
    %102 = vector.load %arg8[%c2_98, %c0_99] : memref<72x256xf32, #tpu.memory_space<vmem>>, vector<38x128xf32>
    %103 = arith.truncf %102 : vector<38x128xf32> to vector<38x128xbf16>
    %c6 = arith.constant 6 : index
    %c0_100 = arith.constant 0 : index
    %c0_101 = arith.constant 0 : index
    %104 = vector.load %arg2[%c6, %c0_100, %c0_101] : memref<45x128x256xbf16, #tpu.memory_space<vmem>>, vector<1x128x256xbf16>
    %105 = vector.shape_cast %104 : vector<1x128x256xbf16> to vector<128x256xbf16>
    %106 = vector.extract_strided_slice %105 {offsets = [0, 0], sizes = [128, 128], strides = [1, 1]} : vector<128x256xbf16> to vector<128x128xbf16>
    %cst_102 = arith.constant dense<0.000000e+00> : vector<38x128xf32>
    %107 = tpu.matmul %99, %106, %cst_102 {dimension_numbers = #tpu.dot_dimension_numbers<[1], [0], [0], [1], [0, 0, 1, 1], [], []>} : vector<38x128xbf16>, vector<128x128xbf16>, vector<38x128xf32> -> vector<38x128xf32>
    %c7 = arith.constant 7 : index
    %c0_103 = arith.constant 0 : index
    %c0_104 = arith.constant 0 : index
    %108 = vector.load %arg2[%c7, %c0_103, %c0_104] : memref<45x128x256xbf16, #tpu.memory_space<vmem>>, vector<1x128x256xbf16>
    %109 = vector.shape_cast %108 : vector<1x128x256xbf16> to vector<128x256xbf16>
    %110 = vector.extract_strided_slice %109 {offsets = [0, 0], sizes = [128, 128], strides = [1, 1]} : vector<128x256xbf16> to vector<128x128xbf16>
    %cst_105 = arith.constant dense<0.000000e+00> : vector<38x128xf32>
    %111 = tpu.matmul %101, %110, %cst_105 {dimension_numbers = #tpu.dot_dimension_numbers<[1], [0], [0], [1], [0, 0, 1, 1], [], []>} : vector<38x128xbf16>, vector<128x128xbf16>, vector<38x128xf32> -> vector<38x128xf32>
    %112 = arith.addf %107, %111 : vector<38x128xf32>
    %c8 = arith.constant 8 : index
    %c0_106 = arith.constant 0 : index
    %c0_107 = arith.constant 0 : index
    %113 = vector.load %arg2[%c8, %c0_106, %c0_107] : memref<45x128x256xbf16, #tpu.memory_space<vmem>>, vector<1x128x256xbf16>
    %114 = vector.shape_cast %113 : vector<1x128x256xbf16> to vector<128x256xbf16>
    %115 = vector.extract_strided_slice %114 {offsets = [0, 0], sizes = [128, 128], strides = [1, 1]} : vector<128x256xbf16> to vector<128x128xbf16>
    %cst_108 = arith.constant dense<0.000000e+00> : vector<38x128xf32>
    %116 = tpu.matmul %103, %115, %cst_108 {dimension_numbers = #tpu.dot_dimension_numbers<[1], [0], [0], [1], [0, 0, 1, 1], [], []>} : vector<38x128xbf16>, vector<128x128xbf16>, vector<38x128xf32> -> vector<38x128xf32>
    %117 = arith.addf %112, %116 : vector<38x128xf32>
    %c2_109 = arith.constant 2 : index
    %c0_110 = arith.constant 0 : index
    %c0_111 = arith.constant 0 : index
    %118 = vector.load %arg3[%c2_109, %c0_110, %c0_111] : memref<15x1x256xf32, #tpu.memory_space<vmem>>, vector<1x1x256xf32>
    %119 = vector.shape_cast %118 : vector<1x1x256xf32> to vector<1x256xf32>
    %120 = vector.extract_strided_slice %119 {offsets = [0, 0], sizes = [1, 128], strides = [1, 1]} : vector<1x256xf32> to vector<1x128xf32>
    %121 = vector.broadcast %120 : vector<1x128xf32> to vector<38x128xf32>
    %122 = arith.addf %117, %121 : vector<38x128xf32>
    %c1_112 = arith.constant 1 : index
    %c0_113 = arith.constant 0 : index
    %123 = vector.load %arg7[%c1_112, %c0_113] : memref<72x256xf32, #tpu.memory_space<vmem>>, vector<38x128xf32>
    %124 = arith.addf %122, %123 : vector<38x128xf32>
    %cst_114 = arith.constant 0.000000e+00 : f32
    %125 = vector.broadcast %cst_114 : f32 to vector<38x128xf32>
    %126 = arith.maximumf %124, %125 : vector<38x128xf32>
    %c1_115 = arith.constant 1 : index
    %c0_116 = arith.constant 0 : index
    %127 = vector.load %arg7[%c1_115, %c0_116] : memref<72x256xf32, #tpu.memory_space<vmem>>, vector<38x128xf32>
    tpu.vector_store %arg7[%c1_115, %c0_116], %126 {strides = array<i32>} : memref<72x256xf32, #tpu.memory_space<vmem>>, vector<38x128xf32>,
    %c0_117 = arith.constant 0 : index
    %c0_118 = arith.constant 0 : index
    %128 = vector.load %arg7[%c0_117, %c0_118] : memref<72x256xf32, #tpu.memory_space<vmem>>, vector<1x128xf32>
    tpu.vector_store %arg7[%c0_117, %c0_118], %0 {strides = array<i32>} : memref<72x256xf32, #tpu.memory_space<vmem>>, vector<1x128xf32>,
    %c9_119 = arith.constant 9 : index
    %c0_120 = arith.constant 0 : index
    %129 = vector.load %arg7[%c9_119, %c0_120] : memref<72x256xf32, #tpu.memory_space<vmem>>, vector<1x128xf32>
    tpu.vector_store %arg7[%c9_119, %c0_120], %0 {strides = array<i32>} : memref<72x256xf32, #tpu.memory_space<vmem>>, vector<1x128xf32>,
    %c10_121 = arith.constant 10 : index
    %c0_122 = arith.constant 0 : index
    %130 = vector.load %arg7[%c10_121, %c0_122] : memref<72x256xf32, #tpu.memory_space<vmem>>, vector<1x128xf32>
    tpu.vector_store %arg7[%c10_121, %c0_122], %0 {strides = array<i32>} : memref<72x256xf32, #tpu.memory_space<vmem>>, vector<1x128xf32>,
    %c19_123 = arith.constant 19 : index
    %c0_124 = arith.constant 0 : index
    %131 = vector.load %arg7[%c19_123, %c0_124] : memref<72x256xf32, #tpu.memory_space<vmem>>, vector<1x128xf32>
    tpu.vector_store %arg7[%c19_123, %c0_124], %0 {strides = array<i32>} : memref<72x256xf32, #tpu.memory_space<vmem>>, vector<1x128xf32>,
    %c20_125 = arith.constant 20 : index
    %c0_126 = arith.constant 0 : index
    %132 = vector.load %arg7[%c20_125, %c0_126] : memref<72x256xf32, #tpu.memory_space<vmem>>, vector<1x128xf32>
    tpu.vector_store %arg7[%c20_125, %c0_126], %0 {strides = array<i32>} : memref<72x256xf32, #tpu.memory_space<vmem>>, vector<1x128xf32>,
    %c29_127 = arith.constant 29 : index
    %c0_128 = arith.constant 0 : index
    %133 = vector.load %arg7[%c29_127, %c0_128] : memref<72x256xf32, #tpu.memory_space<vmem>>, vector<1x128xf32>
    tpu.vector_store %arg7[%c29_127, %c0_128], %0 {strides = array<i32>} : memref<72x256xf32, #tpu.memory_space<vmem>>, vector<1x128xf32>,
    %c30_129 = arith.constant 30 : index
    %c0_130 = arith.constant 0 : index
    %134 = vector.load %arg7[%c30_129, %c0_130] : memref<72x256xf32, #tpu.memory_space<vmem>>, vector<1x128xf32>
    tpu.vector_store %arg7[%c30_129, %c0_130], %0 {strides = array<i32>} : memref<72x256xf32, #tpu.memory_space<vmem>>, vector<1x128xf32>,
    %c39_131 = arith.constant 39 : index
    %c0_132 = arith.constant 0 : index
    %135 = vector.load %arg7[%c39_131, %c0_132] : memref<72x256xf32, #tpu.memory_space<vmem>>, vector<1x128xf32>
    tpu.vector_store %arg7[%c39_131, %c0_132], %0 {strides = array<i32>} : memref<72x256xf32, #tpu.memory_space<vmem>>, vector<1x128xf32>,
    %c0_133 = arith.constant 0 : index
    %c0_134 = arith.constant 0 : index
    %136 = vector.load %arg7[%c0_133, %c0_134] : memref<72x256xf32, #tpu.memory_space<vmem>>, vector<38x128xf32>
    %137 = arith.truncf %136 : vector<38x128xf32> to vector<38x128xbf16>
    %c1_135 = arith.constant 1 : index
    %c0_136 = arith.constant 0 : index
    %138 = vector.load %arg7[%c1_135, %c0_136] : memref<72x256xf32, #tpu.memory_space<vmem>>, vector<38x128xf32>
    %139 = arith.truncf %138 : vector<38x128xf32> to vector<38x128xbf16>
    %c2_137 = arith.constant 2 : index
    %c0_138 = arith.constant 0 : index
    %140 = vector.load %arg7[%c2_137, %c0_138] : memref<72x256xf32, #tpu.memory_space<vmem>>, vector<38x128xf32>
    %141 = arith.truncf %140 : vector<38x128xf32> to vector<38x128xbf16>
    %c9_139 = arith.constant 9 : index
    %c0_140 = arith.constant 0 : index
    %c0_141 = arith.constant 0 : index
    %142 = vector.load %arg2[%c9_139, %c0_140, %c0_141] : memref<45x128x256xbf16, #tpu.memory_space<vmem>>, vector<1x128x256xbf16>
    %143 = vector.shape_cast %142 : vector<1x128x256xbf16> to vector<128x256xbf16>
    %144 = vector.extract_strided_slice %143 {offsets = [0, 0], sizes = [128, 128], strides = [1, 1]} : vector<128x256xbf16> to vector<128x128xbf16>
    %cst_142 = arith.constant dense<0.000000e+00> : vector<38x128xf32>
    %145 = tpu.matmul %137, %144, %cst_142 {dimension_numbers = #tpu.dot_dimension_numbers<[1], [0], [0], [1], [0, 0, 1, 1], [], []>} : vector<38x128xbf16>, vector<128x128xbf16>, vector<38x128xf32> -> vector<38x128xf32>
    %c10_143 = arith.constant 10 : index
    %c0_144 = arith.constant 0 : index
    %c0_145 = arith.constant 0 : index
    %146 = vector.load %arg2[%c10_143, %c0_144, %c0_145] : memref<45x128x256xbf16, #tpu.memory_space<vmem>>, vector<1x128x256xbf16>
    %147 = vector.shape_cast %146 : vector<1x128x256xbf16> to vector<128x256xbf16>
    %148 = vector.extract_strided_slice %147 {offsets = [0, 0], sizes = [128, 128], strides = [1, 1]} : vector<128x256xbf16> to vector<128x128xbf16>
    %cst_146 = arith.constant dense<0.000000e+00> : vector<38x128xf32>
    %149 = tpu.matmul %139, %148, %cst_146 {dimension_numbers = #tpu.dot_dimension_numbers<[1], [0], [0], [1], [0, 0, 1, 1], [], []>} : vector<38x128xbf16>, vector<128x128xbf16>, vector<38x128xf32> -> vector<38x128xf32>
    %150 = arith.addf %145, %149 : vector<38x128xf32>
    %c11 = arith.constant 11 : index
    %c0_147 = arith.constant 0 : index
    %c0_148 = arith.constant 0 : index
    %151 = vector.load %arg2[%c11, %c0_147, %c0_148] : memref<45x128x256xbf16, #tpu.memory_space<vmem>>, vector<1x128x256xbf16>
    %152 = vector.shape_cast %151 : vector<1x128x256xbf16> to vector<128x256xbf16>
    %153 = vector.extract_strided_slice %152 {offsets = [0, 0], sizes = [128, 128], strides = [1, 1]} : vector<128x256xbf16> to vector<128x128xbf16>
    %cst_149 = arith.constant dense<0.000000e+00> : vector<38x128xf32>
    %154 = tpu.matmul %141, %153, %cst_149 {dimension_numbers = #tpu.dot_dimension_numbers<[1], [0], [0], [1], [0, 0, 1, 1], [], []>} : vector<38x128xbf16>, vector<128x128xbf16>, vector<38x128xf32> -> vector<38x128xf32>
    %155 = arith.addf %150, %154 : vector<38x128xf32>
    %c3_150 = arith.constant 3 : index
    %c0_151 = arith.constant 0 : index
    %c0_152 = arith.constant 0 : index
    %156 = vector.load %arg3[%c3_150, %c0_151, %c0_152] : memref<15x1x256xf32, #tpu.memory_space<vmem>>, vector<1x1x256xf32>
    %157 = vector.shape_cast %156 : vector<1x1x256xf32> to vector<1x256xf32>
    %158 = vector.extract_strided_slice %157 {offsets = [0, 0], sizes = [1, 128], strides = [1, 1]} : vector<1x256xf32> to vector<1x128xf32>
    %159 = vector.broadcast %158 : vector<1x128xf32> to vector<38x128xf32>
    %160 = arith.addf %155, %159 : vector<38x128xf32>
    %cst_153 = arith.constant 0.000000e+00 : f32
    %161 = vector.broadcast %cst_153 : f32 to vector<38x128xf32>
    %162 = arith.maximumf %160, %161 : vector<38x128xf32>
    %c1_154 = arith.constant 1 : index
    %c0_155 = arith.constant 0 : index
    %163 = vector.load %arg8[%c1_154, %c0_155] : memref<72x256xf32, #tpu.memory_space<vmem>>, vector<38x128xf32>
    tpu.vector_store %arg8[%c1_154, %c0_155], %162 {strides = array<i32>} : memref<72x256xf32, #tpu.memory_space<vmem>>, vector<38x128xf32>,
    %c0_156 = arith.constant 0 : index
    %c0_157 = arith.constant 0 : index
    %164 = vector.load %arg8[%c0_156, %c0_157] : memref<72x256xf32, #tpu.memory_space<vmem>>, vector<1x128xf32>
    tpu.vector_store %arg8[%c0_156, %c0_157], %0 {strides = array<i32>} : memref<72x256xf32, #tpu.memory_space<vmem>>, vector<1x128xf32>,
    %c9_158 = arith.constant 9 : index
    %c0_159 = arith.constant 0 : index
    %165 = vector.load %arg8[%c9_158, %c0_159] : memref<72x256xf32, #tpu.memory_space<vmem>>, vector<1x128xf32>
    tpu.vector_store %arg8[%c9_158, %c0_159], %0 {strides = array<i32>} : memref<72x256xf32, #tpu.memory_space<vmem>>, vector<1x128xf32>,
    %c10_160 = arith.constant 10 : index
    %c0_161 = arith.constant 0 : index
    %166 = vector.load %arg8[%c10_160, %c0_161] : memref<72x256xf32, #tpu.memory_space<vmem>>, vector<1x128xf32>
    tpu.vector_store %arg8[%c10_160, %c0_161], %0 {strides = array<i32>} : memref<72x256xf32, #tpu.memory_space<vmem>>, vector<1x128xf32>,
    %c19_162 = arith.constant 19 : index
    %c0_163 = arith.constant 0 : index
    %167 = vector.load %arg8[%c19_162, %c0_163] : memref<72x256xf32, #tpu.memory_space<vmem>>, vector<1x128xf32>
    tpu.vector_store %arg8[%c19_162, %c0_163], %0 {strides = array<i32>} : memref<72x256xf32, #tpu.memory_space<vmem>>, vector<1x128xf32>,
    %c20_164 = arith.constant 20 : index
    %c0_165 = arith.constant 0 : index
    %168 = vector.load %arg8[%c20_164, %c0_165] : memref<72x256xf32, #tpu.memory_space<vmem>>, vector<1x128xf32>
    tpu.vector_store %arg8[%c20_164, %c0_165], %0 {strides = array<i32>} : memref<72x256xf32, #tpu.memory_space<vmem>>, vector<1x128xf32>,
    %c29_166 = arith.constant 29 : index
    %c0_167 = arith.constant 0 : index
    %169 = vector.load %arg8[%c29_166, %c0_167] : memref<72x256xf32, #tpu.memory_space<vmem>>, vector<1x128xf32>
    tpu.vector_store %arg8[%c29_166, %c0_167], %0 {strides = array<i32>} : memref<72x256xf32, #tpu.memory_space<vmem>>, vector<1x128xf32>,
    %c30_168 = arith.constant 30 : index
    %c0_169 = arith.constant 0 : index
    %170 = vector.load %arg8[%c30_168, %c0_169] : memref<72x256xf32, #tpu.memory_space<vmem>>, vector<1x128xf32>
    tpu.vector_store %arg8[%c30_168, %c0_169], %0 {strides = array<i32>} : memref<72x256xf32, #tpu.memory_space<vmem>>, vector<1x128xf32>,
    %c39_170 = arith.constant 39 : index
    %c0_171 = arith.constant 0 : index
    %171 = vector.load %arg8[%c39_170, %c0_171] : memref<72x256xf32, #tpu.memory_space<vmem>>, vector<1x128xf32>
    tpu.vector_store %arg8[%c39_170, %c0_171], %0 {strides = array<i32>} : memref<72x256xf32, #tpu.memory_space<vmem>>, vector<1x128xf32>,
    %c0_172 = arith.constant 0 : index
    %c0_173 = arith.constant 0 : index
    %172 = vector.load %arg8[%c0_172, %c0_173] : memref<72x256xf32, #tpu.memory_space<vmem>>, vector<38x128xf32>
    %173 = arith.truncf %172 : vector<38x128xf32> to vector<38x128xbf16>
    %c1_174 = arith.constant 1 : index
    %c0_175 = arith.constant 0 : index
    %174 = vector.load %arg8[%c1_174, %c0_175] : memref<72x256xf32, #tpu.memory_space<vmem>>, vector<38x128xf32>
    %175 = arith.truncf %174 : vector<38x128xf32> to vector<38x128xbf16>
    %c2_176 = arith.constant 2 : index
    %c0_177 = arith.constant 0 : index
    %176 = vector.load %arg8[%c2_176, %c0_177] : memref<72x256xf32, #tpu.memory_space<vmem>>, vector<38x128xf32>
    %177 = arith.truncf %176 : vector<38x128xf32> to vector<38x128xbf16>
    %c12 = arith.constant 12 : index
    %c0_178 = arith.constant 0 : index
    %c0_179 = arith.constant 0 : index
    %178 = vector.load %arg2[%c12, %c0_178, %c0_179] : memref<45x128x256xbf16, #tpu.memory_space<vmem>>, vector<1x128x256xbf16>
    %179 = vector.shape_cast %178 : vector<1x128x256xbf16> to vector<128x256xbf16>
    %180 = vector.extract_strided_slice %179 {offsets = [0, 0], sizes = [128, 128], strides = [1, 1]} : vector<128x256xbf16> to vector<128x128xbf16>
    %cst_180 = arith.constant dense<0.000000e+00> : vector<38x128xf32>
    %181 = tpu.matmul %173, %180, %cst_180 {dimension_numbers = #tpu.dot_dimension_numbers<[1], [0], [0], [1], [0, 0, 1, 1], [], []>} : vector<38x128xbf16>, vector<128x128xbf16>, vector<38x128xf32> -> vector<38x128xf32>
    %c13 = arith.constant 13 : index
    %c0_181 = arith.constant 0 : index
    %c0_182 = arith.constant 0 : index
    %182 = vector.load %arg2[%c13, %c0_181, %c0_182] : memref<45x128x256xbf16, #tpu.memory_space<vmem>>, vector<1x128x256xbf16>
    %183 = vector.shape_cast %182 : vector<1x128x256xbf16> to vector<128x256xbf16>
    %184 = vector.extract_strided_slice %183 {offsets = [0, 0], sizes = [128, 128], strides = [1, 1]} : vector<128x256xbf16> to vector<128x128xbf16>
    %cst_183 = arith.constant dense<0.000000e+00> : vector<38x128xf32>
    %185 = tpu.matmul %175, %184, %cst_183 {dimension_numbers = #tpu.dot_dimension_numbers<[1], [0], [0], [1], [0, 0, 1, 1], [], []>} : vector<38x128xbf16>, vector<128x128xbf16>, vector<38x128xf32> -> vector<38x128xf32>
    %186 = arith.addf %181, %185 : vector<38x128xf32>
    %c14 = arith.constant 14 : index
    %c0_184 = arith.constant 0 : index
    %c0_185 = arith.constant 0 : index
    %187 = vector.load %arg2[%c14, %c0_184, %c0_185] : memref<45x128x256xbf16, #tpu.memory_space<vmem>>, vector<1x128x256xbf16>
    %188 = vector.shape_cast %187 : vector<1x128x256xbf16> to vector<128x256xbf16>
    %189 = vector.extract_strided_slice %188 {offsets = [0, 0], sizes = [128, 128], strides = [1, 1]} : vector<128x256xbf16> to vector<128x128xbf16>
    %cst_186 = arith.constant dense<0.000000e+00> : vector<38x128xf32>
    %190 = tpu.matmul %177, %189, %cst_186 {dimension_numbers = #tpu.dot_dimension_numbers<[1], [0], [0], [1], [0, 0, 1, 1], [], []>} : vector<38x128xbf16>, vector<128x128xbf16>, vector<38x128xf32> -> vector<38x128xf32>
    %191 = arith.addf %186, %190 : vector<38x128xf32>
    %c4_187 = arith.constant 4 : index
    %c0_188 = arith.constant 0 : index
    %c0_189 = arith.constant 0 : index
    %192 = vector.load %arg3[%c4_187, %c0_188, %c0_189] : memref<15x1x256xf32, #tpu.memory_space<vmem>>, vector<1x1x256xf32>
    %193 = vector.shape_cast %192 : vector<1x1x256xf32> to vector<1x256xf32>
    %194 = vector.extract_strided_slice %193 {offsets = [0, 0], sizes = [1, 128], strides = [1, 1]} : vector<1x256xf32> to vector<1x128xf32>
    %195 = vector.broadcast %194 : vector<1x128xf32> to vector<38x128xf32>
    %196 = arith.addf %191, %195 : vector<38x128xf32>
    %c1_190 = arith.constant 1 : index
    %c0_191 = arith.constant 0 : index
    %197 = vector.load %arg7[%c1_190, %c0_191] : memref<72x256xf32, #tpu.memory_space<vmem>>, vector<38x128xf32>
    %198 = arith.addf %196, %197 : vector<38x128xf32>
    %cst_192 = arith.constant 0.000000e+00 : f32
    %199 = vector.broadcast %cst_192 : f32 to vector<38x128xf32>
    %200 = arith.maximumf %198, %199 : vector<38x128xf32>
    %c1_193 = arith.constant 1 : index
    %c0_194 = arith.constant 0 : index
    %201 = vector.load %arg7[%c1_193, %c0_194] : memref<72x256xf32, #tpu.memory_space<vmem>>, vector<38x128xf32>
    tpu.vector_store %arg7[%c1_193, %c0_194], %200 {strides = array<i32>} : memref<72x256xf32, #tpu.memory_space<vmem>>, vector<38x128xf32>,
    %c0_195 = arith.constant 0 : index
    %c0_196 = arith.constant 0 : index
    %202 = vector.load %arg7[%c0_195, %c0_196] : memref<72x256xf32, #tpu.memory_space<vmem>>, vector<1x128xf32>
    tpu.vector_store %arg7[%c0_195, %c0_196], %0 {strides = array<i32>} : memref<72x256xf32, #tpu.memory_space<vmem>>, vector<1x128xf32>,
    %c9_197 = arith.constant 9 : index
    %c0_198 = arith.constant 0 : index
    %203 = vector.load %arg7[%c9_197, %c0_198] : memref<72x256xf32, #tpu.memory_space<vmem>>, vector<1x128xf32>
    tpu.vector_store %arg7[%c9_197, %c0_198], %0 {strides = array<i32>} : memref<72x256xf32, #tpu.memory_space<vmem>>, vector<1x128xf32>,
    %c10_199 = arith.constant 10 : index
    %c0_200 = arith.constant 0 : index
    %204 = vector.load %arg7[%c10_199, %c0_200] : memref<72x256xf32, #tpu.memory_space<vmem>>, vector<1x128xf32>
    tpu.vector_store %arg7[%c10_199, %c0_200], %0 {strides = array<i32>} : memref<72x256xf32, #tpu.memory_space<vmem>>, vector<1x128xf32>,
    %c19_201 = arith.constant 19 : index
    %c0_202 = arith.constant 0 : index
    %205 = vector.load %arg7[%c19_201, %c0_202] : memref<72x256xf32, #tpu.memory_space<vmem>>, vector<1x128xf32>
    tpu.vector_store %arg7[%c19_201, %c0_202], %0 {strides = array<i32>} : memref<72x256xf32, #tpu.memory_space<vmem>>, vector<1x128xf32>,
    %c20_203 = arith.constant 20 : index
    %c0_204 = arith.constant 0 : index
    %206 = vector.load %arg7[%c20_203, %c0_204] : memref<72x256xf32, #tpu.memory_space<vmem>>, vector<1x128xf32>
    tpu.vector_store %arg7[%c20_203, %c0_204], %0 {strides = array<i32>} : memref<72x256xf32, #tpu.memory_space<vmem>>, vector<1x128xf32>,
    %c29_205 = arith.constant 29 : index
    %c0_206 = arith.constant 0 : index
    %207 = vector.load %arg7[%c29_205, %c0_206] : memref<72x256xf32, #tpu.memory_space<vmem>>, vector<1x128xf32>
    tpu.vector_store %arg7[%c29_205, %c0_206], %0 {strides = array<i32>} : memref<72x256xf32, #tpu.memory_space<vmem>>, vector<1x128xf32>,
    %c30_207 = arith.constant 30 : index
    %c0_208 = arith.constant 0 : index
    %208 = vector.load %arg7[%c30_207, %c0_208] : memref<72x256xf32, #tpu.memory_space<vmem>>, vector<1x128xf32>
    tpu.vector_store %arg7[%c30_207, %c0_208], %0 {strides = array<i32>} : memref<72x256xf32, #tpu.memory_space<vmem>>, vector<1x128xf32>,
    %c39_209 = arith.constant 39 : index
    %c0_210 = arith.constant 0 : index
    %209 = vector.load %arg7[%c39_209, %c0_210] : memref<72x256xf32, #tpu.memory_space<vmem>>, vector<1x128xf32>
    tpu.vector_store %arg7[%c39_209, %c0_210], %0 {strides = array<i32>} : memref<72x256xf32, #tpu.memory_space<vmem>>, vector<1x128xf32>,
    %c0_211 = arith.constant 0 : index
    %c0_212 = arith.constant 0 : index
    %210 = vector.load %arg7[%c0_211, %c0_212] : memref<72x256xf32, #tpu.memory_space<vmem>>, vector<38x128xf32>
    %211 = arith.truncf %210 : vector<38x128xf32> to vector<38x128xbf16>
    %c1_213 = arith.constant 1 : index
    %c0_214 = arith.constant 0 : index
    %212 = vector.load %arg7[%c1_213, %c0_214] : memref<72x256xf32, #tpu.memory_space<vmem>>, vector<38x128xf32>
    %213 = arith.truncf %212 : vector<38x128xf32> to vector<38x128xbf16>
    %c2_215 = arith.constant 2 : index
    %c0_216 = arith.constant 0 : index
    %214 = vector.load %arg7[%c2_215, %c0_216] : memref<72x256xf32, #tpu.memory_space<vmem>>, vector<38x128xf32>
    %215 = arith.truncf %214 : vector<38x128xf32> to vector<38x128xbf16>
    %c15 = arith.constant 15 : index
    %c0_217 = arith.constant 0 : index
    %c0_218 = arith.constant 0 : index
    %216 = vector.load %arg2[%c15, %c0_217, %c0_218] : memref<45x128x256xbf16, #tpu.memory_space<vmem>>, vector<1x128x256xbf16>
    %217 = vector.shape_cast %216 : vector<1x128x256xbf16> to vector<128x256xbf16>
    %cst_219 = arith.constant dense<0.000000e+00> : vector<38x256xf32>
    %218 = tpu.matmul %211, %217, %cst_219 {dimension_numbers = #tpu.dot_dimension_numbers<[1], [0], [0], [1], [0, 0, 1, 1], [], []>} : vector<38x128xbf16>, vector<128x256xbf16>, vector<38x256xf32> -> vector<38x256xf32>
    %c16 = arith.constant 16 : index
    %c0_220 = arith.constant 0 : index
    %c0_221 = arith.constant 0 : index
    %219 = vector.load %arg2[%c16, %c0_220, %c0_221] : memref<45x128x256xbf16, #tpu.memory_space<vmem>>, vector<1x128x256xbf16>
    %220 = vector.shape_cast %219 : vector<1x128x256xbf16> to vector<128x256xbf16>
    %cst_222 = arith.constant dense<0.000000e+00> : vector<38x256xf32>
    %221 = tpu.matmul %213, %220, %cst_222 {dimension_numbers = #tpu.dot_dimension_numbers<[1], [0], [0], [1], [0, 0, 1, 1], [], []>} : vector<38x128xbf16>, vector<128x256xbf16>, vector<38x256xf32> -> vector<38x256xf32>
    %222 = arith.addf %218, %221 : vector<38x256xf32>
    %c17 = arith.constant 17 : index
    %c0_223 = arith.constant 0 : index
    %c0_224 = arith.constant 0 : index
    %223 = vector.load %arg2[%c17, %c0_223, %c0_224] : memref<45x128x256xbf16, #tpu.memory_space<vmem>>, vector<1x128x256xbf16>
    %224 = vector.shape_cast %223 : vector<1x128x256xbf16> to vector<128x256xbf16>
    %cst_225 = arith.constant dense<0.000000e+00> : vector<38x256xf32>
    %225 = tpu.matmul %215, %224, %cst_225 {dimension_numbers = #tpu.dot_dimension_numbers<[1], [0], [0], [1], [0, 0, 1, 1], [], []>} : vector<38x128xbf16>, vector<128x256xbf16>, vector<38x256xf32> -> vector<38x256xf32>
    %226 = arith.addf %222, %225 : vector<38x256xf32>
    %c5_226 = arith.constant 5 : index
    %c0_227 = arith.constant 0 : index
    %c0_228 = arith.constant 0 : index
    %227 = vector.load %arg3[%c5_226, %c0_227, %c0_228] : memref<15x1x256xf32, #tpu.memory_space<vmem>>, vector<1x1x256xf32>
    %228 = vector.shape_cast %227 : vector<1x1x256xf32> to vector<1x256xf32>
    %229 = vector.broadcast %228 : vector<1x256xf32> to vector<38x256xf32>
    %230 = arith.addf %226, %229 : vector<38x256xf32>
    %c1_229 = arith.constant 1 : index
    %c0_230 = arith.constant 0 : index
    %231 = vector.load %arg8[%c1_229, %c0_230] : memref<72x256xf32, #tpu.memory_space<vmem>>, vector<38x256xf32>
    tpu.vector_store %arg8[%c1_229, %c0_230], %230 {strides = array<i32>} : memref<72x256xf32, #tpu.memory_space<vmem>>, vector<38x256xf32>,
    %c0_231 = arith.constant 0 : index
    %c0_232 = arith.constant 0 : index
    %232 = vector.load %arg8[%c0_231, %c0_232] : memref<72x256xf32, #tpu.memory_space<vmem>>, vector<40x256xf32>
    %233 = arith.truncf %232 : vector<40x256xf32> to vector<40x256xbf16>
    %c1_233 = arith.constant 1 : index
    %c0_234 = arith.constant 0 : index
    %c0_235 = arith.constant 0 : index
    %234 = vector.load %arg4[%c1_233, %c0_234, %c0_235] : memref<3x256x384xbf16, #tpu.memory_space<vmem>>, vector<1x256x384xbf16>
    %235 = vector.shape_cast %234 : vector<1x256x384xbf16> to vector<256x384xbf16>
    %cst_236 = arith.constant dense<0.000000e+00> : vector<40x384xf32>
    %236 = tpu.matmul %233, %235, %cst_236 {dimension_numbers = #tpu.dot_dimension_numbers<[1], [0], [0], [1], [0, 0, 1, 1], [], []>} : vector<40x256xbf16>, vector<256x384xbf16>, vector<40x384xf32> -> vector<40x384xf32>
    %237 = vector.extract_strided_slice %236 {offsets = [0, 0], sizes = [40, 128], strides = [1, 1]} : vector<40x384xf32> to vector<40x128xf32>
    %238 = vector.extract_strided_slice %236 {offsets = [0, 128], sizes = [40, 128], strides = [1, 1]} : vector<40x384xf32> to vector<40x128xf32>
    %239 = vector.extract_strided_slice %236 {offsets = [0, 256], sizes = [40, 128], strides = [1, 1]} : vector<40x384xf32> to vector<40x128xf32>
    %240 = arith.maximumf %238, %239 : vector<40x128xf32>
    %241 = arith.maximumf %237, %240 : vector<40x128xf32>
    %242 = arith.truncf %241 : vector<40x128xf32> to vector<40x128xbf16>
    %c3_237 = arith.constant 3 : index
    %c0_238 = arith.constant 0 : index
    %c0_239 = arith.constant 0 : index
    %243 = vector.load %arg5[%c3_237, %c0_238, %c0_239] : memref<9x40x72xbf16, #tpu.memory_space<vmem>>, vector<1x40x72xbf16>
    %244 = vector.shape_cast %243 : vector<1x40x72xbf16> to vector<40x72xbf16>
    %245 = vector.extract_strided_slice %244 {offsets = [0, 0], sizes = [24, 40], strides = [1, 1]} : vector<40x72xbf16> to vector<24x40xbf16>
    %cst_240 = arith.constant dense<0.000000e+00> : vector<24x128xf32>
    %246 = tpu.matmul %245, %242, %cst_240 {dimension_numbers = #tpu.dot_dimension_numbers<[1], [0], [0], [1], [0, 0, 1, 1], [], []>} : vector<24x40xbf16>, vector<40x128xbf16>, vector<24x128xf32> -> vector<24x128xf32>
    %c4_241 = arith.constant 4 : index
    %c0_242 = arith.constant 0 : index
    %c0_243 = arith.constant 0 : index
    %247 = vector.load %arg5[%c4_241, %c0_242, %c0_243] : memref<9x40x72xbf16, #tpu.memory_space<vmem>>, vector<1x40x72xbf16>
    %248 = vector.shape_cast %247 : vector<1x40x72xbf16> to vector<40x72xbf16>
    %249 = vector.extract_strided_slice %248 {offsets = [0, 0], sizes = [24, 40], strides = [1, 1]} : vector<40x72xbf16> to vector<24x40xbf16>
    %cst_244 = arith.constant dense<0.000000e+00> : vector<24x128xf32>
    %250 = tpu.matmul %249, %242, %cst_244 {dimension_numbers = #tpu.dot_dimension_numbers<[1], [0], [0], [1], [0, 0, 1, 1], [], []>} : vector<24x40xbf16>, vector<40x128xbf16>, vector<24x128xf32> -> vector<24x128xf32>
    %251 = arith.maximumf %246, %250 : vector<24x128xf32>
    %c5_245 = arith.constant 5 : index
    %c0_246 = arith.constant 0 : index
    %c0_247 = arith.constant 0 : index
    %252 = vector.load %arg5[%c5_245, %c0_246, %c0_247] : memref<9x40x72xbf16, #tpu.memory_space<vmem>>, vector<1x40x72xbf16>
    %253 = vector.shape_cast %252 : vector<1x40x72xbf16> to vector<40x72xbf16>
    %254 = vector.extract_strided_slice %253 {offsets = [0, 0], sizes = [24, 40], strides = [1, 1]} : vector<40x72xbf16> to vector<24x40xbf16>
    %cst_248 = arith.constant dense<0.000000e+00> : vector<24x128xf32>
    %255 = tpu.matmul %254, %242, %cst_248 {dimension_numbers = #tpu.dot_dimension_numbers<[1], [0], [0], [1], [0, 0, 1, 1], [], []>} : vector<24x40xbf16>, vector<40x128xbf16>, vector<24x128xf32> -> vector<24x128xf32>
    %256 = arith.maximumf %251, %255 : vector<24x128xf32>
    %c0_249 = arith.constant 0 : index
    %c0_250 = arith.constant 0 : index
    %257 = vector.load %arg7[%c0_249, %c0_250] : memref<72x256xf32, #tpu.memory_space<vmem>>, vector<24x128xf32>
    tpu.vector_store %arg7[%c0_249, %c0_250], %256 {strides = array<i32>} : memref<72x256xf32, #tpu.memory_space<vmem>>, vector<24x128xf32>,
    %c0_251 = arith.constant 0 : index
    %c0_252 = arith.constant 0 : index
    %258 = vector.load %arg7[%c0_251, %c0_252] : memref<72x256xf32, #tpu.memory_space<vmem>>, vector<22x128xf32>
    %259 = arith.truncf %258 : vector<22x128xf32> to vector<22x128xbf16>
    %c1_253 = arith.constant 1 : index
    %c0_254 = arith.constant 0 : index
    %260 = vector.load %arg7[%c1_253, %c0_254] : memref<72x256xf32, #tpu.memory_space<vmem>>, vector<22x128xf32>
    %261 = arith.truncf %260 : vector<22x128xf32> to vector<22x128xbf16>
    %c2_255 = arith.constant 2 : index
    %c0_256 = arith.constant 0 : index
    %262 = vector.load %arg7[%c2_255, %c0_256] : memref<72x256xf32, #tpu.memory_space<vmem>>, vector<22x128xf32>
    %263 = arith.truncf %262 : vector<22x128xf32> to vector<22x128xbf16>
    %c18 = arith.constant 18 : index
    %c0_257 = arith.constant 0 : index
    %c0_258 = arith.constant 0 : index
    %264 = vector.load %arg2[%c18, %c0_257, %c0_258] : memref<45x128x256xbf16, #tpu.memory_space<vmem>>, vector<1x128x256xbf16>
    %265 = vector.shape_cast %264 : vector<1x128x256xbf16> to vector<128x256xbf16>
    %266 = vector.extract_strided_slice %265 {offsets = [0, 0], sizes = [128, 128], strides = [1, 1]} : vector<128x256xbf16> to vector<128x128xbf16>
    %cst_259 = arith.constant dense<0.000000e+00> : vector<22x128xf32>
    %267 = tpu.matmul %259, %266, %cst_259 {dimension_numbers = #tpu.dot_dimension_numbers<[1], [0], [0], [1], [0, 0, 1, 1], [], []>} : vector<22x128xbf16>, vector<128x128xbf16>, vector<22x128xf32> -> vector<22x128xf32>
    %c19_260 = arith.constant 19 : index
    %c0_261 = arith.constant 0 : index
    %c0_262 = arith.constant 0 : index
    %268 = vector.load %arg2[%c19_260, %c0_261, %c0_262] : memref<45x128x256xbf16, #tpu.memory_space<vmem>>, vector<1x128x256xbf16>
    %269 = vector.shape_cast %268 : vector<1x128x256xbf16> to vector<128x256xbf16>
    %270 = vector.extract_strided_slice %269 {offsets = [0, 0], sizes = [128, 128], strides = [1, 1]} : vector<128x256xbf16> to vector<128x128xbf16>
    %cst_263 = arith.constant dense<0.000000e+00> : vector<22x128xf32>
    %271 = tpu.matmul %261, %270, %cst_263 {dimension_numbers = #tpu.dot_dimension_numbers<[1], [0], [0], [1], [0, 0, 1, 1], [], []>} : vector<22x128xbf16>, vector<128x128xbf16>, vector<22x128xf32> -> vector<22x128xf32>
    %272 = arith.addf %267, %271 : vector<22x128xf32>
    %c20_264 = arith.constant 20 : index
    %c0_265 = arith.constant 0 : index
    %c0_266 = arith.constant 0 : index
    %273 = vector.load %arg2[%c20_264, %c0_265, %c0_266] : memref<45x128x256xbf16, #tpu.memory_space<vmem>>, vector<1x128x256xbf16>
    %274 = vector.shape_cast %273 : vector<1x128x256xbf16> to vector<128x256xbf16>
    %275 = vector.extract_strided_slice %274 {offsets = [0, 0], sizes = [128, 128], strides = [1, 1]} : vector<128x256xbf16> to vector<128x128xbf16>
    %cst_267 = arith.constant dense<0.000000e+00> : vector<22x128xf32>
    %276 = tpu.matmul %263, %275, %cst_267 {dimension_numbers = #tpu.dot_dimension_numbers<[1], [0], [0], [1], [0, 0, 1, 1], [], []>} : vector<22x128xbf16>, vector<128x128xbf16>, vector<22x128xf32> -> vector<22x128xf32>
    %277 = arith.addf %272, %276 : vector<22x128xf32>
    %c6_268 = arith.constant 6 : index
    %c0_269 = arith.constant 0 : index
    %c0_270 = arith.constant 0 : index
    %278 = vector.load %arg3[%c6_268, %c0_269, %c0_270] : memref<15x1x256xf32, #tpu.memory_space<vmem>>, vector<1x1x256xf32>
    %279 = vector.shape_cast %278 : vector<1x1x256xf32> to vector<1x256xf32>
    %280 = vector.extract_strided_slice %279 {offsets = [0, 0], sizes = [1, 128], strides = [1, 1]} : vector<1x256xf32> to vector<1x128xf32>
    %281 = vector.broadcast %280 : vector<1x128xf32> to vector<22x128xf32>
    %282 = arith.addf %277, %281 : vector<22x128xf32>
    %cst_271 = arith.constant 0.000000e+00 : f32
    %283 = vector.broadcast %cst_271 : f32 to vector<22x128xf32>
    %284 = arith.maximumf %282, %283 : vector<22x128xf32>
    %c1_272 = arith.constant 1 : index
    %c0_273 = arith.constant 0 : index
    %285 = vector.load %arg8[%c1_272, %c0_273] : memref<72x256xf32, #tpu.memory_space<vmem>>, vector<22x128xf32>
    tpu.vector_store %arg8[%c1_272, %c0_273], %284 {strides = array<i32>} : memref<72x256xf32, #tpu.memory_space<vmem>>, vector<22x128xf32>,
    %c0_274 = arith.constant 0 : index
    %c0_275 = arith.constant 0 : index
    %286 = vector.load %arg8[%c0_274, %c0_275] : memref<72x256xf32, #tpu.memory_space<vmem>>, vector<1x128xf32>
    tpu.vector_store %arg8[%c0_274, %c0_275], %0 {strides = array<i32>} : memref<72x256xf32, #tpu.memory_space<vmem>>, vector<1x128xf32>,
    %c5_276 = arith.constant 5 : index
    %c0_277 = arith.constant 0 : index
    %287 = vector.load %arg8[%c5_276, %c0_277] : memref<72x256xf32, #tpu.memory_space<vmem>>, vector<1x128xf32>
    tpu.vector_store %arg8[%c5_276, %c0_277], %0 {strides = array<i32>} : memref<72x256xf32, #tpu.memory_space<vmem>>, vector<1x128xf32>,
    %c6_278 = arith.constant 6 : index
    %c0_279 = arith.constant 0 : index
    %288 = vector.load %arg8[%c6_278, %c0_279] : memref<72x256xf32, #tpu.memory_space<vmem>>, vector<1x128xf32>
    tpu.vector_store %arg8[%c6_278, %c0_279], %0 {strides = array<i32>} : memref<72x256xf32, #tpu.memory_space<vmem>>, vector<1x128xf32>,
    %c11_280 = arith.constant 11 : index
    %c0_281 = arith.constant 0 : index
    %289 = vector.load %arg8[%c11_280, %c0_281] : memref<72x256xf32, #tpu.memory_space<vmem>>, vector<1x128xf32>
    tpu.vector_store %arg8[%c11_280, %c0_281], %0 {strides = array<i32>} : memref<72x256xf32, #tpu.memory_space<vmem>>, vector<1x128xf32>,
    %c12_282 = arith.constant 12 : index
    %c0_283 = arith.constant 0 : index
    %290 = vector.load %arg8[%c12_282, %c0_283] : memref<72x256xf32, #tpu.memory_space<vmem>>, vector<1x128xf32>
    tpu.vector_store %arg8[%c12_282, %c0_283], %0 {strides = array<i32>} : memref<72x256xf32, #tpu.memory_space<vmem>>, vector<1x128xf32>,
    %c17_284 = arith.constant 17 : index
    %c0_285 = arith.constant 0 : index
    %291 = vector.load %arg8[%c17_284, %c0_285] : memref<72x256xf32, #tpu.memory_space<vmem>>, vector<1x128xf32>
    tpu.vector_store %arg8[%c17_284, %c0_285], %0 {strides = array<i32>} : memref<72x256xf32, #tpu.memory_space<vmem>>, vector<1x128xf32>,
    %c18_286 = arith.constant 18 : index
    %c0_287 = arith.constant 0 : index
    %292 = vector.load %arg8[%c18_286, %c0_287] : memref<72x256xf32, #tpu.memory_space<vmem>>, vector<1x128xf32>
    tpu.vector_store %arg8[%c18_286, %c0_287], %0 {strides = array<i32>} : memref<72x256xf32, #tpu.memory_space<vmem>>, vector<1x128xf32>,
    %c23 = arith.constant 23 : index
    %c0_288 = arith.constant 0 : index
    %293 = vector.load %arg8[%c23, %c0_288] : memref<72x256xf32, #tpu.memory_space<vmem>>, vector<1x128xf32>
    tpu.vector_store %arg8[%c23, %c0_288], %0 {strides = array<i32>} : memref<72x256xf32, #tpu.memory_space<vmem>>, vector<1x128xf32>,
    %c0_289 = arith.constant 0 : index
    %c0_290 = arith.constant 0 : index
    %294 = vector.load %arg8[%c0_289, %c0_290] : memref<72x256xf32, #tpu.memory_space<vmem>>, vector<22x128xf32>
    %295 = arith.truncf %294 : vector<22x128xf32> to vector<22x128xbf16>
    %c1_291 = arith.constant 1 : index
    %c0_292 = arith.constant 0 : index
    %296 = vector.load %arg8[%c1_291, %c0_292] : memref<72x256xf32, #tpu.memory_space<vmem>>, vector<22x128xf32>
    %297 = arith.truncf %296 : vector<22x128xf32> to vector<22x128xbf16>
    %c2_293 = arith.constant 2 : index
    %c0_294 = arith.constant 0 : index
    %298 = vector.load %arg8[%c2_293, %c0_294] : memref<72x256xf32, #tpu.memory_space<vmem>>, vector<22x128xf32>
    %299 = arith.truncf %298 : vector<22x128xf32> to vector<22x128xbf16>
    %c21 = arith.constant 21 : index
    %c0_295 = arith.constant 0 : index
    %c0_296 = arith.constant 0 : index
    %300 = vector.load %arg2[%c21, %c0_295, %c0_296] : memref<45x128x256xbf16, #tpu.memory_space<vmem>>, vector<1x128x256xbf16>
    %301 = vector.shape_cast %300 : vector<1x128x256xbf16> to vector<128x256xbf16>
    %302 = vector.extract_strided_slice %301 {offsets = [0, 0], sizes = [128, 128], strides = [1, 1]} : vector<128x256xbf16> to vector<128x128xbf16>
    %cst_297 = arith.constant dense<0.000000e+00> : vector<22x128xf32>
    %303 = tpu.matmul %295, %302, %cst_297 {dimension_numbers = #tpu.dot_dimension_numbers<[1], [0], [0], [1], [0, 0, 1, 1], [], []>} : vector<22x128xbf16>, vector<128x128xbf16>, vector<22x128xf32> -> vector<22x128xf32>
    %c22 = arith.constant 22 : index
    %c0_298 = arith.constant 0 : index
    %c0_299 = arith.constant 0 : index
    %304 = vector.load %arg2[%c22, %c0_298, %c0_299] : memref<45x128x256xbf16, #tpu.memory_space<vmem>>, vector<1x128x256xbf16>
    %305 = vector.shape_cast %304 : vector<1x128x256xbf16> to vector<128x256xbf16>
    %306 = vector.extract_strided_slice %305 {offsets = [0, 0], sizes = [128, 128], strides = [1, 1]} : vector<128x256xbf16> to vector<128x128xbf16>
    %cst_300 = arith.constant dense<0.000000e+00> : vector<22x128xf32>
    %307 = tpu.matmul %297, %306, %cst_300 {dimension_numbers = #tpu.dot_dimension_numbers<[1], [0], [0], [1], [0, 0, 1, 1], [], []>} : vector<22x128xbf16>, vector<128x128xbf16>, vector<22x128xf32> -> vector<22x128xf32>
    %308 = arith.addf %303, %307 : vector<22x128xf32>
    %c23_301 = arith.constant 23 : index
    %c0_302 = arith.constant 0 : index
    %c0_303 = arith.constant 0 : index
    %309 = vector.load %arg2[%c23_301, %c0_302, %c0_303] : memref<45x128x256xbf16, #tpu.memory_space<vmem>>, vector<1x128x256xbf16>
    %310 = vector.shape_cast %309 : vector<1x128x256xbf16> to vector<128x256xbf16>
    %311 = vector.extract_strided_slice %310 {offsets = [0, 0], sizes = [128, 128], strides = [1, 1]} : vector<128x256xbf16> to vector<128x128xbf16>
    %cst_304 = arith.constant dense<0.000000e+00> : vector<22x128xf32>
    %312 = tpu.matmul %299, %311, %cst_304 {dimension_numbers = #tpu.dot_dimension_numbers<[1], [0], [0], [1], [0, 0, 1, 1], [], []>} : vector<22x128xbf16>, vector<128x128xbf16>, vector<22x128xf32> -> vector<22x128xf32>
    %313 = arith.addf %308, %312 : vector<22x128xf32>
    %c7_305 = arith.constant 7 : index
    %c0_306 = arith.constant 0 : index
    %c0_307 = arith.constant 0 : index
    %314 = vector.load %arg3[%c7_305, %c0_306, %c0_307] : memref<15x1x256xf32, #tpu.memory_space<vmem>>, vector<1x1x256xf32>
    %315 = vector.shape_cast %314 : vector<1x1x256xf32> to vector<1x256xf32>
    %316 = vector.extract_strided_slice %315 {offsets = [0, 0], sizes = [1, 128], strides = [1, 1]} : vector<1x256xf32> to vector<1x128xf32>
    %317 = vector.broadcast %316 : vector<1x128xf32> to vector<22x128xf32>
    %318 = arith.addf %313, %317 : vector<22x128xf32>
    %c1_308 = arith.constant 1 : index
    %c0_309 = arith.constant 0 : index
    %319 = vector.load %arg7[%c1_308, %c0_309] : memref<72x256xf32, #tpu.memory_space<vmem>>, vector<22x128xf32>
    %320 = arith.addf %318, %319 : vector<22x128xf32>
    %cst_310 = arith.constant 0.000000e+00 : f32
    %321 = vector.broadcast %cst_310 : f32 to vector<22x128xf32>
    %322 = arith.maximumf %320, %321 : vector<22x128xf32>
    %c1_311 = arith.constant 1 : index
    %c0_312 = arith.constant 0 : index
    %323 = vector.load %arg7[%c1_311, %c0_312] : memref<72x256xf32, #tpu.memory_space<vmem>>, vector<22x128xf32>
    tpu.vector_store %arg7[%c1_311, %c0_312], %322 {strides = array<i32>} : memref<72x256xf32, #tpu.memory_space<vmem>>, vector<22x128xf32>,
    %c0_313 = arith.constant 0 : index
    %c0_314 = arith.constant 0 : index
    %324 = vector.load %arg7[%c0_313, %c0_314] : memref<72x256xf32, #tpu.memory_space<vmem>>, vector<1x128xf32>
    tpu.vector_store %arg7[%c0_313, %c0_314], %0 {strides = array<i32>} : memref<72x256xf32, #tpu.memory_space<vmem>>, vector<1x128xf32>,
    %c5_315 = arith.constant 5 : index
    %c0_316 = arith.constant 0 : index
    %325 = vector.load %arg7[%c5_315, %c0_316] : memref<72x256xf32, #tpu.memory_space<vmem>>, vector<1x128xf32>
    tpu.vector_store %arg7[%c5_315, %c0_316], %0 {strides = array<i32>} : memref<72x256xf32, #tpu.memory_space<vmem>>, vector<1x128xf32>,
    %c6_317 = arith.constant 6 : index
    %c0_318 = arith.constant 0 : index
    %326 = vector.load %arg7[%c6_317, %c0_318] : memref<72x256xf32, #tpu.memory_space<vmem>>, vector<1x128xf32>
    tpu.vector_store %arg7[%c6_317, %c0_318], %0 {strides = array<i32>} : memref<72x256xf32, #tpu.memory_space<vmem>>, vector<1x128xf32>,
    %c11_319 = arith.constant 11 : index
    %c0_320 = arith.constant 0 : index
    %327 = vector.load %arg7[%c11_319, %c0_320] : memref<72x256xf32, #tpu.memory_space<vmem>>, vector<1x128xf32>
    tpu.vector_store %arg7[%c11_319, %c0_320], %0 {strides = array<i32>} : memref<72x256xf32, #tpu.memory_space<vmem>>, vector<1x128xf32>,
    %c12_321 = arith.constant 12 : index
    %c0_322 = arith.constant 0 : index
    %328 = vector.load %arg7[%c12_321, %c0_322] : memref<72x256xf32, #tpu.memory_space<vmem>>, vector<1x128xf32>
    tpu.vector_store %arg7[%c12_321, %c0_322], %0 {strides = array<i32>} : memref<72x256xf32, #tpu.memory_space<vmem>>, vector<1x128xf32>,
    %c17_323 = arith.constant 17 : index
    %c0_324 = arith.constant 0 : index
    %329 = vector.load %arg7[%c17_323, %c0_324] : memref<72x256xf32, #tpu.memory_space<vmem>>, vector<1x128xf32>
    tpu.vector_store %arg7[%c17_323, %c0_324], %0 {strides = array<i32>} : memref<72x256xf32, #tpu.memory_space<vmem>>, vector<1x128xf32>,
    %c18_325 = arith.constant 18 : index
    %c0_326 = arith.constant 0 : index
    %330 = vector.load %arg7[%c18_325, %c0_326] : memref<72x256xf32, #tpu.memory_space<vmem>>, vector<1x128xf32>
    tpu.vector_store %arg7[%c18_325, %c0_326], %0 {strides = array<i32>} : memref<72x256xf32, #tpu.memory_space<vmem>>, vector<1x128xf32>,
    %c23_327 = arith.constant 23 : index
    %c0_328 = arith.constant 0 : index
    %331 = vector.load %arg7[%c23_327, %c0_328] : memref<72x256xf32, #tpu.memory_space<vmem>>, vector<1x128xf32>
    tpu.vector_store %arg7[%c23_327, %c0_328], %0 {strides = array<i32>} : memref<72x256xf32, #tpu.memory_space<vmem>>, vector<1x128xf32>,
    %c0_329 = arith.constant 0 : index
    %c0_330 = arith.constant 0 : index
    %332 = vector.load %arg7[%c0_329, %c0_330] : memref<72x256xf32, #tpu.memory_space<vmem>>, vector<22x128xf32>
    %333 = arith.truncf %332 : vector<22x128xf32> to vector<22x128xbf16>
    %c1_331 = arith.constant 1 : index
    %c0_332 = arith.constant 0 : index
    %334 = vector.load %arg7[%c1_331, %c0_332] : memref<72x256xf32, #tpu.memory_space<vmem>>, vector<22x128xf32>
    %335 = arith.truncf %334 : vector<22x128xf32> to vector<22x128xbf16>
    %c2_333 = arith.constant 2 : index
    %c0_334 = arith.constant 0 : index
    %336 = vector.load %arg7[%c2_333, %c0_334] : memref<72x256xf32, #tpu.memory_space<vmem>>, vector<22x128xf32>
    %337 = arith.truncf %336 : vector<22x128xf32> to vector<22x128xbf16>
    %c24 = arith.constant 24 : index
    %c0_335 = arith.constant 0 : index
    %c0_336 = arith.constant 0 : index
    %338 = vector.load %arg2[%c24, %c0_335, %c0_336] : memref<45x128x256xbf16, #tpu.memory_space<vmem>>, vector<1x128x256xbf16>
    %339 = vector.shape_cast %338 : vector<1x128x256xbf16> to vector<128x256xbf16>
    %340 = vector.extract_strided_slice %339 {offsets = [0, 0], sizes = [128, 128], strides = [1, 1]} : vector<128x256xbf16> to vector<128x128xbf16>
    %cst_337 = arith.constant dense<0.000000e+00> : vector<22x128xf32>
    %341 = tpu.matmul %333, %340, %cst_337 {dimension_numbers = #tpu.dot_dimension_numbers<[1], [0], [0], [1], [0, 0, 1, 1], [], []>} : vector<22x128xbf16>, vector<128x128xbf16>, vector<22x128xf32> -> vector<22x128xf32>
    %c25 = arith.constant 25 : index
    %c0_338 = arith.constant 0 : index
    %c0_339 = arith.constant 0 : index
    %342 = vector.load %arg2[%c25, %c0_338, %c0_339] : memref<45x128x256xbf16, #tpu.memory_space<vmem>>, vector<1x128x256xbf16>
    %343 = vector.shape_cast %342 : vector<1x128x256xbf16> to vector<128x256xbf16>
    %344 = vector.extract_strided_slice %343 {offsets = [0, 0], sizes = [128, 128], strides = [1, 1]} : vector<128x256xbf16> to vector<128x128xbf16>
    %cst_340 = arith.constant dense<0.000000e+00> : vector<22x128xf32>
    %345 = tpu.matmul %335, %344, %cst_340 {dimension_numbers = #tpu.dot_dimension_numbers<[1], [0], [0], [1], [0, 0, 1, 1], [], []>} : vector<22x128xbf16>, vector<128x128xbf16>, vector<22x128xf32> -> vector<22x128xf32>
    %346 = arith.addf %341, %345 : vector<22x128xf32>
    %c26 = arith.constant 26 : index
    %c0_341 = arith.constant 0 : index
    %c0_342 = arith.constant 0 : index
    %347 = vector.load %arg2[%c26, %c0_341, %c0_342] : memref<45x128x256xbf16, #tpu.memory_space<vmem>>, vector<1x128x256xbf16>
    %348 = vector.shape_cast %347 : vector<1x128x256xbf16> to vector<128x256xbf16>
    %349 = vector.extract_strided_slice %348 {offsets = [0, 0], sizes = [128, 128], strides = [1, 1]} : vector<128x256xbf16> to vector<128x128xbf16>
    %cst_343 = arith.constant dense<0.000000e+00> : vector<22x128xf32>
    %350 = tpu.matmul %337, %349, %cst_343 {dimension_numbers = #tpu.dot_dimension_numbers<[1], [0], [0], [1], [0, 0, 1, 1], [], []>} : vector<22x128xbf16>, vector<128x128xbf16>, vector<22x128xf32> -> vector<22x128xf32>
    %351 = arith.addf %346, %350 : vector<22x128xf32>
    %c8_344 = arith.constant 8 : index
    %c0_345 = arith.constant 0 : index
    %c0_346 = arith.constant 0 : index
    %352 = vector.load %arg3[%c8_344, %c0_345, %c0_346] : memref<15x1x256xf32, #tpu.memory_space<vmem>>, vector<1x1x256xf32>
    %353 = vector.shape_cast %352 : vector<1x1x256xf32> to vector<1x256xf32>
    %354 = vector.extract_strided_slice %353 {offsets = [0, 0], sizes = [1, 128], strides = [1, 1]} : vector<1x256xf32> to vector<1x128xf32>
    %355 = vector.broadcast %354 : vector<1x128xf32> to vector<22x128xf32>
    %356 = arith.addf %351, %355 : vector<22x128xf32>
    %cst_347 = arith.constant 0.000000e+00 : f32
    %357 = vector.broadcast %cst_347 : f32 to vector<22x128xf32>
    %358 = arith.maximumf %356, %357 : vector<22x128xf32>
    %c1_348 = arith.constant 1 : index
    %c0_349 = arith.constant 0 : index
    %359 = vector.load %arg8[%c1_348, %c0_349] : memref<72x256xf32, #tpu.memory_space<vmem>>, vector<22x128xf32>
    tpu.vector_store %arg8[%c1_348, %c0_349], %358 {strides = array<i32>} : memref<72x256xf32, #tpu.memory_space<vmem>>, vector<22x128xf32>,
    %c0_350 = arith.constant 0 : index
    %c0_351 = arith.constant 0 : index
    %360 = vector.load %arg8[%c0_350, %c0_351] : memref<72x256xf32, #tpu.memory_space<vmem>>, vector<1x128xf32>
    tpu.vector_store %arg8[%c0_350, %c0_351], %0 {strides = array<i32>} : memref<72x256xf32, #tpu.memory_space<vmem>>, vector<1x128xf32>,
    %c5_352 = arith.constant 5 : index
    %c0_353 = arith.constant 0 : index
    %361 = vector.load %arg8[%c5_352, %c0_353] : memref<72x256xf32, #tpu.memory_space<vmem>>, vector<1x128xf32>
    tpu.vector_store %arg8[%c5_352, %c0_353], %0 {strides = array<i32>} : memref<72x256xf32, #tpu.memory_space<vmem>>, vector<1x128xf32>,
    %c6_354 = arith.constant 6 : index
    %c0_355 = arith.constant 0 : index
    %362 = vector.load %arg8[%c6_354, %c0_355] : memref<72x256xf32, #tpu.memory_space<vmem>>, vector<1x128xf32>
    tpu.vector_store %arg8[%c6_354, %c0_355], %0 {strides = array<i32>} : memref<72x256xf32, #tpu.memory_space<vmem>>, vector<1x128xf32>,
    %c11_356 = arith.constant 11 : index
    %c0_357 = arith.constant 0 : index
    %363 = vector.load %arg8[%c11_356, %c0_357] : memref<72x256xf32, #tpu.memory_space<vmem>>, vector<1x128xf32>
    tpu.vector_store %arg8[%c11_356, %c0_357], %0 {strides = array<i32>} : memref<72x256xf32, #tpu.memory_space<vmem>>, vector<1x128xf32>,
    %c12_358 = arith.constant 12 : index
    %c0_359 = arith.constant 0 : index
    %364 = vector.load %arg8[%c12_358, %c0_359] : memref<72x256xf32, #tpu.memory_space<vmem>>, vector<1x128xf32>
    tpu.vector_store %arg8[%c12_358, %c0_359], %0 {strides = array<i32>} : memref<72x256xf32, #tpu.memory_space<vmem>>, vector<1x128xf32>,
    %c17_360 = arith.constant 17 : index
    %c0_361 = arith.constant 0 : index
    %365 = vector.load %arg8[%c17_360, %c0_361] : memref<72x256xf32, #tpu.memory_space<vmem>>, vector<1x128xf32>
    tpu.vector_store %arg8[%c17_360, %c0_361], %0 {strides = array<i32>} : memref<72x256xf32, #tpu.memory_space<vmem>>, vector<1x128xf32>,
    %c18_362 = arith.constant 18 : index
    %c0_363 = arith.constant 0 : index
    %366 = vector.load %arg8[%c18_362, %c0_363] : memref<72x256xf32, #tpu.memory_space<vmem>>, vector<1x128xf32>
    tpu.vector_store %arg8[%c18_362, %c0_363], %0 {strides = array<i32>} : memref<72x256xf32, #tpu.memory_space<vmem>>, vector<1x128xf32>,
    %c23_364 = arith.constant 23 : index
    %c0_365 = arith.constant 0 : index
    %367 = vector.load %arg8[%c23_364, %c0_365] : memref<72x256xf32, #tpu.memory_space<vmem>>, vector<1x128xf32>
    tpu.vector_store %arg8[%c23_364, %c0_365], %0 {strides = array<i32>} : memref<72x256xf32, #tpu.memory_space<vmem>>, vector<1x128xf32>,
    %c0_366 = arith.constant 0 : index
    %c0_367 = arith.constant 0 : index
    %368 = vector.load %arg8[%c0_366, %c0_367] : memref<72x256xf32, #tpu.memory_space<vmem>>, vector<22x128xf32>
    %369 = arith.truncf %368 : vector<22x128xf32> to vector<22x128xbf16>
    %c1_368 = arith.constant 1 : index
    %c0_369 = arith.constant 0 : index
    %370 = vector.load %arg8[%c1_368, %c0_369] : memref<72x256xf32, #tpu.memory_space<vmem>>, vector<22x128xf32>
    %371 = arith.truncf %370 : vector<22x128xf32> to vector<22x128xbf16>
    %c2_370 = arith.constant 2 : index
    %c0_371 = arith.constant 0 : index
    %372 = vector.load %arg8[%c2_370, %c0_371] : memref<72x256xf32, #tpu.memory_space<vmem>>, vector<22x128xf32>
    %373 = arith.truncf %372 : vector<22x128xf32> to vector<22x128xbf16>
    %c27 = arith.constant 27 : index
    %c0_372 = arith.constant 0 : index
    %c0_373 = arith.constant 0 : index
    %374 = vector.load %arg2[%c27, %c0_372, %c0_373] : memref<45x128x256xbf16, #tpu.memory_space<vmem>>, vector<1x128x256xbf16>
    %375 = vector.shape_cast %374 : vector<1x128x256xbf16> to vector<128x256xbf16>
    %376 = vector.extract_strided_slice %375 {offsets = [0, 0], sizes = [128, 128], strides = [1, 1]} : vector<128x256xbf16> to vector<128x128xbf16>
    %cst_374 = arith.constant dense<0.000000e+00> : vector<22x128xf32>
    %377 = tpu.matmul %369, %376, %cst_374 {dimension_numbers = #tpu.dot_dimension_numbers<[1], [0], [0], [1], [0, 0, 1, 1], [], []>} : vector<22x128xbf16>, vector<128x128xbf16>, vector<22x128xf32> -> vector<22x128xf32>
    %c28 = arith.constant 28 : index
    %c0_375 = arith.constant 0 : index
    %c0_376 = arith.constant 0 : index
    %378 = vector.load %arg2[%c28, %c0_375, %c0_376] : memref<45x128x256xbf16, #tpu.memory_space<vmem>>, vector<1x128x256xbf16>
    %379 = vector.shape_cast %378 : vector<1x128x256xbf16> to vector<128x256xbf16>
    %380 = vector.extract_strided_slice %379 {offsets = [0, 0], sizes = [128, 128], strides = [1, 1]} : vector<128x256xbf16> to vector<128x128xbf16>
    %cst_377 = arith.constant dense<0.000000e+00> : vector<22x128xf32>
    %381 = tpu.matmul %371, %380, %cst_377 {dimension_numbers = #tpu.dot_dimension_numbers<[1], [0], [0], [1], [0, 0, 1, 1], [], []>} : vector<22x128xbf16>, vector<128x128xbf16>, vector<22x128xf32> -> vector<22x128xf32>
    %382 = arith.addf %377, %381 : vector<22x128xf32>
    %c29_378 = arith.constant 29 : index
    %c0_379 = arith.constant 0 : index
    %c0_380 = arith.constant 0 : index
    %383 = vector.load %arg2[%c29_378, %c0_379, %c0_380] : memref<45x128x256xbf16, #tpu.memory_space<vmem>>, vector<1x128x256xbf16>
    %384 = vector.shape_cast %383 : vector<1x128x256xbf16> to vector<128x256xbf16>
    %385 = vector.extract_strided_slice %384 {offsets = [0, 0], sizes = [128, 128], strides = [1, 1]} : vector<128x256xbf16> to vector<128x128xbf16>
    %cst_381 = arith.constant dense<0.000000e+00> : vector<22x128xf32>
    %386 = tpu.matmul %373, %385, %cst_381 {dimension_numbers = #tpu.dot_dimension_numbers<[1], [0], [0], [1], [0, 0, 1, 1], [], []>} : vector<22x128xbf16>, vector<128x128xbf16>, vector<22x128xf32> -> vector<22x128xf32>
    %387 = arith.addf %382, %386 : vector<22x128xf32>
    %c9_382 = arith.constant 9 : index
    %c0_383 = arith.constant 0 : index
    %c0_384 = arith.constant 0 : index
    %388 = vector.load %arg3[%c9_382, %c0_383, %c0_384] : memref<15x1x256xf32, #tpu.memory_space<vmem>>, vector<1x1x256xf32>
    %389 = vector.shape_cast %388 : vector<1x1x256xf32> to vector<1x256xf32>
    %390 = vector.extract_strided_slice %389 {offsets = [0, 0], sizes = [1, 128], strides = [1, 1]} : vector<1x256xf32> to vector<1x128xf32>
    %391 = vector.broadcast %390 : vector<1x128xf32> to vector<22x128xf32>
    %392 = arith.addf %387, %391 : vector<22x128xf32>
    %c1_385 = arith.constant 1 : index
    %c0_386 = arith.constant 0 : index
    %393 = vector.load %arg7[%c1_385, %c0_386] : memref<72x256xf32, #tpu.memory_space<vmem>>, vector<22x128xf32>
    %394 = arith.addf %392, %393 : vector<22x128xf32>
    %cst_387 = arith.constant 0.000000e+00 : f32
    %395 = vector.broadcast %cst_387 : f32 to vector<22x128xf32>
    %396 = arith.maximumf %394, %395 : vector<22x128xf32>
    %c1_388 = arith.constant 1 : index
    %c0_389 = arith.constant 0 : index
    %397 = vector.load %arg7[%c1_388, %c0_389] : memref<72x256xf32, #tpu.memory_space<vmem>>, vector<22x128xf32>
    tpu.vector_store %arg7[%c1_388, %c0_389], %396 {strides = array<i32>} : memref<72x256xf32, #tpu.memory_space<vmem>>, vector<22x128xf32>,
    %c0_390 = arith.constant 0 : index
    %c0_391 = arith.constant 0 : index
    %398 = vector.load %arg7[%c0_390, %c0_391] : memref<72x256xf32, #tpu.memory_space<vmem>>, vector<1x128xf32>
    tpu.vector_store %arg7[%c0_390, %c0_391], %0 {strides = array<i32>} : memref<72x256xf32, #tpu.memory_space<vmem>>, vector<1x128xf32>,
    %c5_392 = arith.constant 5 : index
    %c0_393 = arith.constant 0 : index
    %399 = vector.load %arg7[%c5_392, %c0_393] : memref<72x256xf32, #tpu.memory_space<vmem>>, vector<1x128xf32>
    tpu.vector_store %arg7[%c5_392, %c0_393], %0 {strides = array<i32>} : memref<72x256xf32, #tpu.memory_space<vmem>>, vector<1x128xf32>,
    %c6_394 = arith.constant 6 : index
    %c0_395 = arith.constant 0 : index
    %400 = vector.load %arg7[%c6_394, %c0_395] : memref<72x256xf32, #tpu.memory_space<vmem>>, vector<1x128xf32>
    tpu.vector_store %arg7[%c6_394, %c0_395], %0 {strides = array<i32>} : memref<72x256xf32, #tpu.memory_space<vmem>>, vector<1x128xf32>,
    %c11_396 = arith.constant 11 : index
    %c0_397 = arith.constant 0 : index
    %401 = vector.load %arg7[%c11_396, %c0_397] : memref<72x256xf32, #tpu.memory_space<vmem>>, vector<1x128xf32>
    tpu.vector_store %arg7[%c11_396, %c0_397], %0 {strides = array<i32>} : memref<72x256xf32, #tpu.memory_space<vmem>>, vector<1x128xf32>,
    %c12_398 = arith.constant 12 : index
    %c0_399 = arith.constant 0 : index
    %402 = vector.load %arg7[%c12_398, %c0_399] : memref<72x256xf32, #tpu.memory_space<vmem>>, vector<1x128xf32>
    tpu.vector_store %arg7[%c12_398, %c0_399], %0 {strides = array<i32>} : memref<72x256xf32, #tpu.memory_space<vmem>>, vector<1x128xf32>,
    %c17_400 = arith.constant 17 : index
    %c0_401 = arith.constant 0 : index
    %403 = vector.load %arg7[%c17_400, %c0_401] : memref<72x256xf32, #tpu.memory_space<vmem>>, vector<1x128xf32>
    tpu.vector_store %arg7[%c17_400, %c0_401], %0 {strides = array<i32>} : memref<72x256xf32, #tpu.memory_space<vmem>>, vector<1x128xf32>,
    %c18_402 = arith.constant 18 : index
    %c0_403 = arith.constant 0 : index
    %404 = vector.load %arg7[%c18_402, %c0_403] : memref<72x256xf32, #tpu.memory_space<vmem>>, vector<1x128xf32>
    tpu.vector_store %arg7[%c18_402, %c0_403], %0 {strides = array<i32>} : memref<72x256xf32, #tpu.memory_space<vmem>>, vector<1x128xf32>,
    %c23_404 = arith.constant 23 : index
    %c0_405 = arith.constant 0 : index
    %405 = vector.load %arg7[%c23_404, %c0_405] : memref<72x256xf32, #tpu.memory_space<vmem>>, vector<1x128xf32>
    tpu.vector_store %arg7[%c23_404, %c0_405], %0 {strides = array<i32>} : memref<72x256xf32, #tpu.memory_space<vmem>>, vector<1x128xf32>,
    %c0_406 = arith.constant 0 : index
    %c0_407 = arith.constant 0 : index
    %406 = vector.load %arg7[%c0_406, %c0_407] : memref<72x256xf32, #tpu.memory_space<vmem>>, vector<22x128xf32>
    %407 = arith.truncf %406 : vector<22x128xf32> to vector<22x128xbf16>
    %c1_408 = arith.constant 1 : index
    %c0_409 = arith.constant 0 : index
    %408 = vector.load %arg7[%c1_408, %c0_409] : memref<72x256xf32, #tpu.memory_space<vmem>>, vector<22x128xf32>
    %409 = arith.truncf %408 : vector<22x128xf32> to vector<22x128xbf16>
    %c2_410 = arith.constant 2 : index
    %c0_411 = arith.constant 0 : index
    %410 = vector.load %arg7[%c2_410, %c0_411] : memref<72x256xf32, #tpu.memory_space<vmem>>, vector<22x128xf32>
    %411 = arith.truncf %410 : vector<22x128xf32> to vector<22x128xbf16>
    %c30_412 = arith.constant 30 : index
    %c0_413 = arith.constant 0 : index
    %c0_414 = arith.constant 0 : index
    %412 = vector.load %arg2[%c30_412, %c0_413, %c0_414] : memref<45x128x256xbf16, #tpu.memory_space<vmem>>, vector<1x128x256xbf16>
    %413 = vector.shape_cast %412 : vector<1x128x256xbf16> to vector<128x256xbf16>
    %414 = vector.extract_strided_slice %413 {offsets = [0, 0], sizes = [128, 128], strides = [1, 1]} : vector<128x256xbf16> to vector<128x128xbf16>
    %cst_415 = arith.constant dense<0.000000e+00> : vector<22x128xf32>
    %415 = tpu.matmul %407, %414, %cst_415 {dimension_numbers = #tpu.dot_dimension_numbers<[1], [0], [0], [1], [0, 0, 1, 1], [], []>} : vector<22x128xbf16>, vector<128x128xbf16>, vector<22x128xf32> -> vector<22x128xf32>
    %c31 = arith.constant 31 : index
    %c0_416 = arith.constant 0 : index
    %c0_417 = arith.constant 0 : index
    %416 = vector.load %arg2[%c31, %c0_416, %c0_417] : memref<45x128x256xbf16, #tpu.memory_space<vmem>>, vector<1x128x256xbf16>
    %417 = vector.shape_cast %416 : vector<1x128x256xbf16> to vector<128x256xbf16>
    %418 = vector.extract_strided_slice %417 {offsets = [0, 0], sizes = [128, 128], strides = [1, 1]} : vector<128x256xbf16> to vector<128x128xbf16>
    %cst_418 = arith.constant dense<0.000000e+00> : vector<22x128xf32>
    %419 = tpu.matmul %409, %418, %cst_418 {dimension_numbers = #tpu.dot_dimension_numbers<[1], [0], [0], [1], [0, 0, 1, 1], [], []>} : vector<22x128xbf16>, vector<128x128xbf16>, vector<22x128xf32> -> vector<22x128xf32>
    %420 = arith.addf %415, %419 : vector<22x128xf32>
    %c32 = arith.constant 32 : index
    %c0_419 = arith.constant 0 : index
    %c0_420 = arith.constant 0 : index
    %421 = vector.load %arg2[%c32, %c0_419, %c0_420] : memref<45x128x256xbf16, #tpu.memory_space<vmem>>, vector<1x128x256xbf16>
    %422 = vector.shape_cast %421 : vector<1x128x256xbf16> to vector<128x256xbf16>
    %423 = vector.extract_strided_slice %422 {offsets = [0, 0], sizes = [128, 128], strides = [1, 1]} : vector<128x256xbf16> to vector<128x128xbf16>
    %cst_421 = arith.constant dense<0.000000e+00> : vector<22x128xf32>
    %424 = tpu.matmul %411, %423, %cst_421 {dimension_numbers = #tpu.dot_dimension_numbers<[1], [0], [0], [1], [0, 0, 1, 1], [], []>} : vector<22x128xbf16>, vector<128x128xbf16>, vector<22x128xf32> -> vector<22x128xf32>
    %425 = arith.addf %420, %424 : vector<22x128xf32>
    %c10_422 = arith.constant 10 : index
    %c0_423 = arith.constant 0 : index
    %c0_424 = arith.constant 0 : index
    %426 = vector.load %arg3[%c10_422, %c0_423, %c0_424] : memref<15x1x256xf32, #tpu.memory_space<vmem>>, vector<1x1x256xf32>
    %427 = vector.shape_cast %426 : vector<1x1x256xf32> to vector<1x256xf32>
    %428 = vector.extract_strided_slice %427 {offsets = [0, 0], sizes = [1, 128], strides = [1, 1]} : vector<1x256xf32> to vector<1x128xf32>
    %429 = vector.broadcast %428 : vector<1x128xf32> to vector<22x128xf32>
    %430 = arith.addf %425, %429 : vector<22x128xf32>
    %c1_425 = arith.constant 1 : index
    %c0_426 = arith.constant 0 : index
    %431 = vector.load %arg8[%c1_425, %c0_426] : memref<72x256xf32, #tpu.memory_space<vmem>>, vector<22x128xf32>
    tpu.vector_store %arg8[%c1_425, %c0_426], %430 {strides = array<i32>} : memref<72x256xf32, #tpu.memory_space<vmem>>, vector<22x128xf32>,
    %c0_427 = arith.constant 0 : index
    %c0_428 = arith.constant 0 : index
    %432 = vector.load %arg8[%c0_427, %c0_428] : memref<72x256xf32, #tpu.memory_space<vmem>>, vector<24x128xf32>
    %433 = arith.truncf %432 : vector<24x128xf32> to vector<24x128xbf16>
    %c2_429 = arith.constant 2 : index
    %c0_430 = arith.constant 0 : index
    %c0_431 = arith.constant 0 : index
    %434 = vector.load %arg4[%c2_429, %c0_430, %c0_431] : memref<3x256x384xbf16, #tpu.memory_space<vmem>>, vector<1x256x384xbf16>
    %435 = vector.shape_cast %434 : vector<1x256x384xbf16> to vector<256x384xbf16>
    %436 = vector.extract_strided_slice %435 {offsets = [0, 0], sizes = [128, 384], strides = [1, 1]} : vector<256x384xbf16> to vector<128x384xbf16>
    %cst_432 = arith.constant dense<0.000000e+00> : vector<24x384xf32>
    %437 = tpu.matmul %433, %436, %cst_432 {dimension_numbers = #tpu.dot_dimension_numbers<[1], [0], [0], [1], [0, 0, 1, 1], [], []>} : vector<24x128xbf16>, vector<128x384xbf16>, vector<24x384xf32> -> vector<24x384xf32>
    %438 = vector.extract_strided_slice %437 {offsets = [0, 0], sizes = [24, 128], strides = [1, 1]} : vector<24x384xf32> to vector<24x128xf32>
    %439 = vector.extract_strided_slice %437 {offsets = [0, 128], sizes = [24, 128], strides = [1, 1]} : vector<24x384xf32> to vector<24x128xf32>
    %440 = vector.extract_strided_slice %437 {offsets = [0, 256], sizes = [24, 128], strides = [1, 1]} : vector<24x384xf32> to vector<24x128xf32>
    %441 = arith.maximumf %439, %440 : vector<24x128xf32>
    %442 = arith.maximumf %438, %441 : vector<24x128xf32>
    %443 = arith.truncf %442 : vector<24x128xf32> to vector<24x128xbf16>
    %c6_433 = arith.constant 6 : index
    %c0_434 = arith.constant 0 : index
    %c0_435 = arith.constant 0 : index
    %444 = vector.load %arg5[%c6_433, %c0_434, %c0_435] : memref<9x40x72xbf16, #tpu.memory_space<vmem>>, vector<1x40x72xbf16>
    %445 = vector.shape_cast %444 : vector<1x40x72xbf16> to vector<40x72xbf16>
    %446 = vector.extract_strided_slice %445 {offsets = [0, 0], sizes = [16, 24], strides = [1, 1]} : vector<40x72xbf16> to vector<16x24xbf16>
    %cst_436 = arith.constant dense<0.000000e+00> : vector<16x128xf32>
    %447 = tpu.matmul %446, %443, %cst_436 {dimension_numbers = #tpu.dot_dimension_numbers<[1], [0], [0], [1], [0, 0, 1, 1], [], []>} : vector<16x24xbf16>, vector<24x128xbf16>, vector<16x128xf32> -> vector<16x128xf32>
    %c7_437 = arith.constant 7 : index
    %c0_438 = arith.constant 0 : index
    %c0_439 = arith.constant 0 : index
    %448 = vector.load %arg5[%c7_437, %c0_438, %c0_439] : memref<9x40x72xbf16, #tpu.memory_space<vmem>>, vector<1x40x72xbf16>
    %449 = vector.shape_cast %448 : vector<1x40x72xbf16> to vector<40x72xbf16>
    %450 = vector.extract_strided_slice %449 {offsets = [0, 0], sizes = [16, 24], strides = [1, 1]} : vector<40x72xbf16> to vector<16x24xbf16>
    %cst_440 = arith.constant dense<0.000000e+00> : vector<16x128xf32>
    %451 = tpu.matmul %450, %443, %cst_440 {dimension_numbers = #tpu.dot_dimension_numbers<[1], [0], [0], [1], [0, 0, 1, 1], [], []>} : vector<16x24xbf16>, vector<24x128xbf16>, vector<16x128xf32> -> vector<16x128xf32>
    %452 = arith.maximumf %447, %451 : vector<16x128xf32>
    %c8_441 = arith.constant 8 : index
    %c0_442 = arith.constant 0 : index
    %c0_443 = arith.constant 0 : index
    %453 = vector.load %arg5[%c8_441, %c0_442, %c0_443] : memref<9x40x72xbf16, #tpu.memory_space<vmem>>, vector<1x40x72xbf16>
    %454 = vector.shape_cast %453 : vector<1x40x72xbf16> to vector<40x72xbf16>
    %455 = vector.extract_strided_slice %454 {offsets = [0, 0], sizes = [16, 24], strides = [1, 1]} : vector<40x72xbf16> to vector<16x24xbf16>
    %cst_444 = arith.constant dense<0.000000e+00> : vector<16x128xf32>
    %456 = tpu.matmul %455, %443, %cst_444 {dimension_numbers = #tpu.dot_dimension_numbers<[1], [0], [0], [1], [0, 0, 1, 1], [], []>} : vector<16x24xbf16>, vector<24x128xbf16>, vector<16x128xf32> -> vector<16x128xf32>
    %457 = arith.maximumf %452, %456 : vector<16x128xf32>
    %c0_445 = arith.constant 0 : index
    %c0_446 = arith.constant 0 : index
    %458 = vector.load %arg7[%c0_445, %c0_446] : memref<72x256xf32, #tpu.memory_space<vmem>>, vector<16x128xf32>
    tpu.vector_store %arg7[%c0_445, %c0_446], %457 {strides = array<i32>} : memref<72x256xf32, #tpu.memory_space<vmem>>, vector<16x128xf32>,
    %c0_447 = arith.constant 0 : index
    %c0_448 = arith.constant 0 : index
    %459 = vector.load %arg7[%c0_447, %c0_448] : memref<72x256xf32, #tpu.memory_space<vmem>>, vector<14x128xf32>
    %460 = arith.truncf %459 : vector<14x128xf32> to vector<14x128xbf16>
    %c1_449 = arith.constant 1 : index
    %c0_450 = arith.constant 0 : index
    %461 = vector.load %arg7[%c1_449, %c0_450] : memref<72x256xf32, #tpu.memory_space<vmem>>, vector<14x128xf32>
    %462 = arith.truncf %461 : vector<14x128xf32> to vector<14x128xbf16>
    %c2_451 = arith.constant 2 : index
    %c0_452 = arith.constant 0 : index
    %463 = vector.load %arg7[%c2_451, %c0_452] : memref<72x256xf32, #tpu.memory_space<vmem>>, vector<14x128xf32>
    %464 = arith.truncf %463 : vector<14x128xf32> to vector<14x128xbf16>
    %c33 = arith.constant 33 : index
    %c0_453 = arith.constant 0 : index
    %c0_454 = arith.constant 0 : index
    %465 = vector.load %arg2[%c33, %c0_453, %c0_454] : memref<45x128x256xbf16, #tpu.memory_space<vmem>>, vector<1x128x256xbf16>
    %466 = vector.shape_cast %465 : vector<1x128x256xbf16> to vector<128x256xbf16>
    %467 = vector.extract_strided_slice %466 {offsets = [0, 0], sizes = [128, 64], strides = [1, 1]} : vector<128x256xbf16> to vector<128x64xbf16>
    %cst_455 = arith.constant dense<0.000000e+00> : vector<14x64xf32>
    %468 = tpu.matmul %460, %467, %cst_455 {dimension_numbers = #tpu.dot_dimension_numbers<[1], [0], [0], [1], [0, 0, 1, 1], [], []>} : vector<14x128xbf16>, vector<128x64xbf16>, vector<14x64xf32> -> vector<14x64xf32>
    %c34 = arith.constant 34 : index
    %c0_456 = arith.constant 0 : index
    %c0_457 = arith.constant 0 : index
    %469 = vector.load %arg2[%c34, %c0_456, %c0_457] : memref<45x128x256xbf16, #tpu.memory_space<vmem>>, vector<1x128x256xbf16>
    %470 = vector.shape_cast %469 : vector<1x128x256xbf16> to vector<128x256xbf16>
    %471 = vector.extract_strided_slice %470 {offsets = [0, 0], sizes = [128, 64], strides = [1, 1]} : vector<128x256xbf16> to vector<128x64xbf16>
    %cst_458 = arith.constant dense<0.000000e+00> : vector<14x64xf32>
    %472 = tpu.matmul %462, %471, %cst_458 {dimension_numbers = #tpu.dot_dimension_numbers<[1], [0], [0], [1], [0, 0, 1, 1], [], []>} : vector<14x128xbf16>, vector<128x64xbf16>, vector<14x64xf32> -> vector<14x64xf32>
    %473 = arith.addf %468, %472 : vector<14x64xf32>
    %c35 = arith.constant 35 : index
    %c0_459 = arith.constant 0 : index
    %c0_460 = arith.constant 0 : index
    %474 = vector.load %arg2[%c35, %c0_459, %c0_460] : memref<45x128x256xbf16, #tpu.memory_space<vmem>>, vector<1x128x256xbf16>
    %475 = vector.shape_cast %474 : vector<1x128x256xbf16> to vector<128x256xbf16>
    %476 = vector.extract_strided_slice %475 {offsets = [0, 0], sizes = [128, 64], strides = [1, 1]} : vector<128x256xbf16> to vector<128x64xbf16>
    %cst_461 = arith.constant dense<0.000000e+00> : vector<14x64xf32>
    %477 = tpu.matmul %464, %476, %cst_461 {dimension_numbers = #tpu.dot_dimension_numbers<[1], [0], [0], [1], [0, 0, 1, 1], [], []>} : vector<14x128xbf16>, vector<128x64xbf16>, vector<14x64xf32> -> vector<14x64xf32>
    %478 = arith.addf %473, %477 : vector<14x64xf32>
    %c11_462 = arith.constant 11 : index
    %c0_463 = arith.constant 0 : index
    %c0_464 = arith.constant 0 : index
    %479 = vector.load %arg3[%c11_462, %c0_463, %c0_464] : memref<15x1x256xf32, #tpu.memory_space<vmem>>, vector<1x1x256xf32>
    %480 = vector.shape_cast %479 : vector<1x1x256xf32> to vector<1x256xf32>
    %481 = vector.extract_strided_slice %480 {offsets = [0, 0], sizes = [1, 64], strides = [1, 1]} : vector<1x256xf32> to vector<1x64xf32>
    %482 = vector.broadcast %481 : vector<1x64xf32> to vector<14x64xf32>
    %483 = arith.addf %478, %482 : vector<14x64xf32>
    %cst_465 = arith.constant 0.000000e+00 : f32
    %484 = vector.broadcast %cst_465 : f32 to vector<14x64xf32>
    %485 = arith.maximumf %483, %484 : vector<14x64xf32>
    %c1_466 = arith.constant 1 : index
    %c0_467 = arith.constant 0 : index
    %486 = vector.load %arg8[%c1_466, %c0_467] : memref<72x256xf32, #tpu.memory_space<vmem>>, vector<14x64xf32>
    tpu.vector_store %arg8[%c1_466, %c0_467], %485 {strides = array<i32>} : memref<72x256xf32, #tpu.memory_space<vmem>>, vector<14x64xf32>,
    %c0_468 = arith.constant 0 : index
    %c0_469 = arith.constant 0 : index
    %487 = vector.load %arg8[%c0_468, %c0_469] : memref<72x256xf32, #tpu.memory_space<vmem>>, vector<1x128xf32>
    tpu.vector_store %arg8[%c0_468, %c0_469], %0 {strides = array<i32>} : memref<72x256xf32, #tpu.memory_space<vmem>>, vector<1x128xf32>,
    %c3_470 = arith.constant 3 : index
    %c0_471 = arith.constant 0 : index
    %488 = vector.load %arg8[%c3_470, %c0_471] : memref<72x256xf32, #tpu.memory_space<vmem>>, vector<1x128xf32>
    tpu.vector_store %arg8[%c3_470, %c0_471], %0 {strides = array<i32>} : memref<72x256xf32, #tpu.memory_space<vmem>>, vector<1x128xf32>,
    %c4_472 = arith.constant 4 : index
    %c0_473 = arith.constant 0 : index
    %489 = vector.load %arg8[%c4_472, %c0_473] : memref<72x256xf32, #tpu.memory_space<vmem>>, vector<1x128xf32>
    tpu.vector_store %arg8[%c4_472, %c0_473], %0 {strides = array<i32>} : memref<72x256xf32, #tpu.memory_space<vmem>>, vector<1x128xf32>,
    %c7_474 = arith.constant 7 : index
    %c0_475 = arith.constant 0 : index
    %490 = vector.load %arg8[%c7_474, %c0_475] : memref<72x256xf32, #tpu.memory_space<vmem>>, vector<1x128xf32>
    tpu.vector_store %arg8[%c7_474, %c0_475], %0 {strides = array<i32>} : memref<72x256xf32, #tpu.memory_space<vmem>>, vector<1x128xf32>,
    %c8_476 = arith.constant 8 : index
    %c0_477 = arith.constant 0 : index
    %491 = vector.load %arg8[%c8_476, %c0_477] : memref<72x256xf32, #tpu.memory_space<vmem>>, vector<1x128xf32>
    tpu.vector_store %arg8[%c8_476, %c0_477], %0 {strides = array<i32>} : memref<72x256xf32, #tpu.memory_space<vmem>>, vector<1x128xf32>,
    %c11_478 = arith.constant 11 : index
    %c0_479 = arith.constant 0 : index
    %492 = vector.load %arg8[%c11_478, %c0_479] : memref<72x256xf32, #tpu.memory_space<vmem>>, vector<1x128xf32>
    tpu.vector_store %arg8[%c11_478, %c0_479], %0 {strides = array<i32>} : memref<72x256xf32, #tpu.memory_space<vmem>>, vector<1x128xf32>,
    %c12_480 = arith.constant 12 : index
    %c0_481 = arith.constant 0 : index
    %493 = vector.load %arg8[%c12_480, %c0_481] : memref<72x256xf32, #tpu.memory_space<vmem>>, vector<1x128xf32>
    tpu.vector_store %arg8[%c12_480, %c0_481], %0 {strides = array<i32>} : memref<72x256xf32, #tpu.memory_space<vmem>>, vector<1x128xf32>,
    %c15_482 = arith.constant 15 : index
    %c0_483 = arith.constant 0 : index
    %494 = vector.load %arg8[%c15_482, %c0_483] : memref<72x256xf32, #tpu.memory_space<vmem>>, vector<1x128xf32>
    tpu.vector_store %arg8[%c15_482, %c0_483], %0 {strides = array<i32>} : memref<72x256xf32, #tpu.memory_space<vmem>>, vector<1x128xf32>,
    %c0_484 = arith.constant 0 : index
    %c0_485 = arith.constant 0 : index
    %495 = vector.load %arg8[%c0_484, %c0_485] : memref<72x256xf32, #tpu.memory_space<vmem>>, vector<14x128xf32>
    %496 = arith.truncf %495 : vector<14x128xf32> to vector<14x128xbf16>
    %c1_486 = arith.constant 1 : index
    %c0_487 = arith.constant 0 : index
    %497 = vector.load %arg8[%c1_486, %c0_487] : memref<72x256xf32, #tpu.memory_space<vmem>>, vector<14x128xf32>
    %498 = arith.truncf %497 : vector<14x128xf32> to vector<14x128xbf16>
    %c2_488 = arith.constant 2 : index
    %c0_489 = arith.constant 0 : index
    %499 = vector.load %arg8[%c2_488, %c0_489] : memref<72x256xf32, #tpu.memory_space<vmem>>, vector<14x128xf32>
    %500 = arith.truncf %499 : vector<14x128xf32> to vector<14x128xbf16>
    %c36 = arith.constant 36 : index
    %c0_490 = arith.constant 0 : index
    %c0_491 = arith.constant 0 : index
    %501 = vector.load %arg2[%c36, %c0_490, %c0_491] : memref<45x128x256xbf16, #tpu.memory_space<vmem>>, vector<1x128x256xbf16>
    %502 = vector.shape_cast %501 : vector<1x128x256xbf16> to vector<128x256xbf16>
    %503 = vector.extract_strided_slice %502 {offsets = [0, 0], sizes = [128, 64], strides = [1, 1]} : vector<128x256xbf16> to vector<128x64xbf16>
    %cst_492 = arith.constant dense<0.000000e+00> : vector<14x64xf32>
    %504 = tpu.matmul %496, %503, %cst_492 {dimension_numbers = #tpu.dot_dimension_numbers<[1], [0], [0], [1], [0, 0, 1, 1], [], []>} : vector<14x128xbf16>, vector<128x64xbf16>, vector<14x64xf32> -> vector<14x64xf32>
    %c37_493 = arith.constant 37 : index
    %c0_494 = arith.constant 0 : index
    %c0_495 = arith.constant 0 : index
    %505 = vector.load %arg2[%c37_493, %c0_494, %c0_495] : memref<45x128x256xbf16, #tpu.memory_space<vmem>>, vector<1x128x256xbf16>
    %506 = vector.shape_cast %505 : vector<1x128x256xbf16> to vector<128x256xbf16>
    %507 = vector.extract_strided_slice %506 {offsets = [0, 0], sizes = [128, 64], strides = [1, 1]} : vector<128x256xbf16> to vector<128x64xbf16>
    %cst_496 = arith.constant dense<0.000000e+00> : vector<14x64xf32>
    %508 = tpu.matmul %498, %507, %cst_496 {dimension_numbers = #tpu.dot_dimension_numbers<[1], [0], [0], [1], [0, 0, 1, 1], [], []>} : vector<14x128xbf16>, vector<128x64xbf16>, vector<14x64xf32> -> vector<14x64xf32>
    %509 = arith.addf %504, %508 : vector<14x64xf32>
    %c38 = arith.constant 38 : index
    %c0_497 = arith.constant 0 : index
    %c0_498 = arith.constant 0 : index
    %510 = vector.load %arg2[%c38, %c0_497, %c0_498] : memref<45x128x256xbf16, #tpu.memory_space<vmem>>, vector<1x128x256xbf16>
    %511 = vector.shape_cast %510 : vector<1x128x256xbf16> to vector<128x256xbf16>
    %512 = vector.extract_strided_slice %511 {offsets = [0, 0], sizes = [128, 64], strides = [1, 1]} : vector<128x256xbf16> to vector<128x64xbf16>
    %cst_499 = arith.constant dense<0.000000e+00> : vector<14x64xf32>
    %513 = tpu.matmul %500, %512, %cst_499 {dimension_numbers = #tpu.dot_dimension_numbers<[1], [0], [0], [1], [0, 0, 1, 1], [], []>} : vector<14x128xbf16>, vector<128x64xbf16>, vector<14x64xf32> -> vector<14x64xf32>
    %514 = arith.addf %509, %513 : vector<14x64xf32>
    %c12_500 = arith.constant 12 : index
    %c0_501 = arith.constant 0 : index
    %c0_502 = arith.constant 0 : index
    %515 = vector.load %arg3[%c12_500, %c0_501, %c0_502] : memref<15x1x256xf32, #tpu.memory_space<vmem>>, vector<1x1x256xf32>
    %516 = vector.shape_cast %515 : vector<1x1x256xf32> to vector<1x256xf32>
    %517 = vector.extract_strided_slice %516 {offsets = [0, 0], sizes = [1, 64], strides = [1, 1]} : vector<1x256xf32> to vector<1x64xf32>
    %518 = vector.broadcast %517 : vector<1x64xf32> to vector<14x64xf32>
    %519 = arith.addf %514, %518 : vector<14x64xf32>
    %c1_503 = arith.constant 1 : index
    %c0_504 = arith.constant 0 : index
    %520 = vector.load %arg7[%c1_503, %c0_504] : memref<72x256xf32, #tpu.memory_space<vmem>>, vector<14x64xf32>
    %521 = arith.addf %519, %520 : vector<14x64xf32>
    %cst_505 = arith.constant 0.000000e+00 : f32
    %522 = vector.broadcast %cst_505 : f32 to vector<14x64xf32>
    %523 = arith.maximumf %521, %522 : vector<14x64xf32>
    %c1_506 = arith.constant 1 : index
    %c0_507 = arith.constant 0 : index
    %524 = vector.load %arg7[%c1_506, %c0_507] : memref<72x256xf32, #tpu.memory_space<vmem>>, vector<14x64xf32>
    tpu.vector_store %arg7[%c1_506, %c0_507], %523 {strides = array<i32>} : memref<72x256xf32, #tpu.memory_space<vmem>>, vector<14x64xf32>,
    %c0_508 = arith.constant 0 : index
    %c0_509 = arith.constant 0 : index
    %525 = vector.load %arg7[%c0_508, %c0_509] : memref<72x256xf32, #tpu.memory_space<vmem>>, vector<1x128xf32>
    tpu.vector_store %arg7[%c0_508, %c0_509], %0 {strides = array<i32>} : memref<72x256xf32, #tpu.memory_space<vmem>>, vector<1x128xf32>,
    %c3_510 = arith.constant 3 : index
    %c0_511 = arith.constant 0 : index
    %526 = vector.load %arg7[%c3_510, %c0_511] : memref<72x256xf32, #tpu.memory_space<vmem>>, vector<1x128xf32>
    tpu.vector_store %arg7[%c3_510, %c0_511], %0 {strides = array<i32>} : memref<72x256xf32, #tpu.memory_space<vmem>>, vector<1x128xf32>,
    %c4_512 = arith.constant 4 : index
    %c0_513 = arith.constant 0 : index
    %527 = vector.load %arg7[%c4_512, %c0_513] : memref<72x256xf32, #tpu.memory_space<vmem>>, vector<1x128xf32>
    tpu.vector_store %arg7[%c4_512, %c0_513], %0 {strides = array<i32>} : memref<72x256xf32, #tpu.memory_space<vmem>>, vector<1x128xf32>,
    %c7_514 = arith.constant 7 : index
    %c0_515 = arith.constant 0 : index
    %528 = vector.load %arg7[%c7_514, %c0_515] : memref<72x256xf32, #tpu.memory_space<vmem>>, vector<1x128xf32>
    tpu.vector_store %arg7[%c7_514, %c0_515], %0 {strides = array<i32>} : memref<72x256xf32, #tpu.memory_space<vmem>>, vector<1x128xf32>,
    %c8_516 = arith.constant 8 : index
    %c0_517 = arith.constant 0 : index
    %529 = vector.load %arg7[%c8_516, %c0_517] : memref<72x256xf32, #tpu.memory_space<vmem>>, vector<1x128xf32>
    tpu.vector_store %arg7[%c8_516, %c0_517], %0 {strides = array<i32>} : memref<72x256xf32, #tpu.memory_space<vmem>>, vector<1x128xf32>,
    %c11_518 = arith.constant 11 : index
    %c0_519 = arith.constant 0 : index
    %530 = vector.load %arg7[%c11_518, %c0_519] : memref<72x256xf32, #tpu.memory_space<vmem>>, vector<1x128xf32>
    tpu.vector_store %arg7[%c11_518, %c0_519], %0 {strides = array<i32>} : memref<72x256xf32, #tpu.memory_space<vmem>>, vector<1x128xf32>,
    %c12_520 = arith.constant 12 : index
    %c0_521 = arith.constant 0 : index
    %531 = vector.load %arg7[%c12_520, %c0_521] : memref<72x256xf32, #tpu.memory_space<vmem>>, vector<1x128xf32>
    tpu.vector_store %arg7[%c12_520, %c0_521], %0 {strides = array<i32>} : memref<72x256xf32, #tpu.memory_space<vmem>>, vector<1x128xf32>,
    %c15_522 = arith.constant 15 : index
    %c0_523 = arith.constant 0 : index
    %532 = vector.load %arg7[%c15_522, %c0_523] : memref<72x256xf32, #tpu.memory_space<vmem>>, vector<1x128xf32>
    tpu.vector_store %arg7[%c15_522, %c0_523], %0 {strides = array<i32>} : memref<72x256xf32, #tpu.memory_space<vmem>>, vector<1x128xf32>,
    %c0_524 = arith.constant 0 : index
    %c0_525 = arith.constant 0 : index
    %533 = vector.load %arg7[%c0_524, %c0_525] : memref<72x256xf32, #tpu.memory_space<vmem>>, vector<14x128xf32>
    %534 = arith.truncf %533 : vector<14x128xf32> to vector<14x128xbf16>
    %c1_526 = arith.constant 1 : index
    %c0_527 = arith.constant 0 : index
    %535 = vector.load %arg7[%c1_526, %c0_527] : memref<72x256xf32, #tpu.memory_space<vmem>>, vector<14x128xf32>
    %536 = arith.truncf %535 : vector<14x128xf32> to vector<14x128xbf16>
    %c2_528 = arith.constant 2 : index
    %c0_529 = arith.constant 0 : index
    %537 = vector.load %arg7[%c2_528, %c0_529] : memref<72x256xf32, #tpu.memory_space<vmem>>, vector<14x128xf32>
    %538 = arith.truncf %537 : vector<14x128xf32> to vector<14x128xbf16>
    %c39_530 = arith.constant 39 : index
    %c0_531 = arith.constant 0 : index
    %c0_532 = arith.constant 0 : index
    %539 = vector.load %arg2[%c39_530, %c0_531, %c0_532] : memref<45x128x256xbf16, #tpu.memory_space<vmem>>, vector<1x128x256xbf16>
    %540 = vector.shape_cast %539 : vector<1x128x256xbf16> to vector<128x256xbf16>
    %541 = vector.extract_strided_slice %540 {offsets = [0, 0], sizes = [128, 64], strides = [1, 1]} : vector<128x256xbf16> to vector<128x64xbf16>
    %cst_533 = arith.constant dense<0.000000e+00> : vector<14x64xf32>
    %542 = tpu.matmul %534, %541, %cst_533 {dimension_numbers = #tpu.dot_dimension_numbers<[1], [0], [0], [1], [0, 0, 1, 1], [], []>} : vector<14x128xbf16>, vector<128x64xbf16>, vector<14x64xf32> -> vector<14x64xf32>
    %c40 = arith.constant 40 : index
    %c0_534 = arith.constant 0 : index
    %c0_535 = arith.constant 0 : index
    %543 = vector.load %arg2[%c40, %c0_534, %c0_535] : memref<45x128x256xbf16, #tpu.memory_space<vmem>>, vector<1x128x256xbf16>
    %544 = vector.shape_cast %543 : vector<1x128x256xbf16> to vector<128x256xbf16>
    %545 = vector.extract_strided_slice %544 {offsets = [0, 0], sizes = [128, 64], strides = [1, 1]} : vector<128x256xbf16> to vector<128x64xbf16>
    %cst_536 = arith.constant dense<0.000000e+00> : vector<14x64xf32>
    %546 = tpu.matmul %536, %545, %cst_536 {dimension_numbers = #tpu.dot_dimension_numbers<[1], [0], [0], [1], [0, 0, 1, 1], [], []>} : vector<14x128xbf16>, vector<128x64xbf16>, vector<14x64xf32> -> vector<14x64xf32>
    %547 = arith.addf %542, %546 : vector<14x64xf32>
    %c41 = arith.constant 41 : index
    %c0_537 = arith.constant 0 : index
    %c0_538 = arith.constant 0 : index
    %548 = vector.load %arg2[%c41, %c0_537, %c0_538] : memref<45x128x256xbf16, #tpu.memory_space<vmem>>, vector<1x128x256xbf16>
    %549 = vector.shape_cast %548 : vector<1x128x256xbf16> to vector<128x256xbf16>
    %550 = vector.extract_strided_slice %549 {offsets = [0, 0], sizes = [128, 64], strides = [1, 1]} : vector<128x256xbf16> to vector<128x64xbf16>
    %cst_539 = arith.constant dense<0.000000e+00> : vector<14x64xf32>
    %551 = tpu.matmul %538, %550, %cst_539 {dimension_numbers = #tpu.dot_dimension_numbers<[1], [0], [0], [1], [0, 0, 1, 1], [], []>} : vector<14x128xbf16>, vector<128x64xbf16>, vector<14x64xf32> -> vector<14x64xf32>
    %552 = arith.addf %547, %551 : vector<14x64xf32>
    %c13_540 = arith.constant 13 : index
    %c0_541 = arith.constant 0 : index
    %c0_542 = arith.constant 0 : index
    %553 = vector.load %arg3[%c13_540, %c0_541, %c0_542] : memref<15x1x256xf32, #tpu.memory_space<vmem>>, vector<1x1x256xf32>
    %554 = vector.shape_cast %553 : vector<1x1x256xf32> to vector<1x256xf32>
    %555 = vector.extract_strided_slice %554 {offsets = [0, 0], sizes = [1, 64], strides = [1, 1]} : vector<1x256xf32> to vector<1x64xf32>
    %556 = vector.broadcast %555 : vector<1x64xf32> to vector<14x64xf32>
    %557 = arith.addf %552, %556 : vector<14x64xf32>
    %cst_543 = arith.constant 0.000000e+00 : f32
    %558 = vector.broadcast %cst_543 : f32 to vector<14x64xf32>
    %559 = arith.maximumf %557, %558 : vector<14x64xf32>
    %c1_544 = arith.constant 1 : index
    %c0_545 = arith.constant 0 : index
    %560 = vector.load %arg8[%c1_544, %c0_545] : memref<72x256xf32, #tpu.memory_space<vmem>>, vector<14x64xf32>
    tpu.vector_store %arg8[%c1_544, %c0_545], %559 {strides = array<i32>} : memref<72x256xf32, #tpu.memory_space<vmem>>, vector<14x64xf32>,
    %c0_546 = arith.constant 0 : index
    %c0_547 = arith.constant 0 : index
    %561 = vector.load %arg8[%c0_546, %c0_547] : memref<72x256xf32, #tpu.memory_space<vmem>>, vector<1x128xf32>
    tpu.vector_store %arg8[%c0_546, %c0_547], %0 {strides = array<i32>} : memref<72x256xf32, #tpu.memory_space<vmem>>, vector<1x128xf32>,
    %c3_548 = arith.constant 3 : index
    %c0_549 = arith.constant 0 : index
    %562 = vector.load %arg8[%c3_548, %c0_549] : memref<72x256xf32, #tpu.memory_space<vmem>>, vector<1x128xf32>
    tpu.vector_store %arg8[%c3_548, %c0_549], %0 {strides = array<i32>} : memref<72x256xf32, #tpu.memory_space<vmem>>, vector<1x128xf32>,
    %c4_550 = arith.constant 4 : index
    %c0_551 = arith.constant 0 : index
    %563 = vector.load %arg8[%c4_550, %c0_551] : memref<72x256xf32, #tpu.memory_space<vmem>>, vector<1x128xf32>
    tpu.vector_store %arg8[%c4_550, %c0_551], %0 {strides = array<i32>} : memref<72x256xf32, #tpu.memory_space<vmem>>, vector<1x128xf32>,
    %c7_552 = arith.constant 7 : index
    %c0_553 = arith.constant 0 : index
    %564 = vector.load %arg8[%c7_552, %c0_553] : memref<72x256xf32, #tpu.memory_space<vmem>>, vector<1x128xf32>
    tpu.vector_store %arg8[%c7_552, %c0_553], %0 {strides = array<i32>} : memref<72x256xf32, #tpu.memory_space<vmem>>, vector<1x128xf32>,
    %c8_554 = arith.constant 8 : index
    %c0_555 = arith.constant 0 : index
    %565 = vector.load %arg8[%c8_554, %c0_555] : memref<72x256xf32, #tpu.memory_space<vmem>>, vector<1x128xf32>
    tpu.vector_store %arg8[%c8_554, %c0_555], %0 {strides = array<i32>} : memref<72x256xf32, #tpu.memory_space<vmem>>, vector<1x128xf32>,
    %c11_556 = arith.constant 11 : index
    %c0_557 = arith.constant 0 : index
    %566 = vector.load %arg8[%c11_556, %c0_557] : memref<72x256xf32, #tpu.memory_space<vmem>>, vector<1x128xf32>
    tpu.vector_store %arg8[%c11_556, %c0_557], %0 {strides = array<i32>} : memref<72x256xf32, #tpu.memory_space<vmem>>, vector<1x128xf32>,
    %c12_558 = arith.constant 12 : index
    %c0_559 = arith.constant 0 : index
    %567 = vector.load %arg8[%c12_558, %c0_559] : memref<72x256xf32, #tpu.memory_space<vmem>>, vector<1x128xf32>
    tpu.vector_store %arg8[%c12_558, %c0_559], %0 {strides = array<i32>} : memref<72x256xf32, #tpu.memory_space<vmem>>, vector<1x128xf32>,
    %c15_560 = arith.constant 15 : index
    %c0_561 = arith.constant 0 : index
    %568 = vector.load %arg8[%c15_560, %c0_561] : memref<72x256xf32, #tpu.memory_space<vmem>>, vector<1x128xf32>
    tpu.vector_store %arg8[%c15_560, %c0_561], %0 {strides = array<i32>} : memref<72x256xf32, #tpu.memory_space<vmem>>, vector<1x128xf32>,
    %c0_562 = arith.constant 0 : index
    %c0_563 = arith.constant 0 : index
    %569 = vector.load %arg8[%c0_562, %c0_563] : memref<72x256xf32, #tpu.memory_space<vmem>>, vector<14x128xf32>
    %570 = arith.truncf %569 : vector<14x128xf32> to vector<14x128xbf16>
    %c1_564 = arith.constant 1 : index
    %c0_565 = arith.constant 0 : index
    %571 = vector.load %arg8[%c1_564, %c0_565] : memref<72x256xf32, #tpu.memory_space<vmem>>, vector<14x128xf32>
    %572 = arith.truncf %571 : vector<14x128xf32> to vector<14x128xbf16>
    %c2_566 = arith.constant 2 : index
    %c0_567 = arith.constant 0 : index
    %573 = vector.load %arg8[%c2_566, %c0_567] : memref<72x256xf32, #tpu.memory_space<vmem>>, vector<14x128xf32>
    %574 = arith.truncf %573 : vector<14x128xf32> to vector<14x128xbf16>
    %c42 = arith.constant 42 : index
    %c0_568 = arith.constant 0 : index
    %c0_569 = arith.constant 0 : index
    %575 = vector.load %arg2[%c42, %c0_568, %c0_569] : memref<45x128x256xbf16, #tpu.memory_space<vmem>>, vector<1x128x256xbf16>
    %576 = vector.shape_cast %575 : vector<1x128x256xbf16> to vector<128x256xbf16>
    %577 = vector.extract_strided_slice %576 {offsets = [0, 0], sizes = [128, 64], strides = [1, 1]} : vector<128x256xbf16> to vector<128x64xbf16>
    %cst_570 = arith.constant dense<0.000000e+00> : vector<14x64xf32>
    %578 = tpu.matmul %570, %577, %cst_570 {dimension_numbers = #tpu.dot_dimension_numbers<[1], [0], [0], [1], [0, 0, 1, 1], [], []>} : vector<14x128xbf16>, vector<128x64xbf16>, vector<14x64xf32> -> vector<14x64xf32>
    %c43 = arith.constant 43 : index
    %c0_571 = arith.constant 0 : index
    %c0_572 = arith.constant 0 : index
    %579 = vector.load %arg2[%c43, %c0_571, %c0_572] : memref<45x128x256xbf16, #tpu.memory_space<vmem>>, vector<1x128x256xbf16>
    %580 = vector.shape_cast %579 : vector<1x128x256xbf16> to vector<128x256xbf16>
    %581 = vector.extract_strided_slice %580 {offsets = [0, 0], sizes = [128, 64], strides = [1, 1]} : vector<128x256xbf16> to vector<128x64xbf16>
    %cst_573 = arith.constant dense<0.000000e+00> : vector<14x64xf32>
    %582 = tpu.matmul %572, %581, %cst_573 {dimension_numbers = #tpu.dot_dimension_numbers<[1], [0], [0], [1], [0, 0, 1, 1], [], []>} : vector<14x128xbf16>, vector<128x64xbf16>, vector<14x64xf32> -> vector<14x64xf32>
    %583 = arith.addf %578, %582 : vector<14x64xf32>
    %c44 = arith.constant 44 : index
    %c0_574 = arith.constant 0 : index
    %c0_575 = arith.constant 0 : index
    %584 = vector.load %arg2[%c44, %c0_574, %c0_575] : memref<45x128x256xbf16, #tpu.memory_space<vmem>>, vector<1x128x256xbf16>
    %585 = vector.shape_cast %584 : vector<1x128x256xbf16> to vector<128x256xbf16>
    %586 = vector.extract_strided_slice %585 {offsets = [0, 0], sizes = [128, 64], strides = [1, 1]} : vector<128x256xbf16> to vector<128x64xbf16>
    %cst_576 = arith.constant dense<0.000000e+00> : vector<14x64xf32>
    %587 = tpu.matmul %574, %586, %cst_576 {dimension_numbers = #tpu.dot_dimension_numbers<[1], [0], [0], [1], [0, 0, 1, 1], [], []>} : vector<14x128xbf16>, vector<128x64xbf16>, vector<14x64xf32> -> vector<14x64xf32>
    %588 = arith.addf %583, %587 : vector<14x64xf32>
    %c14_577 = arith.constant 14 : index
    %c0_578 = arith.constant 0 : index
    %c0_579 = arith.constant 0 : index
    %589 = vector.load %arg3[%c14_577, %c0_578, %c0_579] : memref<15x1x256xf32, #tpu.memory_space<vmem>>, vector<1x1x256xf32>
    %590 = vector.shape_cast %589 : vector<1x1x256xf32> to vector<1x256xf32>
    %591 = vector.extract_strided_slice %590 {offsets = [0, 0], sizes = [1, 64], strides = [1, 1]} : vector<1x256xf32> to vector<1x64xf32>
    %592 = vector.broadcast %591 : vector<1x64xf32> to vector<14x64xf32>
    %593 = arith.addf %588, %592 : vector<14x64xf32>
    %c1_580 = arith.constant 1 : index
    %c0_581 = arith.constant 0 : index
    %594 = vector.load %arg7[%c1_580, %c0_581] : memref<72x256xf32, #tpu.memory_space<vmem>>, vector<14x64xf32>
    %595 = arith.addf %593, %594 : vector<14x64xf32>
    %cst_582 = arith.constant 0.000000e+00 : f32
    %596 = vector.broadcast %cst_582 : f32 to vector<14x64xf32>
    %597 = arith.maximumf %595, %596 : vector<14x64xf32>
    %c1_583 = arith.constant 1 : index
    %c0_584 = arith.constant 0 : index
    %598 = vector.load %arg7[%c1_583, %c0_584] : memref<72x256xf32, #tpu.memory_space<vmem>>, vector<14x64xf32>
    tpu.vector_store %arg7[%c1_583, %c0_584], %597 {strides = array<i32>} : memref<72x256xf32, #tpu.memory_space<vmem>>, vector<14x64xf32>,
    %c0_585 = arith.constant 0 : index
    %c0_586 = arith.constant 0 : index
    %599 = vector.load %arg7[%c0_585, %c0_586] : memref<72x256xf32, #tpu.memory_space<vmem>>, vector<1x128xf32>
    tpu.vector_store %arg7[%c0_585, %c0_586], %0 {strides = array<i32>} : memref<72x256xf32, #tpu.memory_space<vmem>>, vector<1x128xf32>,
    %c3_587 = arith.constant 3 : index
    %c0_588 = arith.constant 0 : index
    %600 = vector.load %arg7[%c3_587, %c0_588] : memref<72x256xf32, #tpu.memory_space<vmem>>, vector<1x128xf32>
    tpu.vector_store %arg7[%c3_587, %c0_588], %0 {strides = array<i32>} : memref<72x256xf32, #tpu.memory_space<vmem>>, vector<1x128xf32>,
    %c4_589 = arith.constant 4 : index
    %c0_590 = arith.constant 0 : index
    %601 = vector.load %arg7[%c4_589, %c0_590] : memref<72x256xf32, #tpu.memory_space<vmem>>, vector<1x128xf32>
    tpu.vector_store %arg7[%c4_589, %c0_590], %0 {strides = array<i32>} : memref<72x256xf32, #tpu.memory_space<vmem>>, vector<1x128xf32>,
    %c7_591 = arith.constant 7 : index
    %c0_592 = arith.constant 0 : index
    %602 = vector.load %arg7[%c7_591, %c0_592] : memref<72x256xf32, #tpu.memory_space<vmem>>, vector<1x128xf32>
    tpu.vector_store %arg7[%c7_591, %c0_592], %0 {strides = array<i32>} : memref<72x256xf32, #tpu.memory_space<vmem>>, vector<1x128xf32>,
    %c8_593 = arith.constant 8 : index
    %c0_594 = arith.constant 0 : index
    %603 = vector.load %arg7[%c8_593, %c0_594] : memref<72x256xf32, #tpu.memory_space<vmem>>, vector<1x128xf32>
    tpu.vector_store %arg7[%c8_593, %c0_594], %0 {strides = array<i32>} : memref<72x256xf32, #tpu.memory_space<vmem>>, vector<1x128xf32>,
    %c11_595 = arith.constant 11 : index
    %c0_596 = arith.constant 0 : index
    %604 = vector.load %arg7[%c11_595, %c0_596] : memref<72x256xf32, #tpu.memory_space<vmem>>, vector<1x128xf32>
    tpu.vector_store %arg7[%c11_595, %c0_596], %0 {strides = array<i32>} : memref<72x256xf32, #tpu.memory_space<vmem>>, vector<1x128xf32>,
    %c12_597 = arith.constant 12 : index
    %c0_598 = arith.constant 0 : index
    %605 = vector.load %arg7[%c12_597, %c0_598] : memref<72x256xf32, #tpu.memory_space<vmem>>, vector<1x128xf32>
    tpu.vector_store %arg7[%c12_597, %c0_598], %0 {strides = array<i32>} : memref<72x256xf32, #tpu.memory_space<vmem>>, vector<1x128xf32>,
    %c15_599 = arith.constant 15 : index
    %c0_600 = arith.constant 0 : index
    %606 = vector.load %arg7[%c15_599, %c0_600] : memref<72x256xf32, #tpu.memory_space<vmem>>, vector<1x128xf32>
    tpu.vector_store %arg7[%c15_599, %c0_600], %0 {strides = array<i32>} : memref<72x256xf32, #tpu.memory_space<vmem>>, vector<1x128xf32>,
    %c1_601 = arith.constant 1 : index
    %c0_602 = arith.constant 0 : index
    %607 = vector.load %arg7[%c1_601, %c0_602] : memref<72x256xf32, #tpu.memory_space<vmem>>, vector<2x64xf32>
    %c0_603 = arith.constant 0 : index
    %c0_604 = arith.constant 0 : index
    %c0_605 = arith.constant 0 : index
    %608 = vector.load %arg6[%c0_603, %c0_604, %c0_605] : memref<4x2x64xf32, #tpu.memory_space<vmem>>, vector<1x2x64xf32>
    %609 = vector.shape_cast %608 : vector<1x2x64xf32> to vector<2x64xf32>
    %610 = vector.shape_cast %607 : vector<2x64xf32> to vector<1x2x64xf32>
    tpu.vector_store %arg6[%c0_603, %c0_604, %c0_605], %610 {strides = array<i32>} : memref<4x2x64xf32, #tpu.memory_space<vmem>>, vector<1x2x64xf32>,
    %c5_606 = arith.constant 5 : index
    %c0_607 = arith.constant 0 : index
    %611 = vector.load %arg7[%c5_606, %c0_607] : memref<72x256xf32, #tpu.memory_space<vmem>>, vector<2x64xf32>
    %c1_608 = arith.constant 1 : index
    %c0_609 = arith.constant 0 : index
    %c0_610 = arith.constant 0 : index
    %612 = vector.load %arg6[%c1_608, %c0_609, %c0_610] : memref<4x2x64xf32, #tpu.memory_space<vmem>>, vector<1x2x64xf32>
    %613 = vector.shape_cast %612 : vector<1x2x64xf32> to vector<2x64xf32>
    %614 = vector.shape_cast %611 : vector<2x64xf32> to vector<1x2x64xf32>
    tpu.vector_store %arg6[%c1_608, %c0_609, %c0_610], %614 {strides = array<i32>} : memref<4x2x64xf32, #tpu.memory_space<vmem>>, vector<1x2x64xf32>,
    %c9_611 = arith.constant 9 : index
    %c0_612 = arith.constant 0 : index
    %615 = vector.load %arg7[%c9_611, %c0_612] : memref<72x256xf32, #tpu.memory_space<vmem>>, vector<2x64xf32>
    %c2_613 = arith.constant 2 : index
    %c0_614 = arith.constant 0 : index
    %c0_615 = arith.constant 0 : index
    %616 = vector.load %arg6[%c2_613, %c0_614, %c0_615] : memref<4x2x64xf32, #tpu.memory_space<vmem>>, vector<1x2x64xf32>
    %617 = vector.shape_cast %616 : vector<1x2x64xf32> to vector<2x64xf32>
    %618 = vector.shape_cast %615 : vector<2x64xf32> to vector<1x2x64xf32>
    tpu.vector_store %arg6[%c2_613, %c0_614, %c0_615], %618 {strides = array<i32>} : memref<4x2x64xf32, #tpu.memory_space<vmem>>, vector<1x2x64xf32>,
    %c13_616 = arith.constant 13 : index
    %c0_617 = arith.constant 0 : index
    %619 = vector.load %arg7[%c13_616, %c0_617] : memref<72x256xf32, #tpu.memory_space<vmem>>, vector<2x64xf32>
    %c3_618 = arith.constant 3 : index
    %c0_619 = arith.constant 0 : index
    %c0_620 = arith.constant 0 : index
    %620 = vector.load %arg6[%c3_618, %c0_619, %c0_620] : memref<4x2x64xf32, #tpu.memory_space<vmem>>, vector<1x2x64xf32>
    %621 = vector.shape_cast %620 : vector<1x2x64xf32> to vector<2x64xf32>
    %622 = vector.shape_cast %619 : vector<2x64xf32> to vector<1x2x64xf32>
    tpu.vector_store %arg6[%c3_618, %c0_619, %c0_620], %622 {strides = array<i32>} : memref<4x2x64xf32, #tpu.memory_space<vmem>>, vector<1x2x64xf32>,
    return
  }
  func.func @transform_0(%arg0: i32) -> (i32, i32, i32) {
    %c0_i32 = arith.constant 0 : i32
    %c0_i32_0 = arith.constant 0 : i32
    %c0_i32_1 = arith.constant 0 : i32
    return %arg0, %c0_i32, %c0_i32_0 : i32, i32, i32
  }
  func.func @transform_1(%arg0: i32) -> (i32, i32, i32) {
    %c0_i32 = arith.constant 0 : i32
    %c0_i32_0 = arith.constant 0 : i32
    %c0_i32_1 = arith.constant 0 : i32
    %c0_i32_2 = arith.constant 0 : i32
    return %c0_i32, %c0_i32_0, %c0_i32_1 : i32, i32, i32
  }
  func.func @transform_2(%arg0: i32) -> (i32, i32, i32) {
    %c0_i32 = arith.constant 0 : i32
    %c0_i32_0 = arith.constant 0 : i32
    %c0_i32_1 = arith.constant 0 : i32
    %c0_i32_2 = arith.constant 0 : i32
    return %c0_i32, %c0_i32_0, %c0_i32_1 : i32, i32, i32
  }
  func.func @transform_3(%arg0: i32) -> (i32, i32, i32) {
    %c0_i32 = arith.constant 0 : i32
    %c0_i32_0 = arith.constant 0 : i32
    %c0_i32_1 = arith.constant 0 : i32
    %c0_i32_2 = arith.constant 0 : i32
    return %c0_i32, %c0_i32_0, %c0_i32_1 : i32, i32, i32
  }
  func.func @transform_4(%arg0: i32) -> (i32, i32, i32) {
    %c0_i32 = arith.constant 0 : i32
    %c0_i32_0 = arith.constant 0 : i32
    %c0_i32_1 = arith.constant 0 : i32
    %c0_i32_2 = arith.constant 0 : i32
    return %c0_i32, %c0_i32_0, %c0_i32_1 : i32, i32, i32
  }
  func.func @transform_5(%arg0: i32) -> (i32, i32, i32) {
    %c0_i32 = arith.constant 0 : i32
    %c0_i32_0 = arith.constant 0 : i32
    %c0_i32_1 = arith.constant 0 : i32
    return %arg0, %c0_i32, %c0_i32_0 : i32, i32, i32
  }
}

</mosaic_0001>

<bundles_post_ra>
// kernel: impala_cnn_forward.1
= control target key start
LH: loop header
LB: loop body
LE: loop exit
PB: predicated region body
PF: predicated region fallthrough
CT: control target
= control target key end

     0   :  { %s12924_s18 = smov 0   ;;  %s15471_s0 = inlined_call_operand.vmem [shape: f32[8,16,128], index: 0, kind: input, shape index: {}]   ;;  %s15472_s1 = inlined_call_operand.vmem [shape: bf16[45,128,256], index: 1, kind: input, shape index: {}]   ;;  %s15473_s2 = inlined_call_operand.vmem [shape: f32[15,1,256], index: 2, kind: input, shape index: {}]   ;;  %s15474_s3 = inlined_call_operand.vmem [shape: bf16[3,256,384], index: 3, kind: input, shape index: {}]   ;;  %s15475_s4 = inlined_call_operand.vmem [shape: bf16[9,40,72], index: 4, kind: input, shape index: {}]   ;;  %s15476_s5 = inlined_call_operand.vmem [shape: f32[8,2,64], index: 5, kind: output, shape index: {}]  }
   0x1 LB: > { %s9212_s19 = sadd.s32 4294967295, %s12889_s18   ;;  %p9216_p0 = scmp.ge.s32.totalorder %s12889_s18, 1  ;;  %s12889_s18 = sphi %s12924_s18, %s15_s18  }
   0x2   : > { %p189_p1 = scmp.lt.s32.totalorder %s12889_s18, 3 }
   0x4   : > { %p190_p2 = pnand %p9216_p0, %p189_p1 }
   0x5   : > { %v12243_v0 = vld [vmem:[%s15472_s1 + $0x84] ss:$8 sps:$4 sm:$0xff] (!%p190_p2)   ;;  %s9217_s22 = sshll.u32 (!%p190_p2), %s9212_s19, 2  ;;  %v12245_v1 = vld [vmem:[%s15472_s1 + $0x80] ss:$8 sps:$4 sm:$0xff] (!%p190_p2)   ;;  %v12891_v2 = vmov (!%p190_p2), 0  }
   0x6   : > { %193 = sbr.rel (%p190_p2) target bundleno = 5770 (0x168a), region = 40  ;;  %539 = vmatprep.mubr.bf16.mxu0 (!%p190_p2), %v12891_v2  ;;  %p219_p3 = scmp.lt.s32.totalorder (!%p190_p2), %s9217_s22, 7  ;;  %507 = vmatprep.subr.bf16.mxu0 (!%p190_p2), %v12243_v0  ;;  %v12246_v3 = vld [vmem:[%s15472_s1 + $0x94] ss:$8 sps:$4 sm:$0xff] (!%p190_p2)   ;;  %v12892_v4 = vmov (!%p190_p2), 0.0   ;;  %vm302_vm0 = vcmask (!%p190_p2), 1044480  }
   0x7   : > { %232 = vst [vmem:[#allocation2] sm:$0xff] (!%p190_p2), %v12892_v4  ;;  %233 = vst [vmem:[#allocation2 + $0x8] sm:$0xff] (!%p190_p2), %v12892_v4  ;;  %508 = vmatpush1.bf16.msra.mxu0 (!%p190_p2), %v12245_v1  ;;  %v12248_v5 = vld [vmem:[%s15472_s1 + $0x90] ss:$8 sps:$4 sm:$0xff] (!%p190_p2)   ;;  %v12249_v6 = vld [vmem:[%s15472_s1 + $0xa4] ss:$8 sps:$4 sm:$0xff] (!%p190_p2)  }
   0x8   : > { %236 = vst [vmem:[#allocation2 + $0x20] sm:$0xff] (!%p190_p2), %v12892_v4  ;;  %240 = vst [vmem:[#allocation2 + $0x40] sm:$0xff] (!%p190_p2), %v12892_v4  ;;  %509 = vmatprep.subr.bf16.mxu0 (!%p190_p2), %v12246_v3  ;;  %v12251_v7 = vld [vmem:[%s15472_s1 + $0xa0] ss:$8 sps:$4 sm:$0xff] (!%p190_p2)   ;;  %v12252_v8 = vld [vmem:[%s15472_s1 + $0xb4] ss:$8 sps:$4 sm:$0xff] (!%p190_p2)  }
   0x9   : > { %244 = vst [vmem:[#allocation2 + $0x60] sm:$0xff] (!%p190_p2), %v12892_v4  ;;  %248 = vst [vmem:[#allocation2 + $0x80] sm:$0xff] (!%p190_p2), %v12892_v4  ;;  %v12254_v9 = vld [vmem:[%s15472_s1 + $0xb0] ss:$8 sps:$4 sm:$0xff] (!%p190_p2)   ;;  %v12255_v10 = vld [vmem:[%s15472_s1 + $0xc4] ss:$8 sps:$4 sm:$0xff] (!%p190_p2)  }
   0xa   : > { %250 = vst [vmem:[#allocation3] sm:$0xff] (!%p190_p2), %v12892_v4  ;;  %251 = vst [vmem:[#allocation3 + $0x8] sm:$0xff] (!%p190_p2), %v12892_v4  ;;  %vm272_vm1 = vcmask (!%p190_p2), 1040384   ;;  %v12257_v23 = vld [vmem:[%s15472_s1 + $0xc0] ss:$8 sps:$4 sm:$0xff] (!%p190_p2)   ;;  %vm287_vm2 = vcmask (!%p190_p2), 1042432  }
   0xb   : > { %266 = vst [vmem:[#allocation3 + $0x80] sm:$0xff] (!%p190_p2), %v12892_v4  ;;  %267 = vst [vmem:[#allocation3 + $0x88] sm:$0xff] (!%p190_p2), %v12892_v4  ;;  %510 = vmatpush1.bf16.msra.mxu0 (!%p190_p2), %v12248_v5  ;;  %vm317_vm3 = vcmask (!%p190_p2), 1046528   ;;  %v12258_v26 = vld [vmem:[%s15472_s1 + $0xd4] ss:$8 sps:$4 sm:$0xff] (!%p190_p2)   ;;  %vm12893_vm5 = vmmov (!%p190_p2), 0  }
   0xc   : > { %511 = vmatprep.subr.bf16.mxu0 (!%p190_p2), %v12249_v6  ;;  %v12260_v32 = vld [vmem:[%s15472_s1 + $0xd0] ss:$8 sps:$4 sm:$0xff] (!%p190_p2)   ;;  %v12261_v34 = vld [vmem:[%s15472_s1 + $0xe4] ss:$8 sps:$4 sm:$0xff] (!%p190_p2)   ;;  %v12263_v38 = vld [vmem:[%s15472_s1 + $0xe0] ss:$8 sps:$4 sm:$0xff] (!%p190_p2)  }
   0xd   : > { %s15478_s22 = smov (!%p219_p3, %s9217_s22), 7  ;;  %v12264_v40 = vld [vmem:[%s15472_s1 + $0xf4] ss:$8 sps:$4 sm:$0xff]   ;;  %v12266_v47 = vld [vmem:[%s15472_s1 + $0xf0] ss:$8 sps:$4 sm:$0xff]   ;;  %vm1635_vm6 = vcmask 1043456  }
   0xe   : > { %s10636_s6 = sshll.u32 %s15478_s22, 4  ;;  %v12269_v50 = vld [vmem:[%s15472_s1 + $0x4] ss:$8 sps:$4 sm:$0xff]   ;;  %vm382_vm4 = vsmask.f32 7424  ;;  %vm1625_vm7 = vcmask 588800  }
   0xf   : > { %s223_s11 = scalar_lea.vmem %s15471_s0, %s10636_s6  ;;  %512 = vmatpush1.bf16.msra.mxu0 %v12251_v7  ;;  %v12267_v53 = vld [vmem:[%s15472_s1] ss:$8 sps:$4 sm:$0xff]   ;;  %v12272_v55 = vld [vmem:[%s15472_s1 + $0x14] ss:$8 sps:$4 sm:$0xff]   ;;  %v12270_v0 = vld [vmem:[%s15472_s1 + $0x10] ss:$8 sps:$4 sm:$0xff]  }
  0x10   : > { %v268_v11 = vld [vmem:[%s223_s11] sm:$0xff]  ;;  %v269_v12 = vld [vmem:[%s223_s11 + $0x8] sm:$0xff]  ;;  %v9222_v14 = vld [vmem:[%s223_s11 + $0x10] sm:$0xff]  ;;  %513 = vmatprep.subr.bf16.mxu0 %v12252_v8  ;;  %vm4907_vm8 = vcmask 326656   ;;  %vm7485_vm9 = vcmask 195584   ;;  %vm8002_vm10 = vcmask 523265  }
  0x11   : > { %v273_v13 = vrot.slane %v268_v11, 7  ;;  %v9223_v15 = vld [vmem:[%s223_s11 + $0x18] sm:$0xff]  ;;  %v274_v16 = vrot.slane %v269_v12, 7  ;;  %v288_v17 = vrot.slane %v9222_v14, 5  ;;  %v9224_v19 = vld [vmem:[%s223_s11 + $0x20] sm:$0xff]  ;;  %v9225_v20 = vld [vmem:[%s223_s11 + $0x28] sm:$0xff] }
  0x12   : > { %v289_v18 = vrot.slane %v9223_v15, 5  ;;  %v303_v21 = vrot.slane %v9224_v19, 3  ;;  %v304_v22 = vrot.slane %v9225_v20, 3  ;;  %v9226_v24 = vld [vmem:[%s223_s11 + $0x30] sm:$0xff]  ;;  %v9227_v25 = vld [vmem:[%s223_s11 + $0x38] sm:$0xff]  ;;  %vm8004_vm11 = vcmask 522240  }
  0x13   : > { %279 = vst [vmem:[#allocation2] sm:$0xfe] %v273_v13  ;;  %281 = vst [vmem:[#allocation2 + $0x20] sm:$0x1] %v274_v16  ;;  %514 = vmatpush1.bf16.msra.mxu0 %v12254_v9  ;;  %v318_v28 = vrot.slane %v9226_v24, 1  ;;  %v319_v29 = vrot.slane %v9227_v25, 1  ;;  %v12985_v30 = vsel %vm272_vm1, %v273_v13, %v274_v16 }
  0x14   : > { %294 = vst [vmem:[#allocation2 + $0x20] sm:$0xf8] %v288_v17  ;;  %296 = vst [vmem:[#allocation2 + $0x40] sm:$0x7] %v289_v18  ;;  %515 = vmatprep.subr.bf16.mxu0 %v12255_v10  ;;  %v305_v27 = vsel %vm302_vm0, %v303_v21, %v304_v22  ;;  %v290_v33 = vsel %vm287_vm2, %v288_v17, %v289_v18  ;;  %v12275_v3 = vld [vmem:[%s15472_s1 + $0x24] ss:$8 sps:$4 sm:$0xff]  }
  0x15   : > { %309 = vst [vmem:[#allocation2 + $0x40] sm:$0xe0] %v303_v21  ;;  %311 = vst [vmem:[#allocation2 + $0x60] sm:$0x1f] %v304_v22  ;;  %v320_v31 = vsel %vm317_vm3, %v318_v28, %v319_v29  ;;  %v12273_v5 = vld [vmem:[%s15472_s1 + $0x20] ss:$8 sps:$4 sm:$0xff]  }
  0x16   : > { %324 = vst [vmem:[#allocation2 + $0x60] sm:$0x80] %v318_v28  ;;  %326 = vst [vmem:[#allocation2 + $0x80] sm:$0x7f] %v319_v29  ;;  %v12278_v7 = vld [vmem:[%s15472_s1 + $0x34] ss:$8 sps:$4 sm:$0xff]  }
  0x17   : > { %516 = vmatpush1.bf16.msra.mxu0 %v12257_v23  ;;  %v12276_v12 = vld [vmem:[%s15472_s1 + $0x30] ss:$8 sps:$4 sm:$0xff]   ;;  %v12281_v13 = vld [vmem:[%s15472_s1 + $0x44] ss:$8 sps:$4 sm:$0xff]   ;;  %v12279_v17 = vld [vmem:[%s15472_s1 + $0x40] ss:$8 sps:$4 sm:$0xff]  }
  0x18   : > { %517 = vmatprep.subr.bf16.mxu0 %v12258_v26  ;;  %v12284_v18 = vld [vmem:[%s15472_s1 + $0x54] ss:$8 sps:$4 sm:$0xff]   ;;  %v12282_v23 = vld [vmem:[%s15472_s1 + $0x50] ss:$8 sps:$4 sm:$0xff]   ;;  %v12287_v24 = vld [vmem:[%s15472_s1 + $0x64] ss:$8 sps:$4 sm:$0xff]  }
  0x19   : > { %v12285_v26 = vld [vmem:[%s15472_s1 + $0x60] ss:$8 sps:$4 sm:$0xff]   ;;  %v12288_v29 = vld [vmem:[%s15472_s1 + $0x70] ss:$8 sps:$4 sm:$0xff]   ;;  %s9221_s19 = sshll.u32 %s15478_s22, 1  ;;  %vm9144_vm12 = vcmask 518145  }
  0x1a   : > { %v341_v35 = vld [vmem:[#allocation2] sm:$0xfe]  ;;  %s229_s23 = scalar_lea.vmem %s15476_s5, %s9221_s19  ;;  %vm9148_vm13 = vcmask 522245  }
  0x1b   : > { %v329_v36 = vld [vmem:[#allocation2 + $0x20] sm:$0xff]  ;;  %v343_v37 = vpack.c.bf16 %v12985_v30, %v341_v35  ;;  %518 = vmatpush1.bf16.msra.mxu0 %v12260_v32 }
  0x1c   : > { %v12999_v39 = vpack.c.bf16 %v290_v33, %v329_v36  ;;  %519 = vmatprep.subr.bf16.mxu0 %v12261_v34  ;;  %v345_v43 = vld [vmem:[#allocation2] sm:$0xfc]  ;;  %v12296_v36 = vld [vmem:[%s15472_s1 + $0x114] ss:$8 sps:$4 sm:$0xff]  }
  0x1d   : > { %v384_v41 = vshrl.u32 %v343_v37, 16  ;;  %v386_v42 = vshll.u32 %v343_v37, 16  ;;  %v331_v45 = vld [vmem:[#allocation2 + $0x40] sm:$0xff]  ;;  %v347_v52 = vpack.c.bf16 %v12985_v30, %v345_v43  ;;  %v12294_v37 = vld [vmem:[%s15472_s1 + $0x110] ss:$8 sps:$4 sm:$0xff]  }
  0x1e   : > { %v391_v44 = vshll.u32 %v12999_v39, 16  ;;  %v13011_v51 = vpack.c.bf16 %v305_v27, %v331_v45  ;;  %v395_v54 = vshrl.u32 %v12999_v39, 16  ;;  %v773_v59 = vrot.slane %v12999_v39, 1  ;;  %v333_v60 = vld [vmem:[#allocation2 + $0x60] sm:$0xff]  ;;  %v12290_v27 = vld [vmem:[%s15472_s1 + $0x74] ss:$8 sps:$4 sm:$0xff]  }
  0x1f   : > { %v388_v46 = vrot.slane %v386_v42, 1  ;;  %520 = vmatpush1.bf16.msra.mxu0 %v12263_v38  ;;  %v772_v58 = vrot.slane %v347_v52, 1  ;;  %v13033_v1 = vpack.c.bf16 %v320_v31, %v333_v60  ;;  %v342_v6 = vld [vmem:[#allocation2 + $0x80] sm:$0x7f]  ;;  %v12306_v45 = vld [vmem:[%s15472_s1 + $0x150] ss:$8 sps:$4 sm:$0xff]  }
  0x20   : > { %v393_v49 = vrot.slane %v391_v44, 1  ;;  %521 = vmatprep.subr.bf16.mxu0 %v12264_v40  ;;  %v399_v57 = vshll.u32 %v13011_v51, 16  ;;  %v403_v9 = vshrl.u32 %v13011_v51, 16  ;;  %v344_v11 = vpack.c.bf16 %v342_v6, %v342_v6  ;;  %v12293_v31 = vld [vmem:[%s15472_s1 + $0x104] ss:$8 sps:$4 sm:$0xff]  }
  0x21   : > { %v389_v48 = vor.u32 %v388_v46, %v384_v41  ;;  %v13027_v61 = vsel %vm317_vm3, %v772_v58, %v773_v59  ;;  %v407_v10 = vshll.u32 %v13033_v1, 16  ;;  %v411_v20 = vshrl.u32 %v13033_v1, 16  ;;  %v327_v33 = vld [vmem:[#allocation2] sm:$0xff]  ;;  %v12302_v40 = vld [vmem:[%s15472_s1 + $0x134] ss:$8 sps:$4 sm:$0xff]  }
  0x22   : > { %v397_v62 = vor.u32 %v395_v54, %v393_v49  ;;  %v401_v63 = vrot.slane %v399_v57, 1  ;;  %v415_v16 = vshll.u32 %v344_v11, 16  ;;  %v419_v22 = vshrl.u32 %v344_v11, 16  ;;  %v12291_v34 = vld [vmem:[%s15472_s1 + $0x100] ss:$8 sps:$4 sm:$0xff]  }
  0x23   : > { %522 = vmatpush1.bf16.msra.mxu0 %v12266_v47  ;;  %v394_v56 = vsel %vm382_vm4, %v389_v48, %v393_v49  ;;  %v409_v15 = vrot.slane %v407_v10, 1  ;;  %v336_v35 = vpack.c.bf16 %v12985_v30, %v327_v33  ;;  %v12299_v38 = vld [vmem:[%s15472_s1 + $0x124] ss:$8 sps:$4 sm:$0xff]   ;;  %v12297_v30 = vld [vmem:[%s15472_s1 + $0x120] ss:$8 sps:$4 sm:$0xff]  }
  0x24   : > { %668 = vmatprep.subr.bf16.mxu0 %v12269_v50  ;;  %v402_v8 = vsel %vm382_vm4, %v397_v62, %v401_v63  ;;  %v405_v14 = vor.u32 %v403_v9, %v401_v63  ;;  %v417_v21 = vrot.slane %v415_v16, 1  ;;  %v12300_v41 = vld [vmem:[%s15472_s1 + $0x130] ss:$8 sps:$4 sm:$0xff]   ;;  %v12305_v42 = vld [vmem:[%s15472_s1 + $0x144] ss:$8 sps:$4 sm:$0xff]  }
  0x25   : > { %v413_v25 = vor.u32 %v411_v20, %v409_v15  ;;  %v12303_v43 = vld [vmem:[%s15472_s1 + $0x140] ss:$8 sps:$4 sm:$0xff]   ;;  %v12308_v44 = vld [vmem:[%s15472_s1 + $0x154] ss:$8 sps:$4 sm:$0xff]   ;;  %v12311_v46 = vld [vmem:[%s15472_s1 + $0x164] ss:$8 sps:$4 sm:$0xff]  }
  0x26   : > { %540 = vmatmul.mubr.bf16.vlgmr.msra.gmra.mrb[0].mxu0 %v394_v56  ;;  %v410_v19 = vsel %vm382_vm4, %v405_v14, %v409_v15  ;;  %v421_v32 = vor.u32 %v419_v22, %v417_v21  ;;  %v12309_v47 = vld [vmem:[%s15472_s1 + $0x160] ss:$8 sps:$4 sm:$0xff]   ;;  %v12314_v48 = vld [vmem:[%s15472_s1 + $0x174] ss:$8 sps:$4 sm:$0xff]   ;;  %v12312_v50 = vld [vmem:[%s15472_s1 + $0x170] ss:$8 sps:$4 sm:$0xff]  }
  0x27   : > { %549 = vmatprep.mubr.bf16.mxu0 %v12891_v2  ;;  %669 = vmatpush1.bf16.msra.mxu0 %v12267_v53  ;;  %v418_v28 = vsel %vm382_vm4, %v413_v25, %v417_v21  ;;  %v335_v49 = vld [vmem:[#allocation2 + $0x80] sm:$0x3f]  ;;  %v775_v53 = vrot.slane %v13011_v51, 1  ;;  %v777_v56 = vrot.slane %v13033_v1, 1  ;;  %v12323_v63 = vld [vmem:[%s15474_s3 + $0x30] ss:$12 sps:$4 sm:$0xff]  }
  0x28   : > { %670 = vmatprep.subr.bf16.mxu0 %v12272_v55  ;;  %v340_v52 = vpack.c.bf16 %v335_v49, %v335_v49  ;;  %v346_v55 = vld [vmem:[#allocation2 + $0x80] sm:$0xff]  ;;  %v12330_v6 = vld [vmem:[%s15474_s3 + $0x7c] ss:$12 sps:$4 sm:$0xff]   ;;  %v12336_v10 = vld [vmem:[%s15474_s3 + $0xac] ss:$12 sps:$4 sm:$0xff]  }
  0x29   : > { %v776_v54 = vsel %vm317_vm3, %v773_v59, %v775_v53  ;;  %v348_v57 = vpack.c.bf16 %v346_v55, %v346_v55  ;;  %v12318_v59 = vld [vmem:[%s15474_s3 + $0x1c] ss:$12 sps:$4 sm:$0xff]   ;;  %v12321_v62 = vld [vmem:[%s15474_s3 + $0x34] ss:$12 sps:$4 sm:$0xff]   ;;  %v12344_v15 = vld [vmem:[%s15474_s3 + $0xd8] ss:$12 sps:$4 sm:$0xff]  }
  0x2a   : > { %v12335_v9 = vld [vmem:[%s15474_s3 + $0x90] ss:$12 sps:$4 sm:$0xff]   ;;  %v12338_v11 = vld [vmem:[%s15474_s3 + $0xa8] ss:$12 sps:$4 sm:$0xff]   ;;  %v12353_v21 = vld [vmem:[%s15474_s3 + $0x120] ss:$12 sps:$4 sm:$0xff]  }
  0x2b   : > { %671 = vmatpush1.bf16.msra.mxu0 %v12270_v0  ;;  %v779_v58 = vrot.slane %v348_v57, 1  ;;  %v12324_v0 = vld [vmem:[%s15474_s3 + $0x4c] ss:$12 sps:$4 sm:$0xff]   ;;  %v12342_v14 = vld [vmem:[%s15474_s3 + $0xdc] ss:$12 sps:$4 sm:$0xff]  }
  0x2c   : > { %672 = vmatprep.subr.bf16.mxu0 %v12275_v3  ;;  %v12327_v3 = vld [vmem:[%s15474_s3 + $0x64] ss:$12 sps:$4 sm:$0xff]   ;;  %v12345_v16 = vld [vmem:[%s15474_s3 + $0xf4] ss:$12 sps:$4 sm:$0xff]   ;;  %v12354_v22 = vld [vmem:[%s15474_s3 + $0x13c] ss:$12 sps:$4 sm:$0xff]  }
  0x2d   : > { %v780_v60 = vsel %vm317_vm3, %v777_v56, %v779_v58  ;;  %v12351_v20 = vld [vmem:[%s15474_s3 + $0x124] ss:$12 sps:$4 sm:$0xff]  }
  0x2e   : > { %550 = vmatmul.mubr.bf16.gmra.mrb[4].mxu0 %v402_v8  ;;  %v12333_v8 = vld [vmem:[%s15474_s3 + $0x94] ss:$12 sps:$4 sm:$0xff]   ;;  %v12359_v25 = vld [vmem:[%s15474_s3 + $0x150] ss:$12 sps:$4 sm:$0xff]  }
  0x2f   : > { %559 = vmatprep.mubr.bf16.mxu0 %v12891_v2  ;;  %673 = vmatpush1.bf16.msra.mxu0 %v12273_v5  ;;  %v12329_v5 = vld [vmem:[%s15474_s3 + $0x60] ss:$12 sps:$4 sm:$0xff]  }
  0x30   : > { %674 = vmatprep.subr.bf16.mxu0 %v12278_v7  ;;  %v12332_v7 = vld [vmem:[%s15474_s3 + $0x78] ss:$12 sps:$4 sm:$0xff]  }
  0x33   : > { %675 = vmatpush1.bf16.msra.mxu0 %v12276_v12  ;;  %v12339_v12 = vld [vmem:[%s15474_s3 + $0xc4] ss:$12 sps:$4 sm:$0xff]  }
  0x34   : > { %676 = vmatprep.subr.bf16.mxu0 %v12281_v13  ;;  %v12341_v13 = vld [vmem:[%s15474_s3 + $0xc0] ss:$12 sps:$4 sm:$0xff]  }
  0x36   : > { %560 = vmatmul.mubr.bf16.gmra.mrb[8].mxu0 %v410_v19  ;;  %v12350_v19 = vld [vmem:[%s15474_s3 + $0x108] ss:$12 sps:$4 sm:$0xff]  }
  0x37   : > { %569 = vmatprep.mubr.bf16.mxu0 %v12891_v2  ;;  %677 = vmatpush1.bf16.msra.mxu0 %v12279_v17  ;;  %v12347_v17 = vld [vmem:[%s15474_s3 + $0xf0] ss:$12 sps:$4 sm:$0xff]  }
  0x38   : > { %678 = vmatprep.subr.bf16.mxu0 %v12284_v18  ;;  %v12348_v18 = vld [vmem:[%s15474_s3 + $0x10c] ss:$12 sps:$4 sm:$0xff]  }
  0x3b   : > { %679 = vmatpush1.bf16.msra.mxu0 %v12282_v23  ;;  %v12356_v23 = vld [vmem:[%s15474_s3 + $0x138] ss:$12 sps:$4 sm:$0xff]  }
  0x3c   : > { %680 = vmatprep.subr.bf16.mxu0 %v12287_v24  ;;  %v12357_v24 = vld [vmem:[%s15474_s3 + $0x154] ss:$12 sps:$4 sm:$0xff]  }
  0x3e   : > { %570 = vmatmul.mubr.bf16.gmra.mrb[12].mxu0 %v418_v28  ;;  %v12363_v28 = vld [vmem:[%s15474_s3 + $0xc8] ss:$12 sps:$4 sm:$0xff]  }
  0x3f   : > { %579 = vmatprep.mubr.bf16.mxu0 %v12891_v2  ;;  %681 = vmatpush1.bf16.msra.mxu0 %v12285_v26  ;;  %v12360_v26 = vld [vmem:[%s15474_s3 + $0x16c] ss:$12 sps:$4 sm:$0xff]  }
  0x40   : > { %682 = vmatprep.subr.bf16.mxu0 %v12290_v27  ;;  %v12362_v27 = vld [vmem:[%s15474_s3 + $0x168] ss:$12 sps:$4 sm:$0xff]  }
  0x43   : > { %683 = vmatpush1.bf16.msra.mxu0 %v12288_v29 }
  0x44   : > { %866 = vmatprep.subr.bf16.mxu0 %v12293_v31 }
  0x46   : > { %580 = vmatmul.mubr.bf16.gmra.mrb[16].mxu0 %v421_v32 }
  0x47   : > { %700 = vmatprep.mubr.bf16.mxu0 %v12891_v2 }
  0x4e   : > { %701 = vmatmul.mubr.bf16.vlgmr.msra.gmra.mrb[0].mxu0 %v336_v35 }
  0x4f   : > { %710 = vmatprep.mubr.bf16.mxu0 %v12891_v2  ;;  %867 = vmatpush1.bf16.msra.mxu0 %v12291_v34  ;;  %v967_v34 = vlaneseq }
  0x50   : > { %868 = vmatprep.subr.bf16.mxu0 %v12296_v36 }
  0x51   : > { %v13250_v35 = vshrl.u32 %v967_v34, 7 }
  0x53   : > { %869 = vmatpush1.bf16.msra.mxu0 %v12294_v37  ;;  %v965_v37 = vld [vmem:[%s15473_s2] sm:$0x3] }
  0x54   : > { %870 = vmatprep.subr.bf16.mxu0 %v12299_v38 }
  0x56   : > { %711 = vmatmul.mubr.bf16.gmra.mrb[4].mxu0 %v12999_v39  ;;  %v12315_v39 = vld [vmem:[%s15474_s3 + $0x4] ss:$12 sps:$4 sm:$0xff]  }
  0x57   : > { %720 = vmatprep.mubr.bf16.mxu0 %v12891_v2  ;;  %871 = vmatpush1.bf16.msra.mxu0 %v12297_v30 }
  0x58   : > { %872 = vmatprep.subr.bf16.mxu0 %v12302_v40  ;;  %1431 = vmatprep.subr.bf16.mxu1 %v12315_v39  ;;  %v13258_v40 = vsub.s32 0, %v13250_v35 }
  0x5b   : > { %873 = vmatpush1.bf16.msra.mxu0 %v12300_v41 }
  0x5c   : > { %874 = vmatprep.subr.bf16.mxu0 %v12305_v42 }
  0x5e   : > { %721 = vmatmul.mubr.bf16.gmra.mrb[8].mxu0 %v13011_v51  ;;  %v12317_v51 = vld [vmem:[%s15474_s3] ss:$12 sps:$4 sm:$0xff]  }
  0x5f   : > { %730 = vmatprep.mubr.bf16.mxu0 %v12891_v2  ;;  %875 = vmatpush1.bf16.msra.mxu0 %v12303_v43  ;;  %v973_v43 = vsub.s32 1, %v13250_v35 }
  0x60   : > { %876 = vmatprep.subr.bf16.mxu0 %v12308_v44  ;;  %1432 = vmatpush1.bf16.msra.mxu1 %v12317_v51 }
  0x61   : > { %1433 = vmatprep.subr.bf16.mxu1 %v12318_v59 }
  0x63   : > { %877 = vmatpush1.bf16.msra.mxu0 %v12306_v45  ;;  %v13264_v45 = vrot.slane %v965_v37, %v13258_v40 }
  0x64   : > { %878 = vmatprep.subr.bf16.mxu0 %v12311_v46  ;;  %v13268_v46 = vrot.slane %v965_v37, %v973_v43 }
  0x66   : > { %731 = vmatmul.mubr.bf16.gmra.mrb[12].mxu0 %v13033_v1  ;;  %v12326_v1 = vld [vmem:[%s15474_s3 + $0x48] ss:$12 sps:$4 sm:$0xff]  }
  0x67   : > { %740 = vmatprep.mubr.bf16.mxu0 %v12891_v2  ;;  %879 = vmatpush1.bf16.msra.mxu0 %v12309_v47 }
  0x68   : > { %880 = vmatprep.subr.bf16.mxu0 %v12314_v48 }
  0x6b   : > { %881 = vmatpush1.bf16.msra.mxu0 %v12312_v50 }
  0x6c   : > { %11187 = vmatprep.subr.bf16.mxu0 %v12892_v4  ;;  %v778_v4 = vsel %vm317_vm3, %v775_v53, %v777_v56 }
  0x6e   : > { %741 = vmatmul.mubr.bf16.gmra.mrb[20].mxu0 %v340_v52 }
  0x6f   : > { %898 = vmatprep.mubr.bf16.mxu0 %v12891_v2 }
  0x76   : > { %899 = vmatmul.mubr.bf16.vlgmr.msra.gmra.mrb[0].mxu0 %v13027_v61  ;;  %v12320_v61 = vld [vmem:[%s15474_s3 + $0x18] ss:$12 sps:$4 sm:$0xff]  }
  0x77   : > { %908 = vmatprep.mubr.bf16.mxu0 %v12891_v2  ;;  %1434 = vmatpush1.bf16.msra.mxu1 %v12320_v61 }
  0x78   : > { %1435 = vmatprep.subr.bf16.mxu1 %v12321_v62 }
  0x7b   : > { %1436 = vmatpush1.bf16.msra.mxu1 %v12323_v63 }
  0x7c   : > { %1437 = vmatprep.subr.bf16.mxu1 %v12324_v0 }
  0x7e   : > { %909 = vmatmul.mubr.bf16.gmra.mrb[4].mxu0 %v776_v54 }
  0x7f   : > { %918 = vmatprep.mubr.bf16.mxu0 %v12891_v2  ;;  %1438 = vmatpush1.bf16.msra.mxu1 %v12326_v1 }
  0x80   : > { %1439 = vmatprep.subr.bf16.mxu1 %v12327_v3 }
  0x83   : > { %1440 = vmatpush1.bf16.msra.mxu1 %v12329_v5 }
  0x84   : > { %1441 = vmatprep.subr.bf16.mxu1 %v12330_v6 }
  0x86   : > { %919 = vmatmul.mubr.bf16.gmra.mrb[8].mxu0 %v778_v4 }
  0x87   : > { %928 = vmatprep.mubr.bf16.mxu0 %v12891_v2  ;;  %1442 = vmatpush1.bf16.msra.mxu1 %v12332_v7 }
  0x88   : > { %1443 = vmatprep.subr.bf16.mxu1 %v12333_v8  ;;  %v12364_v8 = vld [vmem:[%s15474_s3 + $0x8] ss:$12 sps:$4 sm:$0xff]  }
  0x8b   : > { %1444 = vmatpush1.bf16.msra.mxu1 %v12335_v9  ;;  %v13283_v9 = vld [vmem:[#allocation2 + $0x8] sm:$0xff] }
  0x8c   : > { %1445 = vmatprep.subr.bf16.mxu1 %v12336_v10 }
  0x8e   : > { %929 = vmatmul.mubr.bf16.gmra.mrb[12].mxu0 %v780_v60 }
  0x8f   : > { %938 = vmatprep.mubr.bf16.mxu0 %v12891_v2  ;;  %1446 = vmatpush1.bf16.msra.mxu1 %v12338_v11 }
  0x90   : > { %1447 = vmatprep.subr.bf16.mxu1 %v12339_v12 }
  0x93   : > { %1448 = vmatpush1.bf16.msra.mxu1 %v12341_v13  ;;  %v12365_v13 = vld [vmem:[%s15474_s3 + $0xe0] ss:$12 sps:$4 sm:$0xff]  }
  0x94   : > { %1449 = vmatprep.subr.bf16.mxu1 %v12342_v14 }
  0x96   : > { %939 = vmatmul.mubr.bf16.gmra.mrb[24].mxu0 %v779_v58 }
  0x97   : > { %1450 = vmatpush1.bf16.msra.mxu1 %v12344_v15  ;;  %11197 = vmatprep.mubr.msk.bf16.mxu0 %vm12893_vm5, %v13283_v9 }
  0x98   : > { %1451 = vmatprep.subr.bf16.mxu1 %v12345_v16 }
  0x9b   : > { %1452 = vmatpush1.bf16.msra.mxu1 %v12347_v17 }
  0x9c   : > { %1453 = vmatprep.subr.bf16.mxu1 %v12348_v18 }
  0x9f   : > { %1454 = vmatpush1.bf16.msra.mxu1 %v12350_v19 }
  0xa0   : > { %1455 = vmatprep.subr.bf16.mxu1 %v12351_v20 }
  0xa3   : > { %1456 = vmatpush1.bf16.msra.mxu1 %v12353_v21 }
  0xa4   : > { %1457 = vmatprep.subr.bf16.mxu1 %v12354_v22 }
  0xa7   : > { %1458 = vmatpush1.bf16.msra.mxu1 %v12356_v23 }
  0xa8   : > { %1459 = vmatprep.subr.bf16.mxu1 %v12357_v24 }
  0xab   : > { %1460 = vmatpush1.bf16.msra.mxu1 %v12359_v25 }
  0xac   : > { %1461 = vmatprep.subr.bf16.mxu1 %v12360_v26 }
  0xaf   : > { %1462 = vmatpush1.bf16.msra.mxu1 %v12362_v27  ;;  %v12366_v27 = vld [vmem:[%s15474_s3 + $0x20] ss:$12 sps:$4 sm:$0xff]  }
  0xb0   : > { %10637 = vmatprep.subr.bf16.mxu1 %v12363_v28 }
 0x119   : > { %v581_v29 = vpop.f32.mrb[16].mxu0 }
 0x11a   : > { %v583_v31 = vpop.f32.mrb[17].mxu0 }
 0x11b   : > { %v585_v32 = vpop.f32.mrb[18].mxu0 }
 0x11c   : > { %v586_v33 = vpop.f32.mrb[19].mxu0  ;;  %v12367_v32 = vld [vmem:[%s15474_s3 + $0xf8] ss:$12 sps:$4 sm:$0xff]  }
 0x141   : > { %v742_v36 = vpop.f32.mrb[20].mxu0 }
 0x142   : > { %v13255_v38 = vadd.f32 %v742_v36, %v581_v29  ;;  %v744_v30 = vpop.f32.mrb[21].mxu0 }
 0x143   : > { %v13260_v41 = vadd.f32 %v744_v30, %v583_v31  ;;  %v746_v42 = vpop.f32.mrb[22].mxu0 }
 0x144   : > { %v747_v44 = vpop.f32.mrb[23].mxu0 }
 0x145   : > { %v12368_v44 = vld [vmem:[%s15474_s3 + $0x38] ss:$12 sps:$4 sm:$0xff]  }
 0x149   : > { %v900_v47 = vpop.f32.mrb[0].mxu0 }
 0x14a   : > { %v977_v48 = vadd.f32 %v13264_v45, %v900_v47  ;;  %v902_v49 = vpop.f32.mrb[1].mxu0 }
 0x14b   : > { %v978_v50 = vadd.f32 %v13268_v46, %v902_v49  ;;  %v904_v52 = vpop.f32.mrb[2].mxu0 }
 0x14c   : > { %v1013_v53 = vrot.slane %v977_v48, 7  ;;  %v979_v54 = vadd.f32 %v13264_v45, %v904_v52  ;;  %v906_v55 = vpop.f32.mrb[3].mxu0  ;;  %v12369_v48 = vld [vmem:[%s15474_s3 + $0x110] ss:$12 sps:$4 sm:$0xff]  }
 0x14d   : > { %v1014_v56 = vrot.slane %v978_v50, 7  ;;  %v980_v4 = vadd.f32 %v13268_v46, %v906_v55 }
 0x14e   : > { %1065 = vst [vmem:[#allocation3] sm:$0xfe] %v1013_v53  ;;  %v1015_v57 = vrot.slane %v979_v54, 7 }
 0x14f   : > { %1066 = vst [vmem:[#allocation3 + $0x8] sm:$0xfe] %v1014_v56  ;;  %v1017_v58 = vrot.slane %v980_v4, 7 }
 0x150   : > { %v1016_v60 = vsel %vm272_vm1, %v1013_v53, %v1015_v57 }
 0x151   : > { %v1018_v39 = vsel %vm272_vm1, %v1014_v56, %v1017_v58  ;;  %v910_v51 = vpop.f32.mrb[4].mxu0 }
 0x152   : > { %v981_v59 = vadd.f32 %v13264_v45, %v910_v51  ;;  %v912_v61 = vpop.f32.mrb[5].mxu0  ;;  %v12371_v51 = vld [vmem:[%s15474_s3 + $0x128] ss:$12 sps:$4 sm:$0xff]  }
 0x153   : > { %v982_v62 = vadd.f32 %v13268_v46, %v912_v61  ;;  %v914_v63 = vpop.f32.mrb[6].mxu0 }
 0x154   : > { %v1019_v0 = vrot.slane %v981_v59, 7  ;;  %v983_v1 = vadd.f32 %v13264_v45, %v914_v63  ;;  %v916_v3 = vpop.f32.mrb[7].mxu0 }
 0x155   : > { %v1083_v5 = vld [vmem:[#allocation3] sm:$0xff]  ;;  %v1021_v6 = vrot.slane %v982_v62, 7  ;;  %v984_v7 = vadd.f32 %v13268_v46, %v916_v3 }
 0x156   : > { %2341 = vst [vmem:[#allocation3] sm:$0x1] %v13283_v9  ;;  %v1020_v10 = vsel %vm272_vm1, %v1015_v57, %v1019_v0  ;;  %v1023_v11 = vrot.slane %v983_v1, 7  ;;  %v1084_v12 = vld [vmem:[#allocation3 + $0x8] sm:$0xff]  ;;  %v13294_v18 = vpack.c.bf16 %v1016_v60, %v1083_v5  ;;  %v12372_v3 = vld [vmem:[%s15474_s3 + $0x68] ss:$12 sps:$4 sm:$0xff]  }
 0x157   : > { %v1022_v14 = vsel %vm272_vm1, %v1017_v58, %v1021_v6  ;;  %v1025_v15 = vrot.slane %v984_v7, 7  ;;  %v13291_v16 = vpack.c.bf16 %v1018_v39, %v1084_v12  ;;  %v12370_v57 = vld [vmem:[%s15474_s3 + $0x50] ss:$12 sps:$4 sm:$0xff]  }
 0x158   : > { %v1024_v17 = vsel %vm272_vm1, %v1019_v0, %v1023_v11 }
 0x159   : > { %v1026_v19 = vsel %vm272_vm1, %v1021_v6, %v1025_v15  ;;  %v920_v20 = vpop.f32.mrb[8].mxu0  ;;  %1463 = vmatprep.mubr.bf16.mxu1 %v13291_v16  ;;  %v13298_v21 = vpack.c.bf16 %v1024_v17, %v1020_v10  ;;  %v12373_v6 = vld [vmem:[%s15474_s3 + $0x140] ss:$12 sps:$4 sm:$0xff]  }
 0x15a   : > { %v985_v22 = vadd.f32 %v13264_v45, %v920_v20  ;;  %v922_v23 = vpop.f32.mrb[9].mxu0  ;;  %1464 = vmatmul.mubr.bf16.vlgmr.msra.gmra.mrb[0].mxu1 %v13294_v18  ;;  %v13302_v24 = vpack.c.bf16 %v1026_v19, %v1022_v14  ;;  %v12374_v17 = vld [vmem:[%s15474_s3 + $0x80] ss:$12 sps:$4 sm:$0xff]  }
 0x15b   : > { %v986_v25 = vadd.f32 %v13268_v46, %v922_v23  ;;  %v924_v26 = vpop.f32.mrb[10].mxu0  ;;  %10638 = vmatpush3.bf16.msra.mxu1 %v12364_v8 }
 0x15c   : > { %v1027_v28 = vrot.slane %v985_v22, 7  ;;  %v987_v29 = vadd.f32 %v13264_v45, %v924_v26  ;;  %v926_v31 = vpop.f32.mrb[11].mxu0  ;;  %1473 = vmatprep.mubr.bf16.mxu1 %v13302_v24  ;;  %10639 = vmatprep.subr.bf16.mxu1 %v12365_v13 }
 0x15d   : > { %v1029_v33 = vrot.slane %v986_v25, 7  ;;  %v988_v34 = vadd.f32 %v13268_v46, %v926_v31 }
 0x15e   : > { %v1028_v36 = vsel %vm272_vm1, %v1023_v11, %v1027_v28  ;;  %v1031_v37 = vrot.slane %v987_v29, 7 }
 0x15f   : > { %1073 = vst [vmem:[#allocation3 + $0x40] sm:$0xff] %v1028_v36  ;;  %v1030_v30 = vsel %vm272_vm1, %v1025_v15, %v1029_v33  ;;  %v1033_v42 = vrot.slane %v988_v34, 7  ;;  %10640 = vmatpush3.bf16.msra.mxu1 %v12366_v27 }
 0x160   : > { %2348 = vst [vmem:[#allocation3 + $0x47] sm:$0x1] %v13283_v9  ;;  %1074 = vst [vmem:[#allocation3 + $0x48] sm:$0xff] %v1030_v30  ;;  %v1032_v47 = vsel %vm272_vm1, %v1027_v28, %v1031_v37  ;;  %10641 = vmatprep.subr.bf16.mxu1 %v12367_v32 }
 0x161   : > { %v1034_v49 = vsel %vm272_vm1, %v1029_v33, %v1033_v42  ;;  %v930_v50 = vpop.f32.mrb[12].mxu0  ;;  %v13325_v52 = vpack.c.bf16 %v1032_v47, %v1028_v36 }
 0x162   : > { %v989_v53 = vadd.f32 %v13264_v45, %v930_v50  ;;  %v932_v54 = vpop.f32.mrb[13].mxu0  ;;  %1474 = vmatmul.mubr.bf16.gmra.mrb[4].mxu1 %v13298_v21  ;;  %v13329_v55 = vpack.c.bf16 %v1034_v49, %v1030_v30 }
 0x163   : > { %v990_v56 = vadd.f32 %v13268_v46, %v932_v54  ;;  %v934_v4 = vpop.f32.mrb[14].mxu0  ;;  %10642 = vmatpush3.bf16.msra.mxu1 %v12368_v44 }
 0x164   : > { %v1035_v58 = vrot.slane %v989_v53, 7  ;;  %v991_v60 = vadd.f32 %v13264_v45, %v934_v4  ;;  %v936_v39 = vpop.f32.mrb[15].mxu0  ;;  %1483 = vmatprep.mubr.bf16.mxu1 %v13329_v55  ;;  %10643 = vmatprep.subr.bf16.mxu1 %v12369_v48 }
 0x165   : > { %v1037_v59 = vrot.slane %v990_v56, 7  ;;  %v992_v61 = vadd.f32 %v13268_v46, %v936_v39 }
 0x166   : > { %v1036_v62 = vsel %vm272_vm1, %v1031_v37, %v1035_v58  ;;  %v1039_v63 = vrot.slane %v991_v60, 7 }
 0x167   : > { %v1038_v0 = vsel %vm272_vm1, %v1033_v42, %v1037_v59  ;;  %v1041_v1 = vrot.slane %v992_v61, 7  ;;  %10644 = vmatpush3.bf16.msra.mxu1 %v12370_v57 }
 0x168   : > { %v1040_v5 = vsel %vm272_vm1, %v1035_v58, %v1039_v63  ;;  %10645 = vmatprep.subr.bf16.mxu1 %v12371_v51 }
 0x169   : > { %v1042_v7 = vsel %vm272_vm1, %v1037_v59, %v1041_v1  ;;  %v940_v8 = vpop.f32.mrb[24].mxu0  ;;  %v1107_v10 = vpack.c.bf16 %v1040_v5, %v1036_v62 }
 0x16a   : > { %v963_v11 = vadd.f32 %v940_v8, %v13255_v38  ;;  %v942_v12 = vpop.f32.mrb[25].mxu0  ;;  %1484 = vmatmul.mubr.bf16.gmra.mrb[8].mxu1 %v13325_v52  ;;  %v1108_v13 = vpack.c.bf16 %v1042_v7, %v1038_v0  ;;  %v12375_v38 = vld [vmem:[%s15474_s3 + $0x158] ss:$12 sps:$4 sm:$0xff]  }
 0x16b   : > { %v964_v14 = vadd.f32 %v942_v12, %v13260_v41  ;;  %v944_v15 = vpop.f32.mrb[26].mxu0  ;;  %10646 = vmatpush3.bf16.msra.mxu1 %v12372_v3  ;;  %v12376_v41 = vld [vmem:[%s15474_s3 + $0x98] ss:$12 sps:$4 sm:$0xff]  }
 0x16c   : > { %v993_v19 = vadd.f32 %v13264_v45, %v963_v11  ;;  %v945_v20 = vpop.f32.mrb[27].mxu0  ;;  %1493 = vmatprep.mubr.bf16.mxu1 %v1108_v13  ;;  %10647 = vmatprep.subr.bf16.mxu1 %v12373_v6  ;;  %v12377_v45 = vld [vmem:[%s15474_s3 + $0x170] ss:$12 sps:$4 sm:$0xff]  }
 0x16d   : > { %v994_v22 = vadd.f32 %v13268_v46, %v964_v14  ;;  %v12378_v46 = vld [vmem:[%s15474_s3 + $0xb0] ss:$12 sps:$4 sm:$0xff]  }
 0x16e   : > { %v1043_v23 = vrot.slane %v993_v19, 7 }
 0x16f   : > { %v1045_v25 = vrot.slane %v994_v22, 7  ;;  %10648 = vmatpush3.bf16.msra.mxu1 %v12374_v17 }
 0x170   : > { %v1044_v26 = vsel %vm272_vm1, %v1039_v63, %v1043_v23  ;;  %10649 = vmatprep.subr.bf16.mxu1 %v12375_v38 }
 0x171   : > { %1081 = vst [vmem:[#allocation3 + $0x80] sm:$0x7f] %v1044_v26  ;;  %v1046_v27 = vsel %vm272_vm1, %v1041_v1, %v1045_v25 }
 0x172   : > { %1082 = vst [vmem:[#allocation3 + $0x88] sm:$0x7f] %v1046_v27  ;;  %1494 = vmatmul.mubr.bf16.gmra.mrb[12].mxu1 %v1107_v10 }
 0x173   : > { %10650 = vmatpush3.bf16.msra.mxu1 %v12376_v41 }
 0x174   : > { %10651 = vmatprep.subr.bf16.mxu1 %v12377_v45 }
 0x177   : > { %10652 = vmatpush3.bf16.msra.mxu1 %v12378_v46 }
 0x178   : > { %v1099_v28 = vld [vmem:[#allocation3 + $0x80] sm:$0xff]  ;;  %11165 = vmatprep.subr.bf16.mxu1 %v13283_v9 }
 0x179   : > { %v1100_v29 = vld [vmem:[#allocation3 + $0x88] sm:$0xff]  ;;  %v1109_v32 = vpack.c.bf16 %v1099_v28, %v1099_v28 }
 0x17a   : > { %v1110_v31 = vpack.c.bf16 %v1100_v29, %v1100_v29 }
 0x17c   : > { %1503 = vmatprep.mubr.bf16.mxu1 %v1110_v31 }
 0x17d   : > { %1504 = vmatmul.mubr.bf16.gmra.mrb[16].mxu1 %v1109_v32 }
 0x17e   : > { %1544 = vmatprep.mubr.bf16.mxu1 %v13291_v16 }
 0x185   : > { %1545 = vmatmul.mubr.bf16.vlgmr.msra.gmra.mrb[20].mxu1 %v13294_v18 }
 0x186   : > { %1552 = vmatprep.mubr.bf16.mxu1 %v13302_v24 }
 0x18d   : > { %1553 = vmatmul.mubr.bf16.gmra.mrb[24].mxu1 %v13298_v21 }
 0x18e   : > { %1560 = vmatprep.mubr.bf16.mxu1 %v13329_v55 }
 0x195   : > { %1561 = vmatmul.mubr.bf16.gmra.mrb[28].mxu1 %v13325_v52 }
 0x196   : > { %1568 = vmatprep.mubr.bf16.mxu1 %v1108_v13 }
 0x19d   : > { %1569 = vmatmul.mubr.bf16.gmra.mrb[32].mxu1 %v1107_v10 }
 0x19e   : > { %1576 = vmatprep.mubr.bf16.mxu1 %v1110_v31 }
 0x1a5   : > { %1577 = vmatmul.mubr.bf16.gmra.mrb[36].mxu1 %v1109_v32 }
 0x1a6   : > { %11175 = vmatprep.mubr.msk.bf16.mxu1 %vm12893_vm5, %v13283_v9 }
 0x22d   : > { %v1465_v16 = vpop.f32.mrb[0].mxu1 }
 0x22e   : > { %v1467_v18 = vpop.f32.mrb[1].mxu1 }
 0x22f   : > { %v1469_v24 = vpop.f32.mrb[2].mxu1 }
 0x230   : > { %v1471_v33 = vpop.f32.mrb[3].mxu1 }
 0x235   : > { %v1475_v21 = vpop.f32.mrb[4].mxu1 }
 0x236   : > { %v1477_v34 = vpop.f32.mrb[5].mxu1 }
 0x237   : > { %v1479_v36 = vpop.f32.mrb[6].mxu1 }
 0x238   : > { %v1481_v37 = vpop.f32.mrb[7].mxu1 }
 0x23d   : > { %v1485_v30 = vpop.f32.mrb[8].mxu1 }
 0x23e   : > { %v1487_v42 = vpop.f32.mrb[9].mxu1 }
 0x23f   : > { %v1489_v44 = vpop.f32.mrb[10].mxu1 }
 0x240   : > { %v1491_v47 = vpop.f32.mrb[11].mxu1 }
 0x245   : > { %v1495_v48 = vpop.f32.mrb[12].mxu1 }
 0x246   : > { %v1497_v49 = vpop.f32.mrb[13].mxu1 }
 0x247   : > { %v1499_v50 = vpop.f32.mrb[14].mxu1 }
 0x248   : > { %v1501_v52 = vpop.f32.mrb[15].mxu1 }
 0x250   : > { %v13384_v53 = vpop.f32.mrb[16].mxu1 }
 0x251   : > { %v13386_v54 = vpop.f32.mrb[17].mxu1 }
 0x252   : > { %v1509_v55 = vpop.f32.mrb[18].mxu1 }
 0x253   : > { %v1510_v56 = vpop.f32.mrb[19].mxu1  ;;  %v12383_v55 = vld [vmem:[%s15475_s4 + $0x10] ss:$0 sps:$4 sm:$0xff]  }
 0x254   : > { %v12384_v56 = vld [vmem:[%s15475_s4 + $0x24] ss:$0 sps:$4 sm:$0xff]  }
 0x258   : > { %v10653_v4 = vpop.f32.mrb[20].mxu1 }
 0x259   : > { %v10654_v57 = vpop.f32.mrb[21].mxu1 }
 0x25a   : > { %v10655_v58 = vadd.f32 %v10654_v57, %v10653_v4  ;;  %v10656_v60 = vpop.f32.mrb[22].mxu1  ;;  %v12385_v4 = vld [vmem:[%s15475_s4 + $0x28] sm:$0xff]   ;;  %v12386_v57 = vld [vmem:[%s15475_s4 + $0x30] sm:$0xff]  }
 0x25b   : > { %v10657_v39 = vpop.f32.mrb[23].mxu1 }
 0x25c   : > { %v1584_v51 = vmax.f32 %v1467_v18, %v10655_v58  ;;  %v10658_v59 = vadd.f32 %v10657_v39, %v10656_v60  ;;  %v12387_v58 = vld [vmem:[%s15475_s4 + $0x38] ss:$0 sps:$4 sm:$0xff]   ;;  %v12388_v60 = vld [vmem:[%s15472_s1 + $0x180] ss:$8 sps:$4 sm:$0xff]  }
 0x25d   : > { %v12389_v39 = vld [vmem:[%s15472_s1 + $0x190] ss:$8 sps:$4 sm:$0xff]  }
 0x25e   : > { %v1593_v61 = vmax.f32 %v1465_v16, %v1584_v51  ;;  %v1585_v62 = vmax.f32 %v1471_v33, %v10658_v59  ;;  %v12390_v51 = vld [vmem:[%s15472_s1 + $0x1a0] ss:$8 sps:$4 sm:$0xff]  }
 0x25f   : > { %v12391_v59 = vld [vmem:[%s15472_s1 + $0x200] ss:$8 sps:$4 sm:$0xff]  }
 0x260   : > { %v1594_v63 = vmax.f32 %v1469_v24, %v1585_v62  ;;  %v10659_v0 = vpop.f32.mrb[24].mxu1  ;;  %v12393_v62 = vld [vmem:[%s15472_s1 + $0x210] ss:$8 sps:$4 sm:$0xff]  }
 0x261   : > { %v10660_v1 = vpop.f32.mrb[25].mxu1 }
 0x262   : > { %v13388_v3 = vpack.c.bf16 %v1594_v63, %v1593_v61  ;;  %v10661_v5 = vadd.f32 %v10660_v1, %v10659_v0  ;;  %v10662_v6 = vpop.f32.mrb[26].mxu1  ;;  %v12392_v61 = vld [vmem:[%s15472_s1 + $0x1b0] ss:$8 sps:$4 sm:$0xff]   ;;  %v12394_v63 = vld [vmem:[%s15472_s1 + $0x1c0] ss:$8 sps:$4 sm:$0xff]  }
 0x263   : > { %v10663_v7 = vpop.f32.mrb[27].mxu1  ;;  %v12395_v0 = vld [vmem:[%s15472_s1 + $0x220] ss:$8 sps:$4 sm:$0xff]   ;;  %v12396_v1 = vld [vmem:[%s15472_s1 + $0x1d0] ss:$8 sps:$4 sm:$0xff]  }
 0x264   : > { %v1586_v8 = vmax.f32 %v1477_v34, %v10661_v5  ;;  %v10664_v10 = vadd.f32 %v10663_v7, %v10662_v6  ;;  %11166 = vmatpush3.bf16.msra.mxu1 %v13388_v3  ;;  %11188 = vmatpush3.bf16.msra.mxu0 %v13388_v3  ;;  %v12398_v5 = vld [vmem:[%s15472_s1 + $0x1e0] ss:$8 sps:$4 sm:$0xff]   ;;  %v12400_v7 = vld [vmem:[%s15472_s1 + $0x1f0] ss:$8 sps:$4 sm:$0xff]  }
 0x265   : > { %11167 = vmatprep.subr.bf16.mxu1 %v13283_v9  ;;  %11189 = vmatprep.subr.bf16.mxu0 %v13283_v9  ;;  %v12399_v6 = vld [vmem:[%s15472_s1 + $0x240] ss:$8 sps:$4 sm:$0xff]  }
 0x266   : > { %v1595_v11 = vmax.f32 %v1475_v21, %v1586_v8  ;;  %v1587_v12 = vmax.f32 %v1481_v37, %v10664_v10  ;;  %v12401_v8 = vld [vmem:[%s15472_s1 + $0x250] ss:$8 sps:$4 sm:$0xff]   ;;  %v12402_v10 = vld [vmem:[%s15472_s1 + $0x260] ss:$8 sps:$4 sm:$0xff]  }
 0x268   : > { %v1596_v13 = vmax.f32 %v1479_v36, %v1587_v12  ;;  %v10665_v14 = vpop.f32.mrb[28].mxu1 }
 0x269   : > { %v10666_v15 = vpop.f32.mrb[29].mxu1 }
 0x26a   : > { %v1603_v17 = vpack.c.bf16 %v1596_v13, %v1595_v11  ;;  %v10667_v19 = vadd.f32 %v10666_v15, %v10665_v14  ;;  %v10668_v20 = vpop.f32.mrb[30].mxu1  ;;  %v12403_v11 = vld [vmem:[%s15472_s1 + $0x270] ss:$8 sps:$4 sm:$0xff]  }
 0x26b   : > { %v10669_v38 = vpop.f32.mrb[31].mxu1 }
 0x26c   : > { %v1588_v22 = vmax.f32 %v1487_v42, %v10667_v19  ;;  %v10670_v23 = vadd.f32 %v10669_v38, %v10668_v20  ;;  %11168 = vmatpush3.bf16.msra.mxu1 %v1603_v17  ;;  %11190 = vmatpush3.bf16.msra.mxu0 %v1603_v17 }
 0x26d   : > { %11169 = vmatprep.subr.bf16.mxu1 %v13283_v9  ;;  %11191 = vmatprep.subr.bf16.mxu0 %v13283_v9 }
 0x26e   : > { %v1597_v25 = vmax.f32 %v1485_v30, %v1588_v22  ;;  %v1589_v41 = vmax.f32 %v1491_v47, %v10670_v23 }
 0x270   : > { %v1598_v26 = vmax.f32 %v1489_v44, %v1589_v41  ;;  %v10671_v45 = vpop.f32.mrb[32].mxu1 }
 0x271   : > { %v10672_v27 = vpop.f32.mrb[33].mxu1 }
 0x272   : > { %v1604_v46 = vpack.c.bf16 %v1598_v26, %v1597_v25  ;;  %v10673_v28 = vadd.f32 %v10672_v27, %v10671_v45  ;;  %v10674_v29 = vpop.f32.mrb[34].mxu1 }
 0x273   : > { %v10675_v31 = vpop.f32.mrb[35].mxu1 }
 0x274   : > { %v1590_v32 = vmax.f32 %v1497_v49, %v10673_v28  ;;  %v10676_v16 = vadd.f32 %v10675_v31, %v10674_v29  ;;  %11170 = vmatpush3.bf16.msra.mxu1 %v1604_v46  ;;  %11192 = vmatpush3.bf16.msra.mxu0 %v1604_v46 }
 0x275   : > { %11171 = vmatprep.subr.bf16.mxu1 %v13283_v9  ;;  %11193 = vmatprep.subr.bf16.mxu0 %v13283_v9 }
 0x276   : > { %v1599_v18 = vmax.f32 %v1495_v48, %v1590_v32  ;;  %v1591_v24 = vmax.f32 %v1501_v52, %v10676_v16  ;;  %v12380_v52 = vld [vmem:[%s15475_s4 + $0x14] sm:$0xff]  }
 0x278   : > { %v1600_v33 = vmax.f32 %v1499_v50, %v1591_v24  ;;  %v10677_v21 = vpop.f32.mrb[36].mxu1  ;;  %v12379_v50 = vld [vmem:[%s15475_s4] sm:$0xff]  }
 0x279   : > { %v10678_v34 = vpop.f32.mrb[37].mxu1 }
 0x27a   : > { %v1605_v36 = vpack.c.bf16 %v1600_v33, %v1599_v18  ;;  %v10679_v37 = vadd.f32 %v10678_v34, %v10677_v21  ;;  %v10680_v30 = vpop.f32.mrb[38].mxu1 }
 0x27b   : > { %v10681_v42 = vpop.f32.mrb[39].mxu1 }
 0x27c   : > { %v1592_v44 = vmax.f32 %v13386_v54, %v10679_v37  ;;  %11172 = vmatpush3.bf16.msra.mxu1 %v1605_v36  ;;  %11194 = vmatpush3.bf16.msra.mxu0 %v1605_v36  ;;  %v12382_v54 = vld [vmem:[%s15475_s4 + $0x1c] sm:$0xff]  }
 0x27d   : > { %11173 = vmatprep.subr.bf16.mxu1 %v13283_v9  ;;  %11195 = vmatprep.subr.bf16.mxu0 %v13283_v9 }
 0x27e   : > { %v1601_v47 = vmax.f32 %v13384_v53, %v1592_v44  ;;  %v12381_v53 = vld [vmem:[%s15475_s4 + $0x8] sm:$0xff]  }
 0x280   : > { %v1606_v48 = vpack.c.bf16 %v1601_v47, %v1601_v47 }
 0x282   : > { %v1637_v49 = vsel %vm1635_vm6, %v1606_v48, 0 }
 0x283   : > { %11174 = vmatpush3.bf16.msra.mxu1 %v1637_v49  ;;  %11196 = vmatpush3.bf16.msra.mxu0 %v1637_v49 }
 0x284   : > { %11209 = vmatprep.subr.bf16.mxu1 %v13283_v9  ;;  %11231 = vmatprep.subr.bf16.mxu0 %v13283_v9 }
 0x286   : > { %11176 = vmatmul.mubr.msk.bf16.vlgmr.msra.gmra.mrb[40].mxu1 %vm1625_vm7, %v12379_v50  ;;  %11198 = vmatmul.mubr.msk.bf16.vlgmr.msra.gmra.mrb[28].mxu0 %vm1625_vm7, %v12380_v52 }
 0x287   : > { %11210 = vmatpush3.bf16.msra.mxu1 %v13388_v3  ;;  %11179 = vmatprep.mubr.msk.bf16.mxu1 %vm12893_vm5, %v13283_v9  ;;  %v12397_v3 = vld [vmem:[%s15472_s1 + $0x230] ss:$8 sps:$4 sm:$0xff]  }
 0x288   : > { %11211 = vmatprep.subr.bf16.mxu1 %v13283_v9  ;;  %11201 = vmatprep.mubr.msk.bf16.mxu0 %vm12893_vm5, %v13283_v9 }
 0x289   : > { %11232 = vmatpush3.bf16.msra.mxu0 %v12391_v59 }
 0x28a   : > { %11233 = vmatprep.subr.bf16.mxu0 %v13283_v9 }
 0x28b   : > { %11212 = vmatpush3.bf16.msra.mxu1 %v1603_v17 }
 0x28c   : > { %11213 = vmatprep.subr.bf16.mxu1 %v13283_v9 }
 0x28d   : > { %11234 = vmatpush3.bf16.msra.mxu0 %v12393_v62 }
 0x28e   : > { %11180 = vmatmul.mubr.msk.bf16.gmra.mrb[44].mxu1 %vm1625_vm7, %v12381_v53  ;;  %11202 = vmatmul.mubr.msk.bf16.gmra.mrb[32].mxu0 %vm1625_vm7, %v12382_v54 }
 0x28f   : > { %11214 = vmatpush3.bf16.msra.mxu1 %v1604_v46  ;;  %11183 = vmatprep.mubr.msk.bf16.mxu1 %vm12893_vm5, %v13283_v9 }
 0x290   : > { %11215 = vmatprep.subr.bf16.mxu1 %v13283_v9  ;;  %11205 = vmatprep.mubr.msk.bf16.mxu0 %vm12893_vm5, %v13283_v9 }
 0x291   : > { %11235 = vmatprep.subr.bf16.mxu0 %v13283_v9 }
 0x292   : > { %11236 = vmatpush3.bf16.msra.mxu0 %v12395_v0 }
 0x293   : > { %11216 = vmatpush3.bf16.msra.mxu1 %v1605_v36  ;;  %11237 = vmatprep.subr.bf16.mxu0 %v13283_v9 }
 0x294   : > { %11217 = vmatprep.subr.bf16.mxu1 %v13283_v9 }
 0x296   : > { %11184 = vmatmul.mubr.msk.bf16.gmra.mrb[48].mxu1 %vm1625_vm7, %v12383_v55  ;;  %11206 = vmatmul.mubr.msk.bf16.gmra.mrb[36].mxu0 %vm1625_vm7, %v12384_v56 }
 0x297   : > { %11218 = vmatpush3.bf16.msra.mxu1 %v1637_v49  ;;  %11219 = vmatprep.mubr.msk.bf16.mxu1 %vm12893_vm5, %v13283_v9 }
 0x298   : > { %11259 = vmatprep.subr.bf16.mxu1 %v13283_v9  ;;  %11247 = vmatprep.mubr.msk.bf16.mxu0 %vm12893_vm5, %v13283_v9 }
 0x299   : > { %11238 = vmatpush3.bf16.msra.mxu0 %v12397_v3 }
 0x29a   : > { %11239 = vmatprep.subr.bf16.mxu0 %v13283_v9 }
 0x29d   : > { %11240 = vmatpush3.bf16.msra.mxu0 %v12399_v6 }
 0x29e   : > { %11220 = vmatmul.mubr.msk.bf16.vlgmr.msra.gmra.mrb[52].mxu1 %vm1625_vm7, %v12385_v4  ;;  %11241 = vmatprep.subr.bf16.mxu0 %v13283_v9 }
 0x29f   : > { %11223 = vmatprep.mubr.msk.bf16.mxu1 %vm12893_vm5, %v13283_v9  ;;  %11260 = vmatpush3.bf16.msra.mxu1 %v12388_v60 }
 0x2a0   : > { %11261 = vmatprep.subr.bf16.mxu1 %v13283_v9 }
 0x2a1   : > { %11242 = vmatpush3.bf16.msra.mxu0 %v12401_v8 }
 0x2a2   : > { %11243 = vmatprep.subr.bf16.mxu0 %v13283_v9 }
 0x2a3   : > { %11262 = vmatpush3.bf16.msra.mxu1 %v12389_v39 }
 0x2a4   : > { %11263 = vmatprep.subr.bf16.mxu1 %v13283_v9 }
 0x2a5   : > { %11244 = vmatpush3.bf16.msra.mxu0 %v12402_v10 }
 0x2a6   : > { %11224 = vmatmul.mubr.msk.bf16.gmra.mrb[56].mxu1 %vm1625_vm7, %v12386_v57  ;;  %11245 = vmatprep.subr.bf16.mxu0 %v13283_v9 }
 0x2a7   : > { %11227 = vmatprep.mubr.msk.bf16.mxu1 %vm12893_vm5, %v13283_v9  ;;  %11264 = vmatpush3.bf16.msra.mxu1 %v12390_v51 }
 0x2a8   : > { %11265 = vmatprep.subr.bf16.mxu1 %v13283_v9 }
 0x2a9   : > { %11246 = vmatpush3.bf16.msra.mxu0 %v12403_v11 }
 0x2aa   : > { %11287 = vmatprep.subr.bf16.mxu0 %v13283_v9 }
 0x2ab   : > { %11266 = vmatpush3.bf16.msra.mxu1 %v12392_v61 }
 0x2ac   : > { %11267 = vmatprep.subr.bf16.mxu1 %v13283_v9 }
 0x2ae   : > { %11228 = vmatmul.mubr.msk.bf16.gmra.mrb[60].mxu1 %vm1625_vm7, %v12387_v58 }
 0x2af   : > { %11275 = vmatprep.mubr.msk.bf16.mxu1 %vm12893_vm5, %v13283_v9  ;;  %11268 = vmatpush3.bf16.msra.mxu1 %v12394_v63 }
 0x2b0   : > { %11269 = vmatprep.subr.bf16.mxu1 %v13283_v9 }
 0x2b3   : > { %11270 = vmatpush3.bf16.msra.mxu1 %v12396_v1 }
 0x2b4   : > { %11271 = vmatprep.subr.bf16.mxu1 %v13283_v9 }
 0x2b7   : > { %11272 = vmatpush3.bf16.msra.mxu1 %v12398_v5 }
 0x2b8   : > { %11273 = vmatprep.subr.bf16.mxu1 %v13283_v9 }
 0x2bb   : > { %11274 = vmatpush3.bf16.msra.mxu1 %v12400_v7 }
 0x2bc   : > { %11315 = vmatprep.subr.bf16.mxu1 %v13283_v9 }
 0x359   : > { %v1673_v12 = vpop.f32.mrb[40].mxu1  ;;  %v1757_v13 = vpop.f32.mrb[28].mxu0 }
 0x35a   : > { %v1779_v14 = vmax.f32 %v1673_v12, %v1757_v13  ;;  %v11177_v15 = vpop.f32.mrb[41].mxu1  ;;  %v11199_v17 = vpop.f32.mrb[29].mxu0 }
 0x35b   : > { %v1676_v19 = vpop.f32.mrb[42].mxu1  ;;  %v1760_v20 = vpop.f32.mrb[30].mxu0 }
 0x35c   : > { %v1780_v38 = vmax.f32 %v1676_v19, %v1760_v20  ;;  %v11178_v22 = vpop.f32.mrb[43].mxu1  ;;  %v11200_v23 = vpop.f32.mrb[31].mxu0  ;;  %v12404_v19 = vld [vmem:[%s15472_s1 + $0x280] ss:$8 sps:$4 sm:$0xff]  }
 0x361   : > { %v1681_v25 = vpop.f32.mrb[44].mxu1  ;;  %v1765_v41 = vpop.f32.mrb[32].mxu0 }
 0x362   : > { %v1781_v26 = vmax.f32 %v1681_v25, %v1765_v41  ;;  %v11181_v45 = vpop.f32.mrb[45].mxu1  ;;  %v11203_v27 = vpop.f32.mrb[33].mxu0  ;;  %v12405_v41 = vld [vmem:[%s15472_s1 + $0x290] ss:$8 sps:$4 sm:$0xff]  }
 0x363   : > { %v1684_v46 = vpop.f32.mrb[46].mxu1  ;;  %v1768_v28 = vpop.f32.mrb[34].mxu0 }
 0x364   : > { %v1782_v29 = vmax.f32 %v1684_v46, %v1768_v28  ;;  %v11182_v31 = vpop.f32.mrb[47].mxu1  ;;  %v11204_v32 = vpop.f32.mrb[35].mxu0  ;;  %v12406_v46 = vld [vmem:[%s15472_s1 + $0x2a0] ss:$8 sps:$4 sm:$0xff]  }
 0x369   : > { %v1689_v16 = vpop.f32.mrb[48].mxu1  ;;  %v1773_v18 = vpop.f32.mrb[36].mxu0 }
 0x36a   : > { %v1783_v24 = vmax.f32 %v1689_v16, %v1773_v18  ;;  %v11185_v33 = vpop.f32.mrb[49].mxu1  ;;  %v11207_v21 = vpop.f32.mrb[37].mxu0 }
 0x36b   : > { %v1692_v34 = vpop.f32.mrb[50].mxu1  ;;  %v1776_v36 = vpop.f32.mrb[38].mxu0  ;;  %v12408_v21 = vld [vmem:[%s15472_s1 + $0x2c0] ss:$8 sps:$4 sm:$0xff]  }
 0x36c   : > { %v11186_v37 = vpop.f32.mrb[51].mxu1  ;;  %v11208_v30 = vpop.f32.mrb[39].mxu0  ;;  %v12409_v36 = vld [vmem:[%s15472_s1 + $0x2d0] ss:$8 sps:$4 sm:$0xff]  }
 0x36d   : > { %v12410_v30 = vld [vmem:[%s15472_s1 + $0x2e0] ss:$8 sps:$4 sm:$0xff]  }
 0x371   : > { %v1846_v42 = vpop.f32.mrb[52].mxu1 }
 0x372   : > { %v1868_v44 = vmax.f32 %v1779_v14, %v1846_v42  ;;  %v11221_v47 = vpop.f32.mrb[53].mxu1  ;;  %v12411_v42 = vld [vmem:[%s15472_s1 + $0x2f0] ss:$8 sps:$4 sm:$0xff]  }
 0x373   : > { %v1849_v48 = vpop.f32.mrb[54].mxu1  ;;  %v12413_v47 = vld [vmem:[%s15472_s1 + $0x310] ss:$8 sps:$4 sm:$0xff]  }
 0x374   : > { %1873 = vst [vmem:[#allocation2] sm:$0xff] %v1868_v44  ;;  %v13529_v49 = vmax.f32 %v1780_v38, %v1849_v48  ;;  %v11222_v50 = vpop.f32.mrb[55].mxu1  ;;  %v12414_v48 = vld [vmem:[%s15472_s1 + $0x320] ss:$8 sps:$4 sm:$0xff]  }
 0x375   : > { %2841 = vst [vmem:[#allocation2] sm:$0x1] %v13283_v9  ;;  %v12415_v50 = vld [vmem:[%s15472_s1 + $0x380] ss:$8 sps:$4 sm:$0xff]  }
 0x376   : > { %v1883_v52 = vpack.c.bf16 %v13529_v49, %v1868_v44  ;;  %v2794_v61 = vrot.slane %v13529_v49, 1  ;;  %v12412_v44 = vld [vmem:[%s15472_s1 + $0x300] ss:$8 sps:$4 sm:$0xff]  }
 0x378   : > { %11276 = vmatmul.mubr.bf16.vlgmr.msra.gmra.mrb[64].mxu1 %v1883_v52  ;;  %v12416_v52 = vld [vmem:[%s15472_s1 + $0x330] ss:$8 sps:$4 sm:$0xff]  }
 0x379   : > { %v1854_v53 = vpop.f32.mrb[56].mxu1  ;;  %11279 = vmatprep.mubr.msk.bf16.mxu1 %vm12893_vm5, %v13283_v9  ;;  %11316 = vmatpush3.bf16.msra.mxu1 %v12415_v50 }
 0x37a   : > { %v1870_v54 = vmax.f32 %v1781_v26, %v1854_v53  ;;  %v11225_v55 = vpop.f32.mrb[57].mxu1  ;;  %11317 = vmatprep.subr.bf16.mxu1 %v13283_v9  ;;  %v12417_v53 = vld [vmem:[%s15472_s1 + $0x390] ss:$8 sps:$4 sm:$0xff]  }
 0x37b   : > { %v1886_v56 = vld [vmem:[#allocation2] sm:$0xfe]  ;;  %v1857_v57 = vpop.f32.mrb[58].mxu1 }
 0x37c   : > { %v1890_v4 = vld [vmem:[#allocation2] sm:$0xfc]  ;;  %v1888_v58 = vpack.c.bf16 %v13529_v49, %v1886_v56  ;;  %v2796_v60 = vrot.slane %v1870_v54, 1  ;;  %v13536_v39 = vmax.f32 %v1782_v29, %v1857_v57  ;;  %v11226_v51 = vpop.f32.mrb[59].mxu1  ;;  %v12420_v56 = vld [vmem:[%s15472_s1 + $0x350] ss:$8 sps:$4 sm:$0xff]  }
 0x37d   : > { %v1892_v59 = vpack.c.bf16 %v13529_v49, %v1890_v4  ;;  %11318 = vmatpush3.bf16.msra.mxu1 %v12417_v53  ;;  %v12419_v55 = vld [vmem:[%s15472_s1 + $0x3a0] ss:$8 sps:$4 sm:$0xff]   ;;  %v12421_v4 = vld [vmem:[%s15472_s1 + $0x3b0] ss:$8 sps:$4 sm:$0xff]  }
 0x37e   : > { %v1931_v62 = vshll.u32 %v1888_v58, 16  ;;  %v1884_v63 = vpack.c.bf16 %v13536_v39, %v1870_v54  ;;  %v13544_v0 = vsel %vm317_vm3, %v2794_v61, %v2796_v60  ;;  %v2798_v1 = vrot.slane %v13536_v39, 1  ;;  %v12418_v54 = vld [vmem:[%s15472_s1 + $0x340] ss:$8 sps:$4 sm:$0xff]   ;;  %11319 = vmatprep.subr.bf16.mxu1 %v13283_v9  ;;  %v12425_v51 = vld [vmem:[%s15472_s1 + $0x3d0] ss:$8 sps:$4 sm:$0xff]  }
 0x37f   : > { %v1929_v3 = vshrl.u32 %v1888_v58, 16  ;;  %v2182_v8 = vrot.slane %v1892_v59, 1  ;;  %v12422_v57 = vld [vmem:[%s15472_s1 + $0x360] ss:$8 sps:$4 sm:$0xff]  }
 0x380   : > { %v1933_v5 = vrot.slane %v1931_v62, 1  ;;  %11280 = vmatmul.mubr.bf16.gmra.mrb[68].mxu1 %v1884_v63  ;;  %v1936_v7 = vshll.u32 %v1884_v63, 16  ;;  %v2183_v10 = vrot.slane %v1884_v63, 1  ;;  %v13550_v11 = vsel %vm317_vm3, %v2796_v60, %v2798_v1  ;;  %v12423_v58 = vld [vmem:[%s15472_s1 + $0x3c0] ss:$8 sps:$4 sm:$0xff]  }
 0x381   : > { %v1862_v6 = vpop.f32.mrb[60].mxu1  ;;  %11283 = vmatprep.mubr.msk.bf16.mxu1 %vm12893_vm5, %v13283_v9  ;;  %v1940_v31 = vshrl.u32 %v1884_v63, 16  ;;  %11320 = vmatpush3.bf16.msra.mxu1 %v12419_v55  ;;  %v12424_v60 = vld [vmem:[%s15472_s1 + $0x370] ss:$8 sps:$4 sm:$0xff]   ;;  %v12426_v59 = vld [vmem:[%s15472_s1 + $0x3e0] ss:$8 sps:$4 sm:$0xff]  }
 0x382   : > { %v1872_v12 = vmax.f32 %v1783_v24, %v1862_v6  ;;  %v11229_v13 = vpop.f32.mrb[61].mxu1  ;;  %v1934_v14 = vor.u32 %v1933_v5, %v1929_v3  ;;  %v1938_v17 = vrot.slane %v1936_v7, 1  ;;  %v2184_v20 = vsel %vm317_vm3, %v2182_v8, %v2183_v10  ;;  %v12407_v24 = vld [vmem:[%s15472_s1 + $0x2b0] ss:$8 sps:$4 sm:$0xff]   ;;  %11321 = vmatprep.subr.bf16.mxu1 %v13283_v9 }
 0x383   : > { %v1865_v15 = vpop.f32.mrb[62].mxu1  ;;  %v12427_v62 = vld [vmem:[%s15472_s1 + $0x3f0] ss:$8 sps:$4 sm:$0xff]  }
 0x384   : > { %1877 = vst [vmem:[#allocation2 + $0x40] sm:$0xff] %v1872_v12  ;;  %v11230_v38 = vpop.f32.mrb[63].mxu1  ;;  %v1893_v22 = vpack.c.bf16 %v1872_v12, %v1872_v12  ;;  %v1939_v23 = vsel %vm382_vm4, %v1934_v14, %v1938_v17  ;;  %v1942_v16 = vor.u32 %v1940_v31, %v1938_v17 }
 0x385   : > { %2848 = vst [vmem:[#allocation2 + $0x47] sm:$0x1] %v13283_v9  ;;  %11248 = vmatmul.mubr.bf16.vlgmr.msra.gmra.mrb[40].mxu0 %v1939_v23  ;;  %11322 = vmatpush3.bf16.msra.mxu1 %v12421_v4 }
 0x386   : > { %v2185_v25 = vrot.slane %v1893_v22, 1  ;;  %11288 = vmatpush3.bf16.msra.mxu0 %v12404_v19  ;;  %11251 = vmatprep.mubr.msk.bf16.mxu0 %vm12893_vm5, %v13283_v9 }
 0x387   : > { %11289 = vmatprep.subr.bf16.mxu0 %v13283_v9  ;;  %11323 = vmatprep.subr.bf16.mxu1 %v13283_v9 }
 0x388   : > { %v2186_v26 = vsel %vm317_vm3, %v2183_v10, %v2185_v25 }
 0x389   : > { %11324 = vmatpush3.bf16.msra.mxu1 %v12423_v58 }
 0x38a   : > { %11290 = vmatpush3.bf16.msra.mxu0 %v12405_v41  ;;  %11325 = vmatprep.subr.bf16.mxu1 %v13283_v9 }
 0x38b   : > { %v1882_v45 = vld [vmem:[#allocation2 + $0x40] sm:$0x3f]  ;;  %11291 = vmatprep.subr.bf16.mxu0 %v13283_v9 }
 0x38c   : > { %v1887_v27 = vld [vmem:[#allocation2 + $0x40] sm:$0x7f]  ;;  %v1885_v28 = vpack.c.bf16 %v1882_v45, %v1882_v45 }
 0x38d   : > { %v1889_v29 = vpack.c.bf16 %v1887_v27, %v1887_v27  ;;  %11326 = vmatpush3.bf16.msra.mxu1 %v12425_v51  ;;  %v13674_v51 = vld [vmem:[#allocation2 + $0x8] sm:$0xff] }
 0x38e   : > { %11284 = vmatmul.mubr.bf16.gmra.mrb[72].mxu1 %v1885_v28  ;;  %11292 = vmatpush3.bf16.msra.mxu0 %v12406_v46 }
 0x38f   : > { %v1944_v32 = vshll.u32 %v1889_v29, 16  ;;  %11331 = vmatprep.mubr.msk.bf16.mxu1 %vm12893_vm5, %v13283_v9  ;;  %11293 = vmatprep.subr.bf16.mxu0 %v13283_v9  ;;  %v1948_v34 = vshrl.u32 %v1889_v29, 16 }
 0x390   : > { %11327 = vmatprep.subr.bf16.mxu1 %v13283_v9 }
 0x391   : > { %v1946_v18 = vrot.slane %v1944_v32, 1  ;;  %11328 = vmatpush3.bf16.msra.mxu1 %v12426_v59 }
 0x392   : > { %11294 = vmatpush3.bf16.msra.mxu0 %v12407_v24  ;;  %11329 = vmatprep.subr.bf16.mxu1 %v13283_v9 }
 0x393   : > { %v1947_v33 = vsel %vm382_vm4, %v1942_v16, %v1946_v18  ;;  %11295 = vmatprep.subr.bf16.mxu0 %v13283_v9  ;;  %v1950_v37 = vor.u32 %v1948_v34, %v1946_v18  ;;  %v9456_v18 = vld [vmem:[%s15473_s2 + $0x2] sm:$0x3] }
 0x394   : > { %11252 = vmatmul.mubr.bf16.gmra.mrb[44].mxu0 %v1947_v33  ;;  %v2305_v24 = vrot.slane %v9456_v18, %v13258_v40 }
 0x395   : > { %11255 = vmatprep.mubr.msk.bf16.mxu0 %vm12893_vm5, %v13283_v9  ;;  %11330 = vmatpush3.bf16.msra.mxu1 %v12427_v62 }
 0x396   : > { %11296 = vmatpush3.bf16.msra.mxu0 %v12408_v21  ;;  %11371 = vmatprep.subr.bf16.mxu1 %v13283_v9 }
 0x397   : > { %11297 = vmatprep.subr.bf16.mxu0 %v13283_v9 }
 0x39a   : > { %11298 = vmatpush3.bf16.msra.mxu0 %v12409_v36 }
 0x39b   : > { %11299 = vmatprep.subr.bf16.mxu0 %v13283_v9 }
 0x39c   : > { %11256 = vmatmul.mubr.bf16.gmra.mrb[48].mxu0 %v1950_v37 }
 0x39d   : > { %11303 = vmatprep.mubr.msk.bf16.mxu0 %vm12893_vm5, %v13283_v9 }
 0x39e   : > { %11300 = vmatpush3.bf16.msra.mxu0 %v12410_v30 }
 0x39f   : > { %11301 = vmatprep.subr.bf16.mxu0 %v13283_v9 }
 0x3a2   : > { %11302 = vmatpush3.bf16.msra.mxu0 %v12411_v42 }
 0x3a3   : > { %11343 = vmatprep.subr.bf16.mxu0 %v13283_v9 }
 0x3a5   : > { %11304 = vmatmul.mubr.bf16.vlgmr.msra.gmra.mrb[52].mxu0 %v2184_v20 }
 0x3a6   : > { %11307 = vmatprep.mubr.msk.bf16.mxu0 %vm12893_vm5, %v13283_v9  ;;  %11344 = vmatpush3.bf16.msra.mxu0 %v12412_v44 }
 0x3a7   : > { %11345 = vmatprep.subr.bf16.mxu0 %v13283_v9 }
 0x3aa   : > { %11346 = vmatpush3.bf16.msra.mxu0 %v12413_v47 }
 0x3ab   : > { %11347 = vmatprep.subr.bf16.mxu0 %v13283_v9 }
 0x3ad   : > { %11308 = vmatmul.mubr.bf16.gmra.mrb[56].mxu0 %v2186_v26 }
 0x3ae   : > { %11311 = vmatprep.mubr.msk.bf16.mxu0 %vm12893_vm5, %v13283_v9  ;;  %11348 = vmatpush3.bf16.msra.mxu0 %v12414_v48 }
 0x3af   : > { %11349 = vmatprep.subr.bf16.mxu0 %v13283_v9 }
 0x3b2   : > { %11350 = vmatpush3.bf16.msra.mxu0 %v12416_v52 }
 0x3b3   : > { %11351 = vmatprep.subr.bf16.mxu0 %v13283_v9 }
 0x3b5   : > { %11312 = vmatmul.mubr.bf16.gmra.mrb[60].mxu0 %v2185_v25 }
 0x3b6   : > { %11359 = vmatprep.mubr.msk.bf16.mxu0 %vm12893_vm5, %v13283_v9  ;;  %11352 = vmatpush3.bf16.msra.mxu0 %v12418_v54 }
 0x3b7   : > { %11353 = vmatprep.subr.bf16.mxu0 %v13283_v9 }
 0x3ba   : > { %11354 = vmatpush3.bf16.msra.mxu0 %v12420_v56 }
 0x3bb   : > { %11355 = vmatprep.subr.bf16.mxu0 %v13283_v9 }
 0x3be   : > { %11356 = vmatpush3.bf16.msra.mxu0 %v12422_v57 }
 0x3bf   : > { %11357 = vmatprep.subr.bf16.mxu0 %v13283_v9 }
 0x3c2   : > { %11358 = vmatpush3.bf16.msra.mxu0 %v12424_v60 }
 0x3c3   : > { %11399 = vmatprep.subr.bf16.mxu0 %v13283_v9 }
 0x44b   : > { %v2140_v63 = vpop.f32.mrb[64].mxu1 }
 0x44c   : > { %v11277_v3 = vpop.f32.mrb[65].mxu1 }
 0x44d   : > { %v2143_v5 = vpop.f32.mrb[66].mxu1 }
 0x44e   : > { %v11278_v6 = vpop.f32.mrb[67].mxu1 }
 0x453   : > { %v2148_v7 = vpop.f32.mrb[68].mxu1 }
 0x454   : > { %v11281_v8 = vpop.f32.mrb[69].mxu1 }
 0x455   : > { %v2151_v10 = vpop.f32.mrb[70].mxu1 }
 0x456   : > { %v11282_v12 = vpop.f32.mrb[71].mxu1 }
 0x458   : > { %v2036_v13 = vpop.f32.mrb[40].mxu0 }
 0x459   : > { %v2141_v14 = vadd.f32 %v2140_v63, %v2036_v13  ;;  %v11249_v15 = vpop.f32.mrb[41].mxu0 }
 0x45a   : > { %v2039_v17 = vpop.f32.mrb[42].mxu0 }
 0x45b   : > { %v2144_v19 = vadd.f32 %v2143_v5, %v2039_v17  ;;  %v11250_v20 = vpop.f32.mrb[43].mxu0 }
 0x461   : > { %v2156_v38 = vpop.f32.mrb[72].mxu1 }
 0x462   : > { %v11285_v22 = vpop.f32.mrb[73].mxu1 }
 0x463   : > { %v2159_v23 = vpop.f32.mrb[74].mxu1 }
 0x464   : > { %v11286_v25 = vpop.f32.mrb[75].mxu1 }
 0x467   : > { %v2044_v41 = vpop.f32.mrb[44].mxu0 }
 0x468   : > { %v2149_v9 = vadd.f32 %v2148_v7, %v2044_v41  ;;  %v11253_v26 = vpop.f32.mrb[45].mxu0 }
 0x469   : > { %v2047_v45 = vpop.f32.mrb[46].mxu0 }
 0x46a   : > { %v2152_v27 = vadd.f32 %v2151_v10, %v2047_v45  ;;  %v11254_v46 = vpop.f32.mrb[47].mxu0 }
 0x46f   : > { %v2052_v28 = vpop.f32.mrb[48].mxu0 }
 0x470   : > { %v2157_v29 = vadd.f32 %v2156_v38, %v2052_v28  ;;  %v11257_v31 = vpop.f32.mrb[49].mxu0 }
 0x471   : > { %v2055_v32 = vpop.f32.mrb[50].mxu0 }
 0x472   : > { %v11258_v16 = vpop.f32.mrb[51].mxu0 }
 0x473   : > { %v12428_v16 = vld [vmem:[%s15472_s1 + $0x400] ss:$8 sps:$4 sm:$0xff]  }
 0x478   : > { %v2272_v33 = vpop.f32.mrb[52].mxu0 }
 0x479   : > { %v2294_v21 = vadd.f32 %v2272_v33, %v2141_v14  ;;  %v11305_v34 = vpop.f32.mrb[53].mxu0 }
 0x47a   : > { %v2275_v36 = vpop.f32.mrb[54].mxu0 }
 0x47b   : > { %v2307_v37 = vadd.f32 %v2305_v24, %v2294_v21  ;;  %v2295_v30 = vadd.f32 %v2275_v36, %v2144_v19  ;;  %v11306_v42 = vpop.f32.mrb[55].mxu0 }
 0x47d   : > { %v2312_v44 = vmax.f32 %v2307_v37, 0.0  ;;  %v2308_v47 = vadd.f32 %v2305_v24, %v2295_v30  ;;  %v12429_v30 = vld [vmem:[%s15472_s1 + $0x410] ss:$8 sps:$4 sm:$0xff]  }
 0x47f   : > { %v2322_v48 = vrot.slane %v2312_v44, 7  ;;  %v2313_v50 = vmax.f32 %v2308_v47, 0.0 }
 0x480   : > { %v2280_v52 = vpop.f32.mrb[56].mxu0 }
 0x481   : > { %2336 = vst [vmem:[#allocation3] sm:$0xfe] %v2322_v48  ;;  %v2323_v53 = vrot.slane %v2313_v50, 7  ;;  %v2296_v54 = vadd.f32 %v2280_v52, %v2149_v9  ;;  %v11309_v55 = vpop.f32.mrb[57].mxu0  ;;  %v12431_v52 = vld [vmem:[%s15472_s1 + $0x430] ss:$8 sps:$4 sm:$0xff]  }
 0x482   : > { %v2283_v56 = vpop.f32.mrb[58].mxu0 }
 0x483   : > { %v2324_v4 = vsel %vm272_vm1, %v2322_v48, %v2323_v53  ;;  %v2309_v57 = vadd.f32 %v2305_v24, %v2296_v54  ;;  %v2297_v58 = vadd.f32 %v2283_v56, %v2152_v27  ;;  %v11310_v60 = vpop.f32.mrb[59].mxu0  ;;  %v12430_v48 = vld [vmem:[%s15472_s1 + $0x420] ss:$8 sps:$4 sm:$0xff]   ;;  %v12433_v56 = vld [vmem:[%s15472_s1 + $0x450] ss:$8 sps:$4 sm:$0xff]  }
 0x484   : > { %2337 = vst [vmem:[#allocation3 + $0x10] sm:$0xff] %v2324_v4  ;;  %v12432_v54 = vld [vmem:[%s15472_s1 + $0x440] ss:$8 sps:$4 sm:$0xff]  }
 0x485   : > { %2342 = vst [vmem:[#allocation3 + $0x11] sm:$0x1] %v13674_v51  ;;  %2343 = vst [vmem:[#allocation3 + $0x12] sm:$0x1] %v13674_v51  ;;  %v2314_v59 = vmax.f32 %v2309_v57, 0.0  ;;  %v2310_v62 = vadd.f32 %v2305_v24, %v2297_v58 }
 0x486   : > { %v12434_v4 = vld [vmem:[%s15472_s1 + $0x460] ss:$8 sps:$4 sm:$0xff]   ;;  %v12435_v58 = vld [vmem:[%s15472_s1 + $0x470] ss:$8 sps:$4 sm:$0xff]  }
 0x487   : > { %v2325_v63 = vrot.slane %v2314_v59, 7  ;;  %v2315_v3 = vmax.f32 %v2310_v62, 0.0 }
 0x488   : > { %v2349_v5 = vld [vmem:[#allocation3] sm:$0xff]  ;;  %v2288_v6 = vpop.f32.mrb[60].mxu0 }
 0x489   : > { %3312 = vst [vmem:[#allocation3] sm:$0x1] %v13674_v51  ;;  %v2326_v7 = vsel %vm272_vm1, %v2323_v53, %v2325_v63  ;;  %v2327_v8 = vrot.slane %v2315_v3, 7  ;;  %v2298_v10 = vadd.f32 %v2288_v6, %v2157_v29  ;;  %v11313_v12 = vpop.f32.mrb[61].mxu0  ;;  %v2357_v19 = vld [vmem:[#allocation3] sm:$0xfe] }
 0x48a   : > { %2338 = vst [vmem:[#allocation3 + $0x20] sm:$0xff] %v2326_v7  ;;  %v2291_v13 = vpop.f32.mrb[62].mxu0  ;;  %v2361_v57 = vld [vmem:[#allocation3] sm:$0xfc]  ;;  %v12436_v7 = vld [vmem:[%s15472_s1 + $0x480] ss:$8 sps:$4 sm:$0xff]  }
 0x48b   : > { %2344 = vst [vmem:[#allocation3 + $0x23] sm:$0x1] %v13674_v51  ;;  %2345 = vst [vmem:[#allocation3 + $0x24] sm:$0x1] %v13674_v51  ;;  %v2328_v14 = vsel %vm272_vm1, %v2325_v63, %v2327_v8  ;;  %v2311_v15 = vadd.f32 %v2305_v24, %v2298_v10  ;;  %v11314_v17 = vpop.f32.mrb[63].mxu0 }
 0x48c   : > { %2339 = vst [vmem:[#allocation3 + $0x30] sm:$0xff] %v2328_v14  ;;  %v13683_v20 = vld [vmem:[#allocation3 + $0x10] sm:$0xff]  ;;  %v12440_v13 = vld [vmem:[%s15472_s1 + $0x4b0] ss:$8 sps:$4 sm:$0xff]  }
 0x48d   : > { %2346 = vst [vmem:[#allocation3 + $0x35] sm:$0x1] %v13674_v51  ;;  %2347 = vst [vmem:[#allocation3 + $0x36] sm:$0x1] %v13674_v51  ;;  %v2316_v38 = vmax.f32 %v2311_v15, 0.0  ;;  %v2354_v22 = vpack.c.bf16 %v13683_v20, %v2349_v5  ;;  %v2359_v23 = vpack.c.bf16 %v13683_v20, %v2357_v19  ;;  %v2363_v60 = vpack.c.bf16 %v13683_v20, %v2361_v57 }
 0x48e   : > { %v12438_v10 = vld [vmem:[%s15472_s1 + $0x4a0] ss:$8 sps:$4 sm:$0xff]   ;;  %v12441_v14 = vld [vmem:[%s15472_s1 + $0x510] ss:$8 sps:$4 sm:$0xff]  }
 0x48f   : > { %v2329_v25 = vrot.slane %v2316_v38, 7  ;;  %11360 = vmatmul.mubr.bf16.vlgmr.msra.gmra.mrb[64].mxu0 %v2354_v22  ;;  %v2402_v9 = vshll.u32 %v2359_v23, 16  ;;  %v2400_v28 = vshrl.u32 %v2359_v23, 16  ;;  %v2653_v62 = vrot.slane %v2363_v60, 1  ;;  %v12439_v12 = vld [vmem:[%s15472_s1 + $0x500] ss:$8 sps:$4 sm:$0xff]  }
 0x490   : > { %11363 = vmatprep.mubr.msk.bf16.mxu0 %vm12893_vm5, %v13674_v51  ;;  %11400 = vmatpush3.bf16.msra.mxu0 %v12439_v12  ;;  %v12442_v15 = vld [vmem:[%s15472_s1 + $0x4c0] ss:$8 sps:$4 sm:$0xff]   ;;  %v12444_v19 = vld [vmem:[%s15472_s1 + $0x4d0] ss:$8 sps:$4 sm:$0xff]  }
 0x491   : > { %v2330_v41 = vsel %vm272_vm1, %v2327_v8, %v2329_v25  ;;  %v2404_v46 = vrot.slane %v2402_v9, 1  ;;  %v12437_v8 = vld [vmem:[%s15472_s1 + $0x490] ss:$8 sps:$4 sm:$0xff]   ;;  %11401 = vmatprep.subr.bf16.mxu0 %v13674_v51  ;;  %v12443_v17 = vld [vmem:[%s15472_s1 + $0x520] ss:$8 sps:$4 sm:$0xff]  }
 0x492   : > { %2340 = vst [vmem:[#allocation3 + $0x40] sm:$0x7f] %v2330_v41  ;;  %v2351_v26 = vld [vmem:[#allocation3 + $0x20] sm:$0xff]  ;;  %v12446_v38 = vld [vmem:[%s15472_s1 + $0x4e0] ss:$8 sps:$4 sm:$0xff]  }
 0x493   : > { %v2405_v31 = vor.u32 %v2404_v46, %v2400_v28  ;;  %v12445_v20 = vld [vmem:[%s15472_s1 + $0x530] ss:$8 sps:$4 sm:$0xff]   ;;  %v12447_v22 = vld [vmem:[%s15472_s1 + $0x540] ss:$8 sps:$4 sm:$0xff]  }
 0x494   : > { %v2352_v45 = vld [vmem:[#allocation3 + $0x30] sm:$0xff]  ;;  %11402 = vmatpush3.bf16.msra.mxu0 %v12441_v14  ;;  %v12448_v23 = vld [vmem:[%s15472_s1 + $0x4f0] ss:$8 sps:$4 sm:$0xff]  }
 0x495   : > { %v13692_v27 = vpack.c.bf16 %v2352_v45, %v2351_v26  ;;  %11403 = vmatprep.subr.bf16.mxu0 %v13674_v51  ;;  %v12449_v25 = vld [vmem:[%s15472_s1 + $0x550] ss:$8 sps:$4 sm:$0xff]   ;;  %v12450_v41 = vld [vmem:[%s15472_s1 + $0x560] ss:$8 sps:$4 sm:$0xff]  }
 0x496   : > { %v12451_v9 = vld [vmem:[%s15472_s1 + $0x570] ss:$8 sps:$4 sm:$0xff]   ;;  %v2783_v60 = vld [vmem:[#allocation2] sm:$0xfe] }
 0x497   : > { %11364 = vmatmul.mubr.bf16.gmra.mrb[68].mxu0 %v13692_v27  ;;  %v2407_v29 = vshll.u32 %v13692_v27, 16  ;;  %v2411_v42 = vshrl.u32 %v13692_v27, 16  ;;  %v2654_v59 = vrot.slane %v13692_v27, 1 }
 0x498   : > { %11367 = vmatprep.mubr.msk.bf16.mxu0 %vm12893_vm5, %v13674_v51  ;;  %11404 = vmatpush3.bf16.msra.mxu0 %v12443_v17 }
 0x499   : > { %v2409_v32 = vrot.slane %v2407_v29, 1  ;;  %v2358_v18 = vld [vmem:[#allocation3 + $0x40] sm:$0x7f]  ;;  %v2655_v63 = vsel %vm317_vm3, %v2653_v62, %v2654_v59  ;;  %11405 = vmatprep.subr.bf16.mxu0 %v13674_v51 }
 0x49a   : > { %v2362_v24 = vld [vmem:[#allocation3 + $0x40] sm:$0xff]  ;;  %v2360_v21 = vpack.c.bf16 %v2358_v18, %v2358_v18 }
 0x49b   : > { %v2353_v33 = vld [vmem:[#allocation3 + $0x40] sm:$0x3f]  ;;  %3319 = vst [vmem:[#allocation3 + $0x47] sm:$0x1] %v13674_v51  ;;  %v2410_v34 = vsel %vm382_vm4, %v2405_v31, %v2409_v32  ;;  %v2413_v47 = vor.u32 %v2411_v42, %v2409_v32  ;;  %v2364_v3 = vpack.c.bf16 %v2362_v24, %v2362_v24 }
 0x49c   : > { %11332 = vmatmul.mubr.bf16.vlgmr.msra.gmra.mrb[76].mxu1 %v2410_v34  ;;  %v2415_v36 = vshll.u32 %v2360_v21, 16  ;;  %v2356_v37 = vpack.c.bf16 %v2353_v33, %v2353_v33  ;;  %v2419_v53 = vshrl.u32 %v2360_v21, 16  ;;  %11406 = vmatpush3.bf16.msra.mxu0 %v12445_v20 }
 0x49d   : > { %11372 = vmatpush3.bf16.msra.mxu1 %v12428_v16  ;;  %11335 = vmatprep.mubr.msk.bf16.mxu1 %vm12893_vm5, %v13674_v51  ;;  %v2656_v5 = vrot.slane %v2364_v3, 1 }
 0x49e   : > { %11373 = vmatprep.subr.bf16.mxu1 %v13674_v51  ;;  %v2417_v44 = vrot.slane %v2415_v36, 1  ;;  %11407 = vmatprep.subr.bf16.mxu0 %v13674_v51 }
 0x49f   : > { %11368 = vmatmul.mubr.bf16.gmra.mrb[72].mxu0 %v2356_v37  ;;  %v2657_v6 = vsel %vm317_vm3, %v2654_v59, %v2656_v5 }
 0x4a0   : > { %11415 = vmatprep.mubr.msk.bf16.mxu0 %vm12893_vm5, %v13674_v51  ;;  %v2418_v50 = vsel %vm382_vm4, %v2413_v47, %v2417_v44  ;;  %v2421_v55 = vor.u32 %v2419_v53, %v2417_v44  ;;  %11408 = vmatpush3.bf16.msra.mxu0 %v12447_v22 }
 0x4a1   : > { %11374 = vmatpush3.bf16.msra.mxu1 %v12429_v30  ;;  %11409 = vmatprep.subr.bf16.mxu0 %v13674_v51 }
 0x4a2   : > { %11375 = vmatprep.subr.bf16.mxu1 %v13674_v51 }
 0x4a4   : > { %11336 = vmatmul.mubr.bf16.gmra.mrb[80].mxu1 %v2418_v50  ;;  %11410 = vmatpush3.bf16.msra.mxu0 %v12449_v25 }
 0x4a5   : > { %11376 = vmatpush3.bf16.msra.mxu1 %v12430_v48  ;;  %11339 = vmatprep.mubr.msk.bf16.mxu1 %vm12893_vm5, %v13674_v51 }
 0x4a6   : > { %11377 = vmatprep.subr.bf16.mxu1 %v13674_v51  ;;  %11411 = vmatprep.subr.bf16.mxu0 %v13674_v51 }
 0x4a8   : > { %11412 = vmatpush3.bf16.msra.mxu0 %v12450_v41 }
 0x4a9   : > { %11378 = vmatpush3.bf16.msra.mxu1 %v12431_v52  ;;  %11413 = vmatprep.subr.bf16.mxu0 %v13674_v51 }
 0x4aa   : > { %11379 = vmatprep.subr.bf16.mxu1 %v13674_v51 }
 0x4ac   : > { %11340 = vmatmul.mubr.bf16.gmra.mrb[84].mxu1 %v2421_v55  ;;  %11414 = vmatpush3.bf16.msra.mxu0 %v12451_v9 }
 0x4ad   : > { %11380 = vmatpush3.bf16.msra.mxu1 %v12432_v54  ;;  %11387 = vmatprep.mubr.msk.bf16.mxu1 %vm12893_vm5, %v13674_v51 }
 0x4ae   : > { %11381 = vmatprep.subr.bf16.mxu1 %v13674_v51  ;;  %11455 = vmatprep.subr.bf16.mxu0 %v13674_v51 }
 0x4b1   : > { %11382 = vmatpush3.bf16.msra.mxu1 %v12433_v56 }
 0x4b2   : > { %11383 = vmatprep.subr.bf16.mxu1 %v13674_v51 }
 0x4b5   : > { %11384 = vmatpush3.bf16.msra.mxu1 %v12434_v4 }
 0x4b6   : > { %11385 = vmatprep.subr.bf16.mxu1 %v13674_v51 }
 0x4b9   : > { %11386 = vmatpush3.bf16.msra.mxu1 %v12435_v58  ;;  %v9529_v58 = vld [vmem:[%s15473_s2 + $0x4] sm:$0x3] }
 0x4ba   : > { %11427 = vmatprep.subr.bf16.mxu1 %v13674_v51  ;;  %v2776_v59 = vrot.slane %v9529_v58, %v13258_v40 }
 0x4bc   : > { %11388 = vmatmul.mubr.bf16.vlgmr.msra.gmra.mrb[88].mxu1 %v2655_v63  ;;  %v2793_v63 = vrot.slane %v2783_v60, 1 }
 0x4bd   : > { %11391 = vmatprep.mubr.msk.bf16.mxu1 %vm12893_vm5, %v13674_v51  ;;  %11428 = vmatpush3.bf16.msra.mxu1 %v12436_v7 }
 0x4be   : > { %11429 = vmatprep.subr.bf16.mxu1 %v13674_v51  ;;  %v2795_v12 = vsel %vm317_vm3, %v2793_v63, %v2794_v61  ;;  %v12452_v63 = vld [vmem:[%s15472_s1 + $0x580] ss:$8 sps:$4 sm:$0xff]  }
 0x4c1   : > { %11430 = vmatpush3.bf16.msra.mxu1 %v12437_v8 }
 0x4c2   : > { %11431 = vmatprep.subr.bf16.mxu1 %v13674_v51 }
 0x4c4   : > { %11392 = vmatmul.mubr.bf16.gmra.mrb[92].mxu1 %v2657_v6 }
 0x4c5   : > { %11395 = vmatprep.mubr.msk.bf16.mxu1 %vm12893_vm5, %v13674_v51  ;;  %11432 = vmatpush3.bf16.msra.mxu1 %v12438_v10 }
 0x4c6   : > { %11433 = vmatprep.subr.bf16.mxu1 %v13674_v51 }
 0x4c9   : > { %11434 = vmatpush3.bf16.msra.mxu1 %v12440_v13 }
 0x4ca   : > { %11435 = vmatprep.subr.bf16.mxu1 %v13674_v51 }
 0x4cc   : > { %11396 = vmatmul.mubr.bf16.gmra.mrb[96].mxu1 %v2656_v5 }
 0x4cd   : > { %11443 = vmatprep.mubr.msk.bf16.mxu1 %vm12893_vm5, %v13674_v51  ;;  %11436 = vmatpush3.bf16.msra.mxu1 %v12442_v15 }
 0x4ce   : > { %11437 = vmatprep.subr.bf16.mxu1 %v13674_v51 }
 0x4d1   : > { %11438 = vmatpush3.bf16.msra.mxu1 %v12444_v19  ;;  %v2787_v19 = vld [vmem:[#allocation2 + $0x40] sm:$0x7f] }
 0x4d2   : > { %11439 = vmatprep.subr.bf16.mxu1 %v13674_v51  ;;  %v2800_v9 = vrot.slane %v2787_v19, 1  ;;  %v12454_v19 = vld [vmem:[%s15472_s1 + $0x5a0] ss:$8 sps:$4 sm:$0xff]  }
 0x4d5   : > { %11440 = vmatpush3.bf16.msra.mxu1 %v12446_v38 }
 0x4d6   : > { %11441 = vmatprep.subr.bf16.mxu1 %v13674_v51 }
 0x4d9   : > { %11442 = vmatpush3.bf16.msra.mxu1 %v12448_v23 }
 0x4da   : > { %11483 = vmatprep.subr.bf16.mxu1 %v13674_v51 }
 0x562   : > { %v2611_v26 = vpop.f32.mrb[64].mxu0 }
 0x563   : > { %v11361_v45 = vpop.f32.mrb[65].mxu0 }
 0x564   : > { %v2614_v27 = vpop.f32.mrb[66].mxu0 }
 0x565   : > { %v11362_v46 = vpop.f32.mrb[67].mxu0 }
 0x56a   : > { %v2619_v28 = vpop.f32.mrb[68].mxu0 }
 0x56b   : > { %v11365_v29 = vpop.f32.mrb[69].mxu0 }
 0x56c   : > { %v2622_v31 = vpop.f32.mrb[70].mxu0 }
 0x56d   : > { %v11366_v32 = vpop.f32.mrb[71].mxu0 }
 0x56f   : > { %v2507_v16 = vpop.f32.mrb[76].mxu1 }
 0x570   : > { %v2612_v18 = vadd.f32 %v2611_v26, %v2507_v16  ;;  %v11333_v24 = vpop.f32.mrb[77].mxu1 }
 0x571   : > { %v2510_v33 = vpop.f32.mrb[78].mxu1 }
 0x572   : > { %v2615_v21 = vadd.f32 %v2614_v27, %v2510_v33  ;;  %v11334_v34 = vpop.f32.mrb[79].mxu1  ;;  %v2627_v36 = vpop.f32.mrb[72].mxu0 }
 0x573   : > { %v11369_v37 = vpop.f32.mrb[73].mxu0 }
 0x574   : > { %v2630_v30 = vpop.f32.mrb[74].mxu0 }
 0x575   : > { %v11370_v42 = vpop.f32.mrb[75].mxu0 }
 0x577   : > { %v2515_v44 = vpop.f32.mrb[80].mxu1 }
 0x578   : > { %v2620_v47 = vadd.f32 %v2619_v28, %v2515_v44  ;;  %v11337_v48 = vpop.f32.mrb[81].mxu1 }
 0x579   : > { %v2518_v50 = vpop.f32.mrb[82].mxu1 }
 0x57a   : > { %v2623_v52 = vadd.f32 %v2622_v31, %v2518_v50  ;;  %v11338_v53 = vpop.f32.mrb[83].mxu1 }
 0x57f   : > { %v2523_v54 = vpop.f32.mrb[84].mxu1 }
 0x580   : > { %v2628_v55 = vadd.f32 %v2627_v36, %v2523_v54  ;;  %v11341_v56 = vpop.f32.mrb[85].mxu1 }
 0x581   : > { %v2526_v4 = vpop.f32.mrb[86].mxu1 }
 0x582   : > { %v11342_v57 = vpop.f32.mrb[87].mxu1 }
 0x58f   : > { %v2743_v62 = vpop.f32.mrb[88].mxu1 }
 0x590   : > { %v2765_v3 = vadd.f32 %v2743_v62, %v2612_v18  ;;  %v11389_v5 = vpop.f32.mrb[89].mxu1 }
 0x591   : > { %v2746_v6 = vpop.f32.mrb[90].mxu1 }
 0x592   : > { %v2778_v7 = vadd.f32 %v2776_v59, %v2765_v3  ;;  %v2766_v8 = vadd.f32 %v2746_v6, %v2615_v21  ;;  %v11390_v10 = vpop.f32.mrb[91].mxu1 }
 0x594   : > { %v2807_v13 = vadd.f32 %v2795_v12, %v2778_v7  ;;  %v2779_v14 = vadd.f32 %v2776_v59, %v2766_v8 }
 0x596   : > { %v2812_v15 = vmax.f32 %v2807_v13, 0.0  ;;  %v2808_v17 = vadd.f32 %v13544_v0, %v2779_v14  ;;  %v2801_v0 = vsel %vm317_vm3, %v2798_v1, %v2800_v9  ;;  %v12453_v13 = vld [vmem:[%s15472_s1 + $0x590] ss:$8 sps:$4 sm:$0xff]  }
 0x597   : > { %v2751_v20 = vpop.f32.mrb[92].mxu1 }
 0x598   : > { %v2822_v38 = vrot.slane %v2812_v15, 7  ;;  %v2813_v22 = vmax.f32 %v2808_v17, 0.0  ;;  %v2767_v23 = vadd.f32 %v2751_v20, %v2620_v47  ;;  %v11393_v25 = vpop.f32.mrb[93].mxu1 }
 0x599   : > { %v2754_v41 = vpop.f32.mrb[94].mxu1 }
 0x59a   : > { %2836 = vst [vmem:[#allocation2] sm:$0xfe] %v2822_v38  ;;  %v2823_v26 = vrot.slane %v2813_v22, 7  ;;  %v2780_v45 = vadd.f32 %v2776_v59, %v2767_v23  ;;  %v2768_v27 = vadd.f32 %v2754_v41, %v2623_v52  ;;  %v11394_v49 = vpop.f32.mrb[95].mxu1  ;;  %v12456_v23 = vld [vmem:[%s15472_s1 + $0x5c0] ss:$8 sps:$4 sm:$0xff]  }
 0x59b   : > { %v12457_v41 = vld [vmem:[%s15472_s1 + $0x5d0] ss:$8 sps:$4 sm:$0xff]  }
 0x59c   : > { %v2824_v61 = vsel %vm272_vm1, %v2822_v38, %v2823_v26  ;;  %v2809_v46 = vadd.f32 %v13550_v11, %v2780_v45  ;;  %v2781_v28 = vadd.f32 %v2776_v59, %v2768_v27  ;;  %v12455_v38 = vld [vmem:[%s15472_s1 + $0x5b0] ss:$8 sps:$4 sm:$0xff]  }
 0x59d   : > { %2837 = vst [vmem:[#allocation2 + $0x10] sm:$0xff] %v2824_v61  ;;  %v12459_v45 = vld [vmem:[%s15472_s1 + $0x5f0] ss:$8 sps:$4 sm:$0xff]  }
 0x59e   : > { %2842 = vst [vmem:[#allocation2 + $0x11] sm:$0x1] %v13674_v51  ;;  %2843 = vst [vmem:[#allocation2 + $0x12] sm:$0x1] %v13674_v51  ;;  %v2814_v29 = vmax.f32 %v2809_v46, 0.0  ;;  %v2810_v31 = vadd.f32 %v2801_v0, %v2781_v28 }
 0x59f   : > { %v2759_v32 = vpop.f32.mrb[96].mxu1 }
 0x5a0   : > { %v2825_v16 = vrot.slane %v2814_v29, 7  ;;  %v2815_v18 = vmax.f32 %v2810_v31, 0.0  ;;  %v2769_v24 = vadd.f32 %v2759_v32, %v2628_v55  ;;  %v11397_v33 = vpop.f32.mrb[97].mxu1  ;;  %v12460_v31 = vld [vmem:[%s15472_s1 + $0x600] ss:$8 sps:$4 sm:$0xff]  }
 0x5a1   : > { %v2762_v36 = vpop.f32.mrb[98].mxu1  ;;  %v2849_v37 = vld [vmem:[#allocation2] sm:$0xff]  ;;  %v12461_v32 = vld [vmem:[%s15472_s1 + $0x610] ss:$8 sps:$4 sm:$0xff]  }
 0x5a2   : > { %v2826_v21 = vsel %vm272_vm1, %v2823_v26, %v2825_v16  ;;  %v2827_v11 = vrot.slane %v2815_v18, 7  ;;  %v2782_v34 = vadd.f32 %v2776_v59, %v2769_v24  ;;  %v11398_v39 = vpop.f32.mrb[99].mxu1  ;;  %3812 = vst [vmem:[#allocation2] sm:$0x1] %v13674_v51  ;;  %v2857_v42 = vld [vmem:[#allocation2] sm:$0xfe] }
 0x5a3   : > { %2838 = vst [vmem:[#allocation2 + $0x20] sm:$0xff] %v2826_v21  ;;  %v2861_v26 = vld [vmem:[#allocation2] sm:$0xfc]  ;;  %v12464_v24 = vld [vmem:[%s15472_s1 + $0x630] ss:$8 sps:$4 sm:$0xff]  }
 0x5a4   : > { %2844 = vst [vmem:[#allocation2 + $0x23] sm:$0x1] %v13674_v51  ;;  %2845 = vst [vmem:[#allocation2 + $0x24] sm:$0x1] %v13674_v51  ;;  %v2828_v1 = vsel %vm272_vm1, %v2825_v16, %v2827_v11  ;;  %v2811_v30 = vadd.f32 %v2800_v9, %v2782_v34  ;;  %v12458_v9 = vld [vmem:[%s15472_s1 + $0x5e0] ss:$8 sps:$4 sm:$0xff]  }
 0x5a5   : > { %2839 = vst [vmem:[#allocation2 + $0x30] sm:$0xff] %v2828_v1  ;;  %v13836_v44 = vld [vmem:[#allocation2 + $0x10] sm:$0xff]  ;;  %v12462_v16 = vld [vmem:[%s15472_s1 + $0x620] ss:$8 sps:$4 sm:$0xff]  }
 0x5a6   : > { %2846 = vst [vmem:[#allocation2 + $0x35] sm:$0x1] %v13674_v51  ;;  %2847 = vst [vmem:[#allocation2 + $0x36] sm:$0x1] %v13674_v51  ;;  %v2816_v47 = vmax.f32 %v2811_v30, 0.0  ;;  %v2854_v48 = vpack.c.bf16 %v13836_v44, %v2849_v37  ;;  %v2859_v50 = vpack.c.bf16 %v13836_v44, %v2857_v42  ;;  %v2863_v27 = vpack.c.bf16 %v13836_v44, %v2861_v26 }
 0x5a7   : > { %v12463_v18 = vld [vmem:[%s15472_s1 + $0x680] ss:$8 sps:$4 sm:$0xff]   ;;  %v12465_v33 = vld [vmem:[%s15472_s1 + $0x690] ss:$8 sps:$4 sm:$0xff]  }
 0x5a8   : > { %v2829_v52 = vrot.slane %v2816_v47, 7  ;;  %11444 = vmatmul.mubr.bf16.vlgmr.msra.gmra.mrb[100].mxu1 %v2854_v48  ;;  %v2902_v54 = vshll.u32 %v2859_v50, 16  ;;  %v2900_v58 = vshrl.u32 %v2859_v50, 16  ;;  %v3153_v61 = vrot.slane %v2863_v27, 1  ;;  %v12466_v21 = vld [vmem:[%s15472_s1 + $0x640] ss:$8 sps:$4 sm:$0xff]  }
 0x5a9   : > { %11447 = vmatprep.mubr.msk.bf16.mxu1 %vm12893_vm5, %v13674_v51  ;;  %11484 = vmatpush3.bf16.msra.mxu1 %v12463_v18  ;;  %v12468_v34 = vld [vmem:[%s15472_s1 + $0x650] ss:$8 sps:$4 sm:$0xff]   ;;  %v12470_v37 = vld [vmem:[%s15472_s1 + $0x660] ss:$8 sps:$4 sm:$0xff]  }
 0x5aa   : > { %v2830_v53 = vsel %vm272_vm1, %v2827_v11, %v2829_v52  ;;  %v2904_v57 = vrot.slane %v2902_v54, 1  ;;  %11485 = vmatprep.subr.bf16.mxu1 %v13674_v51  ;;  %v12467_v11 = vld [vmem:[%s15472_s1 + $0x6a0] ss:$8 sps:$4 sm:$0xff]   ;;  %v12469_v36 = vld [vmem:[%s15472_s1 + $0x6b0] ss:$8 sps:$4 sm:$0xff]  }
 0x5ab   : > { %2840 = vst [vmem:[#allocation2 + $0x40] sm:$0x7f] %v2830_v53  ;;  %v13845_v55 = vld [vmem:[#allocation2 + $0x20] sm:$0xff]  ;;  %v12472_v1 = vld [vmem:[%s15472_s1 + $0x670] ss:$8 sps:$4 sm:$0xff]  }
 0x5ac   : > { %v2905_v59 = vor.u32 %v2904_v57, %v2900_v58  ;;  %v12471_v39 = vld [vmem:[%s15472_s1 + $0x6c0] ss:$8 sps:$4 sm:$0xff]   ;;  %v12473_v30 = vld [vmem:[%s15472_s1 + $0x6d0] ss:$8 sps:$4 sm:$0xff]  }
 0x5ad   : > { %v13847_v56 = vld [vmem:[#allocation2 + $0x30] sm:$0xff]  ;;  %11486 = vmatpush3.bf16.msra.mxu1 %v12465_v33  ;;  %v12474_v42 = vld [vmem:[%s15472_s1 + $0x6e0] ss:$8 sps:$4 sm:$0xff]  }
 0x5ae   : > { %v13851_v4 = vpack.c.bf16 %v13847_v56, %v13845_v55  ;;  %11487 = vmatprep.subr.bf16.mxu1 %v13674_v51  ;;  %v12475_v47 = vld [vmem:[%s15472_s1 + $0x6f0] ss:$8 sps:$4 sm:$0xff]  }
 0x5b0   : > { %11448 = vmatmul.mubr.bf16.gmra.mrb[104].mxu1 %v13851_v4  ;;  %v2907_v60 = vshll.u32 %v13851_v4, 16  ;;  %v2911_v14 = vshrl.u32 %v13851_v4, 16  ;;  %v3154_v49 = vrot.slane %v13851_v4, 1 }
 0x5b1   : > { %11451 = vmatprep.mubr.msk.bf16.mxu1 %vm12893_vm5, %v13674_v51  ;;  %11488 = vmatpush3.bf16.msra.mxu1 %v12467_v11 }
 0x5b2   : > { %v2909_v62 = vrot.slane %v2907_v60, 1  ;;  %v2858_v3 = vld [vmem:[#allocation2 + $0x40] sm:$0x7f]  ;;  %v3155_v46 = vsel %vm317_vm3, %v3153_v61, %v3154_v49  ;;  %11489 = vmatprep.subr.bf16.mxu1 %v13674_v51 }
 0x5b3   : > { %v2862_v5 = vld [vmem:[#allocation2 + $0x40] sm:$0xff]  ;;  %v2860_v7 = vpack.c.bf16 %v2858_v3, %v2858_v3 }
 0x5b4   : > { %v2853_v6 = vld [vmem:[#allocation2 + $0x40] sm:$0x3f]  ;;  %3819 = vst [vmem:[#allocation2 + $0x47] sm:$0x1] %v13674_v51  ;;  %v2910_v8 = vsel %vm382_vm4, %v2905_v59, %v2909_v62  ;;  %v2913_v17 = vor.u32 %v2911_v14, %v2909_v62  ;;  %v2864_v28 = vpack.c.bf16 %v2862_v5, %v2862_v5 }
 0x5b5   : > { %11416 = vmatmul.mubr.bf16.vlgmr.msra.gmra.mrb[76].mxu0 %v2910_v8  ;;  %v2915_v10 = vshll.u32 %v2860_v7, 16  ;;  %v2856_v12 = vpack.c.bf16 %v2853_v6, %v2853_v6  ;;  %v2919_v22 = vshrl.u32 %v2860_v7, 16  ;;  %11490 = vmatpush3.bf16.msra.mxu1 %v12469_v36 }
 0x5b6   : > { %11456 = vmatpush3.bf16.msra.mxu0 %v12452_v63  ;;  %11419 = vmatprep.mubr.msk.bf16.mxu0 %vm12893_vm5, %v13674_v51  ;;  %v3156_v0 = vrot.slane %v2864_v28, 1 }
 0x5b7   : > { %11457 = vmatprep.subr.bf16.mxu0 %v13674_v51  ;;  %v2917_v15 = vrot.slane %v2915_v10, 1  ;;  %11491 = vmatprep.subr.bf16.mxu1 %v13674_v51 }
 0x5b8   : > { %11452 = vmatmul.mubr.bf16.gmra.mrb[108].mxu1 %v2856_v12  ;;  %v3157_v29 = vsel %vm317_vm3, %v3154_v49, %v3156_v0 }
 0x5b9   : > { %11499 = vmatprep.mubr.msk.bf16.mxu1 %vm12893_vm5, %v13674_v51  ;;  %v2918_v20 = vsel %vm382_vm4, %v2913_v17, %v2917_v15  ;;  %v2921_v25 = vor.u32 %v2919_v22, %v2917_v15  ;;  %11492 = vmatpush3.bf16.msra.mxu1 %v12471_v39 }
 0x5ba   : > { %11458 = vmatpush3.bf16.msra.mxu0 %v12453_v13  ;;  %11493 = vmatprep.subr.bf16.mxu1 %v13674_v51 }
 0x5bb   : > { %11459 = vmatprep.subr.bf16.mxu0 %v13674_v51 }
 0x5bd   : > { %11420 = vmatmul.mubr.bf16.gmra.mrb[80].mxu0 %v2918_v20  ;;  %11494 = vmatpush3.bf16.msra.mxu1 %v12473_v30 }
 0x5be   : > { %11460 = vmatpush3.bf16.msra.mxu0 %v12454_v19  ;;  %11423 = vmatprep.mubr.msk.bf16.mxu0 %vm12893_vm5, %v13674_v51 }
 0x5bf   : > { %11461 = vmatprep.subr.bf16.mxu0 %v13674_v51  ;;  %11495 = vmatprep.subr.bf16.mxu1 %v13674_v51 }
 0x5c1   : > { %11496 = vmatpush3.bf16.msra.mxu1 %v12474_v42 }
 0x5c2   : > { %11462 = vmatpush3.bf16.msra.mxu0 %v12455_v38  ;;  %11497 = vmatprep.subr.bf16.mxu1 %v13674_v51 }
 0x5c3   : > { %11463 = vmatprep.subr.bf16.mxu0 %v13674_v51 }
 0x5c5   : > { %11424 = vmatmul.mubr.bf16.gmra.mrb[84].mxu0 %v2921_v25  ;;  %11498 = vmatpush3.bf16.msra.mxu1 %v12475_v47 }
 0x5c6   : > { %11464 = vmatpush3.bf16.msra.mxu0 %v12456_v23  ;;  %11471 = vmatprep.mubr.msk.bf16.mxu0 %vm12893_vm5, %v13674_v51 }
 0x5c7   : > { %11465 = vmatprep.subr.bf16.mxu0 %v13674_v51  ;;  %11539 = vmatprep.subr.bf16.mxu1 %v13674_v51 }
 0x5ca   : > { %11466 = vmatpush3.bf16.msra.mxu0 %v12457_v41  ;;  %v9602_v41 = vld [vmem:[%s15473_s2 + $0x6] sm:$0x3] }
 0x5cb   : > { %11467 = vmatprep.subr.bf16.mxu0 %v13674_v51 }
 0x5ce   : > { %11468 = vmatpush3.bf16.msra.mxu0 %v12458_v9  ;;  %v3276_v9 = vrot.slane %v9602_v41, %v13258_v40 }
 0x5cf   : > { %11469 = vmatprep.subr.bf16.mxu0 %v13674_v51 }
 0x5d2   : > { %11470 = vmatpush3.bf16.msra.mxu0 %v12459_v45 }
 0x5d3   : > { %11511 = vmatprep.subr.bf16.mxu0 %v13674_v51 }
 0x5d5   : > { %11472 = vmatmul.mubr.bf16.vlgmr.msra.gmra.mrb[88].mxu0 %v3155_v46 }
 0x5d6   : > { %11475 = vmatprep.mubr.msk.bf16.mxu0 %vm12893_vm5, %v13674_v51  ;;  %11512 = vmatpush3.bf16.msra.mxu0 %v12460_v31 }
 0x5d7   : > { %11513 = vmatprep.subr.bf16.mxu0 %v13674_v51 }
 0x5da   : > { %11514 = vmatpush3.bf16.msra.mxu0 %v12461_v32 }
 0x5db   : > { %11515 = vmatprep.subr.bf16.mxu0 %v13674_v51 }
 0x5dd   : > { %11476 = vmatmul.mubr.bf16.gmra.mrb[92].mxu0 %v3157_v29 }
 0x5de   : > { %11479 = vmatprep.mubr.msk.bf16.mxu0 %vm12893_vm5, %v13674_v51  ;;  %11516 = vmatpush3.bf16.msra.mxu0 %v12462_v16 }
 0x5df   : > { %11517 = vmatprep.subr.bf16.mxu0 %v13674_v51 }
 0x5e2   : > { %11518 = vmatpush3.bf16.msra.mxu0 %v12464_v24 }
 0x5e3   : > { %11519 = vmatprep.subr.bf16.mxu0 %v13674_v51 }
 0x5e5   : > { %11480 = vmatmul.mubr.bf16.gmra.mrb[96].mxu0 %v3156_v0 }
 0x5e6   : > { %11527 = vmatprep.mubr.msk.bf16.mxu0 %vm12893_vm5, %v13674_v51  ;;  %11520 = vmatpush3.bf16.msra.mxu0 %v12466_v21 }
 0x5e7   : > { %11521 = vmatprep.subr.bf16.mxu0 %v13674_v51 }
 0x5ea   : > { %11522 = vmatpush3.bf16.msra.mxu0 %v12468_v34 }
 0x5eb   : > { %11523 = vmatprep.subr.bf16.mxu0 %v13674_v51 }
 0x5ee   : > { %11524 = vmatpush3.bf16.msra.mxu0 %v12470_v37 }
 0x5ef   : > { %11525 = vmatprep.subr.bf16.mxu0 %v13674_v51 }
 0x5f2   : > { %11526 = vmatpush3.bf16.msra.mxu0 %v12472_v1 }
 0x67b   : > { %v3111_v48 = vpop.f32.mrb[100].mxu1 }
 0x67c   : > { %v11445_v50 = vpop.f32.mrb[101].mxu1 }
 0x67d   : > { %v3114_v52 = vpop.f32.mrb[102].mxu1 }
 0x67e   : > { %v11446_v53 = vpop.f32.mrb[103].mxu1 }
 0x683   : > { %v3119_v54 = vpop.f32.mrb[104].mxu1 }
 0x684   : > { %v11449_v4 = vpop.f32.mrb[105].mxu1 }
 0x685   : > { %v3122_v57 = vpop.f32.mrb[106].mxu1 }
 0x686   : > { %v11450_v58 = vpop.f32.mrb[107].mxu1 }
 0x688   : > { %v3007_v60 = vpop.f32.mrb[76].mxu0 }
 0x689   : > { %v3112_v59 = vadd.f32 %v3111_v48, %v3007_v60  ;;  %v11417_v62 = vpop.f32.mrb[77].mxu0 }
 0x68a   : > { %v3010_v63 = vpop.f32.mrb[78].mxu0 }
 0x68b   : > { %v3115_v3 = vadd.f32 %v3114_v52, %v3010_v63  ;;  %v11418_v5 = vpop.f32.mrb[79].mxu0  ;;  %v3127_v6 = vpop.f32.mrb[108].mxu1 }
 0x68c   : > { %v11453_v7 = vpop.f32.mrb[109].mxu1 }
 0x68d   : > { %v3130_v8 = vpop.f32.mrb[110].mxu1 }
 0x68e   : > { %v11454_v10 = vpop.f32.mrb[111].mxu1 }
 0x690   : > { %v3015_v12 = vpop.f32.mrb[80].mxu0 }
 0x691   : > { %v3120_v13 = vadd.f32 %v3119_v54, %v3015_v12  ;;  %v11421_v14 = vpop.f32.mrb[81].mxu0 }
 0x692   : > { %v3018_v15 = vpop.f32.mrb[82].mxu0 }
 0x693   : > { %v3123_v17 = vadd.f32 %v3122_v57, %v3018_v15  ;;  %v11422_v19 = vpop.f32.mrb[83].mxu0 }
 0x698   : > { %v3023_v20 = vpop.f32.mrb[84].mxu0 }
 0x699   : > { %v3128_v38 = vadd.f32 %v3127_v6, %v3023_v20  ;;  %v11425_v22 = vpop.f32.mrb[85].mxu0 }
 0x69a   : > { %v3026_v23 = vpop.f32.mrb[86].mxu0 }
 0x69b   : > { %v11426_v25 = vpop.f32.mrb[87].mxu0 }
 0x6a8   : > { %v3243_v26 = vpop.f32.mrb[88].mxu0 }
 0x6a9   : > { %v3265_v45 = vadd.f32 %v3243_v26, %v3112_v59  ;;  %v11473_v27 = vpop.f32.mrb[89].mxu0 }
 0x6aa   : > { %v3246_v49 = vpop.f32.mrb[90].mxu0 }
 0x6ab   : > { %v3278_v61 = vadd.f32 %v3276_v9, %v3265_v45  ;;  %v3266_v46 = vadd.f32 %v3246_v49, %v3115_v3  ;;  %v11474_v28 = vpop.f32.mrb[91].mxu0  ;;  %v12477_v45 = vld [vmem:[%s15472_s1 + $0x710] ss:$8 sps:$4 sm:$0xff]  }
 0x6ad   : > { %v3283_v0 = vmax.f32 %v3278_v61, 0.0  ;;  %v3279_v29 = vadd.f32 %v3276_v9, %v3266_v46  ;;  %v12478_v46 = vld [vmem:[%s15472_s1 + $0x720] ss:$8 sps:$4 sm:$0xff]  }
 0x6af   : > { %v3293_v31 = vrot.slane %v3283_v0, 7  ;;  %v3284_v32 = vmax.f32 %v3279_v29, 0.0  ;;  %v12479_v0 = vld [vmem:[%s15472_s1 + $0x730] ss:$8 sps:$4 sm:$0xff]  }
 0x6b0   : > { %v3251_v16 = vpop.f32.mrb[92].mxu0 }
 0x6b1   : > { %3307 = vst [vmem:[#allocation3] sm:$0xfe] %v3293_v31  ;;  %v3294_v18 = vrot.slane %v3284_v32, 7  ;;  %v3267_v24 = vadd.f32 %v3251_v16, %v3120_v13  ;;  %v11477_v33 = vpop.f32.mrb[93].mxu0  ;;  %v12481_v16 = vld [vmem:[%s15472_s1 + $0x750] ss:$8 sps:$4 sm:$0xff]  }
 0x6b2   : > { %v3254_v21 = vpop.f32.mrb[94].mxu0  ;;  %v12483_v33 = vld [vmem:[%s15472_s1 + $0x770] ss:$8 sps:$4 sm:$0xff]  }
 0x6b3   : > { %v3295_v11 = vsel %vm272_vm1, %v3293_v31, %v3294_v18  ;;  %v3280_v34 = vadd.f32 %v3276_v9, %v3267_v24  ;;  %v3268_v36 = vadd.f32 %v3254_v21, %v3123_v17  ;;  %v11478_v37 = vpop.f32.mrb[95].mxu0  ;;  %v12480_v31 = vld [vmem:[%s15472_s1 + $0x740] ss:$8 sps:$4 sm:$0xff]  }
 0x6b4   : > { %3308 = vst [vmem:[#allocation3 + $0x10] sm:$0xff] %v3295_v11 }
 0x6b5   : > { %3313 = vst [vmem:[#allocation3 + $0x11] sm:$0x1] %v13674_v51  ;;  %3314 = vst [vmem:[#allocation3 + $0x12] sm:$0x1] %v13674_v51  ;;  %v3285_v39 = vmax.f32 %v3280_v34, 0.0  ;;  %v3281_v1 = vadd.f32 %v3276_v9, %v3268_v36 }
 0x6b7   : > { %v3296_v30 = vrot.slane %v3285_v39, 7  ;;  %v3286_v42 = vmax.f32 %v3281_v1, 0.0  ;;  %v14044_v1 = vld [vmem:[#allocation2 + $0x8] sm:$0xff] }
 0x6b8   : > { %v3259_v47 = vpop.f32.mrb[96].mxu0  ;;  %v3320_v60 = vld [vmem:[#allocation3] sm:$0xff] }
 0x6b9   : > { %v3297_v48 = vsel %vm272_vm1, %v3294_v18, %v3296_v30  ;;  %v3298_v50 = vrot.slane %v3286_v42, 7  ;;  %v3269_v52 = vadd.f32 %v3259_v47, %v3128_v38  ;;  %v11481_v53 = vpop.f32.mrb[97].mxu0  ;;  %v3328_v59 = vld [vmem:[#allocation3] sm:$0xfe]  ;;  %v12476_v38 = vld [vmem:[%s15472_s1 + $0x700] ss:$8 sps:$4 sm:$0xff]  }
 0x6ba   : > { %3309 = vst [vmem:[#allocation3 + $0x20] sm:$0xff] %v3297_v48  ;;  %v3262_v54 = vpop.f32.mrb[98].mxu0  ;;  %v12482_v18 = vld [vmem:[%s15472_s1 + $0x760] ss:$8 sps:$4 sm:$0xff]   ;;  %v3332_v24 = vld [vmem:[#allocation3] sm:$0xfc] }
 0x6bb   : > { %3315 = vst [vmem:[#allocation3 + $0x23] sm:$0x1] %v13674_v51  ;;  %3316 = vst [vmem:[#allocation3 + $0x24] sm:$0x1] %v13674_v51  ;;  %v3299_v4 = vsel %vm272_vm1, %v3296_v30, %v3298_v50  ;;  %v3282_v57 = vadd.f32 %v3276_v9, %v3269_v52  ;;  %v11482_v58 = vpop.f32.mrb[99].mxu0 }
 0x6bc   : > { %3310 = vst [vmem:[#allocation3 + $0x30] sm:$0xff] %v3299_v4  ;;  %v13985_v62 = vld [vmem:[#allocation3 + $0x10] sm:$0xff]  ;;  %v12489_v48 = vld [vmem:[%s15472_s1 + $0x814] ss:$8 sps:$4 sm:$0xff]   ;;  %v12493_v4 = vld [vmem:[%s15472_s1 + $0x830] ss:$8 sps:$4 sm:$0xff]  }
 0x6bd   : > { %3317 = vst [vmem:[#allocation3 + $0x35] sm:$0x1] %v13674_v51  ;;  %3318 = vst [vmem:[#allocation3 + $0x36] sm:$0x1] %v13674_v51  ;;  %v3287_v63 = vmax.f32 %v3282_v57, 0.0  ;;  %v3325_v3 = vpack.c.bf16 %v13985_v62, %v3320_v60  ;;  %v3330_v5 = vpack.c.bf16 %v13985_v62, %v3328_v59  ;;  %v3334_v21 = vpack.c.bf16 %v13985_v62, %v3332_v24 }
 0x6be   : > { %v12484_v47 = vld [vmem:[%s15472_s1 + $0x800] ss:$8 sps:$4 sm:$0xff]   ;;  %v12492_v52 = vld [vmem:[%s15472_s1 + $0x824] ss:$8 sps:$4 sm:$0xff]   ;;  %v12495_v54 = vld [vmem:[%s15472_s1 + $0x834] ss:$8 sps:$4 sm:$0xff]  }
 0x6bf   : > { %v3300_v6 = vrot.slane %v3287_v63, 7  ;;  %11528 = vmatmul.mubr.bf16.vlgmr.msra.gmra.mrb[100].mxu0 %v3325_v3  ;;  %v3373_v8 = vshll.u32 %v3330_v5, 16  ;;  %v3371_v15 = vshrl.u32 %v3330_v5, 16  ;;  %v3624_v36 = vrot.slane %v3334_v21, 1  ;;  %v12490_v53 = vld [vmem:[%s15472_s1 + $0x820] ss:$8 sps:$4 sm:$0xff]  }
 0x6c0   : > { %11531 = vmatprep.mubr.msk.bf16.mxu0 %vm12893_vm5, %v13674_v51  ;;  %v12498_v57 = vld [vmem:[%s15472_s1 + $0x844] ss:$8 sps:$4 sm:$0xff]   ;;  %v12496_v58 = vld [vmem:[%s15472_s1 + $0x840] ss:$8 sps:$4 sm:$0xff]   ;;  %v12501_v60 = vld [vmem:[%s15472_s1 + $0x854] ss:$8 sps:$4 sm:$0xff]  }
 0x6c1   : > { %v3301_v7 = vsel %vm272_vm1, %v3298_v50, %v3300_v6  ;;  %v3375_v14 = vrot.slane %v3373_v8, 1  ;;  %v12487_v50 = vld [vmem:[%s15472_s1 + $0x810] ss:$8 sps:$4 sm:$0xff]   ;;  %v12504_v62 = vld [vmem:[%s15472_s1 + $0x864] ss:$8 sps:$4 sm:$0xff]  }
 0x6c2   : > { %3311 = vst [vmem:[#allocation3 + $0x40] sm:$0x7f] %v3301_v7  ;;  %v3322_v10 = vld [vmem:[#allocation3 + $0x20] sm:$0xff]  ;;  %v12502_v63 = vld [vmem:[%s15472_s1 + $0x860] ss:$8 sps:$4 sm:$0xff]  }
 0x6c3   : > { %v3376_v19 = vor.u32 %v3375_v14, %v3371_v15  ;;  %v12499_v59 = vld [vmem:[%s15472_s1 + $0x850] ss:$8 sps:$4 sm:$0xff]   ;;  %v12507_v3 = vld [vmem:[%s15472_s1 + $0x874] ss:$8 sps:$4 sm:$0xff]   ;;  %v12510_v6 = vld [vmem:[%s15472_s1 + $0x784] ss:$8 sps:$4 sm:$0xff]  }
 0x6c4   : > { %v3323_v12 = vld [vmem:[#allocation3 + $0x30] sm:$0xff]  ;;  %v12505_v5 = vld [vmem:[%s15472_s1 + $0x870] ss:$8 sps:$4 sm:$0xff]   ;;  %v9675_v24 = vld [vmem:[%s15473_s2 + $0x8] sm:$0x3] }
 0x6c5   : > { %v13994_v13 = vpack.c.bf16 %v3323_v12, %v3322_v10  ;;  %v3747_v21 = vrot.slane %v9675_v24, %v13258_v40 }
 0x6c7   : > { %11532 = vmatmul.mubr.bf16.gmra.mrb[104].mxu0 %v13994_v13  ;;  %v3378_v17 = vshll.u32 %v13994_v13, 16  ;;  %v3382_v27 = vshrl.u32 %v13994_v13, 16  ;;  %v3625_v11 = vrot.slane %v13994_v13, 1 }
 0x6c8   : > { %11535 = vmatprep.mubr.msk.bf16.mxu0 %vm12893_vm5, %v13674_v51 }
 0x6c9   : > { %v3380_v20 = vrot.slane %v3378_v17, 1  ;;  %v3329_v22 = vld [vmem:[#allocation3 + $0x40] sm:$0x7f]  ;;  %v3626_v37 = vsel %vm317_vm3, %v3624_v36, %v3625_v11 }
 0x6ca   : > { %v3324_v23 = vld [vmem:[#allocation3 + $0x40] sm:$0x3f]  ;;  %v3331_v25 = vpack.c.bf16 %v3329_v22, %v3329_v22 }
 0x6cb   : > { %v3381_v41 = vsel %vm382_vm4, %v3376_v19, %v3380_v20  ;;  %v3327_v26 = vpack.c.bf16 %v3324_v23, %v3324_v23  ;;  %v3384_v61 = vor.u32 %v3382_v27, %v3380_v20  ;;  %v3333_v34 = vld [vmem:[#allocation3 + $0x40] sm:$0xff] }
 0x6cc   : > { %11500 = vmatmul.mubr.bf16.vlgmr.msra.gmra.mrb[112].mxu1 %v3381_v41  ;;  %v3386_v9 = vshll.u32 %v3331_v25, 16  ;;  %v3390_v29 = vshrl.u32 %v3331_v25, 16  ;;  %v3335_v39 = vpack.c.bf16 %v3333_v34, %v3333_v34  ;;  %v3765_v34 = vrot.slane %v13836_v44, 1 }
 0x6cd   : > { %11540 = vmatpush3.bf16.msra.mxu1 %v12476_v38  ;;  %11503 = vmatprep.mubr.msk.bf16.mxu1 %vm12893_vm5, %v13674_v51  ;;  %v3769_v44 = vrot.slane %v13847_v56, 1 }
 0x6ce   : > { %11541 = vmatprep.subr.bf16.mxu1 %v13674_v51  ;;  %v3388_v49 = vrot.slane %v3386_v9, 1  ;;  %v3627_v30 = vrot.slane %v3335_v39, 1 }
 0x6cf   : > { %11536 = vmatmul.mubr.bf16.gmra.mrb[108].mxu0 %v3327_v26 }
 0x6d0   : > { %4008 = vmatprep.mubr.bf16.mxu0 %v12891_v2  ;;  %v3389_v28 = vsel %vm382_vm4, %v3384_v61, %v3388_v49  ;;  %v3392_v32 = vor.u32 %v3390_v29, %v3388_v49  ;;  %v3628_v42 = vsel %vm317_vm3, %v3625_v11, %v3627_v30 }
 0x6d1   : > { %11542 = vmatpush3.bf16.msra.mxu1 %v12477_v45 }
 0x6d2   : > { %11543 = vmatprep.subr.bf16.mxu1 %v13674_v51 }
 0x6d4   : > { %11504 = vmatmul.mubr.bf16.gmra.mrb[116].mxu1 %v3389_v28 }
 0x6d5   : > { %11544 = vmatpush3.bf16.msra.mxu1 %v12478_v46  ;;  %11507 = vmatprep.mubr.msk.bf16.mxu1 %vm12893_vm5, %v13674_v51 }
 0x6d6   : > { %11545 = vmatprep.subr.bf16.mxu1 %v13674_v51 }
 0x6d9   : > { %11546 = vmatpush3.bf16.msra.mxu1 %v12479_v0 }
 0x6da   : > { %11547 = vmatprep.subr.bf16.mxu1 %v13674_v51 }
 0x6dc   : > { %11508 = vmatmul.mubr.bf16.gmra.mrb[120].mxu1 %v3392_v32 }
 0x6dd   : > { %11548 = vmatpush3.bf16.msra.mxu1 %v12480_v31  ;;  %11555 = vmatprep.mubr.msk.bf16.mxu1 %vm12893_vm5, %v13674_v51 }
 0x6de   : > { %11549 = vmatprep.subr.bf16.mxu1 %v13674_v51 }
 0x6e1   : > { %11550 = vmatpush3.bf16.msra.mxu1 %v12481_v16 }
 0x6e2   : > { %11551 = vmatprep.subr.bf16.mxu1 %v13674_v51 }
 0x6e5   : > { %11552 = vmatpush3.bf16.msra.mxu1 %v12482_v18 }
 0x6e6   : > { %11553 = vmatprep.subr.bf16.mxu1 %v13674_v51  ;;  %v12486_v51 = vld [vmem:[%s15472_s1 + $0x804] ss:$8 sps:$4 sm:$0xff]  }
 0x6e7   : > { %3976 = vmatprep.subr.bf16.mxu0 %v12486_v51 }
 0x6e8   : > { %3977 = vmatpush1.bf16.msra.mxu0 %v12484_v47 }
 0x6e9   : > { %11554 = vmatpush3.bf16.msra.mxu1 %v12483_v33  ;;  %3978 = vmatprep.subr.bf16.mxu0 %v12489_v48  ;;  %v3754_v33 = vld [vmem:[#allocation2] sm:$0xfe] }
 0x6ea   : > { %v3764_v39 = vrot.slane %v3754_v33, 1 }
 0x6ec   : > { %11556 = vmatmul.mubr.bf16.vlgmr.msra.gmra.mrb[124].mxu1 %v3626_v37  ;;  %3979 = vmatpush1.bf16.msra.mxu0 %v12487_v50  ;;  %v3766_v50 = vsel %vm317_vm3, %v3764_v39, %v3765_v34 }
 0x6ed   : > { %11559 = vmatprep.mubr.msk.bf16.mxu1 %vm12893_vm5, %v14044_v1  ;;  %3980 = vmatprep.subr.bf16.mxu0 %v12492_v52 }
 0x6f0   : > { %3981 = vmatpush1.bf16.msra.mxu0 %v12490_v53 }
 0x6f1   : > { %3982 = vmatprep.subr.bf16.mxu0 %v12495_v54 }
 0x6f4   : > { %11560 = vmatmul.mubr.bf16.gmra.mrb[128].mxu1 %v3628_v42  ;;  %3983 = vmatpush1.bf16.msra.mxu0 %v12493_v4  ;;  %v3767_v42 = vrot.slane %v13845_v55, 1 }
 0x6f5   : > { %11563 = vmatprep.mubr.msk.bf16.mxu1 %vm12893_vm5, %v14044_v1  ;;  %3984 = vmatprep.subr.bf16.mxu0 %v12498_v57 }
 0x6f6   : > { %v3768_v54 = vsel %vm317_vm3, %v3765_v34, %v3767_v42 }
 0x6f8   : > { %3985 = vmatpush1.bf16.msra.mxu0 %v12496_v58  ;;  %v3758_v58 = vld [vmem:[#allocation2 + $0x40] sm:$0x7f] }
 0x6f9   : > { %3986 = vmatprep.subr.bf16.mxu0 %v12501_v60 }
 0x6fc   : > { %11564 = vmatmul.mubr.bf16.gmra.mrb[132].mxu1 %v3627_v30  ;;  %3987 = vmatpush1.bf16.msra.mxu0 %v12499_v59 }
 0x6fd   : > { %3988 = vmatprep.subr.bf16.mxu0 %v12504_v62 }
 0x700   : > { %3989 = vmatpush1.bf16.msra.mxu0 %v12502_v63 }
 0x701   : > { %3990 = vmatprep.subr.bf16.mxu0 %v12507_v3 }
 0x704   : > { %3991 = vmatpush1.bf16.msra.mxu0 %v12505_v5  ;;  %v3771_v5 = vrot.slane %v3758_v58, 1  ;;  %v12519_v58 = vld [vmem:[%s15472_s1 + $0x7b4] ss:$8 sps:$4 sm:$0xff]  }
 0x705   : > { %4117 = vmatprep.subr.bf16.mxu0 %v12510_v6 }
 0x706   : > { %v3772_v56 = vsel %vm317_vm3, %v3769_v44, %v3771_v5 }
 0x792   : > { %v3582_v7 = vpop.f32.mrb[100].mxu0 }
 0x793   : > { %v11529_v8 = vpop.f32.mrb[101].mxu0 }
 0x794   : > { %v3585_v10 = vpop.f32.mrb[102].mxu0 }
 0x795   : > { %v11530_v12 = vpop.f32.mrb[103].mxu0 }
 0x796   : > { %v3770_v12 = vsel %vm317_vm3, %v3767_v42, %v3769_v44  ;;  %v12513_v42 = vld [vmem:[%s15472_s1 + $0x794] ss:$8 sps:$4 sm:$0xff]   ;;  %v12517_v44 = vld [vmem:[%s15472_s1 + $0x7b0] ss:$8 sps:$4 sm:$0xff]  }
 0x79a   : > { %v3590_v13 = vpop.f32.mrb[104].mxu0 }
 0x79b   : > { %v11533_v14 = vpop.f32.mrb[105].mxu0 }
 0x79c   : > { %v3593_v15 = vpop.f32.mrb[106].mxu0 }
 0x79d   : > { %v11534_v17 = vpop.f32.mrb[107].mxu0 }
 0x79f   : > { %v3478_v19 = vpop.f32.mrb[112].mxu1 }
 0x7a0   : > { %v3583_v20 = vadd.f32 %v3582_v7, %v3478_v19  ;;  %v11501_v38 = vpop.f32.mrb[113].mxu1 }
 0x7a1   : > { %v3481_v22 = vpop.f32.mrb[114].mxu1 }
 0x7a2   : > { %v3586_v23 = vadd.f32 %v3585_v10, %v3481_v22  ;;  %v11502_v25 = vpop.f32.mrb[115].mxu1  ;;  %v3598_v41 = vpop.f32.mrb[108].mxu0 }
 0x7a3   : > { %v11537_v9 = vpop.f32.mrb[109].mxu0 }
 0x7a4   : > { %v3601_v26 = vpop.f32.mrb[110].mxu0 }
 0x7a5   : > { %v11538_v45 = vpop.f32.mrb[111].mxu0 }
 0x7a7   : > { %v3486_v27 = vpop.f32.mrb[116].mxu1 }
 0x7a8   : > { %v3591_v49 = vadd.f32 %v3590_v13, %v3486_v27  ;;  %v11505_v61 = vpop.f32.mrb[117].mxu1 }
 0x7a9   : > { %v3489_v46 = vpop.f32.mrb[118].mxu1 }
 0x7aa   : > { %v3594_v28 = vadd.f32 %v3593_v15, %v3489_v46  ;;  %v11506_v0 = vpop.f32.mrb[119].mxu1 }
 0x7af   : > { %v3494_v29 = vpop.f32.mrb[120].mxu1 }
 0x7b0   : > { %v3599_v31 = vadd.f32 %v3598_v41, %v3494_v29  ;;  %v11509_v32 = vpop.f32.mrb[121].mxu1 }
 0x7b1   : > { %v3497_v16 = vpop.f32.mrb[122].mxu1 }
 0x7b2   : > { %v11510_v18 = vpop.f32.mrb[123].mxu1 }
 0x7bf   : > { %v3714_v11 = vpop.f32.mrb[124].mxu1 }
 0x7c0   : > { %v3736_v36 = vadd.f32 %v3714_v11, %v3583_v20  ;;  %v11557_v37 = vpop.f32.mrb[125].mxu1 }
 0x7c1   : > { %v3717_v30 = vpop.f32.mrb[126].mxu1 }
 0x7c2   : > { %v3749_v51 = vadd.f32 %v3747_v21, %v3736_v36  ;;  %v3737_v47 = vadd.f32 %v3717_v30, %v3586_v23  ;;  %v11558_v48 = vpop.f32.mrb[127].mxu1  ;;  %v12508_v36 = vld [vmem:[%s15472_s1 + $0x780] ss:$8 sps:$4 sm:$0xff]  }
 0x7c4   : > { %v3778_v52 = vadd.f32 %v3766_v50, %v3749_v51  ;;  %v3750_v53 = vadd.f32 %v3747_v21, %v3737_v47  ;;  %v12511_v50 = vld [vmem:[%s15472_s1 + $0x790] ss:$8 sps:$4 sm:$0xff]  }
 0x7c6   : > { %v3783_v4 = vmax.f32 %v3778_v52, 0.0  ;;  %v3779_v57 = vadd.f32 %v3768_v54, %v3750_v53  ;;  %v12516_v52 = vld [vmem:[%s15472_s1 + $0x7a4] ss:$8 sps:$4 sm:$0xff]  }
 0x7c7   : > { %v3722_v60 = vpop.f32.mrb[128].mxu1 }
 0x7c8   : > { %v3793_v59 = vrot.slane %v3783_v4, 7  ;;  %v3784_v62 = vmax.f32 %v3779_v57, 0.0  ;;  %v3738_v63 = vadd.f32 %v3722_v60, %v3591_v49  ;;  %v11561_v3 = vpop.f32.mrb[129].mxu1  ;;  %v12514_v4 = vld [vmem:[%s15472_s1 + $0x7a0] ss:$8 sps:$4 sm:$0xff]  }
 0x7c9   : > { %v3725_v55 = vpop.f32.mrb[130].mxu1 }
 0x7ca   : > { %3807 = vst [vmem:[#allocation2] sm:$0xfe] %v3793_v59  ;;  %v3794_v6 = vrot.slane %v3784_v62, 7  ;;  %v3751_v7 = vadd.f32 %v3747_v21, %v3738_v63  ;;  %v3739_v8 = vadd.f32 %v3725_v55, %v3594_v28  ;;  %v11562_v10 = vpop.f32.mrb[131].mxu1  ;;  %v12520_v63 = vld [vmem:[%s15472_s1 + $0x7c0] ss:$8 sps:$4 sm:$0xff]  }
 0x7cb   : > { %v12525_v55 = vld [vmem:[%s15472_s1 + $0x7d4] ss:$8 sps:$4 sm:$0xff]   ;;  %v12529_v10 = vld [vmem:[%s15472_s1 + $0x7f0] ss:$8 sps:$4 sm:$0xff]  }
 0x7cc   : > { %v3795_v13 = vsel %vm272_vm1, %v3793_v59, %v3794_v6  ;;  %v3780_v14 = vadd.f32 %v3770_v12, %v3751_v7  ;;  %v3752_v15 = vadd.f32 %v3747_v21, %v3739_v8  ;;  %v12522_v59 = vld [vmem:[%s15472_s1 + $0x7c4] ss:$8 sps:$4 sm:$0xff]   ;;  %v12526_v7 = vld [vmem:[%s15472_s1 + $0x7e0] ss:$8 sps:$4 sm:$0xff]   ;;  %v12531_v8 = vld [vmem:[%s15472_s1 + $0x7f4] ss:$8 sps:$4 sm:$0xff]  }
 0x7cd   : > { %3808 = vst [vmem:[#allocation2 + $0x10] sm:$0xff] %v3795_v13  ;;  %v12534_v12 = vld [vmem:[%s15472_s1 + $0x884] ss:$8 sps:$4 sm:$0xff]  }
 0x7ce   : > { %3813 = vst [vmem:[#allocation2 + $0x11] sm:$0x1] %v14044_v1  ;;  %3814 = vst [vmem:[#allocation2 + $0x12] sm:$0x1] %v14044_v1  ;;  %v3785_v17 = vmax.f32 %v3780_v14, 0.0  ;;  %v3781_v19 = vadd.f32 %v3772_v56, %v3752_v15 }
 0x7cf   : > { %v3730_v20 = vpop.f32.mrb[132].mxu1  ;;  %v12532_v14 = vld [vmem:[%s15472_s1 + $0x880] ss:$8 sps:$4 sm:$0xff]   ;;  %v12537_v56 = vld [vmem:[%s15472_s1 + $0x894] ss:$8 sps:$4 sm:$0xff]  }
 0x7d0   : > { %v3796_v38 = vrot.slane %v3785_v17, 7  ;;  %v3786_v22 = vmax.f32 %v3781_v19, 0.0  ;;  %v3740_v23 = vadd.f32 %v3730_v20, %v3599_v31  ;;  %v11565_v25 = vpop.f32.mrb[133].mxu1  ;;  %v12535_v17 = vld [vmem:[%s15472_s1 + $0x890] ss:$8 sps:$4 sm:$0xff]  }
 0x7d1   : > { %v3733_v41 = vpop.f32.mrb[134].mxu1  ;;  %v3828_v28 = vld [vmem:[#allocation2] sm:$0xfe] }
 0x7d2   : > { %v3797_v9 = vsel %vm272_vm1, %v3794_v6, %v3796_v38  ;;  %v3798_v26 = vrot.slane %v3786_v22, 7  ;;  %v3753_v45 = vadd.f32 %v3747_v21, %v3740_v23  ;;  %v11566_v27 = vpop.f32.mrb[135].mxu1  ;;  %v12528_v6 = vld [vmem:[%s15472_s1 + $0x7e4] ss:$8 sps:$4 sm:$0xff]   ;;  %v12538_v20 = vld [vmem:[%s15472_s1 + $0x8a0] ss:$8 sps:$4 sm:$0xff]  }
 0x7d3   : > { %3809 = vst [vmem:[#allocation2 + $0x20] sm:$0xff] %v3797_v9  ;;  %v3820_v13 = vld [vmem:[#allocation2] sm:$0xff]  ;;  %v12541_v22 = vld [vmem:[%s15472_s1 + $0x8b0] ss:$8 sps:$4 sm:$0xff]  }
 0x7d4   : > { %3815 = vst [vmem:[#allocation2 + $0x23] sm:$0x1] %v14044_v1  ;;  %3816 = vst [vmem:[#allocation2 + $0x24] sm:$0x1] %v14044_v1  ;;  %v3799_v49 = vsel %vm272_vm1, %v3796_v38, %v3798_v26  ;;  %v3782_v61 = vadd.f32 %v3771_v5, %v3753_v45  ;;  %v12523_v5 = vld [vmem:[%s15472_s1 + $0x7d0] ss:$8 sps:$4 sm:$0xff]  }
 0x7d5   : > { %3810 = vst [vmem:[#allocation2 + $0x30] sm:$0xff] %v3799_v49  ;;  %v14120_v46 = vld [vmem:[#allocation2 + $0x10] sm:$0xff]  ;;  %v12540_v19 = vld [vmem:[%s15472_s1 + $0x8a4] ss:$8 sps:$4 sm:$0xff]   ;;  %v12544_v41 = vld [vmem:[%s15472_s1 + $0x8c0] ss:$8 sps:$4 sm:$0xff]  }
 0x7d6   : > { %3817 = vst [vmem:[#allocation2 + $0x35] sm:$0x1] %v14044_v1  ;;  %3818 = vst [vmem:[#allocation2 + $0x36] sm:$0x1] %v14044_v1  ;;  %v3787_v0 = vmax.f32 %v3782_v61, 0.0  ;;  %v3830_v29 = vpack.c.bf16 %v14120_v46, %v3828_v28  ;;  %v3825_v15 = vpack.c.bf16 %v14120_v46, %v3820_v13 }
 0x7d7   : > { %v12543_v38 = vld [vmem:[%s15472_s1 + $0x8b4] ss:$8 sps:$4 sm:$0xff]   ;;  %v12546_v23 = vld [vmem:[%s15472_s1 + $0x8c4] ss:$8 sps:$4 sm:$0xff]   ;;  %v12547_v45 = vld [vmem:[%s15472_s1 + $0x8d0] ss:$8 sps:$4 sm:$0xff]  }
 0x7d8   : > { %v3800_v31 = vrot.slane %v3787_v0, 7  ;;  %v3873_v16 = vshll.u32 %v3830_v29, 16  ;;  %v3871_v11 = vshrl.u32 %v3830_v29, 16  ;;  %v12552_v27 = vld [vmem:[%s15472_s1 + $0x8e4] ss:$8 sps:$4 sm:$0xff]  }
 0x7d9   : > { %v12550_v49 = vld [vmem:[%s15472_s1 + $0x8e0] ss:$8 sps:$4 sm:$0xff]   ;;  %v12555_v61 = vld [vmem:[%s15472_s1 + $0x8f4] ss:$8 sps:$4 sm:$0xff]   ;;  %v12553_v0 = vld [vmem:[%s15472_s1 + $0x8f0] ss:$8 sps:$4 sm:$0xff]  }
 0x7da   : > { %v3801_v32 = vsel %vm272_vm1, %v3798_v26, %v3800_v31  ;;  %v3875_v21 = vrot.slane %v3873_v16, 1  ;;  %v12549_v26 = vld [vmem:[%s15472_s1 + $0x8d4] ss:$8 sps:$4 sm:$0xff]   ;;  %v3832_v28 = vld [vmem:[#allocation2] sm:$0xfc] }
 0x7db   : > { %3811 = vst [vmem:[#allocation2 + $0x40] sm:$0x7f] %v3801_v32  ;;  %v3822_v18 = vld [vmem:[#allocation2 + $0x20] sm:$0xff]  ;;  %v3834_v29 = vpack.c.bf16 %v14120_v46, %v3832_v28  ;;  %v12601_v13 = vld [vmem:[%s15474_s3 + $0x2e8] ss:$12 sps:$4 sm:$0xff]  }
 0x7dc   : > { %v3876_v37 = vor.u32 %v3875_v21, %v3871_v11  ;;  %v12558_v46 = vld [vmem:[%s15474_s3 + $0x184] ss:$12 sps:$4 sm:$0xff]  }
 0x7dd   : > { %v3823_v24 = vld [vmem:[#allocation2 + $0x30] sm:$0xff]  ;;  %v4198_v16 = vrot.slane %v3834_v29, 1  ;;  %4765 = vmatprep.subr.bf16.mxu1 %v12558_v46 }
 0x7de   : > { %v14126_v33 = vpack.c.bf16 %v3823_v24, %v3822_v18 }
 0x7e0   : > { %v3878_v34 = vshll.u32 %v14126_v33, 16  ;;  %v3882_v53 = vshrl.u32 %v14126_v33, 16  ;;  %v4199_v31 = vrot.slane %v14126_v33, 1 }
 0x7e2   : > { %v3880_v39 = vrot.slane %v3878_v34, 1  ;;  %v3829_v30 = vld [vmem:[#allocation2 + $0x40] sm:$0x7f]  ;;  %v4200_v18 = vsel %vm317_vm3, %v4198_v16, %v4199_v31  ;;  %v12561_v34 = vld [vmem:[%s15474_s3 + $0x19c] ss:$12 sps:$4 sm:$0xff]  }
 0x7e3   : > { %v3831_v51 = vpack.c.bf16 %v3829_v30, %v3829_v30  ;;  %v3824_v25 = vld [vmem:[#allocation2 + $0x40] sm:$0x3f]  ;;  %v12567_v30 = vld [vmem:[%s15474_s3 + $0x1cc] ss:$12 sps:$4 sm:$0xff]  }
 0x7e4   : > { %v3881_v47 = vsel %vm382_vm4, %v3876_v37, %v3880_v39  ;;  %v3884_v57 = vor.u32 %v3882_v53, %v3880_v39  ;;  %v3827_v9 = vpack.c.bf16 %v3824_v25, %v3824_v25  ;;  %v3833_v32 = vld [vmem:[#allocation2 + $0x40] sm:$0xff]  ;;  %v12562_v39 = vld [vmem:[%s15474_s3 + $0x1b0] ss:$12 sps:$4 sm:$0xff]  }
 0x7e5   : > { %4009 = vmatmul.mubr.bf16.vlgmr.msra.gmra.mrb[112].mxu0 %v3881_v47  ;;  %v3886_v48 = vshll.u32 %v3831_v51, 16  ;;  %v3890_v62 = vshrl.u32 %v3831_v51, 16  ;;  %v3835_v24 = vpack.c.bf16 %v3833_v32, %v3833_v32  ;;  %v12564_v37 = vld [vmem:[%s15474_s3 + $0x1b4] ss:$12 sps:$4 sm:$0xff]   ;;  %v12570_v51 = vld [vmem:[%s15474_s3 + $0x1e4] ss:$12 sps:$4 sm:$0xff]  }
 0x7e6   : > { %4118 = vmatpush1.bf16.msra.mxu0 %v12508_v36  ;;  %4018 = vmatprep.mubr.bf16.mxu0 %v12891_v2  ;;  %v12559_v36 = vld [vmem:[%s15474_s3 + $0x198] ss:$12 sps:$4 sm:$0xff]   ;;  %v12568_v47 = vld [vmem:[%s15474_s3 + $0x1e0] ss:$12 sps:$4 sm:$0xff]   ;;  %v12574_v53 = vld [vmem:[%s15474_s3 + $0x210] ss:$12 sps:$4 sm:$0xff]  }
 0x7e7   : > { %4119 = vmatprep.subr.bf16.mxu0 %v12513_v42  ;;  %v3888_v54 = vrot.slane %v3886_v48, 1  ;;  %v4201_v21 = vrot.slane %v3835_v24, 1  ;;  %v12565_v42 = vld [vmem:[%s15474_s3 + $0x1c8] ss:$12 sps:$4 sm:$0xff]  }
 0x7e8   : > { %v12573_v48 = vld [vmem:[%s15474_s3 + $0x1fc] ss:$12 sps:$4 sm:$0xff]  }
 0x7e9   : > { %v3889_v60 = vsel %vm382_vm4, %v3884_v57, %v3888_v54  ;;  %v3892_v3 = vor.u32 %v3890_v62, %v3888_v54  ;;  %v4202_v11 = vsel %vm317_vm3, %v4199_v31, %v4201_v21  ;;  %v12579_v54 = vld [vmem:[%s15474_s3 + $0x22c] ss:$12 sps:$4 sm:$0xff]   ;;  %v12582_v57 = vld [vmem:[%s15474_s3 + $0x244] ss:$12 sps:$4 sm:$0xff]  }
 0x7ea   : > { %4120 = vmatpush1.bf16.msra.mxu0 %v12511_v50  ;;  %v12571_v50 = vld [vmem:[%s15474_s3 + $0x1f8] ss:$12 sps:$4 sm:$0xff]   ;;  %v12586_v62 = vld [vmem:[%s15474_s3 + $0x270] ss:$12 sps:$4 sm:$0xff]  }
 0x7eb   : > { %4121 = vmatprep.subr.bf16.mxu0 %v12516_v52  ;;  %v12576_v52 = vld [vmem:[%s15474_s3 + $0x214] ss:$12 sps:$4 sm:$0xff]  }
 0x7ed   : > { %4019 = vmatmul.mubr.bf16.gmra.mrb[116].mxu0 %v3889_v60  ;;  %v12585_v60 = vld [vmem:[%s15474_s3 + $0x25c] ss:$12 sps:$4 sm:$0xff]  }
 0x7ee   : > { %4122 = vmatpush1.bf16.msra.mxu0 %v12514_v4  ;;  %4028 = vmatprep.mubr.bf16.mxu0 %v12891_v2  ;;  %v12577_v4 = vld [vmem:[%s15474_s3 + $0x228] ss:$12 sps:$4 sm:$0xff]  }
 0x7ef   : > { %4123 = vmatprep.subr.bf16.mxu0 %v12519_v58  ;;  %v12580_v58 = vld [vmem:[%s15474_s3 + $0x240] ss:$12 sps:$4 sm:$0xff]  }
 0x7f2   : > { %4124 = vmatpush1.bf16.msra.mxu0 %v12517_v44  ;;  %v12583_v44 = vld [vmem:[%s15474_s3 + $0x258] ss:$12 sps:$4 sm:$0xff]  }
 0x7f3   : > { %4125 = vmatprep.subr.bf16.mxu0 %v12522_v59  ;;  %v12588_v59 = vld [vmem:[%s15474_s3 + $0x274] ss:$12 sps:$4 sm:$0xff]  }
 0x7f5   : > { %4029 = vmatmul.mubr.bf16.gmra.mrb[120].mxu0 %v3892_v3  ;;  %v12589_v3 = vld [vmem:[%s15474_s3 + $0x288] ss:$12 sps:$4 sm:$0xff]  }
 0x7f6   : > { %4126 = vmatpush1.bf16.msra.mxu0 %v12520_v63  ;;  %4149 = vmatprep.mubr.bf16.mxu0 %v12891_v2  ;;  %v12591_v63 = vld [vmem:[%s15474_s3 + $0x28c] ss:$12 sps:$4 sm:$0xff]  }
 0x7f7   : > { %4127 = vmatprep.subr.bf16.mxu0 %v12525_v55  ;;  %v12594_v55 = vld [vmem:[%s15474_s3 + $0x2a4] ss:$12 sps:$4 sm:$0xff]  }
 0x7fa   : > { %4128 = vmatpush1.bf16.msra.mxu0 %v12523_v5  ;;  %v12592_v5 = vld [vmem:[%s15474_s3 + $0x2a0] ss:$12 sps:$4 sm:$0xff]  }
 0x7fb   : > { %4129 = vmatprep.subr.bf16.mxu0 %v12528_v6  ;;  %v12597_v6 = vld [vmem:[%s15474_s3 + $0x2bc] ss:$12 sps:$4 sm:$0xff]  }
 0x7fe   : > { %4130 = vmatpush1.bf16.msra.mxu0 %v12526_v7  ;;  %v12595_v7 = vld [vmem:[%s15474_s3 + $0x2b8] ss:$12 sps:$4 sm:$0xff]  }
 0x7ff   : > { %4131 = vmatprep.subr.bf16.mxu0 %v12531_v8  ;;  %v12600_v8 = vld [vmem:[%s15474_s3 + $0x2d4] ss:$12 sps:$4 sm:$0xff]  }
 0x802   : > { %4132 = vmatpush1.bf16.msra.mxu0 %v12529_v10  ;;  %v12598_v10 = vld [vmem:[%s15474_s3 + $0x2d0] ss:$12 sps:$4 sm:$0xff]  }
 0x803   : > { %4286 = vmatprep.subr.bf16.mxu0 %v12534_v12  ;;  %v12603_v12 = vld [vmem:[%s15474_s3 + $0x2ec] ss:$12 sps:$4 sm:$0xff]  }
 0x805   : > { %4150 = vmatmul.mubr.bf16.vlgmr.msra.gmra.mrb[112].mxu0 %v3825_v15 }
 0x806   : > { %4287 = vmatpush1.bf16.msra.mxu0 %v12532_v14  ;;  %4159 = vmatprep.mubr.bf16.mxu0 %v12891_v2  ;;  %v12604_v14 = vld [vmem:[%s15474_s3 + $0x248] ss:$12 sps:$4 sm:$0xff]  }
 0x807   : > { %4288 = vmatprep.subr.bf16.mxu0 %v12537_v56 }
 0x80a   : > { %4289 = vmatpush1.bf16.msra.mxu0 %v12535_v17 }
 0x80b   : > { %4290 = vmatprep.subr.bf16.mxu0 %v12540_v19 }
 0x80d   : > { %4160 = vmatmul.mubr.bf16.gmra.mrb[116].mxu0 %v14126_v33  ;;  %v12556_v33 = vld [vmem:[%s15474_s3 + $0x180] ss:$12 sps:$4 sm:$0xff]  }
 0x80e   : > { %4291 = vmatpush1.bf16.msra.mxu0 %v12538_v20  ;;  %4169 = vmatprep.mubr.bf16.mxu0 %v12891_v2 }
 0x80f   : > { %4292 = vmatprep.subr.bf16.mxu0 %v12543_v38  ;;  %4766 = vmatpush1.bf16.msra.mxu1 %v12556_v33 }
 0x810   : > { %4767 = vmatprep.subr.bf16.mxu1 %v12561_v34 }
 0x812   : > { %4293 = vmatpush1.bf16.msra.mxu0 %v12541_v22 }
 0x813   : > { %4294 = vmatprep.subr.bf16.mxu0 %v12546_v23  ;;  %4768 = vmatpush1.bf16.msra.mxu1 %v12559_v36 }
 0x814   : > { %4769 = vmatprep.subr.bf16.mxu1 %v12564_v37 }
 0x815   : > { %4170 = vmatmul.mubr.bf16.gmra.mrb[124].mxu0 %v3827_v9  ;;  %v9772_v9 = vld [vmem:[%s15473_s2 + $0xa] sm:$0x3] }
 0x816   : > { %4295 = vmatpush1.bf16.msra.mxu0 %v12544_v41  ;;  %4318 = vmatprep.mubr.bf16.mxu0 %v12891_v2 }
 0x817   : > { %4296 = vmatprep.subr.bf16.mxu0 %v12549_v26  ;;  %4770 = vmatpush1.bf16.msra.mxu1 %v12562_v39  ;;  %v4363_v26 = vrot.slane %v9772_v9, %v13258_v40 }
 0x818   : > { %4771 = vmatprep.subr.bf16.mxu1 %v12567_v30 }
 0x81a   : > { %4297 = vmatpush1.bf16.msra.mxu0 %v12547_v45  ;;  %v4367_v45 = vrot.slane %v9772_v9, %v973_v43 }
 0x81b   : > { %4298 = vmatprep.subr.bf16.mxu0 %v12552_v27  ;;  %4772 = vmatpush1.bf16.msra.mxu1 %v12565_v42 }
 0x81c   : > { %4773 = vmatprep.subr.bf16.mxu1 %v12570_v51 }
 0x81e   : > { %4299 = vmatpush1.bf16.msra.mxu0 %v12550_v49 }
 0x81f   : > { %4300 = vmatprep.subr.bf16.mxu0 %v12555_v61  ;;  %4774 = vmatpush1.bf16.msra.mxu1 %v12568_v47 }
 0x820   : > { %4775 = vmatprep.subr.bf16.mxu1 %v12573_v48 }
 0x822   : > { %4301 = vmatpush1.bf16.msra.mxu0 %v12553_v0 }
 0x823   : > { %4776 = vmatpush1.bf16.msra.mxu1 %v12571_v50 }
 0x824   : > { %4777 = vmatprep.subr.bf16.mxu1 %v12576_v52 }
 0x825   : > { %4319 = vmatmul.mubr.bf16.vlgmr.msra.gmra.mrb[112].mxu0 %v4200_v18 }
 0x826   : > { %4328 = vmatprep.mubr.bf16.mxu0 %v12891_v2 }
 0x827   : > { %4778 = vmatpush1.bf16.msra.mxu1 %v12574_v53 }
 0x828   : > { %4779 = vmatprep.subr.bf16.mxu1 %v12579_v54 }
 0x82b   : > { %4780 = vmatpush1.bf16.msra.mxu1 %v12577_v4 }
 0x82c   : > { %4781 = vmatprep.subr.bf16.mxu1 %v12582_v57  ;;  %v12605_v57 = vld [vmem:[%s15474_s3 + $0x188] ss:$12 sps:$4 sm:$0xff]  }
 0x82d   : > { %4329 = vmatmul.mubr.bf16.gmra.mrb[116].mxu0 %v4202_v11 }
 0x82e   : > { %4338 = vmatprep.mubr.bf16.mxu0 %v12891_v2 }
 0x82f   : > { %4782 = vmatpush1.bf16.msra.mxu1 %v12580_v58 }
 0x830   : > { %4783 = vmatprep.subr.bf16.mxu1 %v12585_v60 }
 0x833   : > { %4784 = vmatpush1.bf16.msra.mxu1 %v12583_v44  ;;  %v12606_v44 = vld [vmem:[%s15474_s3 + $0x260] ss:$12 sps:$4 sm:$0xff]  }
 0x834   : > { %4785 = vmatprep.subr.bf16.mxu1 %v12588_v59 }
 0x835   : > { %4339 = vmatmul.mubr.bf16.gmra.mrb[128].mxu0 %v4201_v21 }
 0x837   : > { %4786 = vmatpush1.bf16.msra.mxu1 %v12586_v62 }
 0x838   : > { %4787 = vmatprep.subr.bf16.mxu1 %v12591_v63 }
 0x83b   : > { %4788 = vmatpush1.bf16.msra.mxu1 %v12589_v3 }
 0x83c   : > { %4789 = vmatprep.subr.bf16.mxu1 %v12594_v55 }
 0x83f   : > { %4790 = vmatpush1.bf16.msra.mxu1 %v12592_v5 }
 0x840   : > { %4791 = vmatprep.subr.bf16.mxu1 %v12597_v6 }
 0x843   : > { %4792 = vmatpush1.bf16.msra.mxu1 %v12595_v7 }
 0x844   : > { %4793 = vmatprep.subr.bf16.mxu1 %v12600_v8 }
 0x847   : > { %4794 = vmatpush1.bf16.msra.mxu1 %v12598_v10 }
 0x848   : > { %4795 = vmatprep.subr.bf16.mxu1 %v12603_v12  ;;  %v12608_v12 = vld [vmem:[%s15474_s3 + $0x278] ss:$12 sps:$4 sm:$0xff]  }
 0x84b   : > { %4796 = vmatpush1.bf16.msra.mxu1 %v12601_v13 }
 0x84c   : > { %10839 = vmatprep.subr.bf16.mxu1 %v12604_v14 }
 0x8c8   : > { %v4030_v15 = vpop.f32.mrb[120].mxu0 }
 0x8c9   : > { %v4032_v56 = vpop.f32.mrb[121].mxu0 }
 0x8ca   : > { %v4034_v17 = vpop.f32.mrb[122].mxu0 }
 0x8cb   : > { %v4035_v19 = vpop.f32.mrb[123].mxu0 }
 0x8cc   : > { %v12610_v19 = vld [vmem:[%s15474_s3 + $0x290] ss:$12 sps:$4 sm:$0xff]  }
 0x8e8   : > { %v4171_v20 = vpop.f32.mrb[124].mxu0 }
 0x8e9   : > { %v4172_v38 = vadd.f32 %v4171_v20, %v4030_v15  ;;  %v4173_v22 = vpop.f32.mrb[125].mxu0 }
 0x8ea   : > { %v4174_v23 = vadd.f32 %v4173_v22, %v4032_v56  ;;  %v4175_v25 = vpop.f32.mrb[126].mxu0  ;;  %v12609_v56 = vld [vmem:[%s15474_s3 + $0x1b8] ss:$12 sps:$4 sm:$0xff]   ;;  %v12612_v22 = vld [vmem:[%s15474_s3 + $0x2a8] ss:$12 sps:$4 sm:$0xff]  }
 0x8eb   : > { %v4176_v41 = vpop.f32.mrb[127].mxu0 }
 0x8ec   : > { %v12614_v41 = vld [vmem:[%s15474_s3 + $0x2c0] ss:$12 sps:$4 sm:$0xff]  }
 0x8f8   : > { %v4320_v27 = vpop.f32.mrb[112].mxu0 }
 0x8f9   : > { %v4370_v49 = vadd.f32 %v4363_v26, %v4320_v27  ;;  %v4322_v61 = vpop.f32.mrb[113].mxu0  ;;  %v12615_v27 = vld [vmem:[%s15474_s3 + $0x200] ss:$12 sps:$4 sm:$0xff]  }
 0x8fa   : > { %v4371_v28 = vadd.f32 %v4367_v45, %v4322_v61  ;;  %v4324_v0 = vpop.f32.mrb[114].mxu0  ;;  %v12617_v61 = vld [vmem:[%s15474_s3 + $0x218] ss:$12 sps:$4 sm:$0xff]  }
 0x8fb   : > { %v4390_v29 = vrot.slane %v4370_v49, 7  ;;  %v4372_v31 = vadd.f32 %v4363_v26, %v4324_v0  ;;  %v4326_v32 = vpop.f32.mrb[115].mxu0  ;;  %v12616_v49 = vld [vmem:[%s15474_s3 + $0x2d8] ss:$12 sps:$4 sm:$0xff]   ;;  %v12619_v0 = vld [vmem:[%s15474_s3 + $0x230] ss:$12 sps:$4 sm:$0xff]  }
 0x8fc   : > { %v4391_v16 = vrot.slane %v4371_v28, 7  ;;  %v4373_v18 = vadd.f32 %v4367_v45, %v4326_v32  ;;  %v12618_v28 = vld [vmem:[%s15474_s3 + $0x2f0] ss:$12 sps:$4 sm:$0xff]  }
 0x8fd   : > { %4418 = vst [vmem:[#allocation3] sm:$0xfe] %v4390_v29  ;;  %v4392_v24 = vrot.slane %v4372_v31, 7  ;;  %v12622_v31 = vld [vmem:[%s15475_s4 + $0x64] sm:$0xff]  }
 0x8fe   : > { %4419 = vst [vmem:[#allocation3 + $0x8] sm:$0xfe] %v4391_v16  ;;  %v4394_v21 = vrot.slane %v4373_v18, 7 }
 0x8ff   : > { %v4393_v11 = vsel %vm272_vm1, %v4390_v29, %v4392_v24  ;;  %v12620_v29 = vld [vmem:[%s15475_s4 + $0x3c] sm:$0xff]  }
 0x900   : > { %v4395_v46 = vsel %vm272_vm1, %v4391_v16, %v4394_v21  ;;  %v4330_v35 = vpop.f32.mrb[116].mxu0  ;;  %11573 = vmatprep.mubr.msk.bf16.mxu0 %vm4907_vm8, %v12620_v29  ;;  %v12639_v29 = vld [vmem:[%s15472_s1 + $0x970] ss:$8 sps:$4 sm:$0xff]  }
 0x901   : > { %v4374_v43 = vadd.f32 %v4363_v26, %v4330_v35  ;;  %v4332_v33 = vpop.f32.mrb[117].mxu0 }
 0x902   : > { %v4375_v34 = vadd.f32 %v4367_v45, %v4332_v33  ;;  %v4334_v36 = vpop.f32.mrb[118].mxu0 }
 0x903   : > { %v4396_v37 = vrot.slane %v4374_v43, 7  ;;  %v4376_v39 = vadd.f32 %v4363_v26, %v4334_v36  ;;  %v4336_v30 = vpop.f32.mrb[119].mxu0 }
 0x904   : > { %v4428_v42 = vld [vmem:[#allocation3] sm:$0xff]  ;;  %v4398_v51 = vrot.slane %v4375_v34, 7  ;;  %v4377_v47 = vadd.f32 %v4367_v45, %v4336_v30 }
 0x905   : > { %5513 = vst [vmem:[#allocation3] sm:$0x1] %v14044_v1  ;;  %v4397_v48 = vsel %vm272_vm1, %v4392_v24, %v4396_v37  ;;  %v4400_v50 = vrot.slane %v4376_v39, 7  ;;  %v4429_v52 = vld [vmem:[#allocation3 + $0x8] sm:$0xff]  ;;  %v4438_v60 = vpack.c.bf16 %v4393_v11, %v4428_v42 }
 0x906   : > { %4422 = vst [vmem:[#allocation3 + $0x20] sm:$0xff] %v4397_v48  ;;  %v4399_v53 = vsel %vm272_vm1, %v4394_v21, %v4398_v51  ;;  %v4402_v54 = vrot.slane %v4377_v47, 7  ;;  %v4439_v4 = vpack.c.bf16 %v4395_v46, %v4429_v52 }
 0x907   : > { %5520 = vst [vmem:[#allocation3 + $0x27] sm:$0x1] %v14044_v1  ;;  %v4401_v58 = vsel %vm272_vm1, %v4396_v37, %v4400_v50  ;;  %v12607_v1 = vld [vmem:[%s15474_s3 + $0x1a0] ss:$12 sps:$4 sm:$0xff]  }
 0x908   : > { %4424 = vst [vmem:[#allocation3 + $0x30] sm:$0xff] %v4401_v58  ;;  %v4403_v59 = vsel %vm272_vm1, %v4398_v51, %v4402_v54  ;;  %v4340_v62 = vpop.f32.mrb[128].mxu0  ;;  %4797 = vmatprep.mubr.bf16.mxu1 %v4439_v4  ;;  %v4440_v63 = vpack.c.bf16 %v4401_v58, %v4397_v48 }
 0x909   : > { %v4355_v3 = vadd.f32 %v4340_v62, %v4172_v38  ;;  %v4342_v55 = vpop.f32.mrb[129].mxu0  ;;  %4798 = vmatmul.mubr.bf16.vlgmr.msra.gmra.mrb[136].mxu1 %v4438_v60  ;;  %v4441_v5 = vpack.c.bf16 %v4403_v59, %v4399_v53  ;;  %v12611_v38 = vld [vmem:[%s15474_s3 + $0x1d0] ss:$12 sps:$4 sm:$0xff]  }
 0x90a   : > { %v4356_v6 = vadd.f32 %v4342_v55, %v4174_v23  ;;  %v4344_v7 = vpop.f32.mrb[130].mxu0  ;;  %10840 = vmatpush3.bf16.msra.mxu1 %v12605_v57  ;;  %v12613_v23 = vld [vmem:[%s15474_s3 + $0x1e8] ss:$12 sps:$4 sm:$0xff]  }
 0x90b   : > { %v4378_v8 = vadd.f32 %v4363_v26, %v4355_v3  ;;  %v4345_v10 = vpop.f32.mrb[131].mxu0  ;;  %10841 = vmatprep.subr.bf16.mxu1 %v12606_v44  ;;  %4807 = vmatprep.mubr.bf16.mxu1 %v4441_v5 }
 0x90c   : > { %v4379_v13 = vadd.f32 %v4367_v45, %v4356_v6 }
 0x90d   : > { %v4404_v14 = vrot.slane %v4378_v8, 7 }
 0x90e   : > { %v4406_v15 = vrot.slane %v4379_v13, 7  ;;  %10842 = vmatpush3.bf16.msra.mxu1 %v12607_v1 }
 0x90f   : > { %v4405_v17 = vsel %vm272_vm1, %v4400_v50, %v4404_v14  ;;  %10843 = vmatprep.subr.bf16.mxu1 %v12608_v12 }
 0x910   : > { %4426 = vst [vmem:[#allocation3 + $0x40] sm:$0x7f] %v4405_v17  ;;  %v4407_v20 = vsel %vm272_vm1, %v4402_v54, %v4406_v15  ;;  %v12626_v15 = vld [vmem:[%s15472_s1 + $0x900] ss:$8 sps:$4 sm:$0xff]   ;;  %v12621_v17 = vld [vmem:[%s15475_s4 + $0x44] ss:$0 sps:$4 sm:$0xff]  }
 0x911   : > { %4427 = vst [vmem:[#allocation3 + $0x48] sm:$0x7f] %v4407_v20  ;;  %4808 = vmatmul.mubr.bf16.gmra.mrb[140].mxu1 %v4440_v63  ;;  %v12623_v20 = vld [vmem:[%s15475_s4 + $0x50] sm:$0xff]  }
 0x912   : > { %10844 = vmatpush3.bf16.msra.mxu1 %v12609_v56 }
 0x913   : > { %10845 = vmatprep.subr.bf16.mxu1 %v12610_v19  ;;  %v12624_v19 = vld [vmem:[%s15475_s4 + $0x6c] ss:$0 sps:$4 sm:$0xff]  }
 0x916   : > { %10846 = vmatpush3.bf16.msra.mxu1 %v12611_v38  ;;  %v12625_v38 = vld [vmem:[%s15475_s4 + $0x58] ss:$0 sps:$4 sm:$0xff]  }
 0x917   : > { %10847 = vmatprep.subr.bf16.mxu1 %v12612_v22  ;;  %v4436_v25 = vld [vmem:[#allocation3 + $0x40] sm:$0xff] }
 0x918   : > { %v4437_v9 = vld [vmem:[#allocation3 + $0x48] sm:$0xff]  ;;  %v4442_v45 = vpack.c.bf16 %v4436_v25, %v4436_v25  ;;  %v12629_v25 = vld [vmem:[%s15472_s1 + $0x920] ss:$8 sps:$4 sm:$0xff]  }
 0x919   : > { %v4443_v26 = vpack.c.bf16 %v4437_v9, %v4437_v9  ;;  %v12627_v22 = vld [vmem:[%s15472_s1 + $0x910] ss:$8 sps:$4 sm:$0xff]  }
 0x91a   : > { %10848 = vmatpush3.bf16.msra.mxu1 %v12613_v23  ;;  %v12628_v23 = vld [vmem:[%s15472_s1 + $0x980] ss:$8 sps:$4 sm:$0xff]   ;;  %v12631_v9 = vld [vmem:[%s15472_s1 + $0x930] ss:$8 sps:$4 sm:$0xff]  }
 0x91b   : > { %4817 = vmatprep.mubr.bf16.mxu1 %v4443_v26  ;;  %10849 = vmatprep.subr.bf16.mxu1 %v12614_v41  ;;  %v12630_v41 = vld [vmem:[%s15472_s1 + $0x990] ss:$8 sps:$4 sm:$0xff]  }
 0x91c   : > { %4818 = vmatmul.mubr.bf16.gmra.mrb[144].mxu1 %v4442_v45 }
 0x91d   : > { %4858 = vmatprep.mubr.bf16.mxu1 %v4439_v4 }
 0x91e   : > { %10850 = vmatpush3.bf16.msra.mxu1 %v12615_v27  ;;  %v12634_v27 = vld [vmem:[%s15472_s1 + $0x9b0] ss:$8 sps:$4 sm:$0xff]  }
 0x91f   : > { %10851 = vmatprep.subr.bf16.mxu1 %v12616_v49  ;;  %v12635_v49 = vld [vmem:[%s15472_s1 + $0x950] ss:$8 sps:$4 sm:$0xff]  }
 0x922   : > { %10852 = vmatpush3.bf16.msra.mxu1 %v12617_v61  ;;  %v12636_v61 = vld [vmem:[%s15472_s1 + $0x9c0] ss:$8 sps:$4 sm:$0xff]  }
 0x923   : > { %10853 = vmatprep.subr.bf16.mxu1 %v12618_v28  ;;  %v12637_v28 = vld [vmem:[%s15472_s1 + $0x960] ss:$8 sps:$4 sm:$0xff]  }
 0x926   : > { %10854 = vmatpush3.bf16.msra.mxu1 %v12619_v0  ;;  %v12638_v0 = vld [vmem:[%s15472_s1 + $0x9d0] ss:$8 sps:$4 sm:$0xff]  }
 0x929   : > { %4859 = vmatmul.mubr.bf16.vlgmr.msra.gmra.mrb[148].mxu1 %v4438_v60 }
 0x92a   : > { %4866 = vmatprep.mubr.bf16.mxu1 %v4441_v5 }
 0x931   : > { %4867 = vmatmul.mubr.bf16.gmra.mrb[152].mxu1 %v4440_v63 }
 0x932   : > { %4874 = vmatprep.mubr.bf16.mxu1 %v4443_v26  ;;  %v12632_v26 = vld [vmem:[%s15472_s1 + $0x9a0] ss:$8 sps:$4 sm:$0xff]  }
 0x939   : > { %4875 = vmatmul.mubr.bf16.gmra.mrb[156].mxu1 %v4442_v45  ;;  %v12633_v45 = vld [vmem:[%s15472_s1 + $0x940] ss:$8 sps:$4 sm:$0xff]  }
 0x93a   : > { %11593 = vmatprep.mubr.msk.bf16.mxu1 %vm4907_vm8, %v12622_v31  ;;  %v12640_v31 = vld [vmem:[%s15472_s1 + $0x9e0] ss:$8 sps:$4 sm:$0xff]  }
 0x9dc   : > { %v4799_v32 = vpop.f32.mrb[136].mxu1 }
 0x9dd   : > { %v4801_v16 = vpop.f32.mrb[137].mxu1 }
 0x9de   : > { %v4803_v18 = vpop.f32.mrb[138].mxu1 }
 0x9df   : > { %v4805_v24 = vpop.f32.mrb[139].mxu1 }
 0x9e4   : > { %v4809_v21 = vpop.f32.mrb[140].mxu1 }
 0x9e5   : > { %v4811_v11 = vpop.f32.mrb[141].mxu1 }
 0x9e6   : > { %v4813_v46 = vpop.f32.mrb[142].mxu1 }
 0x9e7   : > { %v4815_v35 = vpop.f32.mrb[143].mxu1 }
 0x9ef   : > { %v4819_v43 = vpop.f32.mrb[144].mxu1 }
 0x9f0   : > { %v4821_v33 = vpop.f32.mrb[145].mxu1 }
 0x9f1   : > { %v4823_v34 = vpop.f32.mrb[146].mxu1 }
 0x9f2   : > { %v4824_v36 = vpop.f32.mrb[147].mxu1 }
 0x9fc   : > { %v10855_v37 = vpop.f32.mrb[148].mxu1 }
 0x9fd   : > { %v10856_v39 = vpop.f32.mrb[149].mxu1 }
 0x9fe   : > { %v10857_v30 = vadd.f32 %v10856_v39, %v10855_v37  ;;  %v10858_v42 = vpop.f32.mrb[150].mxu1 }
 0x9ff   : > { %v10859_v51 = vpop.f32.mrb[151].mxu1 }
 0xa00   : > { %v4882_v47 = vmax.f32 %v4801_v16, %v10857_v30  ;;  %v10860_v48 = vadd.f32 %v10859_v51, %v10858_v42  ;;  %v12642_v16 = vld [vmem:[%s15472_s1 + $0xa00] ss:$8 sps:$4 sm:$0xff]  }
 0xa02   : > { %v4887_v50 = vmax.f32 %v4799_v32, %v4882_v47  ;;  %v4883_v52 = vmax.f32 %v4805_v24, %v10860_v48  ;;  %v12641_v32 = vld [vmem:[%s15472_s1 + $0x9f0] ss:$8 sps:$4 sm:$0xff]  }
 0xa04   : > { %v4888_v53 = vmax.f32 %v4803_v18, %v4883_v52  ;;  %v10861_v54 = vpop.f32.mrb[152].mxu1  ;;  %v14480_v52 = vld [vmem:[#allocation2 + $0x8] sm:$0xff] }
 0xa05   : > { %v10862_v4 = vpop.f32.mrb[153].mxu1 }
 0xa06   : > { %v4892_v57 = vpack.c.bf16 %v4888_v53, %v4887_v50  ;;  %v10863_v58 = vadd.f32 %v10862_v4, %v10861_v54  ;;  %v10864_v60 = vpop.f32.mrb[154].mxu1 }
 0xa07   : > { %v10865_v44 = vpop.f32.mrb[155].mxu1 }
 0xa08   : > { %v4884_v59 = vmax.f32 %v4811_v11, %v10863_v58  ;;  %v10866_v62 = vadd.f32 %v10865_v44, %v10864_v60  ;;  %11567 = vmatprep.subr.bf16.mxu0 %v4892_v57  ;;  %11587 = vmatprep.subr.bf16.mxu1 %v4892_v57 }
 0xa09   : > { %11568 = vmatpush3.bf16.msra.mxu0 %v4892_v57  ;;  %11588 = vmatpush3.bf16.msra.mxu1 %v4892_v57 }
 0xa0a   : > { %v4889_v63 = vmax.f32 %v4809_v21, %v4884_v59  ;;  %v4885_v3 = vmax.f32 %v4815_v35, %v10866_v62 }
 0xa0c   : > { %v4890_v55 = vmax.f32 %v4813_v46, %v4885_v3  ;;  %v10867_v5 = vpop.f32.mrb[156].mxu1 }
 0xa0d   : > { %v10868_v6 = vpop.f32.mrb[157].mxu1 }
 0xa0e   : > { %v4893_v7 = vpack.c.bf16 %v4890_v55, %v4889_v63  ;;  %v10869_v1 = vadd.f32 %v10868_v6, %v10867_v5  ;;  %v10870_v8 = vpop.f32.mrb[158].mxu1 }
 0xa0f   : > { %v10871_v10 = vpop.f32.mrb[159].mxu1 }
 0xa10   : > { %v4886_v12 = vmax.f32 %v4821_v33, %v10869_v1  ;;  %11569 = vmatprep.subr.bf16.mxu0 %v4893_v7  ;;  %11589 = vmatprep.subr.bf16.mxu1 %v4893_v7 }
 0xa11   : > { %11570 = vmatpush3.bf16.msra.mxu0 %v4893_v7  ;;  %11590 = vmatpush3.bf16.msra.mxu1 %v4893_v7 }
 0xa12   : > { %v4891_v13 = vmax.f32 %v4819_v43, %v4886_v12 }
 0xa14   : > { %v4894_v14 = vpack.c.bf16 %v4891_v13, %v4891_v13 }
 0xa16   : > { %12229 = vmatprep.subr.msk.bf16.mxu0 %vm1635_vm6, %v4894_v14  ;;  %12231 = vmatprep.subr.msk.bf16.mxu1 %vm1635_vm6, %v4894_v14  ;;  %v4915_v56 = vsel %vm1635_vm6, %v4894_v14, 0 }
 0xa17   : > { %11572 = vmatpush3.bf16.msra.mxu0 %v4915_v56  ;;  %11592 = vmatpush3.bf16.msra.mxu1 %v4915_v56 }
 0xa18   : > { %11577 = vmatprep.subr.bf16.mxu0 %v4892_v57  ;;  %11617 = vmatprep.subr.bf16.mxu1 %v12626_v15 }
 0xa1a   : > { %11574 = vmatmul.mubr.msk.bf16.vlgmr.msra.gmra.mrb[132].mxu0 %vm4907_vm8, %v12621_v17  ;;  %11594 = vmatmul.mubr.msk.bf16.vlgmr.msra.gmra.mrb[160].mxu1 %vm4907_vm8, %v12624_v19  ;;  %v12644_v17 = vld [vmem:[%s15472_s1 + $0xa20] ss:$8 sps:$4 sm:$0xff]   ;;  %v12645_v19 = vld [vmem:[%s15472_s1 + $0xa30] ss:$8 sps:$4 sm:$0xff]  }
 0xa1b   : > { %11578 = vmatpush3.bf16.msra.mxu0 %v4892_v57  ;;  %11583 = vmatprep.mubr.msk.bf16.mxu0 %vm4907_vm8, %v12623_v20  ;;  %v12646_v20 = vld [vmem:[%s15472_s1 + $0xa40] ss:$8 sps:$4 sm:$0xff]  }
 0xa1c   : > { %11579 = vmatprep.subr.bf16.mxu0 %v4893_v7  ;;  %11618 = vmatpush3.bf16.msra.mxu1 %v12626_v15 }
 0xa1d   : > { %11619 = vmatprep.subr.bf16.mxu1 %v12627_v22 }
 0xa1f   : > { %11580 = vmatpush3.bf16.msra.mxu0 %v4893_v7 }
 0xa20   : > { %12230 = vmatprep.subr.msk.bf16.mxu0 %vm1635_vm6, %v4894_v14  ;;  %11620 = vmatpush3.bf16.msra.mxu1 %v12627_v22  ;;  %v12648_v22 = vld [vmem:[%s15472_s1 + $0xa60] ss:$8 sps:$4 sm:$0xff]  }
 0xa21   : > { %11621 = vmatprep.subr.bf16.mxu1 %v12629_v25 }
 0xa23   : > { %11582 = vmatpush3.bf16.msra.mxu0 %v4915_v56  ;;  %v12643_v56 = vld [vmem:[%s15472_s1 + $0xa10] ss:$8 sps:$4 sm:$0xff]  }
 0xa24   : > { %11597 = vmatprep.subr.bf16.mxu0 %v12628_v23  ;;  %11622 = vmatpush3.bf16.msra.mxu1 %v12629_v25  ;;  %v12650_v25 = vld [vmem:[%s15472_s1 + $0xa80] ss:$8 sps:$4 sm:$0xff]  }
 0xa25   : > { %11623 = vmatprep.subr.bf16.mxu1 %v12631_v9 }
 0xa26   : > { %11584 = vmatmul.mubr.msk.bf16.vlgmr.msra.gmra.mrb[136].mxu0 %vm4907_vm8, %v12625_v38  ;;  %v12647_v38 = vld [vmem:[%s15472_s1 + $0xa50] ss:$8 sps:$4 sm:$0xff]  }
 0xa27   : > { %11598 = vmatpush3.bf16.msra.mxu0 %v12628_v23  ;;  %v12649_v23 = vld [vmem:[%s15472_s1 + $0xa70] ss:$8 sps:$4 sm:$0xff]  }
 0xa28   : > { %11599 = vmatprep.subr.bf16.mxu0 %v12630_v41  ;;  %11624 = vmatpush3.bf16.msra.mxu1 %v12631_v9  ;;  %v12652_v9 = vld [vmem:[%s15472_s1 + $0xb00] ss:$8 sps:$4 sm:$0xff]  }
 0xa29   : > { %11625 = vmatprep.subr.bf16.mxu1 %v12633_v45 }
 0xa2b   : > { %11600 = vmatpush3.bf16.msra.mxu0 %v12630_v41  ;;  %v12651_v41 = vld [vmem:[%s15472_s1 + $0xa90] ss:$8 sps:$4 sm:$0xff]  }
 0xa2c   : > { %11601 = vmatprep.subr.bf16.mxu0 %v12632_v26  ;;  %11626 = vmatpush3.bf16.msra.mxu1 %v12633_v45  ;;  %v12654_v45 = vld [vmem:[%s15472_s1 + $0xb10] ss:$8 sps:$4 sm:$0xff]  }
 0xa2d   : > { %11627 = vmatprep.subr.bf16.mxu1 %v12635_v49 }
 0xa2f   : > { %11602 = vmatpush3.bf16.msra.mxu0 %v12632_v26  ;;  %v12653_v26 = vld [vmem:[%s15472_s1 + $0xaa0] ss:$8 sps:$4 sm:$0xff]  }
 0xa30   : > { %11603 = vmatprep.subr.bf16.mxu0 %v12634_v27  ;;  %11628 = vmatpush3.bf16.msra.mxu1 %v12635_v49  ;;  %v12656_v49 = vld [vmem:[%s15472_s1 + $0xb20] ss:$8 sps:$4 sm:$0xff]  }
 0xa31   : > { %11629 = vmatprep.subr.bf16.mxu1 %v12637_v28 }
 0xa33   : > { %11604 = vmatpush3.bf16.msra.mxu0 %v12634_v27  ;;  %v12655_v27 = vld [vmem:[%s15472_s1 + $0xab0] ss:$8 sps:$4 sm:$0xff]  }
 0xa34   : > { %11605 = vmatprep.subr.bf16.mxu0 %v12636_v61  ;;  %11630 = vmatpush3.bf16.msra.mxu1 %v12637_v28  ;;  %v12658_v28 = vld [vmem:[%s15472_s1 + $0xb30] ss:$8 sps:$4 sm:$0xff]  }
 0xa35   : > { %11631 = vmatprep.subr.bf16.mxu1 %v12639_v29 }
 0xa37   : > { %11606 = vmatpush3.bf16.msra.mxu0 %v12636_v61  ;;  %v12657_v61 = vld [vmem:[%s15472_s1 + $0xac0] ss:$8 sps:$4 sm:$0xff]  }
 0xa38   : > { %11607 = vmatprep.subr.bf16.mxu0 %v12638_v0  ;;  %11632 = vmatpush3.bf16.msra.mxu1 %v12639_v29  ;;  %v12660_v29 = vld [vmem:[%s15472_s1 + $0xb40] ss:$8 sps:$4 sm:$0xff]  }
 0xa39   : > { %11657 = vmatprep.subr.bf16.mxu1 %v12652_v9 }
 0xa3b   : > { %11608 = vmatpush3.bf16.msra.mxu0 %v12638_v0  ;;  %v12659_v0 = vld [vmem:[%s15472_s1 + $0xad0] ss:$8 sps:$4 sm:$0xff]  }
 0xa3c   : > { %11609 = vmatprep.subr.bf16.mxu0 %v12640_v31 }
 0xa3f   : > { %11610 = vmatpush3.bf16.msra.mxu0 %v12640_v31  ;;  %v12661_v31 = vld [vmem:[%s15472_s1 + $0xae0] ss:$8 sps:$4 sm:$0xff]  }
 0xa40   : > { %11611 = vmatprep.subr.bf16.mxu0 %v12641_v32 }
 0xa43   : > { %11612 = vmatpush3.bf16.msra.mxu0 %v12641_v32  ;;  %v12662_v32 = vld [vmem:[%s15472_s1 + $0xb50] ss:$8 sps:$4 sm:$0xff]  }
 0xa44   : > { %11637 = vmatprep.subr.bf16.mxu0 %v12642_v16 }
 0xaed   : > { %v11575_v18 = vpop.f32.mrb[132].mxu0  ;;  %v11595_v24 = vpop.f32.mrb[160].mxu1 }
 0xaee   : > { %v4951_v21 = vpop.f32.mrb[133].mxu0  ;;  %v5086_v11 = vpop.f32.mrb[161].mxu1 }
 0xaef   : > { %v11576_v46 = vpop.f32.mrb[134].mxu0  ;;  %v11596_v35 = vpop.f32.mrb[162].mxu1 }
 0xaf0   : > { %v4954_v43 = vpop.f32.mrb[135].mxu0  ;;  %v5089_v33 = vpop.f32.mrb[163].mxu1 }
 0xaf9   : > { %v11585_v34 = vpop.f32.mrb[136].mxu0 }
 0xafa   : > { %v5033_v36 = vmax.f32 %v11575_v18, %v11585_v34  ;;  %v5017_v37 = vpop.f32.mrb[137].mxu0  ;;  %v12664_v18 = vld [vmem:[%s15472_s1 + $0xb60] ss:$8 sps:$4 sm:$0xff]  }
 0xafb   : > { %v5031_v39 = vmax.f32 %v4951_v21, %v5017_v37  ;;  %v11586_v30 = vpop.f32.mrb[138].mxu0  ;;  %v14561_v21 = vld [vmem:[%s15472_s1 + $0xb80] ss:$8 sps:$4 sm:$0xff]  }
 0xafc   : > { %v5102_v42 = vmax.f32 %v5033_v36, %v11595_v24  ;;  %v5020_v51 = vpop.f32.mrb[139].mxu0  ;;  %v12665_v24 = vld [vmem:[%s15472_s1 + $0xb70] ss:$8 sps:$4 sm:$0xff]  }
 0xafd   : > { %v5100_v47 = vmax.f32 %v5031_v39, %v5086_v11  ;;  %v5032_v48 = vmax.f32 %v4954_v43, %v5020_v51  ;;  %v9978_v51 = vld [vmem:[%s15473_s2 + $0xc] sm:$0x3] }
 0xafe   : > { %5105 = vst [vmem:[#allocation2 + $0x20] sm:$0xff] %v5102_v42  ;;  %v5118_v57 = vpack.c.bf16 %v5102_v42, %v5102_v42 }
 0xaff   : > { %5103 = vst [vmem:[#allocation2] sm:$0xff] %v5100_v47  ;;  %v14478_v50 = vmax.f32 %v5032_v48, %v5089_v33  ;;  %5952 = vst [vmem:[#allocation2 + $0x27] sm:$0x1] %v14480_v52 }
 0xb00   : > { %5945 = vst [vmem:[#allocation2] sm:$0x1] %v14480_v52  ;;  %v5382_v6 = vrot.slane %v5118_v57, 1 }
 0xb01   : > { %v5109_v53 = vpack.c.bf16 %v14478_v50, %v5100_v47  ;;  %v5491_v47 = vrot.slane %v9978_v51, %v13258_v40  ;;  %v12682_v51 = vld [vmem:[%s15472_s1 + $0xcb0] ss:$8 sps:$4 sm:$0xff]  }
 0xb03   : > { %11633 = vmatprep.mubr.bf16.mxu1 %v5109_v53 }
 0xb05   : > { %v5108_v54 = vld [vmem:[#allocation2 + $0x20] sm:$0x3f] }
 0xb06   : > { %v5112_v4 = vld [vmem:[#allocation2 + $0x20] sm:$0x7f]  ;;  %v5110_v58 = vpack.c.bf16 %v5108_v54, %v5108_v54 }
 0xb07   : > { %v5111_v60 = vld [vmem:[#allocation2] sm:$0xfe]  ;;  %v5114_v44 = vpack.c.bf16 %v5112_v4, %v5112_v4 }
 0xb08   : > { %v5115_v59 = vld [vmem:[#allocation2] sm:$0xfc]  ;;  %v5113_v62 = vpack.c.bf16 %v14478_v50, %v5111_v60  ;;  %11634 = vmatmul.mubr.bf16.vlgmr.msra.gmra.mrb[164].mxu1 %v5110_v58 }
 0xb09   : > { %v5117_v63 = vpack.c.bf16 %v14478_v50, %v5115_v59  ;;  %v5161_v3 = vshll.u32 %v5114_v44, 16  ;;  %v5165_v13 = vshrl.u32 %v5114_v44, 16  ;;  %11658 = vmatpush3.bf16.msra.mxu1 %v12652_v9 }
 0xb0a   : > { %v5156_v55 = vshll.u32 %v5113_v62, 16  ;;  %v5154_v7 = vshrl.u32 %v5113_v62, 16  ;;  %11659 = vmatprep.subr.bf16.mxu1 %v12654_v45 }
 0xb0b   : > { %v5381_v5 = vrot.slane %v5117_v63, 1  ;;  %v5163_v8 = vrot.slane %v5161_v3, 1 }
 0xb0c   : > { %v5158_v1 = vrot.slane %v5156_v55, 1 }
 0xb0d   : > { %v5383_v10 = vsel %vm317_vm3, %v5381_v5, %v5382_v6  ;;  %v5167_v15 = vor.u32 %v5165_v13, %v5163_v8  ;;  %11660 = vmatpush3.bf16.msra.mxu1 %v12654_v45 }
 0xb0e   : > { %v5159_v12 = vor.u32 %v5158_v1, %v5154_v7  ;;  %11661 = vmatprep.subr.bf16.mxu1 %v12656_v49 }
 0xb10   : > { %v5164_v14 = vsel %vm382_vm4, %v5159_v12, %v5163_v8 }
 0xb11   : > { %11613 = vmatprep.mubr.bf16.mxu0 %v5164_v14  ;;  %11662 = vmatpush3.bf16.msra.mxu1 %v12656_v49 }
 0xb12   : > { %11614 = vmatmul.mubr.bf16.vlgmr.msra.gmra.mrb[140].mxu0 %v5167_v15  ;;  %11663 = vmatprep.subr.bf16.mxu1 %v12658_v28 }
 0xb13   : > { %11638 = vmatpush3.bf16.msra.mxu0 %v12642_v16  ;;  %11653 = vmatprep.mubr.bf16.mxu0 %v5383_v10  ;;  %v12663_v16 = vld [vmem:[%s15472_s1 + $0xaf0] ss:$8 sps:$4 sm:$0xff]  }
 0xb14   : > { %11639 = vmatprep.subr.bf16.mxu0 %v12643_v56 }
 0xb15   : > { %11664 = vmatpush3.bf16.msra.mxu1 %v12658_v28 }
 0xb16   : > { %11665 = vmatprep.subr.bf16.mxu1 %v12660_v29 }
 0xb17   : > { %11640 = vmatpush3.bf16.msra.mxu0 %v12643_v56 }
 0xb18   : > { %11641 = vmatprep.subr.bf16.mxu0 %v12644_v17 }
 0xb19   : > { %11666 = vmatpush3.bf16.msra.mxu1 %v12660_v29 }
 0xb1a   : > { %11667 = vmatprep.subr.bf16.mxu1 %v12662_v32 }
 0xb1b   : > { %11642 = vmatpush3.bf16.msra.mxu0 %v12644_v17 }
 0xb1c   : > { %11643 = vmatprep.subr.bf16.mxu0 %v12645_v19 }
 0xb1d   : > { %11668 = vmatpush3.bf16.msra.mxu1 %v12662_v32  ;;  %v12667_v32 = vld [vmem:[%s15472_s1 + $0xb90] ss:$8 sps:$4 sm:$0xff]  }
 0xb1e   : > { %11669 = vmatprep.subr.bf16.mxu1 %v12664_v18 }
 0xb1f   : > { %11644 = vmatpush3.bf16.msra.mxu0 %v12645_v19 }
 0xb20   : > { %11645 = vmatprep.subr.bf16.mxu0 %v12646_v20 }
 0xb21   : > { %11670 = vmatpush3.bf16.msra.mxu1 %v12664_v18  ;;  %v12668_v18 = vld [vmem:[%s15472_s1 + $0xba0] ss:$8 sps:$4 sm:$0xff]  }
 0xb22   : > { %11671 = vmatprep.subr.bf16.mxu1 %v12665_v24 }
 0xb23   : > { %11646 = vmatpush3.bf16.msra.mxu0 %v12646_v20 }
 0xb24   : > { %11647 = vmatprep.subr.bf16.mxu0 %v12647_v38 }
 0xb25   : > { %11672 = vmatpush3.bf16.msra.mxu1 %v12665_v24  ;;  %v12669_v24 = vld [vmem:[%s15472_s1 + $0xbb0] ss:$8 sps:$4 sm:$0xff]  }
 0xb26   : > { %11697 = vmatprep.subr.bf16.mxu1 %v14561_v21 }
 0xb27   : > { %11648 = vmatpush3.bf16.msra.mxu0 %v12647_v38 }
 0xb28   : > { %11649 = vmatprep.subr.bf16.mxu0 %v12648_v22 }
 0xb2b   : > { %11650 = vmatpush3.bf16.msra.mxu0 %v12648_v22 }
 0xb2c   : > { %11651 = vmatprep.subr.bf16.mxu0 %v12649_v23 }
 0xb2f   : > { %11652 = vmatpush3.bf16.msra.mxu0 %v12649_v23 }
 0xb30   : > { %11677 = vmatprep.subr.bf16.mxu0 %v12650_v25 }
 0xb32   : > { %11654 = vmatmul.mubr.bf16.vlgmr.msra.gmra.mrb[144].mxu0 %v5382_v6 }
 0xb33   : > { %11678 = vmatpush3.bf16.msra.mxu0 %v12650_v25 }
 0xb34   : > { %11679 = vmatprep.subr.bf16.mxu0 %v12651_v41 }
 0xb37   : > { %11680 = vmatpush3.bf16.msra.mxu0 %v12651_v41 }
 0xb38   : > { %11681 = vmatprep.subr.bf16.mxu0 %v12653_v26 }
 0xb3b   : > { %11682 = vmatpush3.bf16.msra.mxu0 %v12653_v26 }
 0xb3c   : > { %11683 = vmatprep.subr.bf16.mxu0 %v12655_v27 }
 0xb3f   : > { %11684 = vmatpush3.bf16.msra.mxu0 %v12655_v27 }
 0xb40   : > { %11685 = vmatprep.subr.bf16.mxu0 %v12657_v61 }
 0xb43   : > { %11686 = vmatpush3.bf16.msra.mxu0 %v12657_v61 }
 0xb44   : > { %11687 = vmatprep.subr.bf16.mxu0 %v12659_v0 }
 0xb47   : > { %11688 = vmatpush3.bf16.msra.mxu0 %v12659_v0 }
 0xb48   : > { %11689 = vmatprep.subr.bf16.mxu0 %v12661_v31 }
 0xb4b   : > { %11690 = vmatpush3.bf16.msra.mxu0 %v12661_v31 }
 0xb4c   : > { %11691 = vmatprep.subr.bf16.mxu0 %v12663_v16 }
 0xb4f   : > { %11692 = vmatpush3.bf16.msra.mxu0 %v12663_v16 }
 0xbdb   : > { %v11635_v11 = vpop.f32.mrb[164].mxu1 }
 0xbdc   : > { %v5348_v46 = vpop.f32.mrb[165].mxu1 }
 0xbdd   : > { %v11636_v35 = vpop.f32.mrb[166].mxu1 }
 0xbde   : > { %v5351_v43 = vpop.f32.mrb[167].mxu1  ;;  %v12673_v35 = vld [vmem:[%s15472_s1 + $0xbf0] ss:$8 sps:$4 sm:$0xff]  }
 0xbe5   : > { %v11615_v33 = vpop.f32.mrb[140].mxu0 }
 0xbe6   : > { %v5357_v34 = vadd.f32 %v11635_v11, %v11615_v33  ;;  %v5252_v36 = vpop.f32.mrb[141].mxu0  ;;  %v12670_v11 = vld [vmem:[%s15472_s1 + $0xbc0] ss:$8 sps:$4 sm:$0xff]   ;;  %v12675_v33 = vld [vmem:[%s15472_s1 + $0xc10] ss:$8 sps:$4 sm:$0xff]  }
 0xbe7   : > { %v5349_v37 = vadd.f32 %v5348_v46, %v5252_v36  ;;  %v11616_v39 = vpop.f32.mrb[142].mxu0  ;;  %v12672_v46 = vld [vmem:[%s15472_s1 + $0xbe0] ss:$8 sps:$4 sm:$0xff]  }
 0xbe8   : > { %v5255_v30 = vpop.f32.mrb[143].mxu0  ;;  %v12677_v36 = vld [vmem:[%s15472_s1 + $0xc20] ss:$8 sps:$4 sm:$0xff]   ;;  %v12679_v39 = vld [vmem:[%s15472_s1 + $0xc30] ss:$8 sps:$4 sm:$0xff]  }
 0xbe9   : > { %v5352_v42 = vadd.f32 %v5351_v43, %v5255_v30  ;;  %v12674_v43 = vld [vmem:[%s15472_s1 + $0xc00] ss:$8 sps:$4 sm:$0xff]  }
 0xbea   : > { %v12680_v30 = vld [vmem:[%s15472_s1 + $0xca0] ss:$8 sps:$4 sm:$0xff]  }
 0xc05   : > { %v11655_v48 = vpop.f32.mrb[144].mxu0 }
 0xc06   : > { %v5484_v53 = vadd.f32 %v11655_v48, %v5357_v34  ;;  %v5468_v54 = vpop.f32.mrb[145].mxu0  ;;  %v12676_v34 = vld [vmem:[%s15472_s1 + $0xc80] ss:$8 sps:$4 sm:$0xff]  }
 0xc07   : > { %v5482_v4 = vadd.f32 %v5468_v54, %v5349_v37  ;;  %v11656_v57 = vpop.f32.mrb[146].mxu0  ;;  %11717 = vmatprep.subr.bf16.mxu0 %v12676_v34  ;;  %v12678_v37 = vld [vmem:[%s15472_s1 + $0xc90] ss:$8 sps:$4 sm:$0xff]   ;;  %v12684_v48 = vld [vmem:[%s15472_s1 + $0xcc0] ss:$8 sps:$4 sm:$0xff]  }
 0xc08   : > { %v5495_v58 = vadd.f32 %v5491_v47, %v5484_v53  ;;  %v5471_v60 = vpop.f32.mrb[147].mxu0  ;;  %v12685_v53 = vld [vmem:[%s15472_s1 + $0xc60] ss:$8 sps:$4 sm:$0xff]   ;;  %v12686_v54 = vld [vmem:[%s15472_s1 + $0xcd0] ss:$8 sps:$4 sm:$0xff]  }
 0xc09   : > { %v5493_v44 = vadd.f32 %v5491_v47, %v5482_v4  ;;  %v5483_v59 = vadd.f32 %v5471_v60, %v5352_v42  ;;  %v12681_v42 = vld [vmem:[%s15472_s1 + $0xc40] ss:$8 sps:$4 sm:$0xff]   ;;  %v12687_v4 = vld [vmem:[%s15472_s1 + $0xc70] ss:$8 sps:$4 sm:$0xff]  }
 0xc0a   : > { %v5498_v62 = vmax.f32 %v5495_v58, 0.0  ;;  %v12688_v57 = vld [vmem:[%s15472_s1 + $0xce0] ss:$8 sps:$4 sm:$0xff]   ;;  %v12689_v58 = vld [vmem:[%s15472_s1 + $0xcf0] ss:$8 sps:$4 sm:$0xff]  }
 0xc0b   : > { %v5496_v63 = vmax.f32 %v5493_v44, 0.0  ;;  %v5494_v3 = vadd.f32 %v5491_v47, %v5483_v59  ;;  %v12683_v47 = vld [vmem:[%s15472_s1 + $0xc50] ss:$8 sps:$4 sm:$0xff]   ;;  %v14653_v60 = vld [vmem:[%s15472_s1 + $0xd00] ss:$8 sps:$4 sm:$0xff]  }
 0xc0c   : > { %v5505_v6 = vrot.slane %v5498_v62, 7 }
 0xc0d   : > { %v5502_v55 = vrot.slane %v5496_v63, 7  ;;  %v5497_v5 = vmax.f32 %v5494_v3, 0.0 }
 0xc0f   : > { %5510 = vst [vmem:[#allocation3] sm:$0xfe] %v5502_v55  ;;  %v5503_v7 = vrot.slane %v5497_v5, 7 }
 0xc10   : > { %5514 = vst [vmem:[#allocation3 + $0x5] sm:$0x1] %v14480_v52  ;;  %5515 = vst [vmem:[#allocation3 + $0x6] sm:$0x1] %v14480_v52 }
 0xc11   : > { %v5504_v1 = vsel %vm272_vm1, %v5502_v55, %v5503_v7  ;;  %v5506_v8 = vsel %vm272_vm1, %v5503_v7, %v5505_v6 }
 0xc12   : > { %5511 = vst [vmem:[#allocation3 + $0x10] sm:$0xff] %v5504_v1  ;;  %5512 = vst [vmem:[#allocation3 + $0x20] sm:$0x7f] %v5506_v8 }
 0xc13   : > { %5516 = vst [vmem:[#allocation3 + $0x13] sm:$0x1] %v14480_v52  ;;  %5517 = vst [vmem:[#allocation3 + $0x14] sm:$0x1] %v14480_v52 }
 0xc14   : > { %5518 = vst [vmem:[#allocation3 + $0x21] sm:$0x1] %v14480_v52  ;;  %5519 = vst [vmem:[#allocation3 + $0x22] sm:$0x1] %v14480_v52 }
 0xc17   : > { %v5521_v10 = vld [vmem:[#allocation3] sm:$0xff] }
 0xc18   : > { %6360 = vst [vmem:[#allocation3] sm:$0x1] %v14480_v52  ;;  %v5526_v12 = vld [vmem:[#allocation3] sm:$0xfe] }
 0xc19   : > { %v5530_v22 = vld [vmem:[#allocation3] sm:$0xfc] }
 0xc1a   : > { %v5522_v13 = vld [vmem:[#allocation3 + $0x10] sm:$0xff] }
 0xc1b   : > { %v5523_v14 = vld [vmem:[#allocation3 + $0x20] sm:$0x3f]  ;;  %v5524_v56 = vpack.c.bf16 %v5522_v13, %v5521_v10  ;;  %v5528_v19 = vpack.c.bf16 %v5522_v13, %v5526_v12  ;;  %v5532_v41 = vpack.c.bf16 %v5522_v13, %v5530_v22  ;;  %v10051_v10 = vld [vmem:[%s15473_s2 + $0xe] sm:$0x3]  ;;  %v5911_v12 = vld [vmem:[#allocation2] sm:$0xfe] }
 0xc1c   : > { %v5527_v15 = vld [vmem:[#allocation3 + $0x20] sm:$0x7f]  ;;  %v5525_v17 = vpack.c.bf16 %v5523_v14, %v5523_v14  ;;  %v5906_v13 = vrot.slane %v10051_v10, %v13258_v40 }
 0xc1d   : > { %v5529_v20 = vpack.c.bf16 %v5527_v15, %v5527_v15  ;;  %v5531_v38 = vld [vmem:[#allocation3 + $0x20] sm:$0xff]  ;;  %11693 = vmatprep.mubr.bf16.mxu0 %v5524_v56  ;;  %v5571_v23 = vshll.u32 %v5528_v19, 16  ;;  %v5569_v26 = vshrl.u32 %v5528_v19, 16  ;;  %v5796_v28 = vrot.slane %v5532_v41, 1  ;;  %v5913_v15 = vld [vmem:[#allocation2 + $0x20] sm:$0x7f] }
 0xc1e   : > { %6367 = vst [vmem:[#allocation3 + $0x27] sm:$0x1] %v14480_v52  ;;  %v5533_v9 = vpack.c.bf16 %v5531_v38, %v5531_v38  ;;  %11694 = vmatmul.mubr.bf16.vlgmr.msra.gmra.mrb[148].mxu0 %v5525_v17  ;;  %v5917_v19 = vrot.slane %v5911_v12, 1  ;;  %v12697_v10 = vld [vmem:[%s15472_s1 + $0xd70] ss:$8 sps:$4 sm:$0xff]  }
 0xc1f   : > { %v5576_v25 = vshll.u32 %v5529_v20, 16  ;;  %v5573_v45 = vrot.slane %v5571_v23, 1  ;;  %v5580_v61 = vshrl.u32 %v5529_v20, 16  ;;  %11718 = vmatpush3.bf16.msra.mxu0 %v12676_v34  ;;  %v5920_v23 = vrot.slane %v5913_v15, 1  ;;  %v12698_v12 = vld [vmem:[%s15472_s1 + $0xd80] ss:$8 sps:$4 sm:$0xff]  }
 0xc20   : > { %v5797_v0 = vrot.slane %v5533_v9, 1  ;;  %11719 = vmatprep.subr.bf16.mxu0 %v12678_v37  ;;  %v12701_v15 = vld [vmem:[%s15472_s1 + $0xda0] ss:$8 sps:$4 sm:$0xff]  }
 0xc21   : > { %v5578_v27 = vrot.slane %v5576_v25, 1  ;;  %v5574_v49 = vor.u32 %v5573_v45, %v5569_v26  ;;  %v5918_v25 = vrot.slane %v14478_v50, 1 }
 0xc22   : > { %v5798_v16 = vsel %vm317_vm3, %v5796_v28, %v5797_v0 }
 0xc23   : > { %v5579_v29 = vsel %vm382_vm4, %v5574_v49, %v5578_v27  ;;  %v5582_v31 = vor.u32 %v5580_v61, %v5578_v27  ;;  %11720 = vmatpush3.bf16.msra.mxu0 %v12678_v37  ;;  %v5919_v27 = vsel %vm317_vm3, %v5917_v19, %v5918_v25  ;;  %v5921_v28 = vsel %vm317_vm3, %v5918_v25, %v5920_v23  ;;  %v12704_v19 = vld [vmem:[%s15472_s1 + $0xe20] ss:$8 sps:$4 sm:$0xff]  }
 0xc24   : > { %11673 = vmatprep.mubr.bf16.mxu1 %v5579_v29  ;;  %11721 = vmatprep.subr.bf16.mxu0 %v12680_v30  ;;  %v12709_v25 = vld [vmem:[%s15472_s1 + $0xde0] ss:$8 sps:$4 sm:$0xff]  }
 0xc25   : > { %11674 = vmatmul.mubr.bf16.vlgmr.msra.gmra.mrb[168].mxu1 %v5582_v31 }
 0xc26   : > { %11698 = vmatpush3.bf16.msra.mxu1 %v14561_v21  ;;  %11713 = vmatprep.mubr.bf16.mxu1 %v5798_v16  ;;  %v12671_v21 = vld [vmem:[%s15472_s1 + $0xbd0] ss:$8 sps:$4 sm:$0xff]  }
 0xc27   : > { %11699 = vmatprep.subr.bf16.mxu1 %v12667_v32  ;;  %11722 = vmatpush3.bf16.msra.mxu0 %v12680_v30 }
 0xc28   : > { %11723 = vmatprep.subr.bf16.mxu0 %v12682_v51 }
 0xc2a   : > { %11700 = vmatpush3.bf16.msra.mxu1 %v12667_v32 }
 0xc2b   : > { %11701 = vmatprep.subr.bf16.mxu1 %v12668_v18  ;;  %11724 = vmatpush3.bf16.msra.mxu0 %v12682_v51 }
 0xc2c   : > { %11725 = vmatprep.subr.bf16.mxu0 %v12684_v48 }
 0xc2e   : > { %11702 = vmatpush3.bf16.msra.mxu1 %v12668_v18 }
 0xc2f   : > { %11703 = vmatprep.subr.bf16.mxu1 %v12669_v24  ;;  %11726 = vmatpush3.bf16.msra.mxu0 %v12684_v48 }
 0xc30   : > { %11727 = vmatprep.subr.bf16.mxu0 %v12686_v54 }
 0xc32   : > { %11704 = vmatpush3.bf16.msra.mxu1 %v12669_v24 }
 0xc33   : > { %11705 = vmatprep.subr.bf16.mxu1 %v12670_v11  ;;  %11728 = vmatpush3.bf16.msra.mxu0 %v12686_v54 }
 0xc34   : > { %11729 = vmatprep.subr.bf16.mxu0 %v12688_v57 }
 0xc36   : > { %11706 = vmatpush3.bf16.msra.mxu1 %v12670_v11 }
 0xc37   : > { %11707 = vmatprep.subr.bf16.mxu1 %v12671_v21  ;;  %11730 = vmatpush3.bf16.msra.mxu0 %v12688_v57 }
 0xc38   : > { %11731 = vmatprep.subr.bf16.mxu0 %v12689_v58 }
 0xc3a   : > { %11708 = vmatpush3.bf16.msra.mxu1 %v12671_v21 }
 0xc3b   : > { %11709 = vmatprep.subr.bf16.mxu1 %v12672_v46  ;;  %11732 = vmatpush3.bf16.msra.mxu0 %v12689_v58 }
 0xc3c   : > { %11757 = vmatprep.subr.bf16.mxu0 %v14653_v60 }
 0xc3e   : > { %11710 = vmatpush3.bf16.msra.mxu1 %v12672_v46 }
 0xc3f   : > { %11711 = vmatprep.subr.bf16.mxu1 %v12673_v35 }
 0xc42   : > { %11712 = vmatpush3.bf16.msra.mxu1 %v12673_v35 }
 0xc43   : > { %11737 = vmatprep.subr.bf16.mxu1 %v12674_v43 }
 0xc45   : > { %11714 = vmatmul.mubr.bf16.vlgmr.msra.gmra.mrb[172].mxu1 %v5797_v0 }
 0xc46   : > { %11738 = vmatpush3.bf16.msra.mxu1 %v12674_v43 }
 0xc47   : > { %11739 = vmatprep.subr.bf16.mxu1 %v12675_v33 }
 0xc4a   : > { %11740 = vmatpush3.bf16.msra.mxu1 %v12675_v33 }
 0xc4b   : > { %11741 = vmatprep.subr.bf16.mxu1 %v12677_v36 }
 0xc4e   : > { %11742 = vmatpush3.bf16.msra.mxu1 %v12677_v36 }
 0xc4f   : > { %11743 = vmatprep.subr.bf16.mxu1 %v12679_v39 }
 0xc52   : > { %11744 = vmatpush3.bf16.msra.mxu1 %v12679_v39 }
 0xc53   : > { %11745 = vmatprep.subr.bf16.mxu1 %v12681_v42 }
 0xc56   : > { %11746 = vmatpush3.bf16.msra.mxu1 %v12681_v42 }
 0xc57   : > { %11747 = vmatprep.subr.bf16.mxu1 %v12683_v47 }
 0xc5a   : > { %11748 = vmatpush3.bf16.msra.mxu1 %v12683_v47 }
 0xc5b   : > { %11749 = vmatprep.subr.bf16.mxu1 %v12685_v53 }
 0xc5e   : > { %11750 = vmatpush3.bf16.msra.mxu1 %v12685_v53 }
 0xc5f   : > { %11751 = vmatprep.subr.bf16.mxu1 %v12687_v4 }
 0xc62   : > { %11752 = vmatpush3.bf16.msra.mxu1 %v12687_v4 }
 0xcf1   : > { %v11695_v44 = vpop.f32.mrb[148].mxu0 }
 0xcf2   : > { %v5763_v59 = vpop.f32.mrb[149].mxu0 }
 0xcf3   : > { %v11696_v62 = vpop.f32.mrb[150].mxu0 }
 0xcf4   : > { %v5766_v63 = vpop.f32.mrb[151].mxu0 }
 0xcf8   : > { %v11675_v3 = vpop.f32.mrb[168].mxu1 }
 0xcf9   : > { %v5772_v55 = vadd.f32 %v11695_v44, %v11675_v3  ;;  %v5667_v5 = vpop.f32.mrb[169].mxu1 }
 0xcfa   : > { %v5764_v6 = vadd.f32 %v5763_v59, %v5667_v5  ;;  %v11676_v7 = vpop.f32.mrb[170].mxu1 }
 0xcfb   : > { %v5670_v1 = vpop.f32.mrb[171].mxu1  ;;  %v12693_v7 = vld [vmem:[%s15472_s1 + $0xd30] ss:$8 sps:$4 sm:$0xff]  }
 0xcfc   : > { %v5767_v8 = vadd.f32 %v5766_v63, %v5670_v1  ;;  %v12694_v1 = vld [vmem:[%s15472_s1 + $0xd40] ss:$8 sps:$4 sm:$0xff]  }
 0xd18   : > { %v11715_v14 = vpop.f32.mrb[172].mxu1 }
 0xd19   : > { %v5899_v56 = vadd.f32 %v11715_v14, %v5772_v55  ;;  %v5883_v17 = vpop.f32.mrb[173].mxu1  ;;  %v12691_v55 = vld [vmem:[%s15472_s1 + $0xd10] ss:$8 sps:$4 sm:$0xff]   ;;  %v12700_v14 = vld [vmem:[%s15472_s1 + $0xe00] ss:$8 sps:$4 sm:$0xff]  }
 0xd1a   : > { %v5897_v20 = vadd.f32 %v5883_v17, %v5764_v6  ;;  %v11716_v38 = vpop.f32.mrb[174].mxu1  ;;  %v12692_v6 = vld [vmem:[%s15472_s1 + $0xd20] ss:$8 sps:$4 sm:$0xff]   ;;  %11777 = vmatprep.subr.bf16.mxu1 %v12700_v14  ;;  %v12703_v17 = vld [vmem:[%s15472_s1 + $0xdb0] ss:$8 sps:$4 sm:$0xff]  }
 0xd1b   : > { %v5910_v22 = vadd.f32 %v5906_v13, %v5899_v56  ;;  %v5886_v41 = vpop.f32.mrb[175].mxu1  ;;  %v12702_v56 = vld [vmem:[%s15472_s1 + $0xe10] ss:$8 sps:$4 sm:$0xff]  }
 0xd1c   : > { %v5908_v9 = vadd.f32 %v5906_v13, %v5897_v20  ;;  %v5898_v26 = vadd.f32 %v5886_v41, %v5767_v8  ;;  %v12696_v8 = vld [vmem:[%s15472_s1 + $0xd60] ss:$8 sps:$4 sm:$0xff]   ;;  %v12706_v38 = vld [vmem:[%s15472_s1 + $0xe30] ss:$8 sps:$4 sm:$0xff]  }
 0xd1d   : > { %v5927_v45 = vadd.f32 %v5920_v23, %v5910_v22  ;;  %v12705_v20 = vld [vmem:[%s15472_s1 + $0xdc0] ss:$8 sps:$4 sm:$0xff]   ;;  %v12707_v22 = vld [vmem:[%s15472_s1 + $0xdd0] ss:$8 sps:$4 sm:$0xff]  }
 0xd1e   : > { %v5925_v49 = vadd.f32 %v5919_v27, %v5908_v9  ;;  %v5909_v61 = vadd.f32 %v5906_v13, %v5898_v26  ;;  %v12699_v13 = vld [vmem:[%s15472_s1 + $0xd90] ss:$8 sps:$4 sm:$0xff]   ;;  %v12708_v23 = vld [vmem:[%s15472_s1 + $0xe40] ss:$8 sps:$4 sm:$0xff]  }
 0xd1f   : > { %v5930_v0 = vmax.f32 %v5927_v45, 0.0  ;;  %v12710_v41 = vld [vmem:[%s15472_s1 + $0xe50] ss:$8 sps:$4 sm:$0xff]   ;;  %v12712_v26 = vld [vmem:[%s15472_s1 + $0xe60] ss:$8 sps:$4 sm:$0xff]  }
 0xd20   : > { %v5928_v29 = vmax.f32 %v5925_v49, 0.0  ;;  %v5926_v31 = vadd.f32 %v5921_v28, %v5909_v61  ;;  %v12711_v9 = vld [vmem:[%s15472_s1 + $0xdf0] ss:$8 sps:$4 sm:$0xff]   ;;  %v14753_v27 = vld [vmem:[%s15472_s1 + $0xe80] ss:$8 sps:$4 sm:$0xff]  }
 0xd21   : > { %v5937_v18 = vrot.slane %v5930_v0, 7  ;;  %v12713_v45 = vld [vmem:[%s15472_s1 + $0xe70] ss:$8 sps:$4 sm:$0xff]  }
 0xd22   : > { %v5934_v32 = vrot.slane %v5928_v29, 7  ;;  %v5929_v16 = vmax.f32 %v5926_v31, 0.0 }
 0xd24   : > { %5942 = vst [vmem:[#allocation2] sm:$0xfe] %v5934_v32  ;;  %v5935_v24 = vrot.slane %v5929_v16, 7 }
 0xd25   : > { %5946 = vst [vmem:[#allocation2 + $0x5] sm:$0x1] %v14480_v52  ;;  %5947 = vst [vmem:[#allocation2 + $0x6] sm:$0x1] %v14480_v52 }
 0xd26   : > { %v5936_v50 = vsel %vm272_vm1, %v5934_v32, %v5935_v24  ;;  %v5938_v11 = vsel %vm272_vm1, %v5935_v24, %v5937_v18 }
 0xd27   : > { %5943 = vst [vmem:[#allocation2 + $0x10] sm:$0xff] %v5936_v50  ;;  %5944 = vst [vmem:[#allocation2 + $0x20] sm:$0x7f] %v5938_v11  ;;  %v10124_v11 = vld [vmem:[%s15473_s2 + $0x10] sm:$0x3] }
 0xd28   : > { %5948 = vst [vmem:[#allocation2 + $0x13] sm:$0x1] %v14480_v52  ;;  %5949 = vst [vmem:[#allocation2 + $0x14] sm:$0x1] %v14480_v52 }
 0xd29   : > { %5950 = vst [vmem:[#allocation2 + $0x21] sm:$0x1] %v14480_v52  ;;  %5951 = vst [vmem:[#allocation2 + $0x22] sm:$0x1] %v14480_v52 }
 0xd2c   : > { %v5953_v21 = vld [vmem:[#allocation2] sm:$0xff] }
 0xd2d   : > { %6792 = vst [vmem:[#allocation2] sm:$0x1] %v14480_v52  ;;  %v5958_v46 = vld [vmem:[#allocation2] sm:$0xfe] }
 0xd2e   : > { %v5962_v42 = vld [vmem:[#allocation2] sm:$0xfc] }
 0xd2f   : > { %v14672_v35 = vld [vmem:[#allocation2 + $0x10] sm:$0xff] }
 0xd30   : > { %v5955_v43 = vld [vmem:[#allocation2 + $0x20] sm:$0x3f]  ;;  %v5956_v34 = vpack.c.bf16 %v14672_v35, %v5953_v21  ;;  %v5960_v37 = vpack.c.bf16 %v14672_v35, %v5958_v46  ;;  %v5964_v48 = vpack.c.bf16 %v14672_v35, %v5962_v42  ;;  %v6338_v21 = vrot.slane %v10124_v11, %v13258_v40  ;;  %v12731_v11 = vld [vmem:[%s15472_s1 + $0xf50] ss:$8 sps:$4 sm:$0xff]  }
 0xd31   : > { %v5959_v33 = vld [vmem:[#allocation2 + $0x20] sm:$0x7f]  ;;  %v5957_v36 = vpack.c.bf16 %v5955_v43, %v5955_v43 }
 0xd32   : > { %v5961_v39 = vpack.c.bf16 %v5959_v33, %v5959_v33  ;;  %v5963_v30 = vld [vmem:[#allocation2 + $0x20] sm:$0xff]  ;;  %11753 = vmatprep.mubr.bf16.mxu1 %v5956_v34  ;;  %v6003_v51 = vshll.u32 %v5960_v37, 16  ;;  %v6001_v54 = vshrl.u32 %v5960_v37, 16  ;;  %v6228_v59 = vrot.slane %v5964_v48, 1 }
 0xd33   : > { %6799 = vst [vmem:[#allocation2 + $0x27] sm:$0x1] %v14480_v52  ;;  %v5965_v53 = vpack.c.bf16 %v5963_v30, %v5963_v30  ;;  %11754 = vmatmul.mubr.bf16.vlgmr.msra.gmra.mrb[176].mxu1 %v5957_v36 }
 0xd34   : > { %v6008_v47 = vshll.u32 %v5961_v39, 16  ;;  %v6005_v4 = vrot.slane %v6003_v51, 1  ;;  %v6012_v44 = vshrl.u32 %v5961_v39, 16  ;;  %11778 = vmatpush3.bf16.msra.mxu1 %v12700_v14 }
 0xd35   : > { %v6229_v62 = vrot.slane %v5965_v53, 1  ;;  %11779 = vmatprep.subr.bf16.mxu1 %v12702_v56 }
 0xd36   : > { %v6010_v57 = vrot.slane %v6008_v47, 1  ;;  %v6006_v58 = vor.u32 %v6005_v4, %v6001_v54 }
 0xd37   : > { %v6230_v5 = vsel %vm317_vm3, %v6228_v59, %v6229_v62 }
 0xd38   : > { %v6011_v63 = vsel %vm382_vm4, %v6006_v58, %v6010_v57  ;;  %v6014_v3 = vor.u32 %v6012_v44, %v6010_v57  ;;  %11780 = vmatpush3.bf16.msra.mxu1 %v12702_v56 }
 0xd39   : > { %11733 = vmatprep.mubr.bf16.mxu0 %v6011_v63  ;;  %11781 = vmatprep.subr.bf16.mxu1 %v12704_v19 }
 0xd3a   : > { %11734 = vmatmul.mubr.bf16.vlgmr.msra.gmra.mrb[152].mxu0 %v6014_v3 }
 0xd3b   : > { %11758 = vmatpush3.bf16.msra.mxu0 %v14653_v60  ;;  %11773 = vmatprep.mubr.bf16.mxu0 %v6230_v5  ;;  %v12695_v60 = vld [vmem:[%s15472_s1 + $0xd50] ss:$8 sps:$4 sm:$0xff]  }
 0xd3c   : > { %11759 = vmatprep.subr.bf16.mxu0 %v12691_v55  ;;  %11782 = vmatpush3.bf16.msra.mxu1 %v12704_v19 }
 0xd3d   : > { %11783 = vmatprep.subr.bf16.mxu1 %v12706_v38 }
 0xd3f   : > { %11760 = vmatpush3.bf16.msra.mxu0 %v12691_v55 }
 0xd40   : > { %11761 = vmatprep.subr.bf16.mxu0 %v12692_v6  ;;  %11784 = vmatpush3.bf16.msra.mxu1 %v12706_v38 }
 0xd41   : > { %11785 = vmatprep.subr.bf16.mxu1 %v12708_v23 }
 0xd43   : > { %11762 = vmatpush3.bf16.msra.mxu0 %v12692_v6 }
 0xd44   : > { %11763 = vmatprep.subr.bf16.mxu0 %v12693_v7  ;;  %11786 = vmatpush3.bf16.msra.mxu1 %v12708_v23 }
 0xd45   : > { %11787 = vmatprep.subr.bf16.mxu1 %v12710_v41 }
 0xd47   : > { %11764 = vmatpush3.bf16.msra.mxu0 %v12693_v7 }
 0xd48   : > { %11765 = vmatprep.subr.bf16.mxu0 %v12694_v1  ;;  %11788 = vmatpush3.bf16.msra.mxu1 %v12710_v41 }
 0xd49   : > { %11789 = vmatprep.subr.bf16.mxu1 %v12712_v26 }
 0xd4b   : > { %11766 = vmatpush3.bf16.msra.mxu0 %v12694_v1 }
 0xd4c   : > { %11767 = vmatprep.subr.bf16.mxu0 %v12695_v60  ;;  %11790 = vmatpush3.bf16.msra.mxu1 %v12712_v26  ;;  %v12717_v26 = vld [vmem:[%s15472_s1 + $0xeb0] ss:$8 sps:$4 sm:$0xff]  }
 0xd4d   : > { %11791 = vmatprep.subr.bf16.mxu1 %v12713_v45 }
 0xd4f   : > { %11768 = vmatpush3.bf16.msra.mxu0 %v12695_v60 }
 0xd50   : > { %11769 = vmatprep.subr.bf16.mxu0 %v12696_v8  ;;  %11792 = vmatpush3.bf16.msra.mxu1 %v12713_v45  ;;  %v12718_v45 = vld [vmem:[%s15472_s1 + $0xec0] ss:$8 sps:$4 sm:$0xff]  }
 0xd51   : > { %11817 = vmatprep.subr.bf16.mxu1 %v14753_v27 }
 0xd53   : > { %11770 = vmatpush3.bf16.msra.mxu0 %v12696_v8 }
 0xd54   : > { %11771 = vmatprep.subr.bf16.mxu0 %v12697_v10 }
 0xd57   : > { %11772 = vmatpush3.bf16.msra.mxu0 %v12697_v10 }
 0xd58   : > { %11797 = vmatprep.subr.bf16.mxu0 %v12698_v12 }
 0xd5a   : > { %11774 = vmatmul.mubr.bf16.vlgmr.msra.gmra.mrb[156].mxu0 %v6229_v62 }
 0xd5b   : > { %11798 = vmatpush3.bf16.msra.mxu0 %v12698_v12 }
 0xd5c   : > { %11799 = vmatprep.subr.bf16.mxu0 %v12699_v13 }
 0xd5f   : > { %11800 = vmatpush3.bf16.msra.mxu0 %v12699_v13 }
 0xd60   : > { %11801 = vmatprep.subr.bf16.mxu0 %v12701_v15 }
 0xd63   : > { %11802 = vmatpush3.bf16.msra.mxu0 %v12701_v15 }
 0xd64   : > { %11803 = vmatprep.subr.bf16.mxu0 %v12703_v17 }
 0xd67   : > { %11804 = vmatpush3.bf16.msra.mxu0 %v12703_v17 }
 0xd68   : > { %11805 = vmatprep.subr.bf16.mxu0 %v12705_v20 }
 0xd6b   : > { %11806 = vmatpush3.bf16.msra.mxu0 %v12705_v20 }
 0xd6c   : > { %11807 = vmatprep.subr.bf16.mxu0 %v12707_v22 }
 0xd6f   : > { %11808 = vmatpush3.bf16.msra.mxu0 %v12707_v22 }
 0xd70   : > { %11809 = vmatprep.subr.bf16.mxu0 %v12709_v25 }
 0xd73   : > { %11810 = vmatpush3.bf16.msra.mxu0 %v12709_v25  ;;  %v12715_v25 = vld [vmem:[%s15472_s1 + $0xe90] ss:$8 sps:$4 sm:$0xff]  }
 0xd74   : > { %11811 = vmatprep.subr.bf16.mxu0 %v12711_v9 }
 0xd77   : > { %11812 = vmatpush3.bf16.msra.mxu0 %v12711_v9  ;;  %v12716_v9 = vld [vmem:[%s15472_s1 + $0xea0] ss:$8 sps:$4 sm:$0xff]  }
 0xe06   : > { %v11755_v49 = vpop.f32.mrb[176].mxu1 }
 0xe07   : > { %v6195_v61 = vpop.f32.mrb[177].mxu1 }
 0xe08   : > { %v11756_v28 = vpop.f32.mrb[178].mxu1 }
 0xe09   : > { %v6198_v0 = vpop.f32.mrb[179].mxu1  ;;  %v12722_v28 = vld [vmem:[%s15472_s1 + $0xf00] ss:$8 sps:$4 sm:$0xff]  }
 0xe0d   : > { %v11735_v29 = vpop.f32.mrb[152].mxu0 }
 0xe0e   : > { %v6204_v31 = vadd.f32 %v11755_v49, %v11735_v29  ;;  %v6099_v32 = vpop.f32.mrb[153].mxu0  ;;  %v12720_v49 = vld [vmem:[%s15472_s1 + $0xee0] ss:$8 sps:$4 sm:$0xff]  }
 0xe0f   : > { %v6196_v16 = vadd.f32 %v6195_v61, %v6099_v32  ;;  %v11736_v18 = vpop.f32.mrb[154].mxu0  ;;  %v12721_v61 = vld [vmem:[%s15472_s1 + $0xef0] ss:$8 sps:$4 sm:$0xff]   ;;  %v12724_v29 = vld [vmem:[%s15472_s1 + $0xf80] ss:$8 sps:$4 sm:$0xff]  }
 0xe10   : > { %v6102_v24 = vpop.f32.mrb[155].mxu0  ;;  %11837 = vmatprep.subr.bf16.mxu0 %v12724_v29  ;;  %v12726_v32 = vld [vmem:[%s15472_s1 + $0xf90] ss:$8 sps:$4 sm:$0xff]   ;;  %v12728_v18 = vld [vmem:[%s15472_s1 + $0xfa0] ss:$8 sps:$4 sm:$0xff]  }
 0xe11   : > { %v6199_v50 = vadd.f32 %v6198_v0, %v6102_v24  ;;  %v12723_v0 = vld [vmem:[%s15472_s1 + $0xf10] ss:$8 sps:$4 sm:$0xff]   ;;  %v12729_v24 = vld [vmem:[%s15472_s1 + $0xf40] ss:$8 sps:$4 sm:$0xff]  }
 0xe2d   : > { %v11775_v46 = vpop.f32.mrb[156].mxu0 }
 0xe2e   : > { %v6331_v43 = vadd.f32 %v11775_v46, %v6204_v31  ;;  %v6315_v33 = vpop.f32.mrb[157].mxu0  ;;  %v12725_v31 = vld [vmem:[%s15472_s1 + $0xf20] ss:$8 sps:$4 sm:$0xff]  }
 0xe2f   : > { %v6329_v34 = vadd.f32 %v6315_v33, %v6196_v16  ;;  %v11776_v36 = vpop.f32.mrb[158].mxu0  ;;  %v12727_v16 = vld [vmem:[%s15472_s1 + $0xf30] ss:$8 sps:$4 sm:$0xff]   ;;  %v12733_v46 = vld [vmem:[%s15472_s1 + $0xf60] ss:$8 sps:$4 sm:$0xff]  }
 0xe30   : > { %v6342_v37 = vadd.f32 %v6338_v21, %v6331_v43  ;;  %v6318_v39 = vpop.f32.mrb[159].mxu0  ;;  %v12734_v43 = vld [vmem:[%s15472_s1 + $0xfd0] ss:$8 sps:$4 sm:$0xff]  }
 0xe31   : > { %v6340_v30 = vadd.f32 %v6338_v21, %v6329_v34  ;;  %v6330_v42 = vadd.f32 %v6318_v39, %v6199_v50  ;;  %v12730_v50 = vld [vmem:[%s15472_s1 + $0xfb0] ss:$8 sps:$4 sm:$0xff]   ;;  %v12736_v34 = vld [vmem:[%s15472_s1 + $0xfe0] ss:$8 sps:$4 sm:$0xff]  }
 0xe32   : > { %v6345_v51 = vmax.f32 %v6342_v37, 0.0  ;;  %v12735_v33 = vld [vmem:[%s15472_s1 + $0xf70] ss:$8 sps:$4 sm:$0xff]   ;;  %v14843_v37 = vld [vmem:[%s15472_s1 + $0x1000] ss:$8 sps:$4 sm:$0xff]  }
 0xe33   : > { %v6343_v47 = vmax.f32 %v6340_v30, 0.0  ;;  %v6341_v48 = vadd.f32 %v6338_v21, %v6330_v42  ;;  %v12732_v21 = vld [vmem:[%s15472_s1 + $0xfc0] ss:$8 sps:$4 sm:$0xff]   ;;  %v12737_v36 = vld [vmem:[%s15472_s1 + $0xff0] ss:$8 sps:$4 sm:$0xff]  }
 0xe34   : > { %v6352_v4 = vrot.slane %v6345_v51, 7 }
 0xe35   : > { %v6349_v53 = vrot.slane %v6343_v47, 7  ;;  %v6344_v54 = vmax.f32 %v6341_v48, 0.0 }
 0xe37   : > { %6357 = vst [vmem:[#allocation3] sm:$0xfe] %v6349_v53  ;;  %v6350_v57 = vrot.slane %v6344_v54, 7 }
 0xe38   : > { %6361 = vst [vmem:[#allocation3 + $0x5] sm:$0x1] %v14480_v52  ;;  %6362 = vst [vmem:[#allocation3 + $0x6] sm:$0x1] %v14480_v52 }
 0xe39   : > { %v6351_v58 = vsel %vm272_vm1, %v6349_v53, %v6350_v57  ;;  %v6353_v44 = vsel %vm272_vm1, %v6350_v57, %v6352_v4 }
 0xe3a   : > { %6358 = vst [vmem:[#allocation3 + $0x10] sm:$0xff] %v6351_v58  ;;  %6359 = vst [vmem:[#allocation3 + $0x20] sm:$0x7f] %v6353_v44  ;;  %v10197_v44 = vld [vmem:[%s15473_s2 + $0x12] sm:$0x3] }
 0xe3b   : > { %6363 = vst [vmem:[#allocation3 + $0x13] sm:$0x1] %v14480_v52  ;;  %6364 = vst [vmem:[#allocation3 + $0x14] sm:$0x1] %v14480_v52 }
 0xe3c   : > { %6365 = vst [vmem:[#allocation3 + $0x21] sm:$0x1] %v14480_v52  ;;  %6366 = vst [vmem:[#allocation3 + $0x22] sm:$0x1] %v14480_v52 }
 0xe3f   : > { %v6368_v59 = vld [vmem:[#allocation3] sm:$0xff] }
 0xe40   : > { %v6373_v62 = vld [vmem:[#allocation3] sm:$0xfe] }
 0xe41   : > { %v6377_v8 = vld [vmem:[#allocation3] sm:$0xfc] }
 0xe42   : > { %v6369_v63 = vld [vmem:[#allocation3 + $0x10] sm:$0xff] }
 0xe43   : > { %v6370_v3 = vld [vmem:[#allocation3 + $0x20] sm:$0x3f]  ;;  %v6371_v5 = vpack.c.bf16 %v6369_v63, %v6368_v59  ;;  %v6375_v7 = vpack.c.bf16 %v6369_v63, %v6373_v62  ;;  %v6379_v13 = vpack.c.bf16 %v6369_v63, %v6377_v8  ;;  %v6753_v59 = vrot.slane %v10197_v44, %v13258_v40  ;;  %v6760_v63 = vld [vmem:[#allocation2 + $0x20] sm:$0x7f] }
 0xe44   : > { %v6374_v55 = vld [vmem:[#allocation3 + $0x20] sm:$0x7f]  ;;  %v6372_v6 = vpack.c.bf16 %v6370_v3, %v6370_v3  ;;  %v6758_v3 = vld [vmem:[#allocation2] sm:$0xfe]  ;;  %v6767_v8 = vrot.slane %v6760_v63, 1 }
 0xe45   : > { %v6376_v1 = vpack.c.bf16 %v6374_v55, %v6374_v55  ;;  %v6378_v60 = vld [vmem:[#allocation3 + $0x20] sm:$0xff]  ;;  %11813 = vmatprep.mubr.bf16.mxu0 %v6371_v5  ;;  %v6418_v10 = vshll.u32 %v6375_v7, 16  ;;  %v6416_v15 = vshrl.u32 %v6375_v7, 16  ;;  %v6643_v20 = vrot.slane %v6379_v13, 1 }
 0xe46   : > { %v6380_v14 = vpack.c.bf16 %v6378_v60, %v6378_v60  ;;  %11814 = vmatmul.mubr.bf16.vlgmr.msra.gmra.mrb[160].mxu0 %v6372_v6  ;;  %v6765_v6 = vrot.slane %v14672_v35, 1  ;;  %v12745_v44 = vld [vmem:[%s15472_s1 + $0x1070] ss:$8 sps:$4 sm:$0xff]   ;;  %v12749_v63 = vld [vmem:[%s15474_s3 + $0x308] ss:$12 sps:$4 sm:$0xff]  }
 0xe47   : > { %v6423_v12 = vshll.u32 %v6376_v1, 16  ;;  %v6420_v56 = vrot.slane %v6418_v10, 1  ;;  %v6427_v19 = vshrl.u32 %v6376_v1, 16  ;;  %11838 = vmatpush3.bf16.msra.mxu0 %v12724_v29  ;;  %v6764_v10 = vrot.slane %v6758_v3, 1  ;;  %v12752_v3 = vld [vmem:[%s15474_s3 + $0x31c] ss:$12 sps:$4 sm:$0xff]  }
 0xe48   : > { %v6644_v38 = vrot.slane %v6380_v14, 1  ;;  %11839 = vmatprep.subr.bf16.mxu0 %v12726_v32 }
 0xe49   : > { %v6425_v52 = vrot.slane %v6423_v12, 1  ;;  %v6421_v17 = vor.u32 %v6420_v56, %v6416_v15  ;;  %v6766_v56 = vsel %vm317_vm3, %v6764_v10, %v6765_v6  ;;  %v12761_v10 = vld [vmem:[%s15474_s3 + $0x350] ss:$12 sps:$4 sm:$0xff]  }
 0xe4a   : > { %v6645_v41 = vsel %vm317_vm3, %v6643_v20, %v6644_v38 }
 0xe4b   : > { %v6426_v22 = vsel %vm382_vm4, %v6421_v17, %v6425_v52  ;;  %v6429_v23 = vor.u32 %v6427_v19, %v6425_v52  ;;  %11840 = vmatpush3.bf16.msra.mxu0 %v12726_v32  ;;  %v6768_v19 = vsel %vm317_vm3, %v6765_v6, %v6767_v8  ;;  %v12756_v6 = vld [vmem:[%s15474_s3 + $0x334] ss:$12 sps:$4 sm:$0xff]  }
 0xe4c   : > { %11793 = vmatprep.mubr.bf16.mxu1 %v6426_v22  ;;  %11841 = vmatprep.subr.bf16.mxu0 %v12728_v18 }
 0xe4d   : > { %11794 = vmatmul.mubr.bf16.vlgmr.msra.gmra.mrb[180].mxu1 %v6429_v23 }
 0xe4e   : > { %11818 = vmatpush3.bf16.msra.mxu1 %v14753_v27  ;;  %11833 = vmatprep.mubr.bf16.mxu1 %v6645_v41  ;;  %v12719_v27 = vld [vmem:[%s15472_s1 + $0xed0] ss:$8 sps:$4 sm:$0xff]  }
 0xe4f   : > { %11819 = vmatprep.subr.bf16.mxu1 %v12715_v25  ;;  %11842 = vmatpush3.bf16.msra.mxu0 %v12728_v18 }
 0xe50   : > { %11843 = vmatprep.subr.bf16.mxu0 %v12730_v50 }
 0xe52   : > { %11820 = vmatpush3.bf16.msra.mxu1 %v12715_v25 }
 0xe53   : > { %11821 = vmatprep.subr.bf16.mxu1 %v12716_v9  ;;  %11844 = vmatpush3.bf16.msra.mxu0 %v12730_v50 }
 0xe54   : > { %11845 = vmatprep.subr.bf16.mxu0 %v12732_v21 }
 0xe56   : > { %11822 = vmatpush3.bf16.msra.mxu1 %v12716_v9  ;;  %v14853_v9 = vld [vmem:[#allocation2 + $0x8] sm:$0xff] }
 0xe57   : > { %11823 = vmatprep.subr.bf16.mxu1 %v12717_v26  ;;  %11846 = vmatpush3.bf16.msra.mxu0 %v12732_v21 }
 0xe58   : > { %11847 = vmatprep.subr.bf16.mxu0 %v12734_v43 }
 0xe5a   : > { %11824 = vmatpush3.bf16.msra.mxu1 %v12717_v26 }
 0xe5b   : > { %11825 = vmatprep.subr.bf16.mxu1 %v12718_v45  ;;  %11848 = vmatpush3.bf16.msra.mxu0 %v12734_v43 }
 0xe5c   : > { %11849 = vmatprep.subr.bf16.mxu0 %v12736_v34 }
 0xe5e   : > { %11826 = vmatpush3.bf16.msra.mxu1 %v12718_v45 }
 0xe5f   : > { %11827 = vmatprep.subr.bf16.mxu1 %v12719_v27  ;;  %11850 = vmatpush3.bf16.msra.mxu0 %v12736_v34 }
 0xe60   : > { %11851 = vmatprep.subr.bf16.mxu0 %v12737_v36 }
 0xe62   : > { %11828 = vmatpush3.bf16.msra.mxu1 %v12719_v27 }
 0xe63   : > { %11829 = vmatprep.subr.bf16.mxu1 %v12720_v49  ;;  %11852 = vmatpush3.bf16.msra.mxu0 %v12737_v36 }
 0xe64   : > { %11877 = vmatprep.subr.bf16.mxu0 %v14843_v37 }
 0xe66   : > { %11830 = vmatpush3.bf16.msra.mxu1 %v12720_v49 }
 0xe67   : > { %11831 = vmatprep.subr.bf16.mxu1 %v12721_v61 }
 0xe6a   : > { %11832 = vmatpush3.bf16.msra.mxu1 %v12721_v61 }
 0xe6b   : > { %11857 = vmatprep.subr.bf16.mxu1 %v12722_v28 }
 0xe6d   : > { %11834 = vmatmul.mubr.bf16.vlgmr.msra.gmra.mrb[184].mxu1 %v6644_v38 }
 0xe6e   : > { %11858 = vmatpush3.bf16.msra.mxu1 %v12722_v28 }
 0xe6f   : > { %11859 = vmatprep.subr.bf16.mxu1 %v12723_v0 }
 0xe72   : > { %11860 = vmatpush3.bf16.msra.mxu1 %v12723_v0 }
 0xe73   : > { %11861 = vmatprep.subr.bf16.mxu1 %v12725_v31 }
 0xe76   : > { %11862 = vmatpush3.bf16.msra.mxu1 %v12725_v31 }
 0xe77   : > { %11863 = vmatprep.subr.bf16.mxu1 %v12727_v16 }
 0xe7a   : > { %11864 = vmatpush3.bf16.msra.mxu1 %v12727_v16 }
 0xe7b   : > { %11865 = vmatprep.subr.bf16.mxu1 %v12729_v24 }
 0xe7e   : > { %11866 = vmatpush3.bf16.msra.mxu1 %v12729_v24 }
 0xe7f   : > { %11867 = vmatprep.subr.bf16.mxu1 %v12731_v11 }
 0xe82   : > { %11868 = vmatpush3.bf16.msra.mxu1 %v12731_v11 }
 0xe83   : > { %11869 = vmatprep.subr.bf16.mxu1 %v12733_v46 }
 0xe86   : > { %11870 = vmatpush3.bf16.msra.mxu1 %v12733_v46 }
 0xe87   : > { %11871 = vmatprep.subr.bf16.mxu1 %v12735_v33 }
 0xe8a   : > { %11872 = vmatpush3.bf16.msra.mxu1 %v12735_v33 }
 0xf19   : > { %v11815_v39 = vpop.f32.mrb[160].mxu0 }
 0xf1a   : > { %v6610_v30 = vpop.f32.mrb[161].mxu0 }
 0xf1b   : > { %v11816_v42 = vpop.f32.mrb[162].mxu0 }
 0xf1c   : > { %v6613_v51 = vpop.f32.mrb[163].mxu0 }
 0xf20   : > { %v11795_v47 = vpop.f32.mrb[180].mxu1 }
 0xf21   : > { %v6619_v48 = vadd.f32 %v11815_v39, %v11795_v47  ;;  %v6514_v53 = vpop.f32.mrb[181].mxu1 }
 0xf22   : > { %v6611_v54 = vadd.f32 %v6610_v30, %v6514_v53  ;;  %v11796_v4 = vpop.f32.mrb[182].mxu1 }
 0xf23   : > { %v6517_v57 = vpop.f32.mrb[183].mxu1  ;;  %v12741_v4 = vld [vmem:[%s15472_s1 + $0x1030] ss:$8 sps:$4 sm:$0xff]  }
 0xf24   : > { %v6614_v58 = vadd.f32 %v6613_v51, %v6517_v57  ;;  %v12742_v57 = vld [vmem:[%s15472_s1 + $0x1040] ss:$8 sps:$4 sm:$0xff]  }
 0xf40   : > { %v11835_v62 = vpop.f32.mrb[184].mxu1 }
 0xf41   : > { %v6746_v55 = vadd.f32 %v11835_v62, %v6619_v48  ;;  %v6730_v5 = vpop.f32.mrb[185].mxu1  ;;  %v12739_v48 = vld [vmem:[%s15472_s1 + $0x1010] ss:$8 sps:$4 sm:$0xff]  }
 0xf42   : > { %v6744_v7 = vadd.f32 %v6730_v5, %v6611_v54  ;;  %v11836_v1 = vpop.f32.mrb[186].mxu1  ;;  %v12740_v54 = vld [vmem:[%s15472_s1 + $0x1020] ss:$8 sps:$4 sm:$0xff]   ;;  %v12748_v62 = vld [vmem:[%s15474_s3 + $0x304] ss:$12 sps:$4 sm:$0xff]  }
 0xf43   : > { %v6757_v60 = vadd.f32 %v6753_v59, %v6746_v55  ;;  %v6733_v12 = vpop.f32.mrb[187].mxu1  ;;  %v12753_v55 = vld [vmem:[%s15474_s3 + $0x320] ss:$12 sps:$4 sm:$0xff]   ;;  %7370 = vmatprep.subr.bf16.mxu1 %v12748_v62  ;;  %v12750_v5 = vld [vmem:[%s15474_s3 + $0x318] ss:$12 sps:$4 sm:$0xff]  }
 0xf44   : > { %v6755_v13 = vadd.f32 %v6753_v59, %v6744_v7  ;;  %v6745_v14 = vadd.f32 %v6733_v12, %v6614_v58  ;;  %v12744_v58 = vld [vmem:[%s15472_s1 + $0x1060] ss:$8 sps:$4 sm:$0xff]   ;;  %v12757_v7 = vld [vmem:[%s15474_s3 + $0x338] ss:$12 sps:$4 sm:$0xff]   ;;  %v12754_v1 = vld [vmem:[%s15474_s3 + $0x330] ss:$12 sps:$4 sm:$0xff]  }
 0xf45   : > { %v6774_v15 = vadd.f32 %v6767_v8, %v6757_v60  ;;  %v12760_v60 = vld [vmem:[%s15474_s3 + $0x34c] ss:$12 sps:$4 sm:$0xff]   ;;  %v12758_v8 = vld [vmem:[%s15474_s3 + $0x348] ss:$12 sps:$4 sm:$0xff]   ;;  %v12764_v12 = vld [vmem:[%s15474_s3 + $0x364] ss:$12 sps:$4 sm:$0xff]  }
 0xf46   : > { %v6772_v52 = vadd.f32 %v6766_v56, %v6755_v13  ;;  %v6756_v17 = vadd.f32 %v6753_v59, %v6745_v14  ;;  %v12746_v59 = vld [vmem:[%s15474_s3 + $0x300] ss:$12 sps:$4 sm:$0xff]   ;;  %v12765_v14 = vld [vmem:[%s15474_s3 + $0x368] ss:$12 sps:$4 sm:$0xff]   ;;  %v12766_v56 = vld [vmem:[%s15474_s3 + $0x378] ss:$12 sps:$4 sm:$0xff]  }
 0xf47   : > { %v6777_v20 = vmax.f32 %v6774_v15, 0.0  ;;  %v12762_v13 = vld [vmem:[%s15474_s3 + $0x360] ss:$12 sps:$4 sm:$0xff]   ;;  %v12768_v15 = vld [vmem:[%s15474_s3 + $0x37c] ss:$12 sps:$4 sm:$0xff]  }
 0xf48   : > { %v6775_v38 = vmax.f32 %v6772_v52, 0.0  ;;  %v6773_v22 = vadd.f32 %v6768_v19, %v6756_v17  ;;  %v12769_v52 = vld [vmem:[%s15474_s3 + $0x380] ss:$12 sps:$4 sm:$0xff]   ;;  %v12770_v19 = vld [vmem:[%s15474_s3 + $0x390] ss:$12 sps:$4 sm:$0xff]  }
 0xf49   : > { %v6784_v25 = vrot.slane %v6777_v20, 7  ;;  %v12772_v17 = vld [vmem:[%s15474_s3 + $0x394] ss:$12 sps:$4 sm:$0xff]   ;;  %v12773_v20 = vld [vmem:[%s15474_s3 + $0x398] ss:$12 sps:$4 sm:$0xff]  }
 0xf4a   : > { %v6781_v23 = vrot.slane %v6775_v38, 7  ;;  %v6776_v35 = vmax.f32 %v6773_v22, 0.0  ;;  %v12774_v38 = vld [vmem:[%s15474_s3 + $0x3a8] ss:$12 sps:$4 sm:$0xff]   ;;  %v12776_v22 = vld [vmem:[%s15474_s3 + $0x3ac] ss:$12 sps:$4 sm:$0xff]  }
 0xf4c   : > { %6789 = vst [vmem:[#allocation2] sm:$0xfe] %v6781_v23  ;;  %v6782_v41 = vrot.slane %v6776_v35, 7 }
 0xf4d   : > { %6793 = vst [vmem:[#allocation2 + $0x5] sm:$0x1] %v14853_v9  ;;  %6794 = vst [vmem:[#allocation2 + $0x6] sm:$0x1] %v14853_v9 }
 0xf4e   : > { %v6783_v26 = vsel %vm272_vm1, %v6781_v23, %v6782_v41  ;;  %v6785_v45 = vsel %vm272_vm1, %v6782_v41, %v6784_v25  ;;  %v12777_v23 = vld [vmem:[%s15474_s3 + $0x3b0] ss:$12 sps:$4 sm:$0xff]  }
 0xf4f   : > { %6790 = vst [vmem:[#allocation2 + $0x10] sm:$0xff] %v6783_v26  ;;  %6791 = vst [vmem:[#allocation2 + $0x20] sm:$0x7f] %v6785_v45 }
 0xf50   : > { %6795 = vst [vmem:[#allocation2 + $0x13] sm:$0x1] %v14853_v9  ;;  %6796 = vst [vmem:[#allocation2 + $0x14] sm:$0x1] %v14853_v9 }
 0xf51   : > { %6797 = vst [vmem:[#allocation2 + $0x21] sm:$0x1] %v14853_v9  ;;  %6798 = vst [vmem:[#allocation2 + $0x22] sm:$0x1] %v14853_v9 }
 0xf54   : > { %v6800_v27 = vld [vmem:[#allocation2] sm:$0xff] }
 0xf55   : > { %v6805_v49 = vld [vmem:[#allocation2] sm:$0xfe] }
 0xf56   : > { %v6809_v24 = vld [vmem:[#allocation2] sm:$0xfc] }
 0xf57   : > { %v6801_v61 = vld [vmem:[#allocation2 + $0x10] sm:$0xff] }
 0xf58   : > { %v6802_v28 = vld [vmem:[#allocation2 + $0x20] sm:$0x3f]  ;;  %v6803_v29 = vpack.c.bf16 %v6801_v61, %v6800_v27  ;;  %v6807_v32 = vpack.c.bf16 %v6801_v61, %v6805_v49  ;;  %v6811_v21 = vpack.c.bf16 %v6801_v61, %v6809_v24 }
 0xf59   : > { %v6806_v0 = vld [vmem:[#allocation2 + $0x20] sm:$0x7f]  ;;  %v6804_v31 = vpack.c.bf16 %v6802_v28, %v6802_v28 }
 0xf5a   : > { %v6808_v16 = vpack.c.bf16 %v6806_v0, %v6806_v0  ;;  %v6810_v18 = vld [vmem:[#allocation2 + $0x20] sm:$0xff]  ;;  %11873 = vmatprep.mubr.bf16.mxu1 %v6803_v29  ;;  %v6850_v50 = vshll.u32 %v6807_v32, 16  ;;  %v6848_v43 = vshrl.u32 %v6807_v32, 16  ;;  %v7075_v30 = vrot.slane %v6811_v21, 1 }
 0xf5b   : > { %v6812_v46 = vpack.c.bf16 %v6810_v18, %v6810_v18  ;;  %11874 = vmatmul.mubr.bf16.vlgmr.msra.gmra.mrb[188].mxu1 %v6804_v31  ;;  %v10270_v31 = vld [vmem:[%s15473_s2 + $0x14] sm:$0x3] }
 0xf5c   : > { %v6855_v11 = vshll.u32 %v6808_v16, 16  ;;  %v6852_v33 = vrot.slane %v6850_v50, 1  ;;  %7402 = vmatprep.mubr.bf16.mxu1 %v12891_v2  ;;  %v6859_v39 = vshrl.u32 %v6808_v16, 16  ;;  %7371 = vmatpush1.bf16.msra.mxu1 %v12746_v59  ;;  %v7185_v16 = vrot.slane %v10270_v31, %v13258_v40 }
 0xf5d   : > { %v7076_v42 = vrot.slane %v6812_v46, 1  ;;  %7372 = vmatprep.subr.bf16.mxu1 %v12752_v3 }
 0xf5e   : > { %v6857_v34 = vrot.slane %v6855_v11, 1  ;;  %v6853_v36 = vor.u32 %v6852_v33, %v6848_v43 }
 0xf5f   : > { %v7077_v53 = vsel %vm317_vm3, %v7075_v30, %v7076_v42 }
 0xf60   : > { %v6858_v51 = vsel %vm382_vm4, %v6853_v36, %v6857_v34  ;;  %v6861_v47 = vor.u32 %v6859_v39, %v6857_v34  ;;  %7373 = vmatpush1.bf16.msra.mxu1 %v12750_v5 }
 0xf61   : > { %11853 = vmatprep.mubr.bf16.mxu0 %v6858_v51  ;;  %7374 = vmatprep.subr.bf16.mxu1 %v12756_v6 }
 0xf62   : > { %11854 = vmatmul.mubr.bf16.vlgmr.msra.gmra.mrb[164].mxu0 %v6861_v47 }
 0xf63   : > { %11878 = vmatpush3.bf16.msra.mxu0 %v14843_v37  ;;  %11893 = vmatprep.mubr.bf16.mxu0 %v7077_v53  ;;  %v12743_v37 = vld [vmem:[%s15472_s1 + $0x1050] ss:$8 sps:$4 sm:$0xff]  }
 0xf64   : > { %11879 = vmatprep.subr.bf16.mxu0 %v12739_v48  ;;  %7375 = vmatpush1.bf16.msra.mxu1 %v12754_v1 }
 0xf65   : > { %7376 = vmatprep.subr.bf16.mxu1 %v12760_v60 }
 0xf67   : > { %11880 = vmatpush3.bf16.msra.mxu0 %v12739_v48 }
 0xf68   : > { %11881 = vmatprep.subr.bf16.mxu0 %v12740_v54  ;;  %7377 = vmatpush1.bf16.msra.mxu1 %v12758_v8 }
 0xf69   : > { %7378 = vmatprep.subr.bf16.mxu1 %v12764_v12 }
 0xf6b   : > { %11882 = vmatpush3.bf16.msra.mxu0 %v12740_v54 }
 0xf6c   : > { %11883 = vmatprep.subr.bf16.mxu0 %v12741_v4  ;;  %7379 = vmatpush1.bf16.msra.mxu1 %v12762_v13 }
 0xf6d   : > { %7380 = vmatprep.subr.bf16.mxu1 %v12768_v15  ;;  %v12778_v15 = vld [vmem:[%s15475_s4 + $0x78] sm:$0xff]  }
 0xf6f   : > { %11884 = vmatpush3.bf16.msra.mxu0 %v12741_v4 }
 0xf70   : > { %11885 = vmatprep.subr.bf16.mxu0 %v12742_v57  ;;  %7381 = vmatpush1.bf16.msra.mxu1 %v12766_v56  ;;  %v12779_v56 = vld [vmem:[%s15475_s4 + $0x8c] sm:$0xff]  }
 0xf71   : > { %7382 = vmatprep.subr.bf16.mxu1 %v12772_v17  ;;  %v12781_v17 = vld [vmem:[%s15472_s1 + $0x1080] ss:$8 sps:$4 sm:$0xff]  }
 0xf73   : > { %11886 = vmatpush3.bf16.msra.mxu0 %v12742_v57 }
 0xf74   : > { %11887 = vmatprep.subr.bf16.mxu0 %v12743_v37  ;;  %7383 = vmatpush1.bf16.msra.mxu1 %v12770_v19  ;;  %v12782_v19 = vld [vmem:[%s15472_s1 + $0x1090] ss:$8 sps:$4 sm:$0xff]  }
 0xf75   : > { %7384 = vmatprep.subr.bf16.mxu1 %v12776_v22  ;;  %v12785_v22 = vld [vmem:[%s15472_s1 + $0x1110] ss:$8 sps:$4 sm:$0xff]  }
 0xf77   : > { %11888 = vmatpush3.bf16.msra.mxu0 %v12743_v37 }
 0xf78   : > { %11889 = vmatprep.subr.bf16.mxu0 %v12744_v58  ;;  %7385 = vmatpush1.bf16.msra.mxu1 %v12774_v38  ;;  %v12784_v38 = vld [vmem:[%s15472_s1 + $0x10a0] ss:$8 sps:$4 sm:$0xff]  }
 0xf79   : > { %11917 = vmatprep.subr.bf16.mxu1 %v14853_v9 }
 0xf7b   : > { %11890 = vmatpush3.bf16.msra.mxu0 %v12744_v58 }
 0xf7c   : > { %11891 = vmatprep.subr.bf16.mxu0 %v12745_v44 }
 0xf7f   : > { %11892 = vmatpush3.bf16.msra.mxu0 %v12745_v44 }
 0xf80   : > { %11897 = vmatprep.subr.bf16.mxu0 %v12749_v63 }
 0xf82   : > { %11894 = vmatmul.mubr.bf16.vlgmr.msra.gmra.mrb[168].mxu0 %v7076_v42 }
 0xf83   : > { %11898 = vmatpush3.bf16.msra.mxu0 %v12749_v63 }
 0xf84   : > { %11899 = vmatprep.subr.bf16.mxu0 %v12753_v55 }
 0xf87   : > { %11900 = vmatpush3.bf16.msra.mxu0 %v12753_v55 }
 0xf88   : > { %11901 = vmatprep.subr.bf16.mxu0 %v12757_v7 }
 0xf8b   : > { %11902 = vmatpush3.bf16.msra.mxu0 %v12757_v7 }
 0xf8c   : > { %11903 = vmatprep.subr.bf16.mxu0 %v12761_v10 }
 0xf8f   : > { %11904 = vmatpush3.bf16.msra.mxu0 %v12761_v10 }
 0xf90   : > { %11905 = vmatprep.subr.bf16.mxu0 %v12765_v14 }
 0xf93   : > { %11906 = vmatpush3.bf16.msra.mxu0 %v12765_v14 }
 0xf94   : > { %11907 = vmatprep.subr.bf16.mxu0 %v12769_v52 }
 0xf97   : > { %11908 = vmatpush3.bf16.msra.mxu0 %v12769_v52  ;;  %v12780_v52 = vld [vmem:[%s15475_s4 + $0xa0] sm:$0xff]  }
 0xf98   : > { %11909 = vmatprep.subr.bf16.mxu0 %v12773_v20 }
 0xf9b   : > { %11910 = vmatpush3.bf16.msra.mxu0 %v12773_v20  ;;  %v12783_v20 = vld [vmem:[%s15472_s1 + $0x1100] ss:$8 sps:$4 sm:$0xff]  }
 0xf9c   : > { %11911 = vmatprep.subr.bf16.mxu0 %v12777_v23 }
 0xf9f   : > { %11912 = vmatpush3.bf16.msra.mxu0 %v12777_v23  ;;  %v12786_v23 = vld [vmem:[%s15472_s1 + $0x10b0] ss:$8 sps:$4 sm:$0xff]  }
 0xfa0   : > { %11941 = vmatprep.subr.bf16.mxu0 %v14853_v9 }
0x102e   : > { %v11875_v35 = vpop.f32.mrb[188].mxu1 }
0x102f   : > { %v7042_v25 = vpop.f32.mrb[189].mxu1 }
0x1030   : > { %v11876_v41 = vpop.f32.mrb[190].mxu1 }
0x1031   : > { %v7045_v26 = vpop.f32.mrb[191].mxu1  ;;  %v12789_v41 = vld [vmem:[%s15472_s1 + $0x1130] ss:$8 sps:$4 sm:$0xff]  }
0x1035   : > { %v11855_v45 = vpop.f32.mrb[164].mxu0 }
0x1036   : > { %v7051_v27 = vadd.f32 %v11875_v35, %v11855_v45  ;;  %v6946_v49 = vpop.f32.mrb[165].mxu0  ;;  %v12787_v35 = vld [vmem:[%s15472_s1 + $0x1120] ss:$8 sps:$4 sm:$0xff]  }
0x1037   : > { %v7043_v61 = vadd.f32 %v7042_v25, %v6946_v49  ;;  %v11856_v28 = vpop.f32.mrb[166].mxu0  ;;  %v12788_v25 = vld [vmem:[%s15472_s1 + $0x10c0] ss:$8 sps:$4 sm:$0xff]   ;;  %v12793_v49 = vld [vmem:[%s15472_s1 + $0x1150] ss:$8 sps:$4 sm:$0xff]  }
0x1038   : > { %v6949_v0 = vpop.f32.mrb[167].mxu0  ;;  %v12791_v45 = vld [vmem:[%s15472_s1 + $0x1140] ss:$8 sps:$4 sm:$0xff]  }
0x1039   : > { %v7046_v29 = vadd.f32 %v7045_v26, %v6949_v0  ;;  %v12790_v26 = vld [vmem:[%s15472_s1 + $0x10d0] ss:$8 sps:$4 sm:$0xff]   ;;  %v12795_v28 = vld [vmem:[%s15472_s1 + $0x1160] ss:$8 sps:$4 sm:$0xff]  }
0x103a   : > { %v12796_v0 = vld [vmem:[%s15472_s1 + $0x1170] ss:$8 sps:$4 sm:$0xff]  }
0x1055   : > { %v11895_v32 = vpop.f32.mrb[168].mxu0 }
0x1056   : > { %v7178_v18 = vadd.f32 %v11895_v32, %v7051_v27  ;;  %v7162_v24 = vpop.f32.mrb[169].mxu0  ;;  %v12792_v27 = vld [vmem:[%s15472_s1 + $0x10e0] ss:$8 sps:$4 sm:$0xff]  }
0x1057   : > { %v7176_v50 = vadd.f32 %v7162_v24, %v7043_v61  ;;  %v11896_v11 = vpop.f32.mrb[170].mxu0  ;;  %v12794_v61 = vld [vmem:[%s15472_s1 + $0x10f0] ss:$8 sps:$4 sm:$0xff]  }
0x1058   : > { %v7165_v21 = vpop.f32.mrb[171].mxu0  ;;  %v7189_v46 = vadd.f32 %v7185_v16, %v7178_v18 }
0x1059   : > { %v7187_v43 = vadd.f32 %v7185_v16, %v7176_v50  ;;  %v7177_v33 = vadd.f32 %v7165_v21, %v7046_v29 }
0x105a   : > { %v7196_v39 = vrot.slane %v7189_v46, 7 }
0x105b   : > { %v7193_v34 = vrot.slane %v7187_v43, 7  ;;  %v7188_v36 = vadd.f32 %v7185_v16, %v7177_v33 }
0x105d   : > { %7201 = vst [vmem:[#allocation3] sm:$0xfe] %v7193_v34  ;;  %v7194_v30 = vrot.slane %v7188_v36, 7 }
0x105f   : > { %v7195_v42 = vsel %vm272_vm1, %v7193_v34, %v7194_v30  ;;  %v7197_v51 = vsel %vm272_vm1, %v7194_v30, %v7196_v39 }
0x1060   : > { %7202 = vst [vmem:[#allocation3 + $0x10] sm:$0xff] %v7195_v42  ;;  %7203 = vst [vmem:[#allocation3 + $0x20] sm:$0x7f] %v7197_v51 }
0x1061   : > { %8013 = vst [vmem:[#allocation3 + $0x17] sm:$0x1] %v14853_v9 }
0x1064   : > { %v7204_v47 = vld [vmem:[#allocation3] sm:$0xff] }
0x1065   : > { %v7207_v48 = vpack.c.bf16 %v7195_v42, %v7204_v47  ;;  %8006 = vst [vmem:[#allocation3] sm:$0x1] %v14853_v9 }
0x1067   : > { %7403 = vmatmul.mubr.bf16.vlgmr.msra.gmra.mrb[192].mxu1 %v7207_v48  ;;  %11913 = vmatprep.mubr.bf16.mxu0 %v7207_v48  ;;  %v7206_v53 = vld [vmem:[#allocation3 + $0x20] sm:$0xff] }
0x1068   : > { %v7208_v54 = vpack.c.bf16 %v7206_v53, %v7206_v53  ;;  %7412 = vmatprep.mubr.bf16.mxu1 %v12891_v2 }
0x106a   : > { %11914 = vmatmul.mubr.bf16.vlgmr.msra.gmra.mrb[172].mxu0 %v7208_v54 }
0x106b   : > { %11957 = vmatprep.mubr.msk.bf16.mxu0 %vm12893_vm5, %v14853_v9  ;;  %11942 = vmatpush3.bf16.msra.mxu0 %v12783_v20  ;;  %v12817_v20 = vld [vmem:[%s15472_s1 + $0x12d0] ss:$8 sps:$4 sm:$0xff]  }
0x106c   : > { %11943 = vmatprep.subr.bf16.mxu0 %v14853_v9 }
0x106f   : > { %7413 = vmatmul.mubr.bf16.gmra.mrb[196].mxu1 %v7208_v54  ;;  %11944 = vmatpush3.bf16.msra.mxu0 %v12785_v22  ;;  %v12819_v22 = vld [vmem:[%s15472_s1 + $0x12e0] ss:$8 sps:$4 sm:$0xff]  }
0x1070   : > { %11921 = vmatprep.mubr.msk.bf16.mxu1 %vm12893_vm5, %v14853_v9  ;;  %11945 = vmatprep.subr.bf16.mxu0 %v14853_v9 }
0x1073   : > { %11946 = vmatpush3.bf16.msra.mxu0 %v12787_v35 }
0x1074   : > { %11947 = vmatprep.subr.bf16.mxu0 %v14853_v9 }
0x1077   : > { %11948 = vmatpush3.bf16.msra.mxu0 %v12789_v41 }
0x1078   : > { %11949 = vmatprep.subr.bf16.mxu0 %v14853_v9 }
0x107b   : > { %11950 = vmatpush3.bf16.msra.mxu0 %v12791_v45 }
0x107c   : > { %11951 = vmatprep.subr.bf16.mxu0 %v14853_v9 }
0x107f   : > { %11952 = vmatpush3.bf16.msra.mxu0 %v12793_v49 }
0x1080   : > { %11953 = vmatprep.subr.bf16.mxu0 %v14853_v9 }
0x1083   : > { %11954 = vmatpush3.bf16.msra.mxu0 %v12795_v28 }
0x1084   : > { %11955 = vmatprep.subr.bf16.mxu0 %v14853_v9 }
0x1087   : > { %11956 = vmatpush3.bf16.msra.mxu0 %v12796_v0 }
0x1088   : > { %11981 = vmatprep.subr.bf16.mxu0 %v14853_v9 }
0x113a   : > { %v7404_v4 = vpop.f32.mrb[192].mxu1 }
0x113b   : > { %v7406_v57 = vpop.f32.mrb[193].mxu1 }
0x113c   : > { %v7408_v37 = vpop.f32.mrb[194].mxu1 }
0x113d   : > { %v11915_v58 = vpop.f32.mrb[172].mxu0  ;;  %v7410_v44 = vpop.f32.mrb[195].mxu1 }
0x113e   : > { %v7455_v59 = vpop.f32.mrb[173].mxu0 }
0x113f   : > { %v7469_v62 = vmax.f32 %v7406_v57, %v7455_v59  ;;  %v11916_v63 = vpop.f32.mrb[174].mxu0  ;;  %v12799_v59 = vld [vmem:[%s15472_s1 + $0x11a0] ss:$8 sps:$4 sm:$0xff]  }
0x1140   : > { %v7458_v3 = vpop.f32.mrb[175].mxu0  ;;  %v12801_v63 = vld [vmem:[%s15472_s1 + $0x11c0] ss:$8 sps:$4 sm:$0xff]  }
0x1141   : > { %v7472_v55 = vmax.f32 %v7404_v4, %v7469_v62  ;;  %v7470_v5 = vmax.f32 %v7410_v44, %v7458_v3  ;;  %v12798_v44 = vld [vmem:[%s15472_s1 + $0x1190] ss:$8 sps:$4 sm:$0xff]  }
0x1142   : > { %v7414_v2 = vpop.f32.mrb[196].mxu1  ;;  %v12800_v62 = vld [vmem:[%s15472_s1 + $0x11b0] ss:$8 sps:$4 sm:$0xff]  }
0x1143   : > { %v7473_v6 = vmax.f32 %v7408_v37, %v7470_v5  ;;  %v7416_v7 = vpop.f32.mrb[197].mxu1  ;;  %v12797_v37 = vld [vmem:[%s15472_s1 + $0x1180] ss:$8 sps:$4 sm:$0xff]   ;;  %v12802_v3 = vld [vmem:[%s15472_s1 + $0x11d0] ss:$8 sps:$4 sm:$0xff]  }
0x1144   : > { %v7471_v1 = vmax.f32 %v7416_v7, %v11915_v58  ;;  %v7418_v60 = vpop.f32.mrb[198].mxu1 }
0x1145   : > { %v7475_v8 = vpack.c.bf16 %v7473_v6, %v7472_v55  ;;  %v7419_v10 = vpop.f32.mrb[199].mxu1  ;;  %v12803_v55 = vld [vmem:[%s15472_s1 + $0x11e0] ss:$8 sps:$4 sm:$0xff]  }
0x1146   : > { %v7474_v12 = vmax.f32 %v7414_v2, %v7471_v1  ;;  %v12804_v2 = vld [vmem:[%s15472_s1 + $0x11f0] ss:$8 sps:$4 sm:$0xff]   ;;  %v12805_v1 = vld [vmem:[%s15472_s1 + $0x1200] ss:$8 sps:$4 sm:$0xff]  }
0x1147   : > { %11918 = vmatpush3.bf16.msra.mxu1 %v7475_v8  ;;  %v12807_v60 = vld [vmem:[%s15472_s1 + $0x1280] ss:$8 sps:$4 sm:$0xff]  }
0x1148   : > { %v7476_v13 = vpack.c.bf16 %v7474_v12, %v7474_v12  ;;  %11919 = vmatprep.subr.bf16.mxu1 %v14853_v9  ;;  %v12808_v10 = vld [vmem:[%s15472_s1 + $0x1220] ss:$8 sps:$4 sm:$0xff]   ;;  %v12809_v12 = vld [vmem:[%s15472_s1 + $0x1290] ss:$8 sps:$4 sm:$0xff]  }
0x114a   : > { %v7490_v14 = vsel %vm1635_vm6, %v7476_v13, 0  ;;  %v12810_v13 = vld [vmem:[%s15472_s1 + $0x1230] ss:$8 sps:$4 sm:$0xff]  }
0x114b   : > { %11920 = vmatpush3.bf16.msra.mxu1 %v7490_v14 }
0x114c   : > { %11925 = vmatprep.subr.bf16.mxu1 %v14853_v9 }
0x114e   : > { %11922 = vmatmul.mubr.msk.bf16.vlgmr.msra.gmra.mrb[200].mxu1 %vm7485_vm9, %v12778_v15  ;;  %v12812_v15 = vld [vmem:[%s15472_s1 + $0x1240] ss:$8 sps:$4 sm:$0xff]  }
0x114f   : > { %11926 = vmatpush3.bf16.msra.mxu1 %v7475_v8  ;;  %11929 = vmatprep.mubr.msk.bf16.mxu1 %vm12893_vm5, %v14853_v9 }
0x1150   : > { %11927 = vmatprep.subr.bf16.mxu1 %v14853_v9 }
0x1153   : > { %11928 = vmatpush3.bf16.msra.mxu1 %v7490_v14 }
0x1154   : > { %11933 = vmatprep.subr.bf16.mxu1 %v14853_v9 }
0x1156   : > { %11930 = vmatmul.mubr.msk.bf16.vlgmr.msra.gmra.mrb[204].mxu1 %vm7485_vm9, %v12779_v56  ;;  %v12813_v56 = vld [vmem:[%s15472_s1 + $0x12b0] ss:$8 sps:$4 sm:$0xff]  }
0x1157   : > { %11934 = vmatpush3.bf16.msra.mxu1 %v7475_v8  ;;  %11937 = vmatprep.mubr.msk.bf16.mxu1 %vm12893_vm5, %v14853_v9  ;;  %v12806_v8 = vld [vmem:[%s15472_s1 + $0x1210] ss:$8 sps:$4 sm:$0xff]  }
0x1158   : > { %11935 = vmatprep.subr.bf16.mxu1 %v14853_v9 }
0x115b   : > { %11936 = vmatpush3.bf16.msra.mxu1 %v7490_v14  ;;  %v12811_v14 = vld [vmem:[%s15472_s1 + $0x12a0] ss:$8 sps:$4 sm:$0xff]  }
0x115c   : > { %11961 = vmatprep.subr.bf16.mxu1 %v14853_v9 }
0x115e   : > { %11938 = vmatmul.mubr.msk.bf16.vlgmr.msra.gmra.mrb[208].mxu1 %vm7485_vm9, %v12780_v52  ;;  %v12814_v52 = vld [vmem:[%s15472_s1 + $0x1250] ss:$8 sps:$4 sm:$0xff]  }
0x115f   : > { %11962 = vmatpush3.bf16.msra.mxu1 %v12781_v17  ;;  %11977 = vmatprep.mubr.msk.bf16.mxu1 %vm12893_vm5, %v14853_v9  ;;  %v12815_v17 = vld [vmem:[%s15472_s1 + $0x12c0] ss:$8 sps:$4 sm:$0xff]  }
0x1160   : > { %11963 = vmatprep.subr.bf16.mxu1 %v14853_v9 }
0x1163   : > { %11964 = vmatpush3.bf16.msra.mxu1 %v12782_v19  ;;  %v12816_v19 = vld [vmem:[%s15472_s1 + $0x1260] ss:$8 sps:$4 sm:$0xff]  }
0x1164   : > { %11965 = vmatprep.subr.bf16.mxu1 %v14853_v9 }
0x1167   : > { %11966 = vmatpush3.bf16.msra.mxu1 %v12784_v38  ;;  %v12818_v38 = vld [vmem:[%s15472_s1 + $0x1270] ss:$8 sps:$4 sm:$0xff]  }
0x1168   : > { %11967 = vmatprep.subr.bf16.mxu1 %v14853_v9 }
0x116b   : > { %11968 = vmatpush3.bf16.msra.mxu1 %v12786_v23  ;;  %v12820_v23 = vld [vmem:[%s15472_s1 + $0x12f0] ss:$8 sps:$4 sm:$0xff]  }
0x116c   : > { %11969 = vmatprep.subr.bf16.mxu1 %v14853_v9 }
0x116f   : > { %11970 = vmatpush3.bf16.msra.mxu1 %v12788_v25 }
0x1170   : > { %11971 = vmatprep.subr.bf16.mxu1 %v14853_v9 }
0x1173   : > { %11972 = vmatpush3.bf16.msra.mxu1 %v12790_v26 }
0x1174   : > { %11973 = vmatprep.subr.bf16.mxu1 %v14853_v9 }
0x1177   : > { %11974 = vmatpush3.bf16.msra.mxu1 %v12792_v27 }
0x1178   : > { %11975 = vmatprep.subr.bf16.mxu1 %v14853_v9 }
0x117b   : > { %11976 = vmatpush3.bf16.msra.mxu1 %v12794_v61 }
0x117c   : > { %12001 = vmatprep.subr.bf16.mxu1 %v14853_v9 }
0x1221   : > { %v7526_v29 = vpop.f32.mrb[200].mxu1 }
0x1222   : > { %v11923_v31 = vpop.f32.mrb[201].mxu1 }
0x1223   : > { %v7529_v32 = vpop.f32.mrb[202].mxu1 }
0x1224   : > { %v11924_v16 = vpop.f32.mrb[203].mxu1 }
0x1229   : > { %v7578_v18 = vpop.f32.mrb[204].mxu1 }
0x122a   : > { %v7585_v24 = vmax.f32 %v7526_v29, %v7578_v18  ;;  %v11931_v50 = vpop.f32.mrb[205].mxu1  ;;  %v10411_v29 = vld [vmem:[%s15473_s2 + $0x16] sm:$0x3] }
0x122b   : > { %v7581_v11 = vpop.f32.mrb[206].mxu1  ;;  %v7989_v31 = vrot.slane %v10411_v29, %v13258_v40 }
0x122c   : > { %v7586_v21 = vmax.f32 %v7529_v32, %v7581_v11  ;;  %v11932_v46 = vpop.f32.mrb[207].mxu1 }
0x1231   : > { %v7632_v43 = vpop.f32.mrb[208].mxu1 }
0x1232   : > { %v7639_v33 = vmax.f32 %v7585_v24, %v7632_v43  ;;  %v11939_v34 = vpop.f32.mrb[209].mxu1 }
0x1233   : > { %v7635_v36 = vpop.f32.mrb[210].mxu1 }
0x1234   : > { %7641 = vst [vmem:[#allocation2] sm:$0xff] %v7639_v33  ;;  %v7640_v39 = vmax.f32 %v7586_v21, %v7635_v36  ;;  %v11940_v30 = vpop.f32.mrb[211].mxu1 }
0x1235   : > { %8386 = vst [vmem:[#allocation2] sm:$0x1] %v14853_v9 }
0x1236   : > { %7642 = vst [vmem:[#allocation2 + $0x10] sm:$0xff] %v7640_v39 }
0x1237   : > { %8393 = vst [vmem:[#allocation2 + $0x17] sm:$0x1] %v14853_v9 }
0x123b   : > { %v7646_v51 = vld [vmem:[#allocation2] sm:$0xfe] }
0x123c   : > { %v7649_v5 = vld [vmem:[#allocation2] sm:$0xfc] }
0x123d   : > { %v7644_v42 = vld [vmem:[#allocation2 + $0x10] sm:$0x3f]  ;;  %v7651_v6 = vpack.c.bf16 %v7640_v39, %v7649_v5  ;;  %v12827_v5 = vld [vmem:[%s15472_s1 + $0x1360] ss:$8 sps:$4 sm:$0xff]  }
0x123e   : > { %v7647_v47 = vld [vmem:[#allocation2 + $0x10] sm:$0x7f]  ;;  %v7645_v48 = vpack.c.bf16 %v7644_v42, %v7639_v33 }
0x123f   : > { %v7648_v53 = vpack.c.bf16 %v7647_v47, %v7646_v51  ;;  %v7890_v7 = vrot.slane %v7651_v6, 1 }
0x1240   : > { %11978 = vmatmul.mubr.bf16.vlgmr.msra.gmra.mrb[212].mxu1 %v7645_v48 }
0x1241   : > { %v7689_v54 = vshll.u32 %v7648_v53, 16  ;;  %12017 = vmatprep.mubr.msk.bf16.mxu1 %vm12893_vm5, %v14853_v9  ;;  %v7687_v4 = vshrl.u32 %v7648_v53, 16  ;;  %12002 = vmatpush3.bf16.msra.mxu1 %v12807_v60  ;;  %v12829_v60 = vld [vmem:[%s15472_s1 + $0x1380] ss:$8 sps:$4 sm:$0xff]  }
0x1242   : > { %12003 = vmatprep.subr.bf16.mxu1 %v14853_v9 }
0x1243   : > { %v7691_v57 = vrot.slane %v7689_v54, 1 }
0x1245   : > { %v7692_v58 = vor.u32 %v7691_v57, %v7687_v4  ;;  %12004 = vmatpush3.bf16.msra.mxu1 %v12809_v12  ;;  %v12832_v12 = vld [vmem:[%s15472_s1 + $0x13a0] ss:$8 sps:$4 sm:$0xff]  }
0x1246   : > { %12005 = vmatprep.subr.bf16.mxu1 %v14853_v9 }
0x1247   : > { %11958 = vmatmul.mubr.bf16.vlgmr.msra.gmra.mrb[176].mxu0 %v7692_v58  ;;  %v12821_v58 = vld [vmem:[%s15472_s1 + $0x1300] ss:$8 sps:$4 sm:$0xff]  }
0x1248   : > { %11982 = vmatpush3.bf16.msra.mxu0 %v12797_v37  ;;  %11997 = vmatprep.mubr.msk.bf16.mxu0 %vm12893_vm5, %v14853_v9 }
0x1249   : > { %11983 = vmatprep.subr.bf16.mxu0 %v14853_v9  ;;  %12006 = vmatpush3.bf16.msra.mxu1 %v12811_v14  ;;  %v12834_v14 = vld [vmem:[%s15472_s1 + $0x13b0] ss:$8 sps:$4 sm:$0xff]  }
0x124a   : > { %12007 = vmatprep.subr.bf16.mxu1 %v14853_v9 }
0x124c   : > { %11984 = vmatpush3.bf16.msra.mxu0 %v12798_v44 }
0x124d   : > { %11985 = vmatprep.subr.bf16.mxu0 %v14853_v9  ;;  %12008 = vmatpush3.bf16.msra.mxu1 %v12813_v56  ;;  %v12836_v56 = vld [vmem:[%s15472_s1 + $0x13c0] ss:$8 sps:$4 sm:$0xff]  }
0x124e   : > { %12009 = vmatprep.subr.bf16.mxu1 %v14853_v9 }
0x1250   : > { %11986 = vmatpush3.bf16.msra.mxu0 %v12799_v59  ;;  %v12822_v59 = vld [vmem:[%s15472_s1 + $0x1310] ss:$8 sps:$4 sm:$0xff]  }
0x1251   : > { %11987 = vmatprep.subr.bf16.mxu0 %v14853_v9  ;;  %12010 = vmatpush3.bf16.msra.mxu1 %v12815_v17  ;;  %v12838_v17 = vld [vmem:[%s15472_s1 + $0x13d0] ss:$8 sps:$4 sm:$0xff]  }
0x1252   : > { %12011 = vmatprep.subr.bf16.mxu1 %v14853_v9 }
0x1254   : > { %11988 = vmatpush3.bf16.msra.mxu0 %v12800_v62  ;;  %v12823_v62 = vld [vmem:[%s15472_s1 + $0x1320] ss:$8 sps:$4 sm:$0xff]  }
0x1255   : > { %11989 = vmatprep.subr.bf16.mxu0 %v14853_v9  ;;  %12012 = vmatpush3.bf16.msra.mxu1 %v12817_v20  ;;  %v12840_v20 = vld [vmem:[%s15472_s1 + $0x13e0] ss:$8 sps:$4 sm:$0xff]  }
0x1256   : > { %12013 = vmatprep.subr.bf16.mxu1 %v14853_v9 }
0x1258   : > { %11990 = vmatpush3.bf16.msra.mxu0 %v12801_v63  ;;  %v12824_v63 = vld [vmem:[%s15472_s1 + $0x1330] ss:$8 sps:$4 sm:$0xff]  }
0x1259   : > { %11991 = vmatprep.subr.bf16.mxu0 %v14853_v9  ;;  %12014 = vmatpush3.bf16.msra.mxu1 %v12819_v22  ;;  %v12842_v22 = vld [vmem:[%s15472_s1 + $0x13f0] ss:$8 sps:$4 sm:$0xff]  }
0x125a   : > { %12015 = vmatprep.subr.bf16.mxu1 %v14853_v9 }
0x125c   : > { %11992 = vmatpush3.bf16.msra.mxu0 %v12802_v3  ;;  %v12825_v3 = vld [vmem:[%s15472_s1 + $0x1340] ss:$8 sps:$4 sm:$0xff]  }
0x125d   : > { %11993 = vmatprep.subr.bf16.mxu0 %v14853_v9  ;;  %12016 = vmatpush3.bf16.msra.mxu1 %v12820_v23  ;;  %v12843_v23 = vld [vmem:[%s15472_s1 + $0x1460] ss:$8 sps:$4 sm:$0xff]  }
0x125e   : > { %12041 = vmatprep.subr.bf16.mxu1 %v14853_v9 }
0x1260   : > { %11994 = vmatpush3.bf16.msra.mxu0 %v12803_v55  ;;  %v12826_v55 = vld [vmem:[%s15472_s1 + $0x1350] ss:$8 sps:$4 sm:$0xff]  }
0x1261   : > { %11995 = vmatprep.subr.bf16.mxu0 %v14853_v9 }
0x1264   : > { %11996 = vmatpush3.bf16.msra.mxu0 %v12804_v2  ;;  %v12828_v2 = vld [vmem:[%s15472_s1 + $0x1370] ss:$8 sps:$4 sm:$0xff]  }
0x1265   : > { %12021 = vmatprep.subr.bf16.mxu0 %v14853_v9 }
0x1267   : > { %11998 = vmatmul.mubr.bf16.vlgmr.msra.gmra.mrb[180].mxu0 %v7890_v7 }
0x1268   : > { %12037 = vmatprep.mubr.msk.bf16.mxu0 %vm12893_vm5, %v14853_v9  ;;  %12022 = vmatpush3.bf16.msra.mxu0 %v12805_v1 }
0x1269   : > { %12023 = vmatprep.subr.bf16.mxu0 %v14853_v9 }
0x126c   : > { %12024 = vmatpush3.bf16.msra.mxu0 %v12806_v8  ;;  %v12831_v8 = vld [vmem:[%s15472_s1 + $0x1400] ss:$8 sps:$4 sm:$0xff]  }
0x126d   : > { %12025 = vmatprep.subr.bf16.mxu0 %v14853_v9 }
0x1270   : > { %12026 = vmatpush3.bf16.msra.mxu0 %v12808_v10  ;;  %v12830_v10 = vld [vmem:[%s15472_s1 + $0x1390] ss:$8 sps:$4 sm:$0xff]  }
0x1271   : > { %12027 = vmatprep.subr.bf16.mxu0 %v14853_v9 }
0x1274   : > { %12028 = vmatpush3.bf16.msra.mxu0 %v12810_v13  ;;  %v12833_v13 = vld [vmem:[%s15472_s1 + $0x1410] ss:$8 sps:$4 sm:$0xff]  }
0x1275   : > { %12029 = vmatprep.subr.bf16.mxu0 %v14853_v9 }
0x1278   : > { %12030 = vmatpush3.bf16.msra.mxu0 %v12812_v15  ;;  %v12835_v15 = vld [vmem:[%s15472_s1 + $0x1420] ss:$8 sps:$4 sm:$0xff]  }
0x1279   : > { %12031 = vmatprep.subr.bf16.mxu0 %v14853_v9 }
0x127c   : > { %12032 = vmatpush3.bf16.msra.mxu0 %v12814_v52  ;;  %v12837_v52 = vld [vmem:[%s15472_s1 + $0x1430] ss:$8 sps:$4 sm:$0xff]  }
0x127d   : > { %12033 = vmatprep.subr.bf16.mxu0 %v14853_v9 }
0x1280   : > { %12034 = vmatpush3.bf16.msra.mxu0 %v12816_v19  ;;  %v12839_v19 = vld [vmem:[%s15472_s1 + $0x1440] ss:$8 sps:$4 sm:$0xff]  }
0x1281   : > { %12035 = vmatprep.subr.bf16.mxu0 %v14853_v9 }
0x1284   : > { %12036 = vmatpush3.bf16.msra.mxu0 %v12818_v38  ;;  %v12841_v38 = vld [vmem:[%s15472_s1 + $0x1450] ss:$8 sps:$4 sm:$0xff]  }
0x1285   : > { %12061 = vmatprep.subr.bf16.mxu0 %v14853_v9 }
0x1313   : > { %v7865_v35 = vpop.f32.mrb[212].mxu1 }
0x1314   : > { %v11979_v25 = vpop.f32.mrb[213].mxu1 }
0x1315   : > { %v7868_v41 = vpop.f32.mrb[214].mxu1 }
0x1316   : > { %v11980_v26 = vpop.f32.mrb[215].mxu1 }
0x131a   : > { %v7776_v45 = vpop.f32.mrb[176].mxu0 }
0x131b   : > { %v7866_v27 = vadd.f32 %v7865_v35, %v7776_v45  ;;  %v11959_v49 = vpop.f32.mrb[177].mxu0  ;;  %v12844_v35 = vld [vmem:[%s15472_s1 + $0x1470] ss:$8 sps:$4 sm:$0xff]  }
0x131c   : > { %v7779_v61 = vpop.f32.mrb[178].mxu0 }
0x131d   : > { %v7869_v28 = vadd.f32 %v7868_v41, %v7779_v61  ;;  %v11960_v0 = vpop.f32.mrb[179].mxu0 }
0x133a   : > { %v7974_v32 = vpop.f32.mrb[180].mxu0 }
0x133b   : > { %v7981_v16 = vadd.f32 %v7974_v32, %v7866_v27  ;;  %v11999_v18 = vpop.f32.mrb[181].mxu0  ;;  %v8365_v32 = vld [vmem:[#allocation2 + $0x10] sm:$0x7f] }
0x133c   : > { %v7977_v24 = vpop.f32.mrb[182].mxu0  ;;  %v8364_v18 = vld [vmem:[#allocation2] sm:$0xfe] }
0x133d   : > { %v7991_v50 = vadd.f32 %v7989_v31, %v7981_v16  ;;  %v7982_v11 = vadd.f32 %v7977_v24, %v7869_v28  ;;  %v12000_v21 = vpop.f32.mrb[183].mxu0 }
0x133e   : > { %v8368_v21 = vrot.slane %v8364_v18, 1 }
0x133f   : > { %v7993_v46 = vmax.f32 %v7991_v50, 0.0  ;;  %v7992_v43 = vadd.f32 %v7989_v31, %v7982_v11  ;;  %v10484_v31 = vld [vmem:[%s15473_s2 + $0x18] sm:$0x3] }
0x1340   : > { %v8360_v16 = vrot.slane %v10484_v31, %v13258_v40 }
0x1341   : > { %v7997_v33 = vrot.slane %v7993_v46, 7  ;;  %v7994_v34 = vmax.f32 %v7992_v43, 0.0 }
0x1343   : > { %v7998_v36 = vrot.slane %v7994_v34, 7  ;;  %8003 = vst.msk [vmem:[#allocation3] sm:$0xfe] %vm8002_vm10, %v7997_v33 }
0x1344   : > { %8007 = vst [vmem:[#allocation3 + $0x3] sm:$0x1] %v14853_v9  ;;  %8008 = vst [vmem:[#allocation3 + $0x4] sm:$0x1] %v14853_v9 }
0x1345   : > { %8009 = vst [vmem:[#allocation3 + $0x7] sm:$0x1] %v14853_v9  ;;  %v7999_v39 = vsel %vm272_vm1, %v7997_v33, %v7998_v36 }
0x1346   : > { %8005 = vst.msk [vmem:[#allocation3 + $0x10] sm:$0x7f] %vm8004_vm11, %v7999_v39 }
0x1347   : > { %8010 = vst [vmem:[#allocation3 + $0x10] sm:$0x1] %v14853_v9  ;;  %8011 = vst [vmem:[#allocation3 + $0x13] sm:$0x1] %v14853_v9 }
0x1348   : > { %8012 = vst [vmem:[#allocation3 + $0x14] sm:$0x1] %v14853_v9 }
0x134c   : > { %v8014_v30 = vld [vmem:[#allocation3] sm:$0xff] }
0x134d   : > { %8755 = vst [vmem:[#allocation3] sm:$0x1] %v14853_v9  ;;  %v8017_v42 = vld [vmem:[#allocation3] sm:$0xfe] }
0x134e   : > { %v8020_v6 = vld [vmem:[#allocation3] sm:$0xfc] }
0x134f   : > { %v8015_v51 = vld [vmem:[#allocation3 + $0x10] sm:$0x3f] }
0x1350   : > { %v8018_v47 = vld [vmem:[#allocation3 + $0x10] sm:$0x7f]  ;;  %v8016_v53 = vpack.c.bf16 %v8015_v51, %v8014_v30 }
0x1351   : > { %v8021_v48 = vld [vmem:[#allocation3 + $0x10] sm:$0xff]  ;;  %v8019_v54 = vpack.c.bf16 %v8018_v47, %v8017_v42 }
0x1352   : > { %8762 = vst [vmem:[#allocation3 + $0x17] sm:$0x1] %v14853_v9  ;;  %12038 = vmatmul.mubr.bf16.vlgmr.msra.gmra.mrb[184].mxu0 %v8016_v53  ;;  %v8022_v7 = vpack.c.bf16 %v8021_v48, %v8020_v6 }
0x1353   : > { %v8060_v4 = vshll.u32 %v8019_v54, 16  ;;  %12077 = vmatprep.mubr.msk.bf16.mxu0 %vm12893_vm5, %v14853_v9  ;;  %v8058_v57 = vshrl.u32 %v8019_v54, 16  ;;  %12062 = vmatpush3.bf16.msra.mxu0 %v12831_v8  ;;  %v15291_v54 = vld [vmem:[#allocation2 + $0x8] sm:$0xff] }
0x1354   : > { %v8261_v1 = vrot.slane %v8022_v7, 1  ;;  %12063 = vmatprep.subr.bf16.mxu0 %v14853_v9  ;;  %v12846_v7 = vld [vmem:[%s15472_s1 + $0x1490] ss:$8 sps:$4 sm:$0xff]   ;;  %v12849_v8 = vld [vmem:[%s15472_s1 + $0x14c0] ss:$8 sps:$4 sm:$0xff]  }
0x1355   : > { %v8062_v37 = vrot.slane %v8060_v4, 1 }
0x1357   : > { %v8063_v44 = vor.u32 %v8062_v37, %v8058_v57  ;;  %12064 = vmatpush3.bf16.msra.mxu0 %v12833_v13  ;;  %v12852_v13 = vld [vmem:[%s15472_s1 + $0x14f0] ss:$8 sps:$4 sm:$0xff]  }
0x1358   : > { %12065 = vmatprep.subr.bf16.mxu0 %v14853_v9 }
0x1359   : > { %12018 = vmatmul.mubr.bf16.vlgmr.msra.gmra.mrb[216].mxu1 %v8063_v44 }
0x135a   : > { %12042 = vmatpush3.bf16.msra.mxu1 %v12821_v58  ;;  %12057 = vmatprep.mubr.msk.bf16.mxu1 %vm12893_vm5, %v14853_v9 }
0x135b   : > { %12043 = vmatprep.subr.bf16.mxu1 %v14853_v9  ;;  %12066 = vmatpush3.bf16.msra.mxu0 %v12835_v15 }
0x135c   : > { %12067 = vmatprep.subr.bf16.mxu0 %v14853_v9 }
0x135e   : > { %12044 = vmatpush3.bf16.msra.mxu1 %v12822_v59 }
0x135f   : > { %12045 = vmatprep.subr.bf16.mxu1 %v14853_v9  ;;  %12068 = vmatpush3.bf16.msra.mxu0 %v12837_v52  ;;  %v12853_v52 = vld [vmem:[%s15472_s1 + $0x1500] ss:$8 sps:$4 sm:$0xff]  }
0x1360   : > { %12069 = vmatprep.subr.bf16.mxu0 %v14853_v9 }
0x1362   : > { %12046 = vmatpush3.bf16.msra.mxu1 %v12823_v62 }
0x1363   : > { %12047 = vmatprep.subr.bf16.mxu1 %v14853_v9  ;;  %12070 = vmatpush3.bf16.msra.mxu0 %v12839_v19  ;;  %v12854_v19 = vld [vmem:[%s15472_s1 + $0x1510] ss:$8 sps:$4 sm:$0xff]  }
0x1364   : > { %12071 = vmatprep.subr.bf16.mxu0 %v14853_v9 }
0x1366   : > { %12048 = vmatpush3.bf16.msra.mxu1 %v12824_v63 }
0x1367   : > { %12049 = vmatprep.subr.bf16.mxu1 %v14853_v9  ;;  %12072 = vmatpush3.bf16.msra.mxu0 %v12841_v38  ;;  %v12857_v38 = vld [vmem:[%s15472_s1 + $0x1590] ss:$8 sps:$4 sm:$0xff]  }
0x1368   : > { %12073 = vmatprep.subr.bf16.mxu0 %v14853_v9 }
0x136a   : > { %12050 = vmatpush3.bf16.msra.mxu1 %v12825_v3 }
0x136b   : > { %12051 = vmatprep.subr.bf16.mxu1 %v14853_v9  ;;  %12074 = vmatpush3.bf16.msra.mxu0 %v12843_v23  ;;  %v12859_v23 = vld [vmem:[%s15472_s1 + $0x15a0] ss:$8 sps:$4 sm:$0xff]  }
0x136c   : > { %12075 = vmatprep.subr.bf16.mxu0 %v14853_v9 }
0x136e   : > { %12052 = vmatpush3.bf16.msra.mxu1 %v12826_v55 }
0x136f   : > { %12053 = vmatprep.subr.bf16.mxu1 %v14853_v9  ;;  %12076 = vmatpush3.bf16.msra.mxu0 %v12844_v35  ;;  %v12860_v35 = vld [vmem:[%s15472_s1 + $0x1540] ss:$8 sps:$4 sm:$0xff]  }
0x1370   : > { %12101 = vmatprep.subr.bf16.mxu0 %v14853_v9 }
0x1372   : > { %12054 = vmatpush3.bf16.msra.mxu1 %v12827_v5 }
0x1373   : > { %12055 = vmatprep.subr.bf16.mxu1 %v14853_v9 }
0x1376   : > { %12056 = vmatpush3.bf16.msra.mxu1 %v12828_v2  ;;  %v12845_v2 = vld [vmem:[%s15472_s1 + $0x1480] ss:$8 sps:$4 sm:$0xff]  }
0x1377   : > { %12081 = vmatprep.subr.bf16.mxu1 %v14853_v9 }
0x1379   : > { %12058 = vmatmul.mubr.bf16.vlgmr.msra.gmra.mrb[220].mxu1 %v8261_v1  ;;  %v12847_v1 = vld [vmem:[%s15472_s1 + $0x14a0] ss:$8 sps:$4 sm:$0xff]  }
0x137a   : > { %12097 = vmatprep.mubr.msk.bf16.mxu1 %vm12893_vm5, %v14853_v9  ;;  %12082 = vmatpush3.bf16.msra.mxu1 %v12829_v60  ;;  %v12848_v60 = vld [vmem:[%s15472_s1 + $0x14b0] ss:$8 sps:$4 sm:$0xff]  }
0x137b   : > { %12083 = vmatprep.subr.bf16.mxu1 %v14853_v9 }
0x137e   : > { %12084 = vmatpush3.bf16.msra.mxu1 %v12830_v10  ;;  %v12850_v10 = vld [vmem:[%s15472_s1 + $0x14d0] ss:$8 sps:$4 sm:$0xff]  }
0x137f   : > { %12085 = vmatprep.subr.bf16.mxu1 %v14853_v9 }
0x1382   : > { %12086 = vmatpush3.bf16.msra.mxu1 %v12832_v12  ;;  %v12851_v12 = vld [vmem:[%s15472_s1 + $0x14e0] ss:$8 sps:$4 sm:$0xff]  }
0x1383   : > { %12087 = vmatprep.subr.bf16.mxu1 %v14853_v9 }
0x1386   : > { %12088 = vmatpush3.bf16.msra.mxu1 %v12834_v14 }
0x1387   : > { %12089 = vmatprep.subr.bf16.mxu1 %v14853_v9 }
0x138a   : > { %12090 = vmatpush3.bf16.msra.mxu1 %v12836_v56 }
0x138b   : > { %12091 = vmatprep.subr.bf16.mxu1 %v14853_v9 }
0x138e   : > { %12092 = vmatpush3.bf16.msra.mxu1 %v12838_v17  ;;  %v12855_v17 = vld [vmem:[%s15472_s1 + $0x1580] ss:$8 sps:$4 sm:$0xff]  }
0x138f   : > { %12093 = vmatprep.subr.bf16.mxu1 %v14853_v9 }
0x1392   : > { %12094 = vmatpush3.bf16.msra.mxu1 %v12840_v20  ;;  %v12856_v20 = vld [vmem:[%s15472_s1 + $0x1520] ss:$8 sps:$4 sm:$0xff]  }
0x1393   : > { %12095 = vmatprep.subr.bf16.mxu1 %v14853_v9 }
0x1396   : > { %12096 = vmatpush3.bf16.msra.mxu1 %v12842_v22  ;;  %v12858_v22 = vld [vmem:[%s15472_s1 + $0x1530] ss:$8 sps:$4 sm:$0xff]  }
0x1397   : > { %12121 = vmatprep.subr.bf16.mxu1 %v14853_v9  ;;  %v8369_v9 = vrot.slane %v8365_v32, 1 }
0x1399   : > { %v8370_v36 = vsel %vm317_vm3, %v8368_v21, %v8369_v9  ;;  %v10557_v21 = vld [vmem:[%s15473_s2 + $0x1a] sm:$0x3] }
0x1425   : > { %v8236_v25 = vpop.f32.mrb[184].mxu0 }
0x1426   : > { %v12039_v41 = vpop.f32.mrb[185].mxu0 }
0x1427   : > { %v8239_v26 = vpop.f32.mrb[186].mxu0  ;;  %v12862_v41 = vld [vmem:[%s15472_s1 + $0x1550] ss:$8 sps:$4 sm:$0xff]  }
0x1428   : > { %v12040_v45 = vpop.f32.mrb[187].mxu0 }
0x1429   : > { %v12864_v45 = vld [vmem:[%s15472_s1 + $0x1560] ss:$8 sps:$4 sm:$0xff]  }
0x142c   : > { %v8147_v27 = vpop.f32.mrb[216].mxu1 }
0x142d   : > { %v8237_v49 = vadd.f32 %v8236_v25, %v8147_v27  ;;  %v12019_v61 = vpop.f32.mrb[217].mxu1  ;;  %v12861_v25 = vld [vmem:[%s15472_s1 + $0x15b0] ss:$8 sps:$4 sm:$0xff]  }
0x142e   : > { %v8150_v28 = vpop.f32.mrb[218].mxu1  ;;  %v12865_v27 = vld [vmem:[%s15472_s1 + $0x15d0] ss:$8 sps:$4 sm:$0xff]   ;;  %v12867_v61 = vld [vmem:[%s15472_s1 + $0x15e0] ss:$8 sps:$4 sm:$0xff]  }
0x142f   : > { %v8240_v0 = vadd.f32 %v8239_v26, %v8150_v28  ;;  %v12020_v29 = vpop.f32.mrb[219].mxu1  ;;  %v12863_v26 = vld [vmem:[%s15472_s1 + $0x15c0] ss:$8 sps:$4 sm:$0xff]   ;;  %v12868_v28 = vld [vmem:[%s15472_s1 + $0x15f0] ss:$8 sps:$4 sm:$0xff]  }
0x144c   : > { %v8345_v24 = vpop.f32.mrb[220].mxu1 }
0x144d   : > { %v8352_v50 = vadd.f32 %v8345_v24, %v8237_v49  ;;  %v12059_v11 = vpop.f32.mrb[221].mxu1  ;;  %v12866_v49 = vld [vmem:[%s15472_s1 + $0x1570] ss:$8 sps:$4 sm:$0xff]  }
0x144e   : > { %v8348_v46 = vpop.f32.mrb[222].mxu1 }
0x144f   : > { %v8362_v43 = vadd.f32 %v8360_v16, %v8352_v50  ;;  %v8353_v33 = vadd.f32 %v8348_v46, %v8240_v0  ;;  %v12060_v34 = vpop.f32.mrb[223].mxu1  ;;  %v8740_v46 = vrot.slane %v10557_v21, %v13258_v40 }
0x1451   : > { %v8373_v39 = vadd.f32 %v8370_v36, %v8362_v43  ;;  %v8363_v30 = vadd.f32 %v8360_v16, %v8353_v33 }
0x1453   : > { %v8375_v42 = vmax.f32 %v8373_v39, 0.0  ;;  %v8374_v51 = vadd.f32 %v8369_v9, %v8363_v30 }
0x1455   : > { %v8379_v47 = vrot.slane %v8375_v42, 7  ;;  %v8376_v48 = vmax.f32 %v8374_v51, 0.0 }
0x1457   : > { %8384 = vst.msk [vmem:[#allocation2] sm:$0xfe] %vm8002_vm10, %v8379_v47  ;;  %v8380_v53 = vrot.slane %v8376_v48, 7 }
0x1458   : > { %8387 = vst [vmem:[#allocation2 + $0x3] sm:$0x1] %v15291_v54  ;;  %8388 = vst [vmem:[#allocation2 + $0x4] sm:$0x1] %v15291_v54 }
0x1459   : > { %8389 = vst [vmem:[#allocation2 + $0x7] sm:$0x1] %v15291_v54  ;;  %v8381_v4 = vsel %vm272_vm1, %v8379_v47, %v8380_v53 }
0x145a   : > { %8385 = vst.msk [vmem:[#allocation2 + $0x10] sm:$0x7f] %vm8004_vm11, %v8381_v4 }
0x145b   : > { %8390 = vst [vmem:[#allocation2 + $0x10] sm:$0x1] %v15291_v54  ;;  %8391 = vst [vmem:[#allocation2 + $0x13] sm:$0x1] %v15291_v54 }
0x145c   : > { %8392 = vst [vmem:[#allocation2 + $0x14] sm:$0x1] %v15291_v54 }
0x1460   : > { %v8394_v57 = vld [vmem:[#allocation2] sm:$0xff] }
0x1461   : > { %9135 = vst [vmem:[#allocation2] sm:$0x1] %v15291_v54  ;;  %v8397_v37 = vld [vmem:[#allocation2] sm:$0xfe] }
0x1462   : > { %v8400_v14 = vld [vmem:[#allocation2] sm:$0xfc] }
0x1463   : > { %v8395_v58 = vld [vmem:[#allocation2 + $0x10] sm:$0x3f] }
0x1464   : > { %v8398_v44 = vld [vmem:[#allocation2 + $0x10] sm:$0x7f]  ;;  %v8396_v62 = vpack.c.bf16 %v8395_v58, %v8394_v57 }
0x1465   : > { %v8401_v59 = vld [vmem:[#allocation2 + $0x10] sm:$0xff]  ;;  %v8399_v63 = vpack.c.bf16 %v8398_v44, %v8397_v37 }
0x1466   : > { %9142 = vst [vmem:[#allocation2 + $0x17] sm:$0x1] %v15291_v54  ;;  %12098 = vmatmul.mubr.bf16.vlgmr.msra.gmra.mrb[224].mxu1 %v8396_v62  ;;  %v8402_v15 = vpack.c.bf16 %v8401_v59, %v8400_v14  ;;  %v12876_v14 = vld [vmem:[%s15472_s1 + $0x1670] ss:$8 sps:$4 sm:$0xff]  }
0x1467   : > { %v8440_v3 = vshll.u32 %v8399_v63, 16  ;;  %12137 = vmatprep.mubr.msk.bf16.mxu1 %vm12893_vm5, %v15291_v54  ;;  %v8438_v55 = vshrl.u32 %v8399_v63, 16  ;;  %12122 = vmatpush3.bf16.msra.mxu1 %v12855_v17 }
0x1468   : > { %v8641_v56 = vrot.slane %v8402_v15, 1  ;;  %12123 = vmatprep.subr.bf16.mxu1 %v15291_v54 }
0x1469   : > { %v8442_v5 = vrot.slane %v8440_v3, 1 }
0x146b   : > { %v8443_v6 = vor.u32 %v8442_v5, %v8438_v55  ;;  %12124 = vmatpush3.bf16.msra.mxu1 %v12857_v38 }
0x146c   : > { %12125 = vmatprep.subr.bf16.mxu1 %v15291_v54 }
0x146d   : > { %12078 = vmatmul.mubr.bf16.vlgmr.msra.gmra.mrb[188].mxu0 %v8443_v6 }
0x146e   : > { %12102 = vmatpush3.bf16.msra.mxu0 %v12845_v2  ;;  %12117 = vmatprep.mubr.msk.bf16.mxu0 %vm12893_vm5, %v15291_v54  ;;  %v12869_v2 = vld [vmem:[%s15472_s1 + $0x1600] ss:$8 sps:$4 sm:$0xff]  }
0x146f   : > { %12103 = vmatprep.subr.bf16.mxu0 %v15291_v54  ;;  %12126 = vmatpush3.bf16.msra.mxu1 %v12859_v23 }
0x1470   : > { %12127 = vmatprep.subr.bf16.mxu1 %v15291_v54 }
0x1472   : > { %12104 = vmatpush3.bf16.msra.mxu0 %v12846_v7  ;;  %v12870_v7 = vld [vmem:[%s15472_s1 + $0x1610] ss:$8 sps:$4 sm:$0xff]  }
0x1473   : > { %12105 = vmatprep.subr.bf16.mxu0 %v15291_v54  ;;  %12128 = vmatpush3.bf16.msra.mxu1 %v12861_v25 }
0x1474   : > { %12129 = vmatprep.subr.bf16.mxu1 %v15291_v54 }
0x1476   : > { %12106 = vmatpush3.bf16.msra.mxu0 %v12847_v1  ;;  %v12871_v1 = vld [vmem:[%s15472_s1 + $0x1620] ss:$8 sps:$4 sm:$0xff]  }
0x1477   : > { %12107 = vmatprep.subr.bf16.mxu0 %v15291_v54  ;;  %12130 = vmatpush3.bf16.msra.mxu1 %v12863_v26 }
0x1478   : > { %12131 = vmatprep.subr.bf16.mxu1 %v15291_v54 }
0x147a   : > { %12108 = vmatpush3.bf16.msra.mxu0 %v12848_v60  ;;  %v12872_v60 = vld [vmem:[%s15472_s1 + $0x1630] ss:$8 sps:$4 sm:$0xff]  }
0x147b   : > { %12109 = vmatprep.subr.bf16.mxu0 %v15291_v54  ;;  %12132 = vmatpush3.bf16.msra.mxu1 %v12865_v27  ;;  %v9114_v27 = vld [vmem:[#allocation2 + $0x10] sm:$0x7f] }
0x147c   : > { %12133 = vmatprep.subr.bf16.mxu1 %v15291_v54 }
0x147e   : > { %12110 = vmatpush3.bf16.msra.mxu0 %v12849_v8  ;;  %v12873_v8 = vld [vmem:[%s15472_s1 + $0x1640] ss:$8 sps:$4 sm:$0xff]  }
0x147f   : > { %12111 = vmatprep.subr.bf16.mxu0 %v15291_v54  ;;  %12134 = vmatpush3.bf16.msra.mxu1 %v12867_v61  ;;  %v9113_v61 = vld [vmem:[#allocation2] sm:$0xfe] }
0x1480   : > { %12135 = vmatprep.subr.bf16.mxu1 %v15291_v54 }
0x1482   : > { %12112 = vmatpush3.bf16.msra.mxu0 %v12850_v10  ;;  %v12874_v10 = vld [vmem:[%s15472_s1 + $0x1650] ss:$8 sps:$4 sm:$0xff]  }
0x1483   : > { %12113 = vmatprep.subr.bf16.mxu0 %v15291_v54  ;;  %12136 = vmatpush3.bf16.msra.mxu1 %v12868_v28 }
0x1484   : > { %12161 = vmatprep.subr.bf16.mxu1 %v15291_v54 }
0x1486   : > { %12114 = vmatpush3.bf16.msra.mxu0 %v12851_v12  ;;  %v12875_v12 = vld [vmem:[%s15472_s1 + $0x1660] ss:$8 sps:$4 sm:$0xff]  }
0x1487   : > { %12115 = vmatprep.subr.bf16.mxu0 %v15291_v54 }
0x148a   : > { %12116 = vmatpush3.bf16.msra.mxu0 %v12852_v13 }
0x148b   : > { %12141 = vmatprep.subr.bf16.mxu0 %v15291_v54 }
0x148d   : > { %12118 = vmatmul.mubr.bf16.vlgmr.msra.gmra.mrb[192].mxu0 %v8641_v56 }
0x148e   : > { %12157 = vmatprep.mubr.msk.bf16.mxu0 %vm12893_vm5, %v15291_v54  ;;  %12142 = vmatpush3.bf16.msra.mxu0 %v12853_v52 }
0x148f   : > { %12143 = vmatprep.subr.bf16.mxu0 %v15291_v54 }
0x1492   : > { %12144 = vmatpush3.bf16.msra.mxu0 %v12854_v19 }
0x1493   : > { %12145 = vmatprep.subr.bf16.mxu0 %v15291_v54 }
0x1496   : > { %12146 = vmatpush3.bf16.msra.mxu0 %v12856_v20 }
0x1497   : > { %12147 = vmatprep.subr.bf16.mxu0 %v15291_v54 }
0x149a   : > { %12148 = vmatpush3.bf16.msra.mxu0 %v12858_v22 }
0x149b   : > { %12149 = vmatprep.subr.bf16.mxu0 %v15291_v54 }
0x149e   : > { %12150 = vmatpush3.bf16.msra.mxu0 %v12860_v35 }
0x149f   : > { %12151 = vmatprep.subr.bf16.mxu0 %v15291_v54 }
0x14a2   : > { %12152 = vmatpush3.bf16.msra.mxu0 %v12862_v41 }
0x14a3   : > { %12153 = vmatprep.subr.bf16.mxu0 %v15291_v54 }
0x14a6   : > { %12154 = vmatpush3.bf16.msra.mxu0 %v12864_v45  ;;  %v10630_v45 = vld [vmem:[%s15473_s2 + $0x1c] sm:$0x3] }
0x14a7   : > { %12155 = vmatprep.subr.bf16.mxu0 %v15291_v54 }
0x14aa   : > { %12156 = vmatpush3.bf16.msra.mxu0 %v12866_v49  ;;  %v9109_v49 = vrot.slane %v10630_v45, %v13258_v40 }
0x1539   : > { %v8616_v0 = vpop.f32.mrb[224].mxu1 }
0x153a   : > { %v12099_v29 = vpop.f32.mrb[225].mxu1 }
0x153b   : > { %v8619_v31 = vpop.f32.mrb[226].mxu1 }
0x153c   : > { %v12100_v32 = vpop.f32.mrb[227].mxu1 }
0x153d   : > { %v9117_v32 = vrot.slane %v9113_v61, 1 }
0x1540   : > { %v8527_v16 = vpop.f32.mrb[188].mxu0 }
0x1541   : > { %v8617_v18 = vadd.f32 %v8616_v0, %v8527_v16  ;;  %v12079_v24 = vpop.f32.mrb[189].mxu0  ;;  %v9118_v0 = vrot.slane %v9114_v27, 1 }
0x1542   : > { %v8530_v9 = vpop.f32.mrb[190].mxu0 }
0x1543   : > { %v8620_v50 = vadd.f32 %v8619_v31, %v8530_v9  ;;  %v12080_v11 = vpop.f32.mrb[191].mxu0 }
0x1560   : > { %v8725_v43 = vpop.f32.mrb[192].mxu0 }
0x1561   : > { %v8732_v33 = vadd.f32 %v8725_v43, %v8617_v18  ;;  %v12119_v34 = vpop.f32.mrb[193].mxu0 }
0x1562   : > { %v8728_v36 = vpop.f32.mrb[194].mxu0 }
0x1563   : > { %v8742_v39 = vadd.f32 %v8740_v46, %v8732_v33  ;;  %v8733_v30 = vadd.f32 %v8728_v36, %v8620_v50  ;;  %v12120_v42 = vpop.f32.mrb[195].mxu0  ;;  %v9119_v50 = vsel %vm317_vm3, %v9117_v32, %v9118_v0 }
0x1565   : > { %v8744_v51 = vmax.f32 %v8742_v39, 0.0  ;;  %v8743_v47 = vadd.f32 %v8740_v46, %v8733_v30 }
0x1567   : > { %v8748_v48 = vrot.slane %v8744_v51, 7  ;;  %v8745_v53 = vmax.f32 %v8743_v47, 0.0 }
0x1569   : > { %8753 = vst.msk [vmem:[#allocation3] sm:$0xfe] %vm8002_vm10, %v8748_v48  ;;  %v8749_v4 = vrot.slane %v8745_v53, 7 }
0x156a   : > { %8756 = vst [vmem:[#allocation3 + $0x3] sm:$0x1] %v15291_v54  ;;  %8757 = vst [vmem:[#allocation3 + $0x4] sm:$0x1] %v15291_v54 }
0x156b   : > { %8758 = vst [vmem:[#allocation3 + $0x7] sm:$0x1] %v15291_v54  ;;  %v8750_v57 = vsel %vm272_vm1, %v8748_v48, %v8749_v4 }
0x156c   : > { %8754 = vst.msk [vmem:[#allocation3 + $0x10] sm:$0x7f] %vm8004_vm11, %v8750_v57 }
0x156d   : > { %8759 = vst [vmem:[#allocation3 + $0x10] sm:$0x1] %v15291_v54  ;;  %8760 = vst [vmem:[#allocation3 + $0x13] sm:$0x1] %v15291_v54 }
0x156e   : > { %8761 = vst [vmem:[#allocation3 + $0x14] sm:$0x1] %v15291_v54 }
0x1572   : > { %v8763_v37 = vld [vmem:[#allocation3] sm:$0xff] }
0x1573   : > { %v8766_v44 = vld [vmem:[#allocation3] sm:$0xfe] }
0x1574   : > { %v8769_v15 = vld [vmem:[#allocation3] sm:$0xfc] }
0x1575   : > { %v8764_v58 = vld [vmem:[#allocation3 + $0x10] sm:$0x3f] }
0x1576   : > { %v8767_v59 = vld [vmem:[#allocation3 + $0x10] sm:$0x7f]  ;;  %v8765_v62 = vpack.c.bf16 %v8764_v58, %v8763_v37 }
0x1577   : > { %v8768_v63 = vpack.c.bf16 %v8767_v59, %v8766_v44  ;;  %v8770_v13 = vld [vmem:[#allocation3 + $0x10] sm:$0xff] }
0x1578   : > { %12158 = vmatmul.mubr.bf16.vlgmr.msra.gmra.mrb[196].mxu0 %v8765_v62  ;;  %v8771_v56 = vpack.c.bf16 %v8770_v13, %v8769_v15 }
0x1579   : > { %v8809_v3 = vshll.u32 %v8768_v63, 16  ;;  %v8807_v55 = vshrl.u32 %v8768_v63, 16 }
0x157a   : > { %v9010_v52 = vrot.slane %v8771_v56, 1 }
0x157b   : > { %v8811_v5 = vrot.slane %v8809_v3, 1 }
0x157d   : > { %v8812_v6 = vor.u32 %v8811_v5, %v8807_v55 }
0x157f   : > { %12138 = vmatmul.mubr.bf16.vlgmr.msra.gmra.mrb[228].mxu1 %v8812_v6 }
0x1580   : > { %12162 = vmatpush3.bf16.msra.mxu1 %v12869_v2  ;;  %12177 = vmatprep.mubr.msk.bf16.mxu1 %vm12893_vm5, %v15291_v54 }
0x1581   : > { %12163 = vmatprep.subr.bf16.mxu1 %v15291_v54 }
0x1584   : > { %12164 = vmatpush3.bf16.msra.mxu1 %v12870_v7 }
0x1585   : > { %12165 = vmatprep.subr.bf16.mxu1 %v15291_v54 }
0x1588   : > { %12166 = vmatpush3.bf16.msra.mxu1 %v12871_v1 }
0x1589   : > { %12167 = vmatprep.subr.bf16.mxu1 %v15291_v54 }
0x158c   : > { %12168 = vmatpush3.bf16.msra.mxu1 %v12872_v60 }
0x158d   : > { %12169 = vmatprep.subr.bf16.mxu1 %v15291_v54 }
0x1590   : > { %12170 = vmatpush3.bf16.msra.mxu1 %v12873_v8 }
0x1591   : > { %12171 = vmatprep.subr.bf16.mxu1 %v15291_v54 }
0x1594   : > { %12172 = vmatpush3.bf16.msra.mxu1 %v12874_v10 }
0x1595   : > { %12173 = vmatprep.subr.bf16.mxu1 %v15291_v54 }
0x1598   : > { %12174 = vmatpush3.bf16.msra.mxu1 %v12875_v12 }
0x1599   : > { %12175 = vmatprep.subr.bf16.mxu1 %v15291_v54 }
0x159c   : > { %12176 = vmatpush3.bf16.msra.mxu1 %v12876_v14 }
0x159f   : > { %12178 = vmatmul.mubr.bf16.vlgmr.msra.gmra.mrb[232].mxu1 %v9010_v52 }
0x164b   : > { %v8985_v17 = vpop.f32.mrb[196].mxu0 }
0x164c   : > { %v12159_v19 = vpop.f32.mrb[197].mxu0 }
0x164d   : > { %v8988_v20 = vpop.f32.mrb[198].mxu0 }
0x164e   : > { %v12160_v38 = vpop.f32.mrb[199].mxu0 }
0x1652   : > { %v8896_v22 = vpop.f32.mrb[228].mxu1 }
0x1653   : > { %v8986_v23 = vadd.f32 %v8985_v17, %v8896_v22  ;;  %v12139_v35 = vpop.f32.mrb[229].mxu1 }
0x1654   : > { %v8899_v25 = vpop.f32.mrb[230].mxu1 }
0x1655   : > { %v8989_v41 = vadd.f32 %v8988_v20, %v8899_v25  ;;  %v12140_v26 = vpop.f32.mrb[231].mxu1 }
0x1672   : > { %v9094_v28 = vpop.f32.mrb[232].mxu1 }
0x1673   : > { %v9101_v29 = vadd.f32 %v9094_v28, %v8986_v23  ;;  %v12179_v31 = vpop.f32.mrb[233].mxu1 }
0x1674   : > { %v9097_v16 = vpop.f32.mrb[234].mxu1 }
0x1675   : > { %v9111_v18 = vadd.f32 %v9109_v49, %v9101_v29  ;;  %v9102_v24 = vadd.f32 %v9097_v16, %v8989_v41  ;;  %v12180_v9 = vpop.f32.mrb[235].mxu1 }
0x1677   : > { %v9122_v11 = vadd.f32 %v9119_v50, %v9111_v18  ;;  %v9112_v21 = vadd.f32 %v9109_v49, %v9102_v24 }
0x1679   : > { %v9124_v46 = vmax.f32 %v9122_v11, 0.0  ;;  %v9123_v43 = vadd.f32 %v9118_v0, %v9112_v21 }
0x167b   : > { %v9128_v33 = vrot.slane %v9124_v46, 7  ;;  %v9125_v34 = vmax.f32 %v9123_v43, 0.0 }
0x167d   : > { %9133 = vst.msk [vmem:[#allocation2] sm:$0xfe] %vm8002_vm10, %v9128_v33  ;;  %v9129_v40 = vrot.slane %v9125_v34, 7 }
0x167e   : > { %9136 = vst [vmem:[#allocation2 + $0x3] sm:$0x1] %v15291_v54  ;;  %9137 = vst [vmem:[#allocation2 + $0x4] sm:$0x1] %v15291_v54 }
0x167f   : > { %9138 = vst [vmem:[#allocation2 + $0x7] sm:$0x1] %v15291_v54  ;;  %v9130_v36 = vsel %vm272_vm1, %v9128_v33, %v9129_v40 }
0x1680   : > { %9134 = vst.msk [vmem:[#allocation2 + $0x10] sm:$0x7f] %vm8004_vm11, %v9130_v36 }
0x1681   : > { %9139 = vst [vmem:[#allocation2 + $0x10] sm:$0x1] %v15291_v54  ;;  %9140 = vst [vmem:[#allocation2 + $0x13] sm:$0x1] %v15291_v54 }
0x1682   : > { %9141 = vst [vmem:[#allocation2 + $0x14] sm:$0x1] %v15291_v54 }
0x1684   : > { %v9143_v39 = vld [vmem:[#allocation2] sm:$0x6]  ;;  %v9146_v30 = vld [vmem:[#allocation2] sm:$0x60] }
0x1685   : > { %9145 = vst.msk [vmem:[%s229_s23 - $0x1] sm:$0x6] %vm9144_vm12, %v9143_v39 }
0x1686   : > { %10631 = vst.msk [vmem:[%s229_s23 - $0x3] sm:$0x60] %vm9148_vm13, %v9146_v30 }
0x1687   : > { %v9150_v42 = vld [vmem:[#allocation2 + $0x10] sm:$0x6]  ;;  %v9153_v51 = vld [vmem:[#allocation2 + $0x10] sm:$0x60] }
0x1688   : > { %10632 = vst.msk [vmem:[%s229_s23 + $0x3] sm:$0x6] %vm9144_vm12, %v9150_v42 }
0x1689   : > { %10633 = vst.msk [vmem:[%s229_s23 + $0x1] sm:$0x60] %vm9148_vm13, %v9153_v51 }
0x168a PF: > { %s15_s18 = sadd.s32 1, %s12889_s18  }
0x168b   : > { %p12_p4 = scmp.ge.s32.totalorder %s15_s18, 4  }
0x168d   :  { %14 = sbr.rel (!%p12_p4) target bundleno = 1 (0x1), region = 144 }

</bundles_post_ra>
